<compile_context>
chip_gen: v7x
topology: tpu7x:2x2x1
jax: 0.10.0
libtpu: 0.0.40
codegen_flags: <defaults>
</compile_context>

<pallas_src>
import jax
import jax.numpy as jnp
from jax.experimental import pallas as pl
from jax.experimental.pallas import tpu as pltpu


LAYER_CFG = [  # (C_in, C_out, kernel, pad) — matches the PyTorch module
    (24, 64, 7, 3),
    (64, 128, 5, 2),
    (128, 256, 3, 1),
    (256, 512, 3, 1),
]
NUM_CLASSES = 8   # module-level num_classes in the reference script
EPS = 1e-5
HALO_OFF = 16     # bf16 sublane tile is 16 rows -> aligned body store in the halo scratch


def _vmem_limit_bytes():
    """Generation-aware VMEM budget: ~phys-28MiB, clamped to [32 MiB, 96 MiB]."""
    try:
        cap = int(pltpu.get_tpu_info().vmem_capacity_bytes)
    except Exception:
        return 48 * 1024 * 1024
    return int(min(96 * 1024 * 1024, max(32 * 1024 * 1024, cap - 28 * 1024 * 1024)))


VMEM_LIMIT = _vmem_limit_bytes()


def _const_index_map(ndim):
    return lambda *_: (0,) * ndim


# -----------------------------------------------------------------------------
# Kernel 1: fused conv tower — all four Conv1d+BN+ReLU+MaxPool stages in one
# pallas_call; one grid step per batch element; activations stay in VMEM.
# -----------------------------------------------------------------------------
def conv_tower(patches1, kp):
    # patches1: (N, L, K1*24) bf16 — layer-1 im2col built in the wrapper.
    N, L, cin1 = patches1.shape
    assert L % 16 == 0, "sequence length must be a multiple of 16"
    L2, L3, L4, L16 = L // 2, L // 4, L // 8, L // 16
    c_final = LAYER_CFG[-1][1]

    def kernel(x_ref, w1, s1, b1, w2, s2, b2, w3, s3, b3, w4, s4, b4,
               o_ref, buf2, buf3, buf4):
        # Zero only the halo edges, once: scratch persists across the batch grid and the
        # body rows [HALO_OFF, HALO_OFF+l_in) are fully overwritten every step.
        @pl.when(pl.program_id(0) == 0)
        def _zero_halo_edges():
            for buf, l_in, pad in ((buf2, L2, 2), (buf3, L3, 1), (buf4, L4, 1)):
                cin = buf.shape[1]
                buf[0:HALO_OFF, :] = jnp.zeros((HALO_OFF, cin), jnp.bfloat16)
                buf[HALO_OFF + l_in:HALO_OFF + l_in + pad, :] = (
                    jnp.zeros((pad, cin), jnp.bfloat16))

        def bn_pool_relu(acc, scale, bias, l_out, cout):
            z = acc * scale[...] + bias[...]                      # folded eval-mode BatchNorm
            z = jnp.max(z.reshape(l_out // 2, 2, cout), axis=1)   # MaxPool1d(kernel=2, stride=2)
            return jnp.maximum(z, 0.0)                            # ReLU (commutes with max)

        # ---- layer 1: wrapper-side im2col -> single 168-deep MXU matmul ----
        acc = jnp.dot(x_ref[...], w1[...], preferred_element_type=jnp.float32)   # (L, 64)
        y = bn_pool_relu(acc, s1, b1, L, 64)                                      # (L/2, 64)

        # ---- layer 2: per-tap bf16 matmuls (cin=64; unaligned lane concat avoided) ----
        # TODO(synk): v6e/v7x could merge taps via a zero-padded 128-lane buffer (deeper MXU
        #             contraction); kept per-tap for robustness / v5e parity.
        buf2[HALO_OFF:HALO_OFF + L2, :] = y.astype(jnp.bfloat16)
        acc = jnp.dot(buf2[HALO_OFF - 2:HALO_OFF - 2 + L2, :], w2[0],
                      preferred_element_type=jnp.float32)
        for k in range(1, 5):
            acc += jnp.dot(buf2[HALO_OFF - 2 + k:HALO_OFF - 2 + k + L2, :], w2[k],
                           preferred_element_type=jnp.float32)
        y = bn_pool_relu(acc, s2, b2, L2, 128)                                     # (L/4, 128)

        # ---- layer 3: 128-lane-aligned im2col concat -> one deep matmul ----
        buf3[HALO_OFF:HALO_OFF + L3, :] = y.astype(jnp.bfloat16)
        patches = jnp.concatenate(
            [buf3[HALO_OFF - 1 + k:HALO_OFF - 1 + k + L3, :] for k in range(3)], axis=1)
        acc = jnp.dot(patches, w3[...], preferred_element_type=jnp.float32)
        y = bn_pool_relu(acc, s3, b3, L3, 256)                                     # (L/8, 256)

        # ---- layer 4: 128-lane-aligned im2col concat -> one deep matmul ----
        buf4[HALO_OFF:HALO_OFF + L4, :] = y.astype(jnp.bfloat16)
        patches = jnp.concatenate(
            [buf4[HALO_OFF - 1 + k:HALO_OFF - 1 + k + L4, :] for k in range(3)], axis=1)
        acc = jnp.dot(patches, w4[...], preferred_element_type=jnp.float32)
        y = bn_pool_relu(acc, s4, b4, L4, 512)                                     # (L/16, 512)

        o_ref[...] = y.astype(o_ref.dtype)

    in_specs = [pl.BlockSpec((None, L, cin1), lambda b: (b, 0, 0))]
    args = [patches1]
    for i in range(1, 5):
        w = kp[f"conv{i}_w"]
        s = kp[f"conv{i}_scale"]
        bb = kp[f"conv{i}_bias"]
        args += [w, s, bb]
        in_specs += [
            pl.BlockSpec(w.shape, _const_index_map(w.ndim)),
            pl.BlockSpec(s.shape, _const_index_map(2)),
            pl.BlockSpec(bb.shape, _const_index_map(2)),
        ]

    scratch = [
        pltpu.VMEM((L2 + HALO_OFF + 2, 64), jnp.bfloat16),
        pltpu.VMEM((L3 + HALO_OFF + 1, 128), jnp.bfloat16),
        pltpu.VMEM((L4 + HALO_OFF + 1, 256), jnp.bfloat16),
    ]

    return pl.pallas_call(
        kernel,
        out_shape=jax.ShapeDtypeStruct((N, L16, c_final), jnp.bfloat16),
        grid=(N,),
        in_specs=in_specs,
        out_specs=pl.BlockSpec((None, L16, c_final), lambda b: (b, 0, 0)),
        scratch_shapes=scratch,
        compiler_params=pltpu.CompilerParams(
            dimension_semantics=("parallel",),
            vmem_limit_bytes=VMEM_LIMIT),
    )(*args)


# -----------------------------------------------------------------------------
# Kernel 2: MLP head fc1->fc2->fc3->fc4 (no activations, as in the PyTorch
# forward). fc1 is tiled over its reduction dimension so fc1_w streams from HBM;
# a VMEM f32 accumulator carries the partial fc1 result across grid steps and
# fc2..fc4 run in the final step.
# -----------------------------------------------------------------------------
def mlp_head(x_flat, kp):
    N, D = x_flat.shape
    w1, b1 = kp["fc1_w"], kp["fc1_b"]       # (D, 512) bf16 (rows pre-permuted), (1, 512) f32
    w2, b2 = kp["fc2_w"], kp["fc2_b"]
    w3, b3 = kp["fc3_w"], kp["fc3_b"]
    w4, b4 = kp["fc4_w"], kp["fc4_b"]
    h1 = w1.shape[1]
    n_cls = w4.shape[1]

    c4 = LAYER_CFG[-1][1]                   # 512 reduction rows per conv output position
    l16 = D // c4
    # Largest reduction tile that is a multiple of 512, divides D, and is <= 8192 rows
    # (<= ~8 MiB of bf16 weight per buffer -> 3 buffers fit the v7x budget).
    g = max(d for d in range(1, l16 + 1) if l16 % d == 0 and d * c4 <= 8192)
    td = c4 * g
    n_k = D // td

    def kernel(x_ref, w1_ref, b1_ref, w2_ref, b2_ref, w3_ref, b3_ref,
               w4_ref, b4_ref, o_ref, acc_ref):
        k = pl.program_id(0)

        @pl.when(k == 0)
        def _init():
            acc_ref[...] = jnp.zeros_like(acc_ref)

        acc_ref[...] += jnp.dot(x_ref[...], w1_ref[...],
                                preferred_element_type=jnp.float32)

        @pl.when(k == pl.num_programs(0) - 1)
        def _finalize():
            h = acc_ref[...] + b1_ref[...]
            h = jnp.dot(h.astype(jnp.bfloat16), w2_ref[...],
                        preferred_element_type=jnp.float32) + b2_ref[...]
            h = jnp.dot(h.astype(jnp.bfloat16), w3_ref[...],
                        preferred_element_type=jnp.float32) + b3_ref[...]
            h = jnp.dot(h.astype(jnp.bfloat16), w4_ref[...],
                        preferred_element_type=jnp.float32) + b4_ref[...]
            o_ref[...] = h.astype(o_ref.dtype)

    # Deeper pipelining on the fc1 weight stream hides exposed DMA (GEMV-shaped compute);
    # only worth it when there are enough grid steps.
    if n_k >= 3:
        w1_spec = pl.BlockSpec((td, h1), lambda k: (k, 0), pipeline_mode=pl.Buffered(3))
    else:
        w1_spec = pl.BlockSpec((td, h1), lambda k: (k, 0))

    return pl.pallas_call(
        kernel,
        out_shape=jax.ShapeDtypeStruct((N, n_cls), jnp.float32),
        grid=(n_k,),
        in_specs=[
            pl.BlockSpec((N, td), lambda k: (0, k)),
            w1_spec,
            pl.BlockSpec(b1.shape, _const_index_map(2)),
            pl.BlockSpec(w2.shape, _const_index_map(2)),
            pl.BlockSpec(b2.shape, _const_index_map(2)),
            pl.BlockSpec(w3.shape, _const_index_map(2)),
            pl.BlockSpec(b3.shape, _const_index_map(2)),
            pl.BlockSpec(w4.shape, _const_index_map(2)),
            pl.BlockSpec(b4.shape, _const_index_map(2)),
        ],
        out_specs=pl.BlockSpec((N, n_cls), lambda k: (0, 0)),
        scratch_shapes=[pltpu.VMEM((N, h1), jnp.float32)],
        compiler_params=pltpu.CompilerParams(
            dimension_semantics=("arbitrary",),
            vmem_limit_bytes=VMEM_LIMIT),
    )(x_flat, w1, b1, w2, b2, w3, b3, w4, b4)


# -----------------------------------------------------------------------------
# Parameter construction (deterministic, synthetic) and one-time preprocessing.
# -----------------------------------------------------------------------------
def make_params(key, seq_len):
    params = {}
    for i, (cin, cout, k, _pad) in enumerate(LAYER_CFG, start=1):
        key, k1, k2, k3, k4, k5, k6 = jax.random.split(key, 7)
        w = jax.random.normal(k1, (k, cin, cout), jnp.float32) * (1.0 / (cin * k) ** 0.5)
        conv_b = jax.random.normal(k2, (cout,), jnp.float32) * 0.05
        gamma = 1.0 + 0.1 * jax.random.normal(k3, (cout,), jnp.float32)
        beta = 0.1 * jax.random.normal(k4, (cout,), jnp.float32)
        run_mean = 0.1 * jax.random.normal(k5, (cout,), jnp.float32)
        run_var = jax.random.uniform(k6, (cout,), jnp.float32, 0.5, 1.5)
        scale = gamma / jnp.sqrt(run_var + EPS)                 # eval-mode BN folding
        bias = (conv_b - run_mean) * scale + beta
        params[f"conv{i}_w"] = w
        params[f"conv{i}_scale"] = scale
        params[f"conv{i}_bias"] = bias

    fc_in = LAYER_CFG[-1][1] * (seq_len // 16)   # mirrors _get_conv_output_dim at this L
    dims = [fc_in, 512, 256, 64, NUM_CLASSES]
    for i in range(4):
        key, k1, k2 = jax.random.split(key, 3)
        din, dout = dims[i], dims[i + 1]
        params[f"fc{i+1}_w"] = jax.random.normal(k1, (din, dout), jnp.float32) * (1.0 / din ** 0.5)
        params[f"fc{i+1}_b"] = jax.random.normal(k2, (1, dout), jnp.float32) * 0.05
    return params


def prepare_params(params, seq_len):
    """One-time preprocessing: bf16 weight casts, flat im2col weights for the deep-contraction
    layers (1, 3, 4), and folding the NLC->NCL transpose + flatten into a fc1 row permutation."""
    kp = {}
    for i, (cin, cout, k, _pad) in enumerate(LAYER_CFG, start=1):
        w = params[f"conv{i}_w"]                              # (K, cin, cout) f32
        if i != 2:
            w = w.reshape(k * cin, cout)                      # flat weight for im2col matmul
        kp[f"conv{i}_w"] = w.astype(jnp.bfloat16)
        kp[f"conv{i}_scale"] = params[f"conv{i}_scale"].reshape(1, cout)
        kp[f"conv{i}_bias"] = params[f"conv{i}_bias"].reshape(1, cout)

    l16 = seq_len // 16
    c4 = LAYER_CFG[-1][1]
    # torch flattens channel-major (row = c*L16 + l); our conv output flattens L-major
    # (row = l*C4 + c). Permute fc1's rows once so both forwards are identical.
    w1 = params["fc1_w"].reshape(c4, l16, -1)
    w1 = jnp.transpose(w1, (1, 0, 2)).reshape(l16 * c4, -1)
    kp["fc1_w"] = w1.astype(jnp.bfloat16)
    kp["fc1_b"] = params["fc1_b"]
    for i in range(2, 5):
        kp[f"fc{i}_w"] = params[f"fc{i}_w"].astype(jnp.bfloat16)
        kp[f"fc{i}_b"] = params[f"fc{i}_b"]
    return kp


def _layer1_im2col(x_nlc):
    """Layer-1 im2col in the wrapper: (N, L, 24) f32 -> (N, L, 7*24=168) bf16 patches."""
    _cin, _cout, k1, pad1 = LAYER_CFG[0]
    n, seq, _c = x_nlc.shape
    xp = jnp.pad(x_nlc, ((0, 0), (pad1, pad1), (0, 0)))
    patches = jnp.concatenate([xp[:, k:k + seq, :] for k in range(k1)], axis=2)
    return patches.astype(jnp.bfloat16)


@jax.jit
def simple_cnn_forward(x_ncl, kp):
    # x_ncl: (N, 24, L) — PyTorch NCL layout
    x = jnp.transpose(x_ncl, (0, 2, 1))            # NCL -> NLC once at the boundary
    patches1 = _layer1_im2col(x)                   # cheap: input is only 24 channels
    feats = conv_tower(patches1, kp)               # (N, L/16, 512) bf16, single fused kernel
    x_flat = feats.reshape(feats.shape[0], -1)     # row-major flatten (free); fc1 rows permuted
    return mlp_head(x_flat, kp)


if __name__ == "__main__":
    N, C_IN, L = 2, 24, 128  # small analogue of the (1, 24, 5000) torch input
    key = jax.random.PRNGKey(0)
    key_x, key_p = jax.random.split(key)
    x = jax.random.normal(key_x, (N, C_IN, L), jnp.float32)
    params = make_params(key_p, L)
    kp = prepare_params(params, L)

    out = simple_cnn_forward(x, kp)
    out = jax.block_until_ready(out)
    assert out.shape == (N, NUM_CLASSES), out.shape
    assert bool(jnp.all(jnp.isfinite(out)))
    print("KERNEL_OK")
</pallas_src>

<mosaic_0001>
module attributes {stable_mosaic.version = 11 : i64} {
  func.func @kernel(%arg0: i32, %arg1: memref<2x4096xbf16, #tpu.memory_space<vmem>>, %arg2: memref<4096x512xbf16, #tpu.memory_space<vmem>>, %arg3: memref<1x512xf32, #tpu.memory_space<vmem>>, %arg4: memref<512x256xbf16, #tpu.memory_space<vmem>>, %arg5: memref<1x256xf32, #tpu.memory_space<vmem>>, %arg6: memref<256x64xbf16, #tpu.memory_space<vmem>>, %arg7: memref<1x64xf32, #tpu.memory_space<vmem>>, %arg8: memref<64x8xbf16, #tpu.memory_space<vmem>>, %arg9: memref<1x8xf32, #tpu.memory_space<vmem>>, %arg10: memref<2x8xf32, #tpu.memory_space<vmem>>, %arg11: memref<2x512xf32, #tpu.memory_space<vmem>>) attributes {dimension_semantics = [#tpu.dimension_semantics<arbitrary>], iteration_bounds = array<i64: 1>, scalar_prefetch = 0 : i64, scratch_operands = 1 : i64, tpu.core_type = #tpu.core_type<tc>, window_params = [{transform_indices = @transform_0, window_bounds = array<i64: 2, 4096>}, {transform_indices = @transform_1, window_bounds = array<i64: 4096, 512>}, {pipeline_mode = #tpu.pipeline_mode<synchronous>, transform_indices = @transform_2, window_bounds = array<i64: 1, 512>}, {pipeline_mode = #tpu.pipeline_mode<synchronous>, transform_indices = @transform_3, window_bounds = array<i64: 512, 256>}, {pipeline_mode = #tpu.pipeline_mode<synchronous>, transform_indices = @transform_4, window_bounds = array<i64: 1, 256>}, {pipeline_mode = #tpu.pipeline_mode<synchronous>, transform_indices = @transform_5, window_bounds = array<i64: 256, 64>}, {pipeline_mode = #tpu.pipeline_mode<synchronous>, transform_indices = @transform_6, window_bounds = array<i64: 1, 64>}, {pipeline_mode = #tpu.pipeline_mode<synchronous>, transform_indices = @transform_7, window_bounds = array<i64: 64, 8>}, {pipeline_mode = #tpu.pipeline_mode<synchronous>, transform_indices = @transform_8, window_bounds = array<i64: 1, 8>}, {pipeline_mode = #tpu.pipeline_mode<synchronous>, transform_indices = @transform_9, window_bounds = array<i64: 2, 8>}]} {
    %c0_i32 = arith.constant 0 : i32
    %0 = arith.cmpi eq, %arg0, %c0_i32 : i32
    %1 = arith.extui %0 : i1 to i32
    %c0_i32_0 = arith.constant 0 : i32
    %2 = arith.cmpi ne, %1, %c0_i32_0 : i32
    scf.if %2 {
      %cst_10 = arith.constant 0.000000e+00 : f32
      %12 = vector.broadcast %cst_10 : f32 to vector<2x512xf32>
      %c0_11 = arith.constant 0 : index
      %c0_12 = arith.constant 0 : index
      %13 = vector.load %arg11[%c0_11, %c0_12] : memref<2x512xf32, #tpu.memory_space<vmem>>, vector<2x512xf32>
      tpu.vector_store %arg11[%c0_11, %c0_12], %12 {strides = array<i32>} : memref<2x512xf32, #tpu.memory_space<vmem>>, vector<2x512xf32>,
    } else {
    }
    %c0 = arith.constant 0 : index
    %c0_1 = arith.constant 0 : index
    %3 = vector.load %arg11[%c0, %c0_1] : memref<2x512xf32, #tpu.memory_space<vmem>>, vector<2x512xf32>
    %c0_2 = arith.constant 0 : index
    %c0_3 = arith.constant 0 : index
    %4 = vector.load %arg1[%c0_2, %c0_3] : memref<2x4096xbf16, #tpu.memory_space<vmem>>, vector<2x4096xbf16>
    %c0_4 = arith.constant 0 : index
    %c0_5 = arith.constant 0 : index
    %5 = vector.load %arg2[%c0_4, %c0_5] : memref<4096x512xbf16, #tpu.memory_space<vmem>>, vector<4096x512xbf16>
    %cst = arith.constant dense<0.000000e+00> : vector<2x512xf32>
    %6 = tpu.matmul %4, %5, %cst {dimension_numbers = #tpu.dot_dimension_numbers<[1], [0], [0], [1], [0, 0, 1, 1], [], []>} : vector<2x4096xbf16>, vector<4096x512xbf16>, vector<2x512xf32> -> vector<2x512xf32>
    %7 = arith.addf %3, %6 : vector<2x512xf32>
    %c0_6 = arith.constant 0 : index
    %c0_7 = arith.constant 0 : index
    %8 = vector.load %arg11[%c0_6, %c0_7] : memref<2x512xf32, #tpu.memory_space<vmem>>, vector<2x512xf32>
    tpu.vector_store %arg11[%c0_6, %c0_7], %7 {strides = array<i32>} : memref<2x512xf32, #tpu.memory_space<vmem>>, vector<2x512xf32>,
    %c0_i32_8 = arith.constant 0 : i32
    %9 = arith.cmpi eq, %arg0, %c0_i32_8 : i32
    %10 = arith.extui %9 : i1 to i32
    %c0_i32_9 = arith.constant 0 : i32
    %11 = arith.cmpi ne, %10, %c0_i32_9 : i32
    scf.if %11 {
      %c0_10 = arith.constant 0 : index
      %c0_11 = arith.constant 0 : index
      %12 = vector.load %arg11[%c0_10, %c0_11] : memref<2x512xf32, #tpu.memory_space<vmem>>, vector<2x512xf32>
      %c0_12 = arith.constant 0 : index
      %c0_13 = arith.constant 0 : index
      %13 = vector.load %arg3[%c0_12, %c0_13] : memref<1x512xf32, #tpu.memory_space<vmem>>, vector<1x512xf32>
      %14 = vector.broadcast %13 : vector<1x512xf32> to vector<2x512xf32>
      %15 = arith.addf %12, %14 : vector<2x512xf32>
      %16 = arith.truncf %15 : vector<2x512xf32> to vector<2x512xbf16>
      %c0_14 = arith.constant 0 : index
      %c0_15 = arith.constant 0 : index
      %17 = vector.load %arg4[%c0_14, %c0_15] : memref<512x256xbf16, #tpu.memory_space<vmem>>, vector<512x256xbf16>
      %cst_16 = arith.constant dense<0.000000e+00> : vector<2x256xf32>
      %18 = tpu.matmul %16, %17, %cst_16 {dimension_numbers = #tpu.dot_dimension_numbers<[1], [0], [0], [1], [0, 0, 1, 1], [], []>} : vector<2x512xbf16>, vector<512x256xbf16>, vector<2x256xf32> -> vector<2x256xf32>
      %c0_17 = arith.constant 0 : index
      %c0_18 = arith.constant 0 : index
      %19 = vector.load %arg5[%c0_17, %c0_18] : memref<1x256xf32, #tpu.memory_space<vmem>>, vector<1x256xf32>
      %20 = vector.broadcast %19 : vector<1x256xf32> to vector<2x256xf32>
      %21 = arith.addf %18, %20 : vector<2x256xf32>
      %22 = arith.truncf %21 : vector<2x256xf32> to vector<2x256xbf16>
      %c0_19 = arith.constant 0 : index
      %c0_20 = arith.constant 0 : index
      %23 = vector.load %arg6[%c0_19, %c0_20] : memref<256x64xbf16, #tpu.memory_space<vmem>>, vector<256x64xbf16>
      %cst_21 = arith.constant dense<0.000000e+00> : vector<2x64xf32>
      %24 = tpu.matmul %22, %23, %cst_21 {dimension_numbers = #tpu.dot_dimension_numbers<[1], [0], [0], [1], [0, 0, 1, 1], [], []>} : vector<2x256xbf16>, vector<256x64xbf16>, vector<2x64xf32> -> vector<2x64xf32>
      %c0_22 = arith.constant 0 : index
      %c0_23 = arith.constant 0 : index
      %25 = vector.load %arg7[%c0_22, %c0_23] : memref<1x64xf32, #tpu.memory_space<vmem>>, vector<1x64xf32>
      %26 = vector.broadcast %25 : vector<1x64xf32> to vector<2x64xf32>
      %27 = arith.addf %24, %26 : vector<2x64xf32>
      %28 = arith.truncf %27 : vector<2x64xf32> to vector<2x64xbf16>
      %c0_24 = arith.constant 0 : index
      %c0_25 = arith.constant 0 : index
      %29 = vector.load %arg8[%c0_24, %c0_25] : memref<64x8xbf16, #tpu.memory_space<vmem>>, vector<64x8xbf16>
      %cst_26 = arith.constant dense<0.000000e+00> : vector<2x8xf32>
      %30 = tpu.matmul %28, %29, %cst_26 {dimension_numbers = #tpu.dot_dimension_numbers<[1], [0], [0], [1], [0, 0, 1, 1], [], []>} : vector<2x64xbf16>, vector<64x8xbf16>, vector<2x8xf32> -> vector<2x8xf32>
      %c0_27 = arith.constant 0 : index
      %c0_28 = arith.constant 0 : index
      %31 = vector.load %arg9[%c0_27, %c0_28] : memref<1x8xf32, #tpu.memory_space<vmem>>, vector<1x8xf32>
      %32 = vector.broadcast %31 : vector<1x8xf32> to vector<2x8xf32>
      %33 = arith.addf %30, %32 : vector<2x8xf32>
      %c0_29 = arith.constant 0 : index
      %c0_30 = arith.constant 0 : index
      %34 = vector.load %arg10[%c0_29, %c0_30] : memref<2x8xf32, #tpu.memory_space<vmem>>, vector<2x8xf32>
      tpu.vector_store %arg10[%c0_29, %c0_30], %33 {strides = array<i32>} : memref<2x8xf32, #tpu.memory_space<vmem>>, vector<2x8xf32>,
    } else {
    }
    return
  }
  func.func @transform_0(%arg0: i32) -> (i32, i32) {
    %c0_i32 = arith.constant 0 : i32
    %c0_i32_0 = arith.constant 0 : i32
    return %c0_i32, %arg0 : i32, i32
  }
  func.func @transform_1(%arg0: i32) -> (i32, i32) {
    %c0_i32 = arith.constant 0 : i32
    %c0_i32_0 = arith.constant 0 : i32
    return %arg0, %c0_i32 : i32, i32
  }
  func.func @transform_2(%arg0: i32) -> (i32, i32) {
    %c0_i32 = arith.constant 0 : i32
    %c0_i32_0 = arith.constant 0 : i32
    %c0_i32_1 = arith.constant 0 : i32
    return %c0_i32, %c0_i32_0 : i32, i32
  }
  func.func @transform_3(%arg0: i32) -> (i32, i32) {
    %c0_i32 = arith.constant 0 : i32
    %c0_i32_0 = arith.constant 0 : i32
    %c0_i32_1 = arith.constant 0 : i32
    return %c0_i32, %c0_i32_0 : i32, i32
  }
  func.func @transform_4(%arg0: i32) -> (i32, i32) {
    %c0_i32 = arith.constant 0 : i32
    %c0_i32_0 = arith.constant 0 : i32
    %c0_i32_1 = arith.constant 0 : i32
    return %c0_i32, %c0_i32_0 : i32, i32
  }
  func.func @transform_5(%arg0: i32) -> (i32, i32) {
    %c0_i32 = arith.constant 0 : i32
    %c0_i32_0 = arith.constant 0 : i32
    %c0_i32_1 = arith.constant 0 : i32
    return %c0_i32, %c0_i32_0 : i32, i32
  }
  func.func @transform_6(%arg0: i32) -> (i32, i32) {
    %c0_i32 = arith.constant 0 : i32
    %c0_i32_0 = arith.constant 0 : i32
    %c0_i32_1 = arith.constant 0 : i32
    return %c0_i32, %c0_i32_0 : i32, i32
  }
  func.func @transform_7(%arg0: i32) -> (i32, i32) {
    %c0_i32 = arith.constant 0 : i32
    %c0_i32_0 = arith.constant 0 : i32
    %c0_i32_1 = arith.constant 0 : i32
    return %c0_i32, %c0_i32_0 : i32, i32
  }
  func.func @transform_8(%arg0: i32) -> (i32, i32) {
    %c0_i32 = arith.constant 0 : i32
    %c0_i32_0 = arith.constant 0 : i32
    %c0_i32_1 = arith.constant 0 : i32
    return %c0_i32, %c0_i32_0 : i32, i32
  }
  func.func @transform_9(%arg0: i32) -> (i32, i32) {
    %c0_i32 = arith.constant 0 : i32
    %c0_i32_0 = arith.constant 0 : i32
    %c0_i32_1 = arith.constant 0 : i32
    return %c0_i32, %c0_i32_0 : i32, i32
  }
}

module attributes {stable_mosaic.version = 11 : i64} {
  func.func @kernel(%arg0: i32, %arg1: memref<1x128x168xbf16, #tpu.memory_space<vmem>>, %arg2: memref<168x64xbf16, #tpu.memory_space<vmem>>, %arg3: memref<1x64xf32, #tpu.memory_space<vmem>>, %arg4: memref<1x64xf32, #tpu.memory_space<vmem>>, %arg5: memref<5x64x128xbf16, #tpu.memory_space<vmem>>, %arg6: memref<1x128xf32, #tpu.memory_space<vmem>>, %arg7: memref<1x128xf32, #tpu.memory_space<vmem>>, %arg8: memref<384x256xbf16, #tpu.memory_space<vmem>>, %arg9: memref<1x256xf32, #tpu.memory_space<vmem>>, %arg10: memref<1x256xf32, #tpu.memory_space<vmem>>, %arg11: memref<768x512xbf16, #tpu.memory_space<vmem>>, %arg12: memref<1x512xf32, #tpu.memory_space<vmem>>, %arg13: memref<1x512xf32, #tpu.memory_space<vmem>>, %arg14: memref<1x8x512xbf16, #tpu.memory_space<vmem>>, %arg15: memref<82x64xbf16, #tpu.memory_space<vmem>>, %arg16: memref<49x128xbf16, #tpu.memory_space<vmem>>, %arg17: memref<33x256xbf16, #tpu.memory_space<vmem>>) attributes {dimension_semantics = [#tpu.dimension_semantics<parallel>], iteration_bounds = array<i64: 2>, scalar_prefetch = 0 : i64, scratch_operands = 3 : i64, tpu.core_type = #tpu.core_type<tc>, window_params = [{transform_indices = @transform_0, window_bounds = array<i64: 1, 128, 168>}, {pipeline_mode = #tpu.pipeline_mode<synchronous>, transform_indices = @transform_1, window_bounds = array<i64: 168, 64>}, {pipeline_mode = #tpu.pipeline_mode<synchronous>, transform_indices = @transform_2, window_bounds = array<i64: 1, 64>}, {pipeline_mode = #tpu.pipeline_mode<synchronous>, transform_indices = @transform_3, window_bounds = array<i64: 1, 64>}, {pipeline_mode = #tpu.pipeline_mode<synchronous>, transform_indices = @transform_4, window_bounds = array<i64: 5, 64, 128>}, {pipeline_mode = #tpu.pipeline_mode<synchronous>, transform_indices = @transform_5, window_bounds = array<i64: 1, 128>}, {pipeline_mode = #tpu.pipeline_mode<synchronous>, transform_indices = @transform_6, window_bounds = array<i64: 1, 128>}, {pipeline_mode = #tpu.pipeline_mode<synchronous>, transform_indices = @transform_7, window_bounds = array<i64: 384, 256>}, {pipeline_mode = #tpu.pipeline_mode<synchronous>, transform_indices = @transform_8, window_bounds = array<i64: 1, 256>}, {pipeline_mode = #tpu.pipeline_mode<synchronous>, transform_indices = @transform_9, window_bounds = array<i64: 1, 256>}, {pipeline_mode = #tpu.pipeline_mode<synchronous>, transform_indices = @transform_10, window_bounds = array<i64: 768, 512>}, {pipeline_mode = #tpu.pipeline_mode<synchronous>, transform_indices = @transform_11, window_bounds = array<i64: 1, 512>}, {pipeline_mode = #tpu.pipeline_mode<synchronous>, transform_indices = @transform_12, window_bounds = array<i64: 1, 512>}, {transform_indices = @transform_13, window_bounds = array<i64: 1, 8, 512>}]} {
    %c0_i32 = arith.constant 0 : i32
    %0 = arith.cmpi eq, %arg0, %c0_i32 : i32
    %1 = arith.extui %0 : i1 to i32
    %c0_i32_0 = arith.constant 0 : i32
    %2 = arith.cmpi ne, %1, %c0_i32_0 : i32
    scf.if %2 {
      %cst_77 = arith.constant 0.000000e+00 : bf16
      %93 = vector.broadcast %cst_77 : bf16 to vector<16x64xbf16>
      %c0_78 = arith.constant 0 : index
      %c0_79 = arith.constant 0 : index
      %94 = vector.load %arg15[%c0_78, %c0_79] : memref<82x64xbf16, #tpu.memory_space<vmem>>, vector<16x64xbf16>
      tpu.vector_store %arg15[%c0_78, %c0_79], %93 {strides = array<i32>} : memref<82x64xbf16, #tpu.memory_space<vmem>>, vector<16x64xbf16>,
      %cst_80 = arith.constant 0.000000e+00 : bf16
      %95 = vector.broadcast %cst_80 : bf16 to vector<2x64xbf16>
      %c80 = arith.constant 80 : index
      %c0_81 = arith.constant 0 : index
      %96 = vector.load %arg15[%c80, %c0_81] : memref<82x64xbf16, #tpu.memory_space<vmem>>, vector<2x64xbf16>
      tpu.vector_store %arg15[%c80, %c0_81], %95 {strides = array<i32>} : memref<82x64xbf16, #tpu.memory_space<vmem>>, vector<2x64xbf16>,
      %cst_82 = arith.constant 0.000000e+00 : bf16
      %97 = vector.broadcast %cst_82 : bf16 to vector<16x128xbf16>
      %c0_83 = arith.constant 0 : index
      %c0_84 = arith.constant 0 : index
      %98 = vector.load %arg16[%c0_83, %c0_84] : memref<49x128xbf16, #tpu.memory_space<vmem>>, vector<16x128xbf16>
      tpu.vector_store %arg16[%c0_83, %c0_84], %97 {strides = array<i32>} : memref<49x128xbf16, #tpu.memory_space<vmem>>, vector<16x128xbf16>,
      %cst_85 = arith.constant 0.000000e+00 : bf16
      %99 = vector.broadcast %cst_85 : bf16 to vector<1x128xbf16>
      %c48 = arith.constant 48 : index
      %c0_86 = arith.constant 0 : index
      %100 = vector.load %arg16[%c48, %c0_86] : memref<49x128xbf16, #tpu.memory_space<vmem>>, vector<1x128xbf16>
      tpu.vector_store %arg16[%c48, %c0_86], %99 {strides = array<i32>} : memref<49x128xbf16, #tpu.memory_space<vmem>>, vector<1x128xbf16>,
      %cst_87 = arith.constant 0.000000e+00 : bf16
      %101 = vector.broadcast %cst_87 : bf16 to vector<16x256xbf16>
      %c0_88 = arith.constant 0 : index
      %c0_89 = arith.constant 0 : index
      %102 = vector.load %arg17[%c0_88, %c0_89] : memref<33x256xbf16, #tpu.memory_space<vmem>>, vector<16x256xbf16>
      tpu.vector_store %arg17[%c0_88, %c0_89], %101 {strides = array<i32>} : memref<33x256xbf16, #tpu.memory_space<vmem>>, vector<16x256xbf16>,
      %cst_90 = arith.constant 0.000000e+00 : bf16
      %103 = vector.broadcast %cst_90 : bf16 to vector<1x256xbf16>
      %c32 = arith.constant 32 : index
      %c0_91 = arith.constant 0 : index
      %104 = vector.load %arg17[%c32, %c0_91] : memref<33x256xbf16, #tpu.memory_space<vmem>>, vector<1x256xbf16>
      tpu.vector_store %arg17[%c32, %c0_91], %103 {strides = array<i32>} : memref<33x256xbf16, #tpu.memory_space<vmem>>, vector<1x256xbf16>,
    } else {
    }
    %c0 = arith.constant 0 : index
    %c0_1 = arith.constant 0 : index
    %c0_2 = arith.constant 0 : index
    %3 = vector.load %arg1[%c0, %c0_1, %c0_2] : memref<1x128x168xbf16, #tpu.memory_space<vmem>>, vector<1x128x168xbf16>
    %4 = vector.shape_cast %3 : vector<1x128x168xbf16> to vector<128x168xbf16>
    %c0_3 = arith.constant 0 : index
    %c0_4 = arith.constant 0 : index
    %5 = vector.load %arg2[%c0_3, %c0_4] : memref<168x64xbf16, #tpu.memory_space<vmem>>, vector<168x64xbf16>
    %cst = arith.constant dense<0.000000e+00> : vector<128x64xf32>
    %6 = tpu.matmul %4, %5, %cst {dimension_numbers = #tpu.dot_dimension_numbers<[1], [0], [0], [1], [0, 0, 1, 1], [], []>} : vector<128x168xbf16>, vector<168x64xbf16>, vector<128x64xf32> -> vector<128x64xf32>
    %c0_5 = arith.constant 0 : index
    %c0_6 = arith.constant 0 : index
    %7 = vector.load %arg3[%c0_5, %c0_6] : memref<1x64xf32, #tpu.memory_space<vmem>>, vector<1x64xf32>
    %8 = vector.broadcast %7 : vector<1x64xf32> to vector<128x64xf32>
    %9 = arith.mulf %6, %8 : vector<128x64xf32>
    %c0_7 = arith.constant 0 : index
    %c0_8 = arith.constant 0 : index
    %10 = vector.load %arg4[%c0_7, %c0_8] : memref<1x64xf32, #tpu.memory_space<vmem>>, vector<1x64xf32>
    %11 = vector.broadcast %10 : vector<1x64xf32> to vector<128x64xf32>
    %12 = arith.addf %9, %11 : vector<128x64xf32>
    %13 = vector.shape_cast %12 : vector<128x64xf32> to vector<64x2x64xf32>
    %cst_9 = arith.constant dense<0xFF800000> : vector<64x64xf32>
    %14 = vector.multi_reduction <maximumf>, %13, %cst_9 [1] : vector<64x2x64xf32> to vector<64x64xf32>
    %cst_10 = arith.constant 0.000000e+00 : f32
    %15 = vector.broadcast %cst_10 : f32 to vector<64x64xf32>
    %16 = arith.maximumf %14, %15 : vector<64x64xf32>
    %17 = arith.truncf %16 : vector<64x64xf32> to vector<64x64xbf16>
    %c16 = arith.constant 16 : index
    %c0_11 = arith.constant 0 : index
    %18 = vector.load %arg15[%c16, %c0_11] : memref<82x64xbf16, #tpu.memory_space<vmem>>, vector<64x64xbf16>
    tpu.vector_store %arg15[%c16, %c0_11], %17 {strides = array<i32>} : memref<82x64xbf16, #tpu.memory_space<vmem>>, vector<64x64xbf16>,
    %c14 = arith.constant 14 : index
    %c0_12 = arith.constant 0 : index
    %19 = vector.load %arg15[%c14, %c0_12] : memref<82x64xbf16, #tpu.memory_space<vmem>>, vector<64x64xbf16>
    %c0_13 = arith.constant 0 : index
    %c0_14 = arith.constant 0 : index
    %c0_15 = arith.constant 0 : index
    %20 = vector.load %arg5[%c0_13, %c0_14, %c0_15] : memref<5x64x128xbf16, #tpu.memory_space<vmem>>, vector<1x64x128xbf16>
    %21 = vector.shape_cast %20 : vector<1x64x128xbf16> to vector<64x128xbf16>
    %cst_16 = arith.constant dense<0.000000e+00> : vector<64x128xf32>
    %22 = tpu.matmul %19, %21, %cst_16 {dimension_numbers = #tpu.dot_dimension_numbers<[1], [0], [0], [1], [0, 0, 1, 1], [], []>} : vector<64x64xbf16>, vector<64x128xbf16>, vector<64x128xf32> -> vector<64x128xf32>
    %c15 = arith.constant 15 : index
    %c0_17 = arith.constant 0 : index
    %23 = vector.load %arg15[%c15, %c0_17] : memref<82x64xbf16, #tpu.memory_space<vmem>>, vector<64x64xbf16>
    %c1 = arith.constant 1 : index
    %c0_18 = arith.constant 0 : index
    %c0_19 = arith.constant 0 : index
    %24 = vector.load %arg5[%c1, %c0_18, %c0_19] : memref<5x64x128xbf16, #tpu.memory_space<vmem>>, vector<1x64x128xbf16>
    %25 = vector.shape_cast %24 : vector<1x64x128xbf16> to vector<64x128xbf16>
    %cst_20 = arith.constant dense<0.000000e+00> : vector<64x128xf32>
    %26 = tpu.matmul %23, %25, %cst_20 {dimension_numbers = #tpu.dot_dimension_numbers<[1], [0], [0], [1], [0, 0, 1, 1], [], []>} : vector<64x64xbf16>, vector<64x128xbf16>, vector<64x128xf32> -> vector<64x128xf32>
    %27 = arith.addf %22, %26 : vector<64x128xf32>
    %c16_21 = arith.constant 16 : index
    %c0_22 = arith.constant 0 : index
    %28 = vector.load %arg15[%c16_21, %c0_22] : memref<82x64xbf16, #tpu.memory_space<vmem>>, vector<64x64xbf16>
    %c2 = arith.constant 2 : index
    %c0_23 = arith.constant 0 : index
    %c0_24 = arith.constant 0 : index
    %29 = vector.load %arg5[%c2, %c0_23, %c0_24] : memref<5x64x128xbf16, #tpu.memory_space<vmem>>, vector<1x64x128xbf16>
    %30 = vector.shape_cast %29 : vector<1x64x128xbf16> to vector<64x128xbf16>
    %cst_25 = arith.constant dense<0.000000e+00> : vector<64x128xf32>
    %31 = tpu.matmul %28, %30, %cst_25 {dimension_numbers = #tpu.dot_dimension_numbers<[1], [0], [0], [1], [0, 0, 1, 1], [], []>} : vector<64x64xbf16>, vector<64x128xbf16>, vector<64x128xf32> -> vector<64x128xf32>
    %32 = arith.addf %27, %31 : vector<64x128xf32>
    %c17 = arith.constant 17 : index
    %c0_26 = arith.constant 0 : index
    %33 = vector.load %arg15[%c17, %c0_26] : memref<82x64xbf16, #tpu.memory_space<vmem>>, vector<64x64xbf16>
    %c3 = arith.constant 3 : index
    %c0_27 = arith.constant 0 : index
    %c0_28 = arith.constant 0 : index
    %34 = vector.load %arg5[%c3, %c0_27, %c0_28] : memref<5x64x128xbf16, #tpu.memory_space<vmem>>, vector<1x64x128xbf16>
    %35 = vector.shape_cast %34 : vector<1x64x128xbf16> to vector<64x128xbf16>
    %cst_29 = arith.constant dense<0.000000e+00> : vector<64x128xf32>
    %36 = tpu.matmul %33, %35, %cst_29 {dimension_numbers = #tpu.dot_dimension_numbers<[1], [0], [0], [1], [0, 0, 1, 1], [], []>} : vector<64x64xbf16>, vector<64x128xbf16>, vector<64x128xf32> -> vector<64x128xf32>
    %37 = arith.addf %32, %36 : vector<64x128xf32>
    %c18 = arith.constant 18 : index
    %c0_30 = arith.constant 0 : index
    %38 = vector.load %arg15[%c18, %c0_30] : memref<82x64xbf16, #tpu.memory_space<vmem>>, vector<64x64xbf16>
    %c4 = arith.constant 4 : index
    %c0_31 = arith.constant 0 : index
    %c0_32 = arith.constant 0 : index
    %39 = vector.load %arg5[%c4, %c0_31, %c0_32] : memref<5x64x128xbf16, #tpu.memory_space<vmem>>, vector<1x64x128xbf16>
    %40 = vector.shape_cast %39 : vector<1x64x128xbf16> to vector<64x128xbf16>
    %cst_33 = arith.constant dense<0.000000e+00> : vector<64x128xf32>
    %41 = tpu.matmul %38, %40, %cst_33 {dimension_numbers = #tpu.dot_dimension_numbers<[1], [0], [0], [1], [0, 0, 1, 1], [], []>} : vector<64x64xbf16>, vector<64x128xbf16>, vector<64x128xf32> -> vector<64x128xf32>
    %42 = arith.addf %37, %41 : vector<64x128xf32>
    %c0_34 = arith.constant 0 : index
    %c0_35 = arith.constant 0 : index
    %43 = vector.load %arg6[%c0_34, %c0_35] : memref<1x128xf32, #tpu.memory_space<vmem>>, vector<1x128xf32>
    %44 = vector.broadcast %43 : vector<1x128xf32> to vector<64x128xf32>
    %45 = arith.mulf %42, %44 : vector<64x128xf32>
    %c0_36 = arith.constant 0 : index
    %c0_37 = arith.constant 0 : index
    %46 = vector.load %arg7[%c0_36, %c0_37] : memref<1x128xf32, #tpu.memory_space<vmem>>, vector<1x128xf32>
    %47 = vector.broadcast %46 : vector<1x128xf32> to vector<64x128xf32>
    %48 = arith.addf %45, %47 : vector<64x128xf32>
    %49 = vector.shape_cast %48 : vector<64x128xf32> to vector<32x2x128xf32>
    %cst_38 = arith.constant dense<0xFF800000> : vector<32x128xf32>
    %50 = vector.multi_reduction <maximumf>, %49, %cst_38 [1] : vector<32x2x128xf32> to vector<32x128xf32>
    %cst_39 = arith.constant 0.000000e+00 : f32
    %51 = vector.broadcast %cst_39 : f32 to vector<32x128xf32>
    %52 = arith.maximumf %50, %51 : vector<32x128xf32>
    %53 = arith.truncf %52 : vector<32x128xf32> to vector<32x128xbf16>
    %c16_40 = arith.constant 16 : index
    %c0_41 = arith.constant 0 : index
    %54 = vector.load %arg16[%c16_40, %c0_41] : memref<49x128xbf16, #tpu.memory_space<vmem>>, vector<32x128xbf16>
    tpu.vector_store %arg16[%c16_40, %c0_41], %53 {strides = array<i32>} : memref<49x128xbf16, #tpu.memory_space<vmem>>, vector<32x128xbf16>,
    %c15_42 = arith.constant 15 : index
    %c0_43 = arith.constant 0 : index
    %55 = vector.load %arg16[%c15_42, %c0_43] : memref<49x128xbf16, #tpu.memory_space<vmem>>, vector<32x128xbf16>
    %c16_44 = arith.constant 16 : index
    %c0_45 = arith.constant 0 : index
    %56 = vector.load %arg16[%c16_44, %c0_45] : memref<49x128xbf16, #tpu.memory_space<vmem>>, vector<32x128xbf16>
    %c17_46 = arith.constant 17 : index
    %c0_47 = arith.constant 0 : index
    %57 = vector.load %arg16[%c17_46, %c0_47] : memref<49x128xbf16, #tpu.memory_space<vmem>>, vector<32x128xbf16>
    %58 = tpu.concatenate %55, %56, %57 in 1 : vector<32x128xbf16>, vector<32x128xbf16>, vector<32x128xbf16> -> vector<32x384xbf16>
    %c0_48 = arith.constant 0 : index
    %c0_49 = arith.constant 0 : index
    %59 = vector.load %arg8[%c0_48, %c0_49] : memref<384x256xbf16, #tpu.memory_space<vmem>>, vector<384x256xbf16>
    %cst_50 = arith.constant dense<0.000000e+00> : vector<32x256xf32>
    %60 = tpu.matmul %58, %59, %cst_50 {dimension_numbers = #tpu.dot_dimension_numbers<[1], [0], [0], [1], [0, 0, 1, 1], [], []>} : vector<32x384xbf16>, vector<384x256xbf16>, vector<32x256xf32> -> vector<32x256xf32>
    %c0_51 = arith.constant 0 : index
    %c0_52 = arith.constant 0 : index
    %61 = vector.load %arg9[%c0_51, %c0_52] : memref<1x256xf32, #tpu.memory_space<vmem>>, vector<1x256xf32>
    %62 = vector.broadcast %61 : vector<1x256xf32> to vector<32x256xf32>
    %63 = arith.mulf %60, %62 : vector<32x256xf32>
    %c0_53 = arith.constant 0 : index
    %c0_54 = arith.constant 0 : index
    %64 = vector.load %arg10[%c0_53, %c0_54] : memref<1x256xf32, #tpu.memory_space<vmem>>, vector<1x256xf32>
    %65 = vector.broadcast %64 : vector<1x256xf32> to vector<32x256xf32>
    %66 = arith.addf %63, %65 : vector<32x256xf32>
    %67 = vector.shape_cast %66 : vector<32x256xf32> to vector<16x2x256xf32>
    %cst_55 = arith.constant dense<0xFF800000> : vector<16x256xf32>
    %68 = vector.multi_reduction <maximumf>, %67, %cst_55 [1] : vector<16x2x256xf32> to vector<16x256xf32>
    %cst_56 = arith.constant 0.000000e+00 : f32
    %69 = vector.broadcast %cst_56 : f32 to vector<16x256xf32>
    %70 = arith.maximumf %68, %69 : vector<16x256xf32>
    %71 = arith.truncf %70 : vector<16x256xf32> to vector<16x256xbf16>
    %c16_57 = arith.constant 16 : index
    %c0_58 = arith.constant 0 : index
    %72 = vector.load %arg17[%c16_57, %c0_58] : memref<33x256xbf16, #tpu.memory_space<vmem>>, vector<16x256xbf16>
    tpu.vector_store %arg17[%c16_57, %c0_58], %71 {strides = array<i32>} : memref<33x256xbf16, #tpu.memory_space<vmem>>, vector<16x256xbf16>,
    %c15_59 = arith.constant 15 : index
    %c0_60 = arith.constant 0 : index
    %73 = vector.load %arg17[%c15_59, %c0_60] : memref<33x256xbf16, #tpu.memory_space<vmem>>, vector<16x256xbf16>
    %c16_61 = arith.constant 16 : index
    %c0_62 = arith.constant 0 : index
    %74 = vector.load %arg17[%c16_61, %c0_62] : memref<33x256xbf16, #tpu.memory_space<vmem>>, vector<16x256xbf16>
    %c17_63 = arith.constant 17 : index
    %c0_64 = arith.constant 0 : index
    %75 = vector.load %arg17[%c17_63, %c0_64] : memref<33x256xbf16, #tpu.memory_space<vmem>>, vector<16x256xbf16>
    %76 = tpu.concatenate %73, %74, %75 in 1 : vector<16x256xbf16>, vector<16x256xbf16>, vector<16x256xbf16> -> vector<16x768xbf16>
    %c0_65 = arith.constant 0 : index
    %c0_66 = arith.constant 0 : index
    %77 = vector.load %arg11[%c0_65, %c0_66] : memref<768x512xbf16, #tpu.memory_space<vmem>>, vector<768x512xbf16>
    %cst_67 = arith.constant dense<0.000000e+00> : vector<16x512xf32>
    %78 = tpu.matmul %76, %77, %cst_67 {dimension_numbers = #tpu.dot_dimension_numbers<[1], [0], [0], [1], [0, 0, 1, 1], [], []>} : vector<16x768xbf16>, vector<768x512xbf16>, vector<16x512xf32> -> vector<16x512xf32>
    %c0_68 = arith.constant 0 : index
    %c0_69 = arith.constant 0 : index
    %79 = vector.load %arg12[%c0_68, %c0_69] : memref<1x512xf32, #tpu.memory_space<vmem>>, vector<1x512xf32>
    %80 = vector.broadcast %79 : vector<1x512xf32> to vector<16x512xf32>
    %81 = arith.mulf %78, %80 : vector<16x512xf32>
    %c0_70 = arith.constant 0 : index
    %c0_71 = arith.constant 0 : index
    %82 = vector.load %arg13[%c0_70, %c0_71] : memref<1x512xf32, #tpu.memory_space<vmem>>, vector<1x512xf32>
    %83 = vector.broadcast %82 : vector<1x512xf32> to vector<16x512xf32>
    %84 = arith.addf %81, %83 : vector<16x512xf32>
    %85 = vector.shape_cast %84 : vector<16x512xf32> to vector<8x2x512xf32>
    %cst_72 = arith.constant dense<0xFF800000> : vector<8x512xf32>
    %86 = vector.multi_reduction <maximumf>, %85, %cst_72 [1] : vector<8x2x512xf32> to vector<8x512xf32>
    %cst_73 = arith.constant 0.000000e+00 : f32
    %87 = vector.broadcast %cst_73 : f32 to vector<8x512xf32>
    %88 = arith.maximumf %86, %87 : vector<8x512xf32>
    %89 = arith.truncf %88 : vector<8x512xf32> to vector<8x512xbf16>
    %c0_74 = arith.constant 0 : index
    %c0_75 = arith.constant 0 : index
    %c0_76 = arith.constant 0 : index
    %90 = vector.load %arg14[%c0_74, %c0_75, %c0_76] : memref<1x8x512xbf16, #tpu.memory_space<vmem>>, vector<1x8x512xbf16>
    %91 = vector.shape_cast %90 : vector<1x8x512xbf16> to vector<8x512xbf16>
    %92 = vector.shape_cast %89 : vector<8x512xbf16> to vector<1x8x512xbf16>
    tpu.vector_store %arg14[%c0_74, %c0_75, %c0_76], %92 {strides = array<i32>} : memref<1x8x512xbf16, #tpu.memory_space<vmem>>, vector<1x8x512xbf16>,
    return
  }
  func.func @transform_0(%arg0: i32) -> (i32, i32, i32) {
    %c0_i32 = arith.constant 0 : i32
    %c0_i32_0 = arith.constant 0 : i32
    %c0_i32_1 = arith.constant 0 : i32
    return %arg0, %c0_i32, %c0_i32_0 : i32, i32, i32
  }
  func.func @transform_1(%arg0: i32) -> (i32, i32) {
    %c0_i32 = arith.constant 0 : i32
    %c0_i32_0 = arith.constant 0 : i32
    %c0_i32_1 = arith.constant 0 : i32
    return %c0_i32, %c0_i32_0 : i32, i32
  }
  func.func @transform_2(%arg0: i32) -> (i32, i32) {
    %c0_i32 = arith.constant 0 : i32
    %c0_i32_0 = arith.constant 0 : i32
    %c0_i32_1 = arith.constant 0 : i32
    return %c0_i32, %c0_i32_0 : i32, i32
  }
  func.func @transform_3(%arg0: i32) -> (i32, i32) {
    %c0_i32 = arith.constant 0 : i32
    %c0_i32_0 = arith.constant 0 : i32
    %c0_i32_1 = arith.constant 0 : i32
    return %c0_i32, %c0_i32_0 : i32, i32
  }
  func.func @transform_4(%arg0: i32) -> (i32, i32, i32) {
    %c0_i32 = arith.constant 0 : i32
    %c0_i32_0 = arith.constant 0 : i32
    %c0_i32_1 = arith.constant 0 : i32
    %c0_i32_2 = arith.constant 0 : i32
    return %c0_i32, %c0_i32_0, %c0_i32_1 : i32, i32, i32
  }
  func.func @transform_5(%arg0: i32) -> (i32, i32) {
    %c0_i32 = arith.constant 0 : i32
    %c0_i32_0 = arith.constant 0 : i32
    %c0_i32_1 = arith.constant 0 : i32
    return %c0_i32, %c0_i32_0 : i32, i32
  }
  func.func @transform_6(%arg0: i32) -> (i32, i32) {
    %c0_i32 = arith.constant 0 : i32
    %c0_i32_0 = arith.constant 0 : i32
    %c0_i32_1 = arith.constant 0 : i32
    return %c0_i32, %c0_i32_0 : i32, i32
  }
  func.func @transform_7(%arg0: i32) -> (i32, i32) {
    %c0_i32 = arith.constant 0 : i32
    %c0_i32_0 = arith.constant 0 : i32
    %c0_i32_1 = arith.constant 0 : i32
    return %c0_i32, %c0_i32_0 : i32, i32
  }
  func.func @transform_8(%arg0: i32) -> (i32, i32) {
    %c0_i32 = arith.constant 0 : i32
    %c0_i32_0 = arith.constant 0 : i32
    %c0_i32_1 = arith.constant 0 : i32
    return %c0_i32, %c0_i32_0 : i32, i32
  }
  func.func @transform_9(%arg0: i32) -> (i32, i32) {
    %c0_i32 = arith.constant 0 : i32
    %c0_i32_0 = arith.constant 0 : i32
    %c0_i32_1 = arith.constant 0 : i32
    return %c0_i32, %c0_i32_0 : i32, i32
  }
  func.func @transform_10(%arg0: i32) -> (i32, i32) {
    %c0_i32 = arith.constant 0 : i32
    %c0_i32_0 = arith.constant 0 : i32
    %c0_i32_1 = arith.constant 0 : i32
    return %c0_i32, %c0_i32_0 : i32, i32
  }
  func.func @transform_11(%arg0: i32) -> (i32, i32) {
    %c0_i32 = arith.constant 0 : i32
    %c0_i32_0 = arith.constant 0 : i32
    %c0_i32_1 = arith.constant 0 : i32
    return %c0_i32, %c0_i32_0 : i32, i32
  }
  func.func @transform_12(%arg0: i32) -> (i32, i32) {
    %c0_i32 = arith.constant 0 : i32
    %c0_i32_0 = arith.constant 0 : i32
    %c0_i32_1 = arith.constant 0 : i32
    return %c0_i32, %c0_i32_0 : i32, i32
  }
  func.func @transform_13(%arg0: i32) -> (i32, i32, i32) {
    %c0_i32 = arith.constant 0 : i32
    %c0_i32_0 = arith.constant 0 : i32
    %c0_i32_1 = arith.constant 0 : i32
    return %arg0, %c0_i32, %c0_i32_0 : i32, i32, i32
  }
}

</mosaic_0001>

<bundles_post_ra>
// kernel: simple_cnn_forward.2
= control target key start
LH: loop header
LB: loop body
LE: loop exit
PB: predicated region body
PF: predicated region fallthrough
CT: control target
= control target key end

     0   :  { %s10473_s0 = inlined_call_operand.vmem [shape: bf16[2,128,168], index: 0, kind: input, shape index: {}]   ;;  %s10474_s1 = inlined_call_operand.vmem [shape: bf16[168,64], index: 1, kind: input, shape index: {}]   ;;  %s10475_s2 = inlined_call_operand.hbm [shape: f32[1,64], index: 2, kind: input, shape index: {}]   ;;  %s10476_s3 = inlined_call_operand.hbm [shape: f32[1,64], index: 3, kind: input, shape index: {}]   ;;  %s10477_s4 = inlined_call_operand.hbm [shape: bf16[5,64,128], index: 4, kind: input, shape index: {}]   ;;  %s10478_s5 = inlined_call_operand.hbm [shape: f32[1,128], index: 5, kind: input, shape index: {}]   ;;  %s10479_s6 = inlined_call_operand.hbm [shape: f32[1,128], index: 6, kind: input, shape index: {}]   ;;  %s10480_s7 = inlined_call_operand.hbm [shape: bf16[384,256], index: 7, kind: input, shape index: {}]   ;;  %s10481_s8 = inlined_call_operand.hbm [shape: f32[1,256], index: 8, kind: input, shape index: {}]   ;;  %s10482_s9 = inlined_call_operand.hbm [shape: f32[1,256], index: 9, kind: input, shape index: {}]   ;;  %s10483_s10 = inlined_call_operand.hbm [shape: bf16[768,512], index: 10, kind: input, shape index: {}]   ;;  %s10484_s11 = inlined_call_operand.hbm [shape: f32[1,512], index: 11, kind: input, shape index: {}]   ;;  %s10485_s12 = inlined_call_operand.hbm [shape: f32[1,512], index: 12, kind: input, shape index: {}]   ;;  %s10486_s13 = inlined_call_operand.vmem [shape: bf16[2,8,512], index: 13, kind: output, shape index: {}]  }
   0x1   :  { %10490 = sst [smem:[#allocation29_spill]] %s10475_s2 }
   0x2   :  { %18 = vsyncpa [#allocation6], 0 }
   0x3   :  { %19 = vsyncpa [#allocation8], 0 }
   0x4   :  { %20 = vsyncpa [#allocation11], 0 }
   0x5   :  { %21 = vsyncpa [#allocation14], 0 }
   0x6   :  { %22 = vsyncpa [#allocation17], 0 }
   0x7   :  { %23 = vsyncpa [#allocation20], 0  ;;  %s9164_s25 = smov 0  }
   0x8 LB: > { %10491 = sst [smem:[#allocation28_spill]] %s9072_s25  ;;  %s9074_s26 = smov [#allocation7]   ;;  %s9072_s25 = sphi %s9164_s25, %s29_s25  }
   0x9   : > { %s365_s27 = sshll.u32 %s9074_s26, 4  ;;  %s9170_s28 = sadd.s32 4294967295, %s9072_s25   ;;  %s9176_s27 = int_to_ptr.vmem [resolvable:$true] %s365_s27 }
   0xa   : > { %p7338_p0 = scmp.ge.s32.totalorder %s9072_s25, 1  ;;  %p338_p1 = scmp.lt.s32.totalorder %s9072_s25, 3 }
   0xb   : > { %p10488_p3 = scmp.eq.s32.totalorder %s9170_s28, 0  ;;  %s9075_s30 = smov [#allocation10]  }
   0xc   : > { %p9178_p4 = pnand %p7338_p0, %p338_p1  ;;  %s389_s14 = sshll.u32 %s9075_s30, 4  ;;  %s9184_s14 = int_to_ptr.vmem [resolvable:$true] %s389_s14 }
   0xd   : > { %s9076_s15 = smov [#allocation13]   ;;  %s9077_s18 = smov [#allocation16]  }
   0xe   : > { %s10492_s29 = scalar_select %p9178_p4, 1, 0 }
   0xf   : > { %p8205_p5 = pneg %p9178_p4  ;;  %s410_s16 = sshll.u32 %s9076_s15, 4  ;;  %s9192_s16 = int_to_ptr.vmem [resolvable:$true] %s410_s16 }
  0x10   : > { %s9194_s19 = sshll.u32 %s9077_s18, 4  ;;  %s8734_s22 = scalar_lea.hbm %s10476_s3, 16  ;;  %s436_s19 = int_to_ptr.vmem [resolvable:$true] %s9194_s19 }
  0x11   : > { %p9188_p6 = pnand %p10488_p3, %p8205_p5  ;;  %p8735_p7 = scmp.ne.s32.totalorder %s10476_s3, %s8734_s22 }
  0x12   : > { %p8741_p11 = scmp.lt.u32.totalorder %s8734_s22, %s10476_s3 }
  0x13   : > { %p9204_p8 = pneg %p9188_p6 }
  0x15   : > { %p8737_p9 = pnand %p9204_p8, %p8735_p7 }
  0x17   : > { %p8738_p10 = pneg %p8737_p9 }
  0x19   : > { %p8743_p12 = pnand %p8741_p11, %p8738_p10 }
  0x1b   : > { %8746 = shalt.err (!%p8743_p12)
}
  0x1c   : > { %s8747_s18 = scalar_lea.vmem %s9176_s27, 16  ;;  %s8754_s20 = scalar_lea.vmem %s9176_s27, 32 }
  0x1d   : > { %p8748_p13 = scmp.ne.s32.totalorder %s9176_s27, %s8747_s18  ;;  %p8755_p5 = scmp.lt.s32.totalorder %s9176_s27, %s9176_s27 }
  0x1e   : > { %p8756_p7 = scmp.lt.s32.totalorder %s8754_s20, %s8747_s18 }
  0x1f   : > { %p8750_p0 = pnand %p8748_p13, %p9204_p8 }
  0x20   : > { %p8757_p9 = por %p8756_p7, %p8755_p5 }
  0x21   : > { %p8751_p1 = pneg %p8750_p0 }
  0x23   : > { %p8758_p2 = pnand %p8757_p9, %p8751_p1 }
  0x25   : > { %8761 = shalt.err (!%p8758_p2)
}
  0x26   : > { %8211 = dma.hbm_to_vmem [thread:$0]  (!%p9188_p6), %s10476_s3, 16, %s9176_s27, [#allocation8]  }
  0x27   : > { %s8762_s30 = scalar_lea.hbm %s10478_s5, 16 }
  0x28   : > { %p8763_p10 = scmp.ne.s32.totalorder %s10478_s5, %s8762_s30  ;;  %p8769_p2 = scmp.lt.u32.totalorder %s8762_s30, %s10478_s5 }
  0x2a   : > { %p8765_p11 = pnand %p8763_p10, %p9204_p8 }
  0x2c   : > { %p8766_p12 = pneg %p8765_p11 }
  0x2e   : > { %p8771_p13 = pnand %p8769_p2, %p8766_p12 }
  0x30   : > { %8774 = shalt.err (!%p8771_p13)
}
  0x31   : > { %s8775_s27 = scalar_lea.vmem %s9184_s14, 16  ;;  %s8782_s25 = scalar_lea.vmem %s9184_s14, 32 }
  0x32   : > { %p8776_p0 = scmp.ne.s32.totalorder %s9184_s14, %s8775_s27  ;;  %p8783_p7 = scmp.lt.s32.totalorder %s9184_s14, %s9184_s14 }
  0x33   : > { %p8784_p9 = scmp.lt.s32.totalorder %s8782_s25, %s8775_s27 }
  0x34   : > { %p8778_p1 = pnand %p8776_p0, %p9204_p8 }
  0x35   : > { %p8785_p10 = por %p8784_p9, %p8783_p7 }
  0x36   : > { %p8779_p5 = pneg %p8778_p1 }
  0x38   : > { %p8786_p11 = pnand %p8785_p10, %p8779_p5 }
  0x3a   : > { %8789 = shalt.err (!%p8786_p11)
}
  0x3b   : > { %8217 = dma.hbm_to_vmem [thread:$0]  (!%p9188_p6), %s10478_s5, 16, %s9184_s14, [#allocation11]  }
  0x3c   : > { %s8790_s30 = scalar_lea.hbm %s10480_s7, 6144 }
  0x3d   : > { %p8791_p12 = scmp.ne.s32.totalorder %s10480_s7, %s8790_s30  ;;  %p8797_p0 = scmp.lt.u32.totalorder %s8790_s30, %s10480_s7 }
  0x3f   : > { %p8793_p2 = pnand %p8791_p12, %p9204_p8 }
  0x41   : > { %p8794_p13 = pneg %p8793_p2 }
  0x43   : > { %p8799_p1 = pnand %p8797_p0, %p8794_p13 }
  0x45   : > { %8802 = shalt.err (!%p8799_p1)
}
  0x46   : > { %s8803_s14 = scalar_lea.vmem %s9192_s16, 6144  ;;  %p8811_p10 = scmp.lt.s32.totalorder %s9192_s16, %s9192_s16 }
  0x47   : > { %p8804_p5 = scmp.ne.s32.totalorder %s9192_s16, %s8803_s14  ;;  %p8812_p11 = scmp.lt.s32.totalorder %s8803_s14, %s8803_s14 }
  0x49   : > { %p8806_p7 = pnand %p8804_p5, %p9204_p8  ;;  %p8813_p12 = por %p8812_p11, %p8811_p10 }
  0x4b   : > { %p8807_p9 = pneg %p8806_p7 }
  0x4d   : > { %p8814_p2 = pnand %p8813_p12, %p8807_p9 }
  0x4f   : > { %8817 = shalt.err (!%p8814_p2)
}
  0x50   : > { %s9078_s25 = smov 128   ;;  %s9079_s21 = smov 8  }
  0x51   : > { %8223 = dma.hbm_to_vmem [thread:$0]  (!%p9188_p6), %s10480_s7, 6144, %s9192_s16, [#allocation14], %s9078_s25, %s9078_s25, %s9079_s21  }
  0x52   : > { %s8818_s15 = scalar_lea.hbm %s10482_s9, 32 }
  0x53   : > { %p8819_p13 = scmp.ne.s32.totalorder %s10482_s9, %s8818_s15  ;;  %p8825_p5 = scmp.lt.u32.totalorder %s8818_s15, %s10482_s9 }
  0x55   : > { %p8821_p0 = pnand %p8819_p13, %p9204_p8 }
  0x57   : > { %p8822_p1 = pneg %p8821_p0 }
  0x59   : > { %p8827_p7 = pnand %p8825_p5, %p8822_p1 }
  0x5b   : > { %8830 = shalt.err (!%p8827_p7)
}
  0x5c   : > { %s8831_s22 = scalar_lea.vmem %s436_s19, 32  ;;  %p8839_p12 = scmp.lt.s32.totalorder %s436_s19, %s436_s19 }
  0x5d   : > { %p8832_p9 = scmp.ne.s32.totalorder %s436_s19, %s8831_s22  ;;  %p8840_p2 = scmp.lt.s32.totalorder %s8831_s22, %s8831_s22 }
  0x5f   : > { %p8834_p10 = pnand %p8832_p9, %p9204_p8  ;;  %p8841_p3 = por %p8840_p2, %p8839_p12 }
  0x61   : > { %p8835_p11 = pneg %p8834_p10 }
  0x63   : > { %p8842_p4 = pnand %p8841_p3, %p8835_p11 }
  0x65   : > { %8845 = shalt.err (!%p8842_p4)
}
  0x66   : > { %8229 = dma.hbm_to_vmem [thread:$0]  (!%p9188_p6), %s10482_s9, 32, %s436_s19, [#allocation17]  }
  0x67   : > { %s9080_s21 = smov [#allocation19]   ;;  %s9081_s24 = smov [#allocation5]  }
  0x68   : > { %s459_s23 = sshll.u32 %s9080_s21, 4  ;;  %s354_s30 = sshll.u32 %s9081_s24, 4  ;;  %s460_s23 = int_to_ptr.vmem [resolvable:$true] %s459_s23  ;;  %s355_s30 = int_to_ptr.vmem [resolvable:$true] %s354_s30 }
  0x69   : > { %s8846_s20 = scalar_lea.hbm %s10484_s11, 64 }
  0x6a   : > { %p8847_p3 = scmp.ne.s32.totalorder %s10484_s11, %s8846_s20  ;;  %p8853_p0 = scmp.lt.u32.totalorder %s8846_s20, %s10484_s11 }
  0x6c   : > { %p8849_p4 = pnand %p8847_p3, %p9204_p8 }
  0x6e   : > { %p8850_p13 = pneg %p8849_p4 }
  0x70   : > { %p8855_p1 = pnand %p8853_p0, %p8850_p13 }
  0x72   : > { %8858 = shalt.err (!%p8855_p1)
}
  0x73   : > { %s8859_s19 = scalar_lea.vmem %s460_s23, 64  ;;  %p8867_p10 = scmp.lt.s32.totalorder %s460_s23, %s460_s23 }
  0x74   : > { %p8860_p5 = scmp.ne.s32.totalorder %s460_s23, %s8859_s19  ;;  %p8868_p11 = scmp.lt.s32.totalorder %s8859_s19, %s8859_s19 }
  0x76   : > { %p8862_p7 = pnand %p8860_p5, %p9204_p8  ;;  %p8869_p12 = por %p8868_p11, %p8867_p10 }
  0x78   : > { %p8863_p9 = pneg %p8862_p7 }
  0x7a   : > { %p8870_p2 = pnand %p8869_p12, %p8863_p9 }
  0x7c   : > { %8873 = shalt.err (!%p8870_p2)
}
  0x7d   : > { %8235 = dma.hbm_to_vmem [thread:$0]  (!%p9188_p6), %s10484_s11, 64, %s460_s23, [#allocation20]  }
  0x7e   : > { %s10495_s2 = sld [smem:[#allocation29_spill]] }
  0x84   : > { %s8874_s18 = scalar_lea.hbm %s10495_s2, 16 }
  0x85   : > { %p8875_p3 = scmp.ne.s32.totalorder %s10495_s2, %s8874_s18  ;;  %p8881_p0 = scmp.lt.u32.totalorder %s8874_s18, %s10495_s2 }
  0x87   : > { %p8877_p4 = pnand %p8875_p3, %p9204_p8 }
  0x89   : > { %p8878_p13 = pneg %p8877_p4 }
  0x8b   : > { %p8883_p1 = pnand %p8881_p0, %p8878_p13 }
  0x8d   : > { %8886 = shalt.err (!%p8883_p1)
}
  0x8e   : > { %s8887_s16 = scalar_lea.vmem %s355_s30, 16  ;;  %s8894_s23 = scalar_lea.vmem %s355_s30, 32 }
  0x8f   : > { %p8888_p5 = scmp.ne.s32.totalorder %s355_s30, %s8887_s16  ;;  %p8895_p10 = scmp.lt.s32.totalorder %s355_s30, %s355_s30 }
  0x90   : > { %p8896_p11 = scmp.lt.s32.totalorder %s8894_s23, %s8887_s16 }
  0x91   : > { %p8890_p7 = pnand %p8888_p5, %p9204_p8 }
  0x92   : > { %p8897_p12 = por %p8896_p11, %p8895_p10 }
  0x93   : > { %p8891_p9 = pneg %p8890_p7 }
  0x95   : > { %p8898_p2 = pnand %p8897_p12, %p8891_p9 }
  0x97   : > { %8901 = shalt.err (!%p8898_p2)
}
  0x98   : > { %8208 = dma.hbm_to_vmem [thread:$0]  (!%p9188_p6), %s10495_s2, 16, %s355_s30, [#allocation6]  }
  0x99   : > { %s9082_s21 = smov [#allocation9]   ;;  %s8902_s20 = scalar_lea.hbm %s10477_s4, 2560 }
  0x9a   : > { %s375_s24 = sshll.u32 %s9082_s21, 4  ;;  %p8903_p3 = scmp.ne.s32.totalorder %s10477_s4, %s8902_s20  ;;  %s376_s24 = int_to_ptr.vmem [resolvable:$true] %s375_s24 }
  0x9b   : > { %p8909_p0 = scmp.lt.u32.totalorder %s8902_s20, %s10477_s4 }
  0x9c   : > { %p8905_p4 = pnand %p8903_p3, %p9204_p8 }
  0x9e   : > { %p8906_p13 = pneg %p8905_p4 }
  0xa0   : > { %p8911_p1 = pnand %p8909_p0, %p8906_p13 }
  0xa2   : > { %8914 = shalt.err (!%p8911_p1)
}
  0xa3   : > { %s8915_s30 = scalar_lea.vmem %s376_s24, 2560  ;;  %p8923_p10 = scmp.lt.s32.totalorder %s376_s24, %s376_s24 }
  0xa4   : > { %p8916_p5 = scmp.ne.s32.totalorder %s376_s24, %s8915_s30  ;;  %p8924_p11 = scmp.lt.s32.totalorder %s8915_s30, %s8915_s30 }
  0xa6   : > { %p8918_p7 = pnand %p8916_p5, %p9204_p8  ;;  %p8925_p12 = por %p8924_p11, %p8923_p10 }
  0xa8   : > { %p8919_p9 = pneg %p8918_p7 }
  0xaa   : > { %p8926_p2 = pnand %p8925_p12, %p8919_p9 }
  0xac   : > { %8929 = shalt.err (!%p8926_p2)
}
  0xad   : > { %s9083_s23 = smov 64   ;;  %s9084_s19 = smov 4  }
  0xae   : > { %8214 = dma.hbm_to_vmem [thread:$0]  (!%p9188_p6), %s10477_s4, 2560, %s376_s24, [#allocation8], %s9083_s23, %s9083_s23, %s9084_s19  }
  0xaf   : > { %s9085_s15 = smov [#allocation12]   ;;  %s9086_s20 = smov [#allocation15]  }
  0xb0   : > { %s400_s18 = sshll.u32 %s9085_s15, 4  ;;  %s424_s27 = sshll.u32 %s9086_s20, 4  ;;  %s401_s18 = int_to_ptr.vmem [resolvable:$true] %s400_s18  ;;  %s9346_s27 = int_to_ptr.vmem [resolvable:$true] %s424_s27 }
  0xb1   : > { %s8930_s16 = scalar_lea.hbm %s10479_s6, 16 }
  0xb2   : > { %p8931_p3 = scmp.ne.s32.totalorder %s10479_s6, %s8930_s16  ;;  %p8937_p0 = scmp.lt.u32.totalorder %s8930_s16, %s10479_s6 }
  0xb4   : > { %p8933_p4 = pnand %p8931_p3, %p9204_p8 }
  0xb6   : > { %p8934_p13 = pneg %p8933_p4 }
  0xb8   : > { %p8939_p1 = pnand %p8937_p0, %p8934_p13 }
  0xba   : > { %8942 = shalt.err (!%p8939_p1)
}
  0xbb   : > { %s8943_s23 = scalar_lea.vmem %s401_s18, 16  ;;  %s8950_s19 = scalar_lea.vmem %s401_s18, 32 }
  0xbc   : > { %p8944_p5 = scmp.ne.s32.totalorder %s401_s18, %s8943_s23  ;;  %p8951_p10 = scmp.lt.s32.totalorder %s401_s18, %s401_s18 }
  0xbd   : > { %p8952_p11 = scmp.lt.s32.totalorder %s8950_s19, %s8943_s23 }
  0xbe   : > { %p8946_p7 = pnand %p8944_p5, %p9204_p8 }
  0xbf   : > { %p8953_p12 = por %p8952_p11, %p8951_p10 }
  0xc0   : > { %p8947_p9 = pneg %p8946_p7 }
  0xc2   : > { %p8954_p2 = pnand %p8953_p12, %p8947_p9 }
  0xc4   : > { %8957 = shalt.err (!%p8954_p2)
}
  0xc5   : > { %8220 = dma.hbm_to_vmem [thread:$0]  (!%p9188_p6), %s10479_s6, 16, %s401_s18, [#allocation11]  }
  0xc6   : > { %s8958_s14 = scalar_lea.hbm %s10481_s8, 32 }
  0xc7   : > { %p8959_p3 = scmp.ne.s32.totalorder %s10481_s8, %s8958_s14  ;;  %p8965_p0 = scmp.lt.u32.totalorder %s8958_s14, %s10481_s8 }
  0xc9   : > { %p8961_p4 = pnand %p8959_p3, %p9204_p8 }
  0xcb   : > { %p8962_p13 = pneg %p8961_p4 }
  0xcd   : > { %p8967_p1 = pnand %p8965_p0, %p8962_p13 }
  0xcf   : > { %8970 = shalt.err (!%p8967_p1)
}
  0xd0   : > { %s8971_s18 = scalar_lea.vmem %s9346_s27, 32  ;;  %p8979_p10 = scmp.lt.s32.totalorder %s9346_s27, %s9346_s27 }
  0xd1   : > { %p8972_p5 = scmp.ne.s32.totalorder %s9346_s27, %s8971_s18  ;;  %p8980_p11 = scmp.lt.s32.totalorder %s8971_s18, %s8971_s18 }
  0xd3   : > { %p8974_p7 = pnand %p8972_p5, %p9204_p8  ;;  %p8981_p12 = por %p8980_p11, %p8979_p10 }
  0xd5   : > { %p8975_p9 = pneg %p8974_p7 }
  0xd7   : > { %p8982_p2 = pnand %p8981_p12, %p8975_p9 }
  0xd9   : > { %8985 = shalt.err (!%p8982_p2)
}
  0xda   : > { %8226 = dma.hbm_to_vmem [thread:$0]  (!%p9188_p6), %s10481_s8, 32, %s9346_s27, [#allocation14]  }
  0xdb   : > { %s9087_s19 = smov [#allocation18]   ;;  %s8986_s20 = scalar_lea.hbm %s10483_s10, 24576 }
  0xdc   : > { %s445_s2 = sshll.u32 %s9087_s19, 4  ;;  %p8987_p3 = scmp.ne.s32.totalorder %s10483_s10, %s8986_s20  ;;  %s446_s2 = int_to_ptr.vmem [resolvable:$true] %s445_s2 }
  0xdd   : > { %p8993_p0 = scmp.lt.u32.totalorder %s8986_s20, %s10483_s10 }
  0xde   : > { %p8989_p4 = pnand %p8987_p3, %p9204_p8 }
  0xe0   : > { %p8990_p13 = pneg %p8989_p4 }
  0xe2   : > { %p8995_p1 = pnand %p8993_p0, %p8990_p13 }
  0xe4   : > { %8998 = shalt.err (!%p8995_p1)
}
  0xe5   : > { %s8999_s27 = scalar_lea.vmem %s446_s2, 24576  ;;  %p9007_p10 = scmp.lt.s32.totalorder %s446_s2, %s446_s2 }
  0xe6   : > { %p9000_p5 = scmp.ne.s32.totalorder %s446_s2, %s8999_s27  ;;  %p9008_p11 = scmp.lt.s32.totalorder %s8999_s27, %s8999_s27 }
  0xe8   : > { %p9002_p7 = pnand %p9000_p5, %p9204_p8  ;;  %p9009_p12 = por %p9008_p11, %p9007_p10 }
  0xea   : > { %p9003_p9 = pneg %p9002_p7 }
  0xec   : > { %p9010_p2 = pnand %p9009_p12, %p9003_p9 }
  0xee   : > { %9013 = shalt.err (!%p9010_p2)
}
  0xef   : > { %s9088_s25 = smov 256   ;;  %s9089_s18 = smov 16  }
  0xf0   : > { %8232 = dma.hbm_to_vmem [thread:$0]  (!%p9188_p6), %s10483_s10, 24576, %s446_s2, [#allocation17], %s9088_s25, %s9088_s25, %s9089_s18  }
  0xf1   : > { %s9090_s19 = smov [#allocation21]   ;;  %s9014_s14 = scalar_lea.hbm %s10485_s12, 64 }
  0xf2   : > { %s470_s21 = sshll.u32 %s9090_s19, 4  ;;  %p9015_p3 = scmp.ne.s32.totalorder %s10485_s12, %s9014_s14  ;;  %s471_s21 = int_to_ptr.vmem [resolvable:$true] %s470_s21 }
  0xf3   : > { %p9021_p0 = scmp.lt.u32.totalorder %s9014_s14, %s10485_s12 }
  0xf4   : > { %p9017_p4 = pnand %p9015_p3, %p9204_p8 }
  0xf6   : > { %p9018_p13 = pneg %p9017_p4 }
  0xf8   : > { %p9023_p1 = pnand %p9021_p0, %p9018_p13 }
  0xfa   : > { %9026 = shalt.err (!%p9023_p1)
}
  0xfb   : > { %s9027_s2 = scalar_lea.vmem %s471_s21, 64  ;;  %p9035_p10 = scmp.lt.s32.totalorder %s471_s21, %s471_s21 }
  0xfc   : > { %p9028_p5 = scmp.ne.s32.totalorder %s471_s21, %s9027_s2  ;;  %p9036_p11 = scmp.lt.s32.totalorder %s9027_s2, %s9027_s2 }
  0xfe   : > { %p9030_p7 = pnand %p9028_p5, %p9204_p8  ;;  %p9037_p12 = por %p9036_p11, %p9035_p10 }
 0x100   : > { %p9031_p9 = pneg %p9030_p7 }
 0x102   : > { %p9038_p2 = pnand %p9037_p12, %p9031_p9 }
 0x104   : > { %9041 = shalt.err (!%p9038_p2)
}
 0x105   : > { %8238 = dma.hbm_to_vmem [thread:$0]  (!%p9188_p6), %s10485_s12, 64, %s471_s21, [#allocation20]  }
 0x106   : > { %p10496_p3 = scmp.ne.s32.totalorder %s10492_s29, 0 }
 0x107   : > { %p10497_p4 = scmp.eq.s32.totalorder (!%p10496_p3), %s9170_s28, 0 }
 0x108   : > { %491 = sbr.rel (%p10496_p3) target bundleno = 1986 (0x7c2), region = 72 }
 0x10f   : > { %9047 = dma.done.wait (%p10497_p4), [#allocation6], 16   ;;  %p10498_p8 = pmov %p10497_p4 }
 0x110   : > { %p10499_p13 = pmov %p10497_p4 }
 0x111   : > { %9049 = vsyncadd (%p10498_p8), [#allocation6], 4294967280 }
 0x112   : > { %9051 = dma.done.wait (%p10499_p13), [#allocation8], 2576   ;;  %p10500_p0 = pmov %p10497_p4 }
 0x114   : > { %9053 = vsyncadd (%p10500_p0), [#allocation8], 4294964720  ;;  %p10501_p1 = pmov %p10500_p0 }
 0x115   : > { %p10502_p6 = pmov %p10500_p0 }
 0x116   : > { %9055 = dma.done.wait (%p10501_p1), [#allocation11], 32  }
 0x117   : > { %9057 = vsyncadd (%p10502_p6), [#allocation11], 4294967264  ;;  %p10503_p5 = pmov %p10500_p0 }
 0x118   : > { %p10504_p7 = pmov %p10500_p0 }
 0x119   : > { %9059 = dma.done.wait (%p10503_p5), [#allocation14], 6176  }
 0x11a   : > { %9061 = vsyncadd (%p10504_p7), [#allocation14], 4294961120  ;;  %p10505_p9 = pmov %p10500_p0 }
 0x11b   : > { %p10506_p10 = pmov %p10500_p0 }
 0x11c   : > { %9063 = dma.done.wait (%p10505_p9), [#allocation17], 24608  }
 0x11d   : > { %9065 = vsyncadd (%p10506_p10), [#allocation17], 4294942688  ;;  %p10507_p11 = pmov %p10500_p0 }
 0x11e   : > { %p10508_p12 = pmov %p10500_p0 }
 0x11f   : > { %9067 = dma.done.wait (%p10507_p11), [#allocation20], 128  }
 0x120   : > { %9069 = vsyncadd (%p10508_p12), [#allocation20], 4294967168  ;;  %p575_p2 = scmp.lt.s32.totalorder %s9170_s28, 1  ;;  %p10509_p3 = scmp.ne.s32.totalorder %s9170_s28, 0 }
 0x121   : > { %vm590_vm0 = vcmask (!%p10509_p3), 519168   ;;  %vm593_vm1 = vcmask (!%p10509_p3), 516096   ;;  %vm597_vm2 = vcmask (!%p10509_p3), 1040384   ;;  %v600_v0 = vld [vmem:[#allocation3 + $0x18] sm:$0x1] (!%p10509_p3)  ;;  %v9091_v1 = vmov (!%p10509_p3), 0  }
 0x122   : > { %s576_s29 = scalar_select %p575_p2, %s9170_s28, 1 }
 0x123   : > { %589 = sbr.rel (%p10509_p3) target bundleno = 299 (0x12b), region = 120  ;;  %592 = vst.msk [vmem:[#allocation2 + $0x4] sm:$0xf] (!%p10509_p3), %vm590_vm0, %v9091_v1  ;;  %596 = vst [vmem:[#allocation3 + $0x4] sm:$0xf] (!%p10509_p3), %v9091_v1  ;;  %vm605_vm4 = vcmask (!%p10509_p3), 1044484  }
 0x124   : > { %s7855_s17 = sshll.u32 %s576_s29, 7  ;;  %s7856_s26 = sshll.u32 %s576_s29, 4  ;;  %604 = vst [vmem:[#allocation4 + $0x8] sm:$0xff] (!%p10509_p3), %v9091_v1  ;;  %594 = vst.msk [vmem:[#allocation2 + $0x28] sm:$0x1] (!%p10509_p3), %vm593_vm1, %v9091_v1 }
 0x125   : > { %s9456_s19 = scalar_lea.vmem %s10473_s0, %s7855_s17  ;;  %s9461_s20 = scalar_lea.vmem %s10486_s13, %s7856_s26  ;;  %vm598_vm3 = vsmask.f32 (!%p10509_p3), 256  ;;  %vm606_vm5 = vsmask.f32 (!%p10509_p3), 4352  ;;  %v609_v2 = vld [vmem:[#allocation4 + $0x20] sm:$0x11] (!%p10509_p3) }
 0x126   : > { %vm599_vm6 = vmand (!%p10509_p3), %vm597_vm2, %vm598_vm3 }
 0x127   : > { %v601_v3 = vsel (!%p10509_p3), %vm599_vm6, 0, %v600_v0  ;;  %vm607_vm7 = vmand (!%p10509_p3), %vm605_vm4, %vm606_vm5 }
 0x128   : > { %602 = vst [vmem:[#allocation3 + $0x18] sm:$0x1] (!%p10509_p3), %v601_v3  ;;  %vm608_vm8 = vmor (!%p10509_p3), %vm607_vm7, %vm599_vm6 }
 0x129   : > { %v610_v4 = vsel (!%p10509_p3), %vm608_vm8, 0, %v609_v2 }
 0x12a   : > { %611 = vst [vmem:[#allocation4 + $0x20] sm:$0x11] %v610_v4 }
 0x12b PF: > { %v8289_v5 = vld [vmem:[%s10474_s1] sm:$0xff]   ;;  %v9092_v6 = vmov 0   ;;  %v8290_v7 = vld [vmem:[%s10474_s1 + $0x8] sm:$0xff]   ;;  %v8291_v8 = vld [vmem:[%s10474_s1 + $0x10] sm:$0xff]   ;;  %vm784_vm9 = vcmask 326656   ;;  %vm809_vm10 = vcmask 1043456   ;;  %v976_v36 = vlaneseq }
 0x12c   : > { %813 = vmatprep.subr.bf16.mxu0 %v9092_v6  ;;  %v8292_v9 = vld [vmem:[%s10474_s1 + $0x18] sm:$0xff]   ;;  %v8302_v10 = vld [vmem:[%s9456_s19 + $0x4] ss:$8 sps:$4 sm:$0xff]   ;;  %v8295_v13 = vld [vmem:[%s10474_s1 + $0x30] sm:$0xff]   ;;  %v9093_v34 = vmov 1983009808  }
 0x12d   : > { %814 = vmatpush1.bf16.msra.mxu0 %v8289_v5  ;;  %7395 = vmatprep.mubr.msk.bf16.mxu0 %vm784_vm9, %v8302_v10  ;;  %v8293_v11 = vld [vmem:[%s10474_s1 + $0x20] sm:$0xff]   ;;  %v8294_v12 = vld [vmem:[%s10474_s1 + $0x28] sm:$0xff]   ;;  %v8296_v14 = vld [vmem:[%s10474_s1 + $0x38] sm:$0xff]   ;;  %v974_v35 = vunpack.c.l.s4 %v9093_v34  ;;  %v9533_v38 = vshrl.u32 %v976_v36, 7  ;;  %vm1308_vm11 = vcmask 517120   ;;  %vm2141_vm12 = vcmask 1041409  }
 0x12e   : > { %815 = vmatprep.subr.bf16.mxu0 %v9092_v6  ;;  %v8297_v15 = vld [vmem:[%s10474_s1 + $0x40] sm:$0xff]   ;;  %v8298_v16 = vld [vmem:[%s10474_s1 + $0x48] sm:$0xff]   ;;  %v8299_v17 = vld [vmem:[%s10474_s1 + $0x50] ss:$0 sps:$4 sm:$0xff]   ;;  %vm2143_vm13 = vcmask 1042434   ;;  %vm2145_vm14 = vcmask 1043459  }
 0x12f   : > { %v811_v18 = vsel %vm809_vm10, %v8299_v17, 0  ;;  %v8300_v19 = vld [vmem:[%s9456_s19] ss:$8 sps:$4 sm:$0xff]   ;;  %v8303_v20 = vld [vmem:[%s9456_s19 + $0x14] ss:$8 sps:$4 sm:$0xff]   ;;  %v975_v37 = vunpack.c.0.s8 %v974_v35  ;;  %vm2147_vm15 = vcmask 1044484  }
 0x130   : > { %v8305_v21 = vld [vmem:[%s9456_s19 + $0x10] ss:$8 sps:$4 sm:$0xff]   ;;  %v8306_v22 = vld [vmem:[%s9456_s19 + $0x24] ss:$8 sps:$4 sm:$0xff]   ;;  %v8308_v23 = vld [vmem:[%s9456_s19 + $0x20] ss:$8 sps:$4 sm:$0xff]  }
 0x131   : > { %816 = vmatpush1.bf16.msra.mxu0 %v8290_v7  ;;  %v8309_v24 = vld [vmem:[%s9456_s19 + $0x34] ss:$8 sps:$4 sm:$0xff]   ;;  %v8311_v25 = vld [vmem:[%s9456_s19 + $0x30] ss:$8 sps:$4 sm:$0xff]   ;;  %v8312_v26 = vld [vmem:[%s9456_s19 + $0x44] ss:$8 sps:$4 sm:$0xff]   ;;  %v9541_v43 = vsub.s32 %v975_v37, %v9533_v38 }
 0x132   : > { %817 = vmatprep.subr.bf16.mxu0 %v9092_v6  ;;  %v8314_v27 = vld [vmem:[%s9456_s19 + $0x40] ss:$8 sps:$4 sm:$0xff]   ;;  %v8315_v28 = vld [vmem:[%s9456_s19 + $0x54] ss:$8 sps:$4 sm:$0xff]   ;;  %v8317_v29 = vld [vmem:[%s9456_s19 + $0x50] ss:$8 sps:$4 sm:$0xff]  }
 0x133   : > { %v8318_v30 = vld [vmem:[%s9456_s19 + $0x64] ss:$8 sps:$4 sm:$0xff]   ;;  %v8320_v31 = vld [vmem:[%s9456_s19 + $0x60] ss:$8 sps:$4 sm:$0xff]   ;;  %v8321_v32 = vld [vmem:[%s9456_s19 + $0x74] ss:$8 sps:$4 sm:$0xff]  }
 0x134   : > { %v8323_v33 = vld [vmem:[%s9456_s19 + $0x70] ss:$8 sps:$4 sm:$0xff]   ;;  %vm2149_vm0 = vcmask 1045509   ;;  %vm2151_vm1 = vcmask 1046534   ;;  %vm2153_vm2 = vcmask 1047559   ;;  %vm2220_vm3 = vcmask 519168  }
 0x135   : > { %818 = vmatpush1.bf16.msra.mxu0 %v8291_v8  ;;  %v9535_v39 = vld [vmem:[#allocation5] ss:$0 sm:$0xff]  ;;  %v9537_v41 = vld [vmem:[#allocation7] ss:$0 sm:$0xff]  ;;  %vm2279_vm4 = vsmask.f32 4352 }
 0x136   : > { %819 = vmatprep.subr.bf16.mxu0 %v9092_v6  ;;  %vm2348_vm5 = vcmask 523264   ;;  %vm2429_vm6 = vcmask 1044480   ;;  %vm2703_vm7 = vsmask.f32 7424  ;;  %vm2862_vm8 = vcmask 1046528  }
 0x137   : > { %vm3686_vm10 = vcmask 1042432  }
 0x139   : > { %820 = vmatpush1.bf16.msra.mxu0 %v8292_v9 }
 0x13a   : > { %821 = vmatprep.subr.bf16.mxu0 %v9092_v6 }
 0x13d   : > { %822 = vmatpush1.bf16.msra.mxu0 %v8293_v11 }
 0x13e   : > { %823 = vmatprep.subr.bf16.mxu0 %v9092_v6 }
 0x141   : > { %824 = vmatpush1.bf16.msra.mxu0 %v8294_v12 }
 0x142   : > { %825 = vmatprep.subr.bf16.mxu0 %v9092_v6 }
 0x145   : > { %826 = vmatpush1.bf16.msra.mxu0 %v8295_v13 }
 0x146   : > { %827 = vmatprep.subr.bf16.mxu0 %v9092_v6 }
 0x149   : > { %828 = vmatpush1.bf16.msra.mxu0 %v8296_v14 }
 0x14a   : > { %829 = vmatprep.subr.bf16.mxu0 %v9092_v6 }
 0x14d   : > { %830 = vmatpush1.bf16.msra.mxu0 %v8297_v15 }
 0x14e   : > { %831 = vmatprep.subr.bf16.mxu0 %v9092_v6 }
 0x151   : > { %832 = vmatpush1.bf16.msra.mxu0 %v8298_v16 }
 0x152   : > { %833 = vmatprep.subr.bf16.mxu0 %v9092_v6 }
 0x155   : > { %834 = vmatpush1.bf16.msra.mxu0 %v811_v18 }
 0x158   : > { %846 = vmatmul.mubr.bf16.vlgmr.msra.gmra.mrb[0].mxu0 %v8300_v19 }
 0x159   : > { %7396 = vmatprep.mubr.msk.bf16.mxu0 %vm784_vm9, %v8303_v20 }
 0x160   : > { %854 = vmatmul.mubr.bf16.gmra.mrb[4].mxu0 %v8305_v21 }
 0x161   : > { %7397 = vmatprep.mubr.msk.bf16.mxu0 %vm784_vm9, %v8306_v22 }
 0x168   : > { %862 = vmatmul.mubr.bf16.gmra.mrb[8].mxu0 %v8308_v23 }
 0x169   : > { %7398 = vmatprep.mubr.msk.bf16.mxu0 %vm784_vm9, %v8309_v24 }
 0x170   : > { %870 = vmatmul.mubr.bf16.gmra.mrb[12].mxu0 %v8311_v25 }
 0x171   : > { %7399 = vmatprep.mubr.msk.bf16.mxu0 %vm784_vm9, %v8312_v26 }
 0x178   : > { %878 = vmatmul.mubr.bf16.gmra.mrb[16].mxu0 %v8314_v27 }
 0x179   : > { %7400 = vmatprep.mubr.msk.bf16.mxu0 %vm784_vm9, %v8315_v28 }
 0x180   : > { %886 = vmatmul.mubr.bf16.gmra.mrb[20].mxu0 %v8317_v29 }
 0x181   : > { %7401 = vmatprep.mubr.msk.bf16.mxu0 %vm784_vm9, %v8318_v30 }
 0x188   : > { %894 = vmatmul.mubr.bf16.gmra.mrb[24].mxu0 %v8320_v31 }
 0x189   : > { %7402 = vmatprep.mubr.msk.bf16.mxu0 %vm784_vm9, %v8321_v32  ;;  %vm3187_vm9 = vcmask 1041408  }
 0x190   : > { %902 = vmatmul.mubr.bf16.gmra.mrb[28].mxu0 %v8323_v33 }
 0x22b   : > { %v847_v40 = vpop.f32.mrb[0].mxu0 }
 0x22c   : > { %v917_v42 = vmul.f32 %v9535_v39, %v847_v40  ;;  %v849_v44 = vpop.f32.mrb[1].mxu0 }
 0x22d   : > { %v850_v45 = vpop.f32.mrb[2].mxu0 }
 0x22e   : > { %v940_v46 = vadd.f32 %v9537_v41, %v917_v42  ;;  %v918_v47 = vmul.f32 %v9535_v39, %v850_v45  ;;  %v852_v48 = vpop.f32.mrb[3].mxu0 }
 0x230   : > { %v972_v49 = vcombine.high %v940_v46, %v940_v46  ;;  %v979_v50 = vrot.slane %v940_v46, %v9541_v43  ;;  %v941_v51 = vadd.f32 %v9537_v41, %v918_v47 }
 0x232   : > { %v986_v52 = vrot.slane %v972_v49, %v9541_v43  ;;  %v987_v53 = vcombine.high %v979_v50, %v979_v50  ;;  %v1309_v54 = vsel %vm1308_vm11, %v979_v50, -inf  ;;  %v989_v55 = vcombine.high %v941_v51, %v941_v51 }
 0x233   : > { %v1310_v56 = vrot.slane %v1309_v54, 4  ;;  %v996_v57 = vrot.slane %v941_v51, %v9541_v43  ;;  %v9550_v58 = vpop.f32.mrb[4].mxu0 }
 0x234   : > { %v988_v59 = vcombine.high %v986_v52, %v986_v52  ;;  %v1316_v60 = vsel %vm1308_vm11, %v987_v53, -inf  ;;  %v1323_v61 = vsel %vm1308_vm11, %v986_v52, -inf  ;;  %v1003_v62 = vrot.slane %v989_v55, %v9541_v43  ;;  %v857_v63 = vpop.f32.mrb[5].mxu0 }
 0x235   : > { %v1311_v0 = vmax.f32 %v1309_v54, %v1310_v56  ;;  %v1317_v1 = vrot.slane %v1316_v60, 4  ;;  %v1324_v2 = vrot.slane %v1323_v61, 4  ;;  %v1004_v3 = vcombine.high %v996_v57, %v996_v57  ;;  %v9555_v4 = vpop.f32.mrb[6].mxu0 }
 0x236   : > { %v1330_v5 = vsel %vm1308_vm11, %v988_v59, -inf  ;;  %v1005_v7 = vcombine.high %v1003_v62, %v1003_v62  ;;  %v1337_v8 = vsel %vm1308_vm11, %v996_v57, -inf  ;;  %v1351_v9 = vsel %vm1308_vm11, %v1003_v62, -inf  ;;  %v860_v10 = vpop.f32.mrb[7].mxu0 }
 0x237   : > { %v1312_v11 = vrot.slane %v1311_v0, 2  ;;  %v1318_v12 = vmax.f32 %v1316_v60, %v1317_v1  ;;  %v1325_v13 = vmax.f32 %v1323_v61, %v1324_v2  ;;  %v1331_v14 = vrot.slane %v1330_v5, 4 }
 0x238   : > { %v1338_v15 = vrot.slane %v1337_v8, 4  ;;  %v1344_v16 = vsel %vm1308_vm11, %v1004_v3, -inf  ;;  %v1352_v17 = vrot.slane %v1351_v9, 4  ;;  %v1358_v18 = vsel %vm1308_vm11, %v1005_v7, -inf }
 0x239   : > { %v1313_v19 = vmax.f32 %v1311_v0, %v1312_v11  ;;  %v1319_v20 = vrot.slane %v1318_v12, 2  ;;  %v1326_v21 = vrot.slane %v1325_v13, 2  ;;  %v1332_v22 = vmax.f32 %v1330_v5, %v1331_v14 }
 0x23a   : > { %v1339_v23 = vmax.f32 %v1337_v8, %v1338_v15  ;;  %v1345_v24 = vrot.slane %v1344_v16, 4  ;;  %v1353_v25 = vmax.f32 %v1351_v9, %v1352_v17  ;;  %v1359_v26 = vrot.slane %v1358_v18, 4 }
 0x23b   : > { %v1314_v27 = vrot.slane %v1313_v19, 1  ;;  %v1320_v28 = vmax.f32 %v1318_v12, %v1319_v20  ;;  %v1327_v29 = vmax.f32 %v1325_v13, %v1326_v21  ;;  %v1333_v30 = vrot.slane %v1332_v22, 2  ;;  %v9562_v31 = vpop.f32.mrb[8].mxu0 }
 0x23c   : > { %v1340_v32 = vrot.slane %v1339_v23, 2  ;;  %v1346_v33 = vmax.f32 %v1344_v16, %v1345_v24  ;;  %v1354_v34 = vrot.slane %v1353_v25, 2  ;;  %v1360_v35 = vmax.f32 %v1358_v18, %v1359_v26  ;;  %v865_v36 = vpop.f32.mrb[9].mxu0 }
 0x23d   : > { %v1315_v37 = vmax.f32 %v1313_v19, %v1314_v27  ;;  %v1321_v40 = vrot.slane %v1320_v28, 1  ;;  %v1328_v42 = vrot.slane %v1327_v29, 1  ;;  %v1334_v44 = vmax.f32 %v1332_v22, %v1333_v30  ;;  %v9564_v45 = vpop.f32.mrb[10].mxu0 }
 0x23e   : > { %v1341_v46 = vmax.f32 %v1339_v23, %v1340_v32  ;;  %v1347_v47 = vrot.slane %v1346_v33, 2  ;;  %v1355_v48 = vmax.f32 %v1353_v25, %v1354_v34  ;;  %v1361_v49 = vrot.slane %v1360_v35, 2  ;;  %v868_v50 = vpop.f32.mrb[11].mxu0 }
 0x23f   : > { %v1322_v51 = vmax.f32 %v1320_v28, %v1321_v40  ;;  %v1329_v52 = vmax.f32 %v1327_v29, %v1328_v42  ;;  %v1335_v53 = vrot.slane %v1334_v44, 1  ;;  %v1757_v54 = vmax.f32 %v1315_v37, 0.0 }
 0x240   : > { %v1342_v55 = vrot.slane %v1341_v46, 1  ;;  %v1348_v56 = vmax.f32 %v1346_v33, %v1347_v47  ;;  %v1356_v57 = vrot.slane %v1355_v48, 1  ;;  %v1362_v59 = vmax.f32 %v1360_v35, %v1361_v49 }
 0x241   : > { %v1336_v60 = vmax.f32 %v1334_v44, %v1335_v53  ;;  %v1758_v61 = vmax.f32 %v1322_v51, 0.0  ;;  %v1759_v62 = vmax.f32 %v1329_v52, 0.0  ;;  %v7857_v63 = vpack.c.bf16 %v1757_v54, %v1757_v54 }
 0x242   : > { %v1343_v0 = vmax.f32 %v1341_v46, %v1342_v55  ;;  %v1349_v1 = vrot.slane %v1348_v56, 1  ;;  %v1357_v2 = vmax.f32 %v1355_v48, %v1356_v57  ;;  %v1363_v3 = vrot.slane %v1362_v59, 1 }
 0x243   : > { %v1760_v5 = vmax.f32 %v1336_v60, 0.0  ;;  %v7858_v7 = vpack.c.bf16 %v1758_v61, %v1758_v61  ;;  %v7859_v8 = vpack.c.bf16 %v1759_v62, %v1759_v62  ;;  %v2077_v9 = vunpack.c.l.b16 %v7857_v63  ;;  %v9566_v10 = vpop.f32.mrb[12].mxu0 }
 0x244   : > { %v1350_v11 = vmax.f32 %v1348_v56, %v1349_v1  ;;  %v1364_v12 = vmax.f32 %v1362_v59, %v1363_v3  ;;  %v1761_v13 = vmax.f32 %v1343_v0, 0.0  ;;  %v1763_v14 = vmax.f32 %v1357_v2, 0.0  ;;  %v873_v15 = vpop.f32.mrb[13].mxu0 }
 0x245   : > { %v7860_v16 = vpack.c.bf16 %v1760_v5, %v1760_v5  ;;  %v2078_v17 = vunpack.c.l.b16 %v7858_v7  ;;  %v2079_v18 = vunpack.c.l.b16 %v7859_v8  ;;  %v919_v19 = vmul.f32 %v9535_v39, %v9550_v58  ;;  %v9570_v20 = vpop.f32.mrb[14].mxu0 }
 0x246   : > { %v1762_v21 = vmax.f32 %v1350_v11, 0.0  ;;  %v1764_v22 = vmax.f32 %v1364_v12, 0.0  ;;  %v7861_v23 = vpack.c.bf16 %v1761_v13, %v1761_v13  ;;  %v7863_v24 = vpack.c.bf16 %v1763_v14, %v1763_v14  ;;  %v876_v25 = vpop.f32.mrb[15].mxu0 }
 0x247   : > { %v2080_v26 = vunpack.c.l.b16 %v7860_v16  ;;  %v2142_v27 = vsel %vm2141_vm12, %v2078_v17, %v2077_v9  ;;  %v942_v28 = vadd.f32 %v9537_v41, %v919_v19  ;;  %v920_v29 = vmul.f32 %v9535_v39, %v9555_v4 }
 0x248   : > { %v2144_v30 = vsel %vm2143_vm13, %v2079_v18, %v2142_v27  ;;  %v7862_v32 = vpack.c.bf16 %v1762_v21, %v1762_v21  ;;  %v7864_v58 = vpack.c.bf16 %v1764_v22, %v1764_v22  ;;  %v2081_v33 = vunpack.c.l.b16 %v7861_v23 }
 0x249   : > { %v2083_v34 = vunpack.c.l.b16 %v7863_v24  ;;  %v2146_v35 = vsel %vm2145_vm14, %v2080_v26, %v2144_v30  ;;  %v1006_v36 = vcombine.high %v942_v28, %v942_v28  ;;  %v1013_v37 = vrot.slane %v942_v28, %v9541_v43 }
 0x24a   : > { %v2082_v40 = vunpack.c.l.b16 %v7862_v32  ;;  %v2084_v42 = vunpack.c.l.b16 %v7864_v58  ;;  %v2148_v44 = vsel %vm2147_vm15, %v2081_v33, %v2146_v35  ;;  %v943_v46 = vadd.f32 %v9537_v41, %v920_v29 }
 0x24b   : > { %v1020_v47 = vrot.slane %v1006_v36, %v9541_v43  ;;  %v1021_v4 = vcombine.high %v1013_v37, %v1013_v37  ;;  %v1365_v48 = vsel %vm1308_vm11, %v1013_v37, -inf  ;;  %v9585_v49 = vmul.f32 %v9535_v39, %v9562_v31  ;;  %v9587_v50 = vpop.f32.mrb[16].mxu0 }
 0x24c   : > { %v2150_v51 = vsel %vm2149_vm0, %v2082_v40, %v2148_v44  ;;  %v1366_v52 = vrot.slane %v1365_v48, 4  ;;  %v1023_v53 = vcombine.high %v943_v46, %v943_v46  ;;  %v1030_v54 = vrot.slane %v943_v46, %v9541_v43  ;;  %v881_v55 = vpop.f32.mrb[17].mxu0 }
 0x24d   : > { %v2152_v56 = vsel %vm2151_vm1, %v2083_v34, %v2150_v51  ;;  %v1022_v57 = vcombine.high %v1020_v47, %v1020_v47  ;;  %v1372_v59 = vsel %vm1308_vm11, %v1021_v4, -inf  ;;  %v1379_v60 = vsel %vm1308_vm11, %v1020_v47, -inf  ;;  %v9594_v61 = vpop.f32.mrb[18].mxu0 }
 0x24e   : > { %v2154_v31 = vsel %vm2153_vm2, %v2084_v42, %v2152_v56  ;;  %v1367_v62 = vmax.f32 %v1365_v48, %v1366_v52  ;;  %v1373_v63 = vrot.slane %v1372_v59, 4  ;;  %v1380_v0 = vrot.slane %v1379_v60, 4  ;;  %v884_v1 = vpop.f32.mrb[19].mxu0 }
 0x24f   : > { %v2204_v2 = vpack.c.b16 %v2154_v31, %v2154_v31  ;;  %v1386_v3 = vsel %vm1308_vm11, %v1022_v57, -inf  ;;  %v1037_v5 = vrot.slane %v1023_v53, %v9541_v43  ;;  %v1038_v7 = vcombine.high %v1030_v54, %v1030_v54 }
 0x250   : > { %v1368_v8 = vrot.slane %v1367_v62, 2  ;;  %v1374_v9 = vmax.f32 %v1372_v59, %v1373_v63  ;;  %v1381_v11 = vmax.f32 %v1379_v60, %v1380_v0  ;;  %v1387_v12 = vrot.slane %v1386_v3, 4 }
 0x251   : > { %2221 = vst.msk [vmem:[#allocation2 + $0x8] sm:$0xf] %vm2220_vm3, %v2204_v2  ;;  %v1039_v13 = vcombine.high %v1037_v5, %v1037_v5  ;;  %v1393_v14 = vsel %vm1308_vm11, %v1030_v54, -inf  ;;  %v1400_v15 = vsel %vm1308_vm11, %v1038_v7, -inf  ;;  %v1407_v16 = vsel %vm1308_vm11, %v1037_v5, -inf }
 0x252   : > { %v1369_v17 = vmax.f32 %v1367_v62, %v1368_v8  ;;  %v1375_v18 = vrot.slane %v1374_v9, 2  ;;  %v1382_v19 = vrot.slane %v1381_v11, 2  ;;  %v1388_v21 = vmax.f32 %v1386_v3, %v1387_v12 }
 0x253   : > { %v1394_v22 = vrot.slane %v1393_v14, 4  ;;  %v1401_v23 = vrot.slane %v1400_v15, 4  ;;  %v1408_v24 = vrot.slane %v1407_v16, 4  ;;  %v1414_v25 = vsel %vm1308_vm11, %v1039_v13, -inf  ;;  %v9604_v26 = vpop.f32.mrb[20].mxu0 }
 0x254   : > { %v1370_v27 = vrot.slane %v1369_v17, 1  ;;  %v1376_v28 = vmax.f32 %v1374_v9, %v1375_v18  ;;  %v1383_v29 = vmax.f32 %v1381_v11, %v1382_v19  ;;  %v1389_v30 = vrot.slane %v1388_v21, 2  ;;  %v889_v32 = vpop.f32.mrb[21].mxu0 }
 0x255   : > { %v1395_v58 = vmax.f32 %v1393_v14, %v1394_v22  ;;  %v1402_v33 = vmax.f32 %v1400_v15, %v1401_v23  ;;  %v1409_v34 = vmax.f32 %v1407_v16, %v1408_v24  ;;  %v1415_v35 = vrot.slane %v1414_v25, 4  ;;  %v9606_v36 = vpop.f32.mrb[22].mxu0 }
 0x256   : > { %v1371_v37 = vmax.f32 %v1369_v17, %v1370_v27  ;;  %v1377_v40 = vrot.slane %v1376_v28, 1  ;;  %v1384_v42 = vrot.slane %v1383_v29, 1  ;;  %v1390_v44 = vmax.f32 %v1388_v21, %v1389_v30  ;;  %v892_v46 = vpop.f32.mrb[23].mxu0 }
 0x257   : > { %v1396_v47 = vrot.slane %v1395_v58, 2  ;;  %v1403_v4 = vrot.slane %v1402_v33, 2  ;;  %v1410_v48 = vrot.slane %v1409_v34, 2  ;;  %v1416_v51 = vmax.f32 %v1414_v25, %v1415_v35 }
 0x258   : > { %v1378_v52 = vmax.f32 %v1376_v28, %v1377_v40  ;;  %v1385_v53 = vmax.f32 %v1383_v29, %v1384_v42  ;;  %v1391_v54 = vrot.slane %v1390_v44, 1  ;;  %v1765_v55 = vmax.f32 %v1371_v37, 0.0 }
 0x259   : > { %v1397_v56 = vmax.f32 %v1395_v58, %v1396_v47  ;;  %v1404_v57 = vmax.f32 %v1402_v33, %v1403_v4  ;;  %v1411_v59 = vmax.f32 %v1409_v34, %v1410_v48  ;;  %v1417_v60 = vrot.slane %v1416_v51, 2 }
 0x25a   : > { %v1392_v31 = vmax.f32 %v1390_v44, %v1391_v54  ;;  %v1766_v62 = vmax.f32 %v1378_v52, 0.0  ;;  %v1767_v63 = vmax.f32 %v1385_v53, 0.0  ;;  %v7865_v0 = vpack.c.bf16 %v1765_v55, %v1765_v55 }
 0x25b   : > { %v1398_v1 = vrot.slane %v1397_v56, 1  ;;  %v1405_v2 = vrot.slane %v1404_v57, 1  ;;  %v1412_v3 = vrot.slane %v1411_v59, 1  ;;  %v1418_v5 = vmax.f32 %v1416_v51, %v1417_v60  ;;  %v9608_v7 = vpop.f32.mrb[24].mxu0 }
 0x25c   : > { %v1768_v8 = vmax.f32 %v1392_v31, 0.0  ;;  %v7866_v9 = vpack.c.bf16 %v1766_v62, %v1766_v62  ;;  %v7867_v11 = vpack.c.bf16 %v1767_v63, %v1767_v63  ;;  %v2085_v12 = vunpack.c.l.b16 %v7865_v0  ;;  %v897_v13 = vpop.f32.mrb[25].mxu0 }
 0x25d   : > { %v1399_v14 = vmax.f32 %v1397_v56, %v1398_v1  ;;  %v1406_v15 = vmax.f32 %v1404_v57, %v1405_v2  ;;  %v1413_v16 = vmax.f32 %v1411_v59, %v1412_v3  ;;  %v1419_v17 = vrot.slane %v1418_v5, 1  ;;  %v9610_v18 = vpop.f32.mrb[26].mxu0 }
 0x25e   : > { %v7868_v19 = vpack.c.bf16 %v1768_v8, %v1768_v8  ;;  %v2086_v21 = vunpack.c.l.b16 %v7866_v9  ;;  %v2087_v22 = vunpack.c.l.b16 %v7867_v11  ;;  %v944_v23 = vadd.f32 %v9537_v41, %v9585_v49  ;;  %v900_v24 = vpop.f32.mrb[27].mxu0 }
 0x25f   : > { %v1420_v25 = vmax.f32 %v1418_v5, %v1419_v17  ;;  %v1769_v27 = vmax.f32 %v1399_v14, 0.0  ;;  %v1770_v28 = vmax.f32 %v1406_v15, 0.0  ;;  %v1771_v29 = vmax.f32 %v1413_v16, 0.0 }
 0x260   : > { %v2088_v30 = vunpack.c.l.b16 %v7868_v19  ;;  %v2155_v32 = vsel %vm2141_vm12, %v2086_v21, %v2085_v12  ;;  %v1040_v58 = vcombine.high %v944_v23, %v944_v23  ;;  %v1047_v33 = vrot.slane %v944_v23, %v9541_v43 }
 0x261   : > { %v2156_v34 = vsel %vm2143_vm13, %v2087_v22, %v2155_v32  ;;  %v1772_v35 = vmax.f32 %v1420_v25, 0.0  ;;  %v7869_v37 = vpack.c.bf16 %v1769_v27, %v1769_v27  ;;  %v7870_v40 = vpack.c.bf16 %v1770_v28, %v1770_v28 }
 0x262   : > { %v7871_v42 = vpack.c.bf16 %v1771_v29, %v1771_v29  ;;  %v2157_v44 = vsel %vm2145_vm14, %v2088_v30, %v2156_v34  ;;  %v1054_v49 = vrot.slane %v1040_v58, %v9541_v43  ;;  %v1055_v46 = vcombine.high %v1047_v33, %v1047_v33 }
 0x263   : > { %v7872_v47 = vpack.c.bf16 %v1772_v35, %v1772_v35  ;;  %v2089_v4 = vunpack.c.l.b16 %v7869_v37  ;;  %v2090_v48 = vunpack.c.l.b16 %v7870_v40  ;;  %v1421_v51 = vsel %vm1308_vm11, %v1047_v33, -inf  ;;  %v9620_v52 = vpop.f32.mrb[28].mxu0 }
 0x264   : > { %v2091_v53 = vunpack.c.l.b16 %v7871_v42  ;;  %v1056_v54 = vcombine.high %v1054_v49, %v1054_v49  ;;  %v1422_v55 = vrot.slane %v1421_v51, 4  ;;  %v1428_v56 = vsel %vm1308_vm11, %v1055_v46, -inf  ;;  %v905_v57 = vpop.f32.mrb[29].mxu0 }
 0x265   : > { %v2092_v59 = vunpack.c.l.b16 %v7872_v47  ;;  %v2158_v60 = vsel %vm2147_vm15, %v2089_v4, %v2157_v44  ;;  %v1429_v31 = vrot.slane %v1428_v56, 4  ;;  %v1435_v62 = vsel %vm1308_vm11, %v1054_v49, -inf  ;;  %v9625_v63 = vpop.f32.mrb[30].mxu0 }
 0x266   : > { %v2159_v0 = vsel %vm2149_vm0, %v2090_v48, %v2158_v60  ;;  %v1423_v1 = vmax.f32 %v1421_v51, %v1422_v55  ;;  %v1436_v2 = vrot.slane %v1435_v62, 4  ;;  %v1442_v3 = vsel %vm1308_vm11, %v1056_v54, -inf  ;;  %v908_v5 = vpop.f32.mrb[31].mxu0 }
 0x267   : > { %v2160_v8 = vsel %vm2151_vm1, %v2091_v53, %v2159_v0  ;;  %v1430_v9 = vmax.f32 %v1428_v56, %v1429_v31  ;;  %v1443_v11 = vrot.slane %v1442_v3, 4  ;;  %v922_v12 = vmul.f32 %v9535_v39, %v9564_v45 }
 0x268   : > { %v2161_v13 = vsel %vm2153_vm2, %v2092_v59, %v2160_v8  ;;  %v1424_v14 = vrot.slane %v1423_v1, 2  ;;  %v1437_v15 = vmax.f32 %v1435_v62, %v1436_v2  ;;  %v923_v16 = vmul.f32 %v9535_v39, %v9566_v10 }
 0x269   : > { %v2205_v17 = vpack.c.b16 %v2161_v13, %v2161_v13  ;;  %v1431_v19 = vrot.slane %v1430_v9, 2  ;;  %v1444_v21 = vmax.f32 %v1442_v3, %v1443_v11  ;;  %v945_v22 = vadd.f32 %v9537_v41, %v922_v12 }
 0x26a   : > { %v1425_v23 = vmax.f32 %v1423_v1, %v1424_v14  ;;  %v1438_v24 = vrot.slane %v1437_v15, 2  ;;  %v946_v25 = vadd.f32 %v9537_v41, %v923_v16  ;;  %v9639_v27 = vmul.f32 %v9535_v39, %v9570_v20 }
 0x26b   : > { %2222 = vst.msk [vmem:[#allocation2 + $0xc] sm:$0xf] %vm2220_vm3, %v2205_v17  ;;  %v1432_v45 = vmax.f32 %v1430_v9, %v1431_v19  ;;  %v1445_v28 = vrot.slane %v1444_v21, 2  ;;  %v1057_v29 = vcombine.high %v945_v22, %v945_v22  ;;  %v1064_v10 = vrot.slane %v945_v22, %v9541_v43  ;;  %v8324_v9 = vld [vmem:[#allocation9 + $0x20] sm:$0xff]  }
 0x26c   : > { %v1426_v30 = vrot.slane %v1425_v23, 1  ;;  %v1439_v32 = vmax.f32 %v1437_v15, %v1438_v24  ;;  %v1074_v58 = vcombine.high %v946_v25, %v946_v25  ;;  %v1081_v33 = vrot.slane %v946_v25, %v9541_v43  ;;  %8025 = vmatprep.subr.bf16.mxu1 %v8324_v9 }
 0x26d   : > { %v1433_v34 = vrot.slane %v1432_v45, 1  ;;  %v1446_v35 = vmax.f32 %v1444_v21, %v1445_v28  ;;  %v1071_v37 = vrot.slane %v1057_v29, %v9541_v43  ;;  %v1072_v40 = vcombine.high %v1064_v10, %v1064_v10  ;;  %8026 = vmatpush3.bf16.msra.mxu1 %v8324_v9 }
 0x26e   : > { %v1427_v42 = vmax.f32 %v1425_v23, %v1426_v30  ;;  %v1440_v20 = vrot.slane %v1439_v32, 1  ;;  %v1449_v44 = vsel %vm1308_vm11, %v1064_v10, -inf  ;;  %v9647_v49 = vrot.slane %v1074_v58, %v9541_v43 }
 0x26f   : > { %v1434_v46 = vmax.f32 %v1432_v45, %v1433_v34  ;;  %v1447_v47 = vrot.slane %v1446_v35, 1  ;;  %v1073_v4 = vcombine.high %v1071_v37, %v1071_v37  ;;  %v1450_v48 = vrot.slane %v1449_v44, 4 }
 0x270   : > { %v1441_v51 = vmax.f32 %v1439_v32, %v1440_v20  ;;  %v1773_v53 = vmax.f32 %v1427_v42, 0.0  ;;  %v1456_v54 = vsel %vm1308_vm11, %v1072_v40, -inf  ;;  %v1463_v55 = vsel %vm1308_vm11, %v1071_v37, -inf }
 0x271   : > { %v1448_v56 = vmax.f32 %v1446_v35, %v1447_v47  ;;  %v1774_v57 = vmax.f32 %v1434_v46, 0.0  ;;  %v1451_v59 = vmax.f32 %v1449_v44, %v1450_v48  ;;  %v1457_v60 = vrot.slane %v1456_v54, 4 }
 0x272   : > { %v1775_v31 = vmax.f32 %v1441_v51, 0.0  ;;  %v7873_v62 = vpack.c.bf16 %v1773_v53, %v1773_v53  ;;  %v1464_v0 = vrot.slane %v1463_v55, 4  ;;  %v1470_v1 = vsel %vm1308_vm11, %v1073_v4, -inf }
 0x273   : > { %v1776_v2 = vmax.f32 %v1448_v56, 0.0  ;;  %v7874_v3 = vpack.c.bf16 %v1774_v57, %v1774_v57  ;;  %v1452_v5 = vrot.slane %v1451_v59, 2  ;;  %v1458_v8 = vmax.f32 %v1456_v54, %v1457_v60 }
 0x274   : > { %v7875_v11 = vpack.c.bf16 %v1775_v31, %v1775_v31  ;;  %v2093_v12 = vunpack.c.l.b16 %v7873_v62  ;;  %v1465_v13 = vmax.f32 %v1463_v55, %v1464_v0  ;;  %v1471_v14 = vrot.slane %v1470_v1, 4 }
 0x275   : > { %v7876_v15 = vpack.c.bf16 %v1776_v2, %v1776_v2  ;;  %v2094_v16 = vunpack.c.l.b16 %v7874_v3  ;;  %v1453_v17 = vmax.f32 %v1451_v59, %v1452_v5  ;;  %v1459_v19 = vrot.slane %v1458_v8, 2 }
 0x276   : > { %v2095_v21 = vunpack.c.l.b16 %v7875_v11  ;;  %v1466_v22 = vrot.slane %v1465_v13, 2  ;;  %v1472_v23 = vmax.f32 %v1470_v1, %v1471_v14  ;;  %v1089_v24 = vcombine.high %v1081_v33, %v1081_v33 }
 0x277   : > { %v2096_v25 = vunpack.c.l.b16 %v7876_v15  ;;  %v2162_v45 = vsel %vm2141_vm12, %v2094_v16, %v2093_v12  ;;  %v1454_v28 = vrot.slane %v1453_v17, 1  ;;  %v1460_v29 = vmax.f32 %v1458_v8, %v1459_v19 }
 0x278   : > { %v2163_v10 = vsel %vm2143_vm13, %v2095_v21, %v2162_v45  ;;  %v1467_v30 = vmax.f32 %v1465_v13, %v1466_v22  ;;  %v1473_v32 = vrot.slane %v1472_v23, 2  ;;  %v1090_v58 = vcombine.high %v9647_v49, %v9647_v49 }
 0x279   : > { %v1455_v34 = vmax.f32 %v1453_v17, %v1454_v28  ;;  %v1461_v35 = vrot.slane %v1460_v29, 1  ;;  %v2164_v37 = vsel %vm2145_vm14, %v2096_v25, %v2163_v10  ;;  %v1477_v40 = vsel %vm1308_vm11, %v1081_v33, -inf }
 0x27a   : > { %v1468_v42 = vrot.slane %v1467_v30, 1  ;;  %v1474_v20 = vmax.f32 %v1472_v23, %v1473_v32  ;;  %v1478_v44 = vrot.slane %v1477_v40, 4  ;;  %v1484_v46 = vsel %vm1308_vm11, %v1089_v24, -inf }
 0x27b   : > { %v1462_v47 = vmax.f32 %v1460_v29, %v1461_v35  ;;  %v1777_v4 = vmax.f32 %v1455_v34, 0.0  ;;  %v1485_v48 = vrot.slane %v1484_v46, 4  ;;  %v1491_v51 = vsel %vm1308_vm11, %v9647_v49, -inf }
 0x27c   : > { %v1469_v53 = vmax.f32 %v1467_v30, %v1468_v42  ;;  %v1475_v54 = vrot.slane %v1474_v20, 1  ;;  %v1479_v55 = vmax.f32 %v1477_v40, %v1478_v44  ;;  %v1492_v56 = vrot.slane %v1491_v51, 4 }
 0x27d   : > { %v1778_v57 = vmax.f32 %v1462_v47, 0.0  ;;  %v7877_v59 = vpack.c.bf16 %v1777_v4, %v1777_v4  ;;  %v1486_v60 = vmax.f32 %v1484_v46, %v1485_v48  ;;  %v1498_v33 = vsel %vm1308_vm11, %v1090_v58, -inf }
 0x27e   : > { %v1476_v31 = vmax.f32 %v1474_v20, %v1475_v54  ;;  %v1779_v62 = vmax.f32 %v1469_v53, 0.0  ;;  %v1480_v0 = vrot.slane %v1479_v55, 2  ;;  %v1493_v1 = vmax.f32 %v1491_v51, %v1492_v56 }
 0x27f   : > { %v7878_v2 = vpack.c.bf16 %v1778_v57, %v1778_v57  ;;  %v2097_v3 = vunpack.c.l.b16 %v7877_v59  ;;  %v1487_v5 = vrot.slane %v1486_v60, 2  ;;  %v1499_v8 = vrot.slane %v1498_v33, 4  ;;  %v8328_v59 = vld [vmem:[#allocation9 + $0x28] sm:$0xff]  }
 0x280   : > { %v1780_v9 = vmax.f32 %v1476_v31, 0.0  ;;  %v7879_v11 = vpack.c.bf16 %v1779_v62, %v1779_v62  ;;  %v1481_v49 = vmax.f32 %v1479_v55, %v1480_v0  ;;  %v1494_v12 = vrot.slane %v1493_v1, 2  ;;  %8027 = vmatprep.subr.bf16.mxu1 %v8328_v59 }
 0x281   : > { %v2098_v13 = vunpack.c.l.b16 %v7878_v2  ;;  %v2165_v14 = vsel %vm2147_vm15, %v2097_v3, %v2164_v37  ;;  %v1488_v15 = vmax.f32 %v1486_v60, %v1487_v5  ;;  %v1500_v16 = vmax.f32 %v1498_v33, %v1499_v8  ;;  %v8329_v60 = vld [vmem:[#allocation9 + $0x30] sm:$0xff]   ;;  %8028 = vmatpush3.bf16.msra.mxu1 %v8328_v59 }
 0x282   : > { %v7880_v17 = vpack.c.bf16 %v1780_v9, %v1780_v9  ;;  %v2099_v19 = vunpack.c.l.b16 %v7879_v11  ;;  %v1482_v21 = vrot.slane %v1481_v49, 1  ;;  %v1495_v22 = vmax.f32 %v1493_v1, %v1494_v12  ;;  %8029 = vmatprep.subr.bf16.mxu1 %v8329_v60 }
 0x283   : > { %v2166_v23 = vsel %vm2149_vm0, %v2098_v13, %v2165_v14  ;;  %v1489_v24 = vrot.slane %v1488_v15, 1  ;;  %v1501_v25 = vrot.slane %v1500_v16, 2  ;;  %v947_v45 = vadd.f32 %v9537_v41, %v9639_v27 }
 0x284   : > { %v2100_v28 = vunpack.c.l.b16 %v7880_v17  ;;  %v2167_v29 = vsel %vm2151_vm1, %v2099_v19, %v2166_v23  ;;  %v1483_v10 = vmax.f32 %v1481_v49, %v1482_v21  ;;  %v1496_v30 = vrot.slane %v1495_v22, 1 }
 0x285   : > { %v1490_v32 = vmax.f32 %v1488_v15, %v1489_v24  ;;  %v1502_v58 = vmax.f32 %v1500_v16, %v1501_v25  ;;  %v1091_v34 = vcombine.high %v947_v45, %v947_v45  ;;  %v1098_v35 = vrot.slane %v947_v45, %v9541_v43  ;;  %v8330_v15 = vld [vmem:[#allocation9 + $0x38] sm:$0xff]   ;;  %8030 = vmatpush3.bf16.msra.mxu1 %v8329_v60 }
 0x286   : > { %v2168_v37 = vsel %vm2153_vm2, %v2100_v28, %v2167_v29  ;;  %v1497_v40 = vmax.f32 %v1495_v22, %v1496_v30  ;;  %v1781_v42 = vmax.f32 %v1483_v10, 0.0  ;;  %v925_v20 = vmul.f32 %v9535_v39, %v9587_v50  ;;  %8031 = vmatprep.subr.bf16.mxu1 %v8330_v15 }
 0x287   : > { %v2206_v44 = vpack.c.b16 %v2168_v37, %v2168_v37  ;;  %v1503_v46 = vrot.slane %v1502_v58, 1  ;;  %v1782_v27 = vmax.f32 %v1490_v32, 0.0  ;;  %v1105_v47 = vrot.slane %v1091_v34, %v9541_v43 }
 0x288   : > { %v1783_v4 = vmax.f32 %v1497_v40, 0.0  ;;  %v7881_v48 = vpack.c.bf16 %v1781_v42, %v1781_v42  ;;  %v1106_v51 = vcombine.high %v1098_v35, %v1098_v35  ;;  %v1505_v53 = vsel %vm1308_vm11, %v1098_v35, -inf  ;;  %v9685_v35 = vld [vmem:[#allocation9] sm:$0xff]  }
 0x289   : > { %2223 = vst.msk [vmem:[#allocation2 + $0x10] sm:$0xf] %vm2220_vm3, %v2206_v44  ;;  %v1504_v54 = vmax.f32 %v1502_v58, %v1503_v46  ;;  %v7882_v55 = vpack.c.bf16 %v1782_v27, %v1782_v27  ;;  %v1107_v56 = vcombine.high %v1105_v47, %v1105_v47  ;;  %v1506_v57 = vrot.slane %v1505_v53, 4  ;;  %8032 = vmatpush3.bf16.msra.mxu1 %v8330_v15 }
 0x28a   : > { %v7883_v33 = vpack.c.bf16 %v1783_v4, %v1783_v4  ;;  %v2101_v50 = vunpack.c.l.b16 %v7881_v48  ;;  %v1512_v31 = vsel %vm1308_vm11, %v1106_v51, -inf  ;;  %v1519_v62 = vsel %vm1308_vm11, %v1105_v47, -inf  ;;  %8041 = vmatprep.subr.bf16.mxu1 %v9685_v35 }
 0x28b   : > { %v1784_v0 = vmax.f32 %v1504_v54, 0.0  ;;  %v2102_v1 = vunpack.c.l.b16 %v7882_v55  ;;  %v1507_v2 = vmax.f32 %v1505_v53, %v1506_v57  ;;  %v1513_v3 = vrot.slane %v1512_v31, 4 }
 0x28c   : > { %v2103_v5 = vunpack.c.l.b16 %v7883_v33  ;;  %v1520_v8 = vrot.slane %v1519_v62, 4  ;;  %v1526_v9 = vsel %vm1308_vm11, %v1107_v56, -inf  ;;  %v948_v11 = vadd.f32 %v9537_v41, %v925_v20 }
 0x28d   : > { %v7884_v49 = vpack.c.bf16 %v1784_v0, %v1784_v0  ;;  %v2169_v12 = vsel %vm2141_vm12, %v2102_v1, %v2101_v50  ;;  %v1508_v13 = vrot.slane %v1507_v2, 2  ;;  %v1514_v14 = vmax.f32 %v1512_v31, %v1513_v3 }
 0x28e   : > { %v2170_v16 = vsel %vm2143_vm13, %v2103_v5, %v2169_v12  ;;  %v1521_v17 = vmax.f32 %v1519_v62, %v1520_v8  ;;  %v1527_v19 = vrot.slane %v1526_v9, 4  ;;  %v1108_v21 = vcombine.high %v948_v11, %v948_v11 }
 0x28f   : > { %v2104_v22 = vunpack.c.l.b16 %v7884_v49  ;;  %v1509_v23 = vmax.f32 %v1507_v2, %v1508_v13  ;;  %v1515_v24 = vrot.slane %v1514_v14, 2  ;;  %v1115_v25 = vrot.slane %v948_v11, %v9541_v43 }
 0x290   : > { %v1522_v45 = vrot.slane %v1521_v17, 2  ;;  %v1528_v28 = vmax.f32 %v1526_v9, %v1527_v19  ;;  %v1122_v29 = vrot.slane %v1108_v21, %v9541_v43  ;;  %v926_v10 = vmul.f32 %v9535_v39, %v9594_v61 }
 0x291   : > { %v1510_v30 = vrot.slane %v1509_v23, 1  ;;  %v1516_v32 = vmax.f32 %v1514_v14, %v1515_v24  ;;  %v2171_v58 = vsel %vm2145_vm14, %v2104_v22, %v2170_v16  ;;  %v1123_v34 = vcombine.high %v1115_v25, %v1115_v25 }
 0x292   : > { %v1523_v37 = vmax.f32 %v1521_v17, %v1522_v45  ;;  %v1529_v40 = vrot.slane %v1528_v28, 2  ;;  %v1124_v42 = vcombine.high %v1122_v29, %v1122_v29  ;;  %v1533_v20 = vsel %vm1308_vm11, %v1115_v25, -inf }
 0x293   : > { %v1511_v44 = vmax.f32 %v1509_v23, %v1510_v30  ;;  %v1517_v46 = vrot.slane %v1516_v32, 1  ;;  %v1534_v27 = vrot.slane %v1533_v20, 4  ;;  %v1540_v47 = vsel %vm1308_vm11, %v1123_v34, -inf }
 0x294   : > { %v1524_v61 = vrot.slane %v1523_v37, 1  ;;  %v1530_v4 = vmax.f32 %v1528_v28, %v1529_v40  ;;  %v1541_v48 = vrot.slane %v1540_v47, 4  ;;  %v1547_v51 = vsel %vm1308_vm11, %v1122_v29, -inf }
 0x295   : > { %v1518_v53 = vmax.f32 %v1516_v32, %v1517_v46  ;;  %v1785_v54 = vmax.f32 %v1511_v44, 0.0  ;;  %v1535_v55 = vmax.f32 %v1533_v20, %v1534_v27  ;;  %v1548_v56 = vrot.slane %v1547_v51, 4 }
 0x296   : > { %v1525_v57 = vmax.f32 %v1523_v37, %v1524_v61  ;;  %v1531_v59 = vrot.slane %v1530_v4, 1  ;;  %v1542_v60 = vmax.f32 %v1540_v47, %v1541_v48  ;;  %v1554_v33 = vsel %vm1308_vm11, %v1124_v42, -inf }
 0x297   : > { %v1786_v50 = vmax.f32 %v1518_v53, 0.0  ;;  %v7885_v31 = vpack.c.bf16 %v1785_v54, %v1785_v54  ;;  %v1536_v62 = vrot.slane %v1535_v55, 2  ;;  %v1549_v0 = vmax.f32 %v1547_v51, %v1548_v56 }
 0x298   : > { %v1532_v1 = vmax.f32 %v1530_v4, %v1531_v59  ;;  %v1787_v2 = vmax.f32 %v1525_v57, 0.0  ;;  %v1543_v3 = vrot.slane %v1542_v60, 2  ;;  %v1555_v5 = vrot.slane %v1554_v33, 4 }
 0x299   : > { %v7886_v8 = vpack.c.bf16 %v1786_v50, %v1786_v50  ;;  %v2105_v9 = vunpack.c.l.b16 %v7885_v31  ;;  %v1537_v11 = vmax.f32 %v1535_v55, %v1536_v62  ;;  %v1550_v49 = vrot.slane %v1549_v0, 2 }
 0x29a   : > { %v1788_v12 = vmax.f32 %v1532_v1, 0.0  ;;  %v7887_v13 = vpack.c.bf16 %v1787_v2, %v1787_v2  ;;  %v1544_v14 = vmax.f32 %v1542_v60, %v1543_v3  ;;  %v1556_v15 = vmax.f32 %v1554_v33, %v1555_v5 }
 0x29b   : > { %v2106_v16 = vunpack.c.l.b16 %v7886_v8  ;;  %v2172_v17 = vsel %vm2147_vm15, %v2105_v9, %v2171_v58  ;;  %v1538_v19 = vrot.slane %v1537_v11, 1  ;;  %v1551_v21 = vmax.f32 %v1549_v0, %v1550_v49  ;;  %v9707_v8 = vld [vmem:[#allocation7] ss:$0 sm:$0xff] }
 0x29c   : > { %v7888_v22 = vpack.c.bf16 %v1788_v12, %v1788_v12  ;;  %v2107_v23 = vunpack.c.l.b16 %v7887_v13  ;;  %v1545_v24 = vrot.slane %v1544_v14, 1  ;;  %v1557_v25 = vrot.slane %v1556_v15, 2 }
 0x29d   : > { %v2173_v45 = vsel %vm2149_vm0, %v2106_v16, %v2172_v17  ;;  %v1539_v28 = vmax.f32 %v1537_v11, %v1538_v19  ;;  %v1552_v29 = vrot.slane %v1551_v21, 1  ;;  %v949_v30 = vadd.f32 %v9537_v41, %v926_v10 }
 0x29e   : > { %v2108_v32 = vunpack.c.l.b16 %v7888_v22  ;;  %v2174_v34 = vsel %vm2151_vm1, %v2107_v23, %v2173_v45  ;;  %v1546_v37 = vmax.f32 %v1544_v14, %v1545_v24  ;;  %v1558_v40 = vmax.f32 %v1556_v15, %v1557_v25  ;;  %v9712_v23 = vld [vmem:[#allocation5] ss:$0 sm:$0xff] }
 0x29f   : > { %v1553_v42 = vmax.f32 %v1551_v21, %v1552_v29  ;;  %v1789_v20 = vmax.f32 %v1539_v28, 0.0  ;;  %v1125_v58 = vcombine.high %v949_v30, %v949_v30  ;;  %v1132_v44 = vrot.slane %v949_v30, %v9541_v43 }
 0x2a0   : > { %v2175_v46 = vsel %vm2153_vm2, %v2108_v32, %v2174_v34  ;;  %v1559_v27 = vrot.slane %v1558_v40, 1  ;;  %v1790_v47 = vmax.f32 %v1546_v37, 0.0  ;;  %v927_v61 = vmul.f32 %v9535_v39, %v9604_v26 }
 0x2a1   : > { %v2207_v4 = vpack.c.b16 %v2175_v46, %v2175_v46  ;;  %v1791_v48 = vmax.f32 %v1553_v42, 0.0  ;;  %v7889_v41 = vpack.c.bf16 %v1789_v20, %v1789_v20  ;;  %v1139_v10 = vrot.slane %v1125_v58, %v9541_v43 }
 0x2a2   : > { %v1560_v51 = vmax.f32 %v1558_v40, %v1559_v27  ;;  %v7890_v53 = vpack.c.bf16 %v1790_v47, %v1790_v47  ;;  %v1140_v54 = vcombine.high %v1132_v44, %v1132_v44  ;;  %v1561_v55 = vsel %vm1308_vm11, %v1132_v44, -inf }
 0x2a3   : > { %2224 = vst.msk [vmem:[#allocation2 + $0x14] sm:$0xf] %vm2220_vm3, %v2207_v4  ;;  %v7891_v56 = vpack.c.bf16 %v1791_v48, %v1791_v48  ;;  %v2109_v57 = vunpack.c.l.b16 %v7889_v41  ;;  %v1141_v59 = vcombine.high %v1139_v10, %v1139_v10  ;;  %v1562_v60 = vrot.slane %v1561_v55, 4 }
 0x2a4   : > { %v1792_v33 = vmax.f32 %v1560_v51, 0.0  ;;  %v2110_v50 = vunpack.c.l.b16 %v7890_v53  ;;  %v1568_v39 = vsel %vm1308_vm11, %v1140_v54, -inf  ;;  %v1575_v26 = vsel %vm1308_vm11, %v1139_v10, -inf }
 0x2a5   : > { %v2111_v31 = vunpack.c.l.b16 %v7891_v56  ;;  %v1563_v62 = vmax.f32 %v1561_v55, %v1562_v60  ;;  %v1569_v0 = vrot.slane %v1568_v39, 4  ;;  %v1576_v1 = vrot.slane %v1575_v26, 4 }
 0x2a6   : > { %v7892_v2 = vpack.c.bf16 %v1792_v33, %v1792_v33  ;;  %v2176_v3 = vsel %vm2141_vm12, %v2110_v50, %v2109_v57  ;;  %v1582_v5 = vsel %vm1308_vm11, %v1141_v59, -inf  ;;  %v950_v9 = vadd.f32 %v9707_v8, %v927_v61 }
 0x2a7   : > { %v2177_v11 = vsel %vm2143_vm13, %v2111_v31, %v2176_v3  ;;  %v1564_v49 = vrot.slane %v1563_v62, 2  ;;  %v1570_v12 = vmax.f32 %v1568_v39, %v1569_v0  ;;  %v1577_v13 = vmax.f32 %v1575_v26, %v1576_v1 }
 0x2a8   : > { %v2112_v14 = vunpack.c.l.b16 %v7892_v2  ;;  %v1583_v15 = vrot.slane %v1582_v5, 4  ;;  %v1142_v16 = vcombine.high %v950_v9, %v950_v9  ;;  %v1149_v17 = vrot.slane %v950_v9, %v9541_v43 }
 0x2a9   : > { %v1565_v19 = vmax.f32 %v1563_v62, %v1564_v49  ;;  %v1571_v21 = vrot.slane %v1570_v12, 2  ;;  %v1578_v22 = vrot.slane %v1577_v13, 2  ;;  %v928_v24 = vmul.f32 %v9712_v23, %v9606_v36 }
 0x2aa   : > { %v1584_v25 = vmax.f32 %v1582_v5, %v1583_v15  ;;  %v2178_v45 = vsel %vm2145_vm14, %v2112_v14, %v2177_v11  ;;  %v1156_v28 = vrot.slane %v1142_v16, %v9541_v43  ;;  %v1157_v29 = vcombine.high %v1149_v17, %v1149_v17 }
 0x2ab   : > { %v1566_v30 = vrot.slane %v1565_v19, 1  ;;  %v1572_v32 = vmax.f32 %v1570_v12, %v1571_v21  ;;  %v1579_v34 = vmax.f32 %v1577_v13, %v1578_v22  ;;  %v1589_v37 = vsel %vm1308_vm11, %v1149_v17, -inf }
 0x2ac   : > { %v1585_v40 = vrot.slane %v1584_v25, 2  ;;  %v1158_v42 = vcombine.high %v1156_v28, %v1156_v28  ;;  %v1590_v20 = vrot.slane %v1589_v37, 4  ;;  %v1596_v58 = vsel %vm1308_vm11, %v1157_v29, -inf }
 0x2ad   : > { %v1567_v44 = vmax.f32 %v1565_v19, %v1566_v30  ;;  %v1573_v46 = vrot.slane %v1572_v32, 1  ;;  %v1580_v27 = vrot.slane %v1579_v34, 1  ;;  %v1597_v36 = vrot.slane %v1596_v58, 4 }
 0x2ae   : > { %v1586_v47 = vmax.f32 %v1584_v25, %v1585_v40  ;;  %v1591_v61 = vmax.f32 %v1589_v37, %v1590_v20  ;;  %v1603_v4 = vsel %vm1308_vm11, %v1156_v28, -inf  ;;  %v1610_v48 = vsel %vm1308_vm11, %v1158_v42, -inf }
 0x2af   : > { %v1574_v41 = vmax.f32 %v1572_v32, %v1573_v46  ;;  %v1581_v10 = vmax.f32 %v1579_v34, %v1580_v27  ;;  %v1793_v51 = vmax.f32 %v1567_v44, 0.0  ;;  %v1598_v53 = vmax.f32 %v1596_v58, %v1597_v36 }
 0x2b0   : > { %v1587_v54 = vrot.slane %v1586_v47, 1  ;;  %v1592_v55 = vrot.slane %v1591_v61, 2  ;;  %v1604_v56 = vrot.slane %v1603_v4, 4  ;;  %v1611_v57 = vrot.slane %v1610_v48, 4 }
 0x2b1   : > { %v1794_v59 = vmax.f32 %v1574_v41, 0.0  ;;  %v1795_v60 = vmax.f32 %v1581_v10, 0.0  ;;  %v7893_v33 = vpack.c.bf16 %v1793_v51, %v1793_v51  ;;  %v1599_v50 = vrot.slane %v1598_v53, 2 }
 0x2b2   : > { %v1588_v39 = vmax.f32 %v1586_v47, %v1587_v54  ;;  %v1593_v26 = vmax.f32 %v1591_v61, %v1592_v55  ;;  %v1605_v31 = vmax.f32 %v1603_v4, %v1604_v56  ;;  %v1612_v62 = vmax.f32 %v1610_v48, %v1611_v57 }
 0x2b3   : > { %v7894_v0 = vpack.c.bf16 %v1794_v59, %v1794_v59  ;;  %v7895_v1 = vpack.c.bf16 %v1795_v60, %v1795_v60  ;;  %v2113_v2 = vunpack.c.l.b16 %v7893_v33  ;;  %v1600_v3 = vmax.f32 %v1598_v53, %v1599_v50 }
 0x2b4   : > { %v1796_v5 = vmax.f32 %v1588_v39, 0.0  ;;  %v1594_v9 = vrot.slane %v1593_v26, 1  ;;  %v1606_v11 = vrot.slane %v1605_v31, 2  ;;  %v1613_v49 = vrot.slane %v1612_v62, 2 }
 0x2b5   : > { %v2114_v12 = vunpack.c.l.b16 %v7894_v0  ;;  %v2115_v13 = vunpack.c.l.b16 %v7895_v1  ;;  %v2179_v14 = vsel %vm2147_vm15, %v2113_v2, %v2178_v45  ;;  %v1601_v15 = vrot.slane %v1600_v3, 1 }
 0x2b6   : > { %v7896_v16 = vpack.c.bf16 %v1796_v5, %v1796_v5  ;;  %v1595_v17 = vmax.f32 %v1593_v26, %v1594_v9  ;;  %v1607_v19 = vmax.f32 %v1605_v31, %v1606_v11  ;;  %v1614_v21 = vmax.f32 %v1612_v62, %v1613_v49 }
 0x2b7   : > { %v2180_v22 = vsel %vm2149_vm0, %v2114_v12, %v2179_v14  ;;  %v1602_v25 = vmax.f32 %v1600_v3, %v1601_v15  ;;  %v951_v28 = vadd.f32 %v9707_v8, %v928_v24  ;;  %v929_v29 = vmul.f32 %v9712_v23, %v9608_v7 }
 0x2b8   : > { %v2116_v30 = vunpack.c.l.b16 %v7896_v16  ;;  %v2181_v32 = vsel %vm2151_vm1, %v2115_v13, %v2180_v22  ;;  %v1608_v34 = vrot.slane %v1607_v19, 1  ;;  %v1615_v37 = vrot.slane %v1614_v21, 1 }
 0x2b9   : > { %v1797_v40 = vmax.f32 %v1595_v17, 0.0  ;;  %v1798_v45 = vmax.f32 %v1602_v25, 0.0  ;;  %v1159_v42 = vcombine.high %v951_v28, %v951_v28  ;;  %v1166_v20 = vrot.slane %v951_v28, %v9541_v43 }
 0x2ba   : > { %v2182_v58 = vsel %vm2153_vm2, %v2116_v30, %v2181_v32  ;;  %v1609_v44 = vmax.f32 %v1607_v19, %v1608_v34  ;;  %v1616_v46 = vmax.f32 %v1614_v21, %v1615_v37  ;;  %v952_v27 = vadd.f32 %v9707_v8, %v929_v29 }
 0x2bb   : > { %v2208_v24 = vpack.c.b16 %v2182_v58, %v2182_v58  ;;  %v7897_v36 = vpack.c.bf16 %v1797_v40, %v1797_v40  ;;  %v7898_v47 = vpack.c.bf16 %v1798_v45, %v1798_v45  ;;  %v1173_v7 = vrot.slane %v1159_v42, %v9541_v43 }
 0x2bc   : > { %v1799_v61 = vmax.f32 %v1609_v44, 0.0  ;;  %v1800_v4 = vmax.f32 %v1616_v46, 0.0  ;;  %v1174_v48 = vcombine.high %v1166_v20, %v1166_v20  ;;  %v1617_v41 = vsel %vm1308_vm11, %v1166_v20, -inf }
 0x2bd   : > { %2225 = vst.msk [vmem:[#allocation2 + $0x18] sm:$0xf] %vm2220_vm3, %v2208_v24  ;;  %v2117_v10 = vunpack.c.l.b16 %v7897_v36  ;;  %v2118_v51 = vunpack.c.l.b16 %v7898_v47  ;;  %v1175_v53 = vcombine.high %v1173_v7, %v1173_v7  ;;  %v1618_v54 = vrot.slane %v1617_v41, 4 }
 0x2be   : > { %v7899_v55 = vpack.c.bf16 %v1799_v61, %v1799_v61  ;;  %v7900_v56 = vpack.c.bf16 %v1800_v4, %v1800_v4  ;;  %v1624_v57 = vsel %vm1308_vm11, %v1174_v48, -inf  ;;  %v1631_v59 = vsel %vm1308_vm11, %v1173_v7, -inf }
 0x2bf   : > { %v2183_v60 = vsel %vm2141_vm12, %v2118_v51, %v2117_v10  ;;  %v1619_v33 = vmax.f32 %v1617_v41, %v1618_v54  ;;  %v1625_v50 = vrot.slane %v1624_v57, 4  ;;  %v1632_v39 = vrot.slane %v1631_v59, 4 }
 0x2c0   : > { %v2119_v26 = vunpack.c.l.b16 %v7899_v55  ;;  %v2120_v31 = vunpack.c.l.b16 %v7900_v56  ;;  %v1638_v62 = vsel %vm1308_vm11, %v1175_v53, -inf  ;;  %v1176_v0 = vcombine.high %v952_v27, %v952_v27 }
 0x2c1   : > { %v1620_v1 = vrot.slane %v1619_v33, 2  ;;  %v1626_v2 = vmax.f32 %v1624_v57, %v1625_v50  ;;  %v1633_v3 = vmax.f32 %v1631_v59, %v1632_v39  ;;  %v1639_v5 = vrot.slane %v1638_v62, 4 }
 0x2c2   : > { %v2184_v9 = vsel %vm2143_vm13, %v2119_v26, %v2183_v60  ;;  %v1183_v11 = vrot.slane %v952_v27, %v9541_v43  ;;  %v1190_v49 = vrot.slane %v1176_v0, %v9541_v43  ;;  %v930_v12 = vmul.f32 %v9712_v23, %v9610_v18 }
 0x2c3   : > { %v1621_v13 = vmax.f32 %v1619_v33, %v1620_v1  ;;  %v1627_v14 = vrot.slane %v1626_v2, 2  ;;  %v1634_v15 = vrot.slane %v1633_v3, 2  ;;  %v1640_v16 = vmax.f32 %v1638_v62, %v1639_v5 }
 0x2c4   : > { %v2185_v17 = vsel %vm2145_vm14, %v2120_v31, %v2184_v9  ;;  %v1191_v19 = vcombine.high %v1183_v11, %v1183_v11  ;;  %v1192_v21 = vcombine.high %v1190_v49, %v1190_v49  ;;  %v1645_v22 = vsel %vm1308_vm11, %v1183_v11, -inf }
 0x2c5   : > { %v1622_v25 = vrot.slane %v1621_v13, 1  ;;  %v1628_v28 = vmax.f32 %v1626_v2, %v1627_v14  ;;  %v1635_v29 = vmax.f32 %v1633_v3, %v1634_v15  ;;  %v1641_v30 = vrot.slane %v1640_v16, 2 }
 0x2c6   : > { %v1646_v32 = vrot.slane %v1645_v22, 4  ;;  %v1652_v34 = vsel %vm1308_vm11, %v1191_v19, -inf  ;;  %v1659_v37 = vsel %vm1308_vm11, %v1190_v49, -inf  ;;  %v1666_v18 = vsel %vm1308_vm11, %v1192_v21, -inf }
 0x2c7   : > { %v1623_v40 = vmax.f32 %v1621_v13, %v1622_v25  ;;  %v1629_v45 = vrot.slane %v1628_v28, 1  ;;  %v1636_v42 = vrot.slane %v1635_v29, 1  ;;  %v1642_v20 = vmax.f32 %v1640_v16, %v1641_v30 }
 0x2c8   : > { %v1647_v58 = vmax.f32 %v1645_v22, %v1646_v32  ;;  %v1653_v44 = vrot.slane %v1652_v34, 4  ;;  %v1660_v46 = vrot.slane %v1659_v37, 4  ;;  %v1667_v27 = vrot.slane %v1666_v18, 4 }
 0x2c9   : > { %v1630_v24 = vmax.f32 %v1628_v28, %v1629_v45  ;;  %v1637_v36 = vmax.f32 %v1635_v29, %v1636_v42  ;;  %v1643_v47 = vrot.slane %v1642_v20, 1  ;;  %v1801_v7 = vmax.f32 %v1623_v40, 0.0 }
 0x2ca   : > { %v1648_v61 = vrot.slane %v1647_v58, 2  ;;  %v1654_v4 = vmax.f32 %v1652_v34, %v1653_v44  ;;  %v1661_v48 = vmax.f32 %v1659_v37, %v1660_v46  ;;  %v1668_v41 = vmax.f32 %v1666_v18, %v1667_v27 }
 0x2cb   : > { %v1644_v10 = vmax.f32 %v1642_v20, %v1643_v47  ;;  %v1802_v51 = vmax.f32 %v1630_v24, 0.0  ;;  %v1803_v53 = vmax.f32 %v1637_v36, 0.0  ;;  %v7901_v54 = vpack.c.bf16 %v1801_v7, %v1801_v7 }
 0x2cc   : > { %v1649_v55 = vmax.f32 %v1647_v58, %v1648_v61  ;;  %v1655_v56 = vrot.slane %v1654_v4, 2  ;;  %v1662_v57 = vrot.slane %v1661_v48, 2  ;;  %v1669_v59 = vrot.slane %v1668_v41, 2 }
 0x2cd   : > { %v1804_v60 = vmax.f32 %v1644_v10, 0.0  ;;  %v7902_v33 = vpack.c.bf16 %v1802_v51, %v1802_v51  ;;  %v7903_v50 = vpack.c.bf16 %v1803_v53, %v1803_v53  ;;  %v2121_v39 = vunpack.c.l.b16 %v7901_v54 }
 0x2ce   : > { %v1650_v26 = vrot.slane %v1649_v55, 1  ;;  %v1656_v31 = vmax.f32 %v1654_v4, %v1655_v56  ;;  %v1663_v62 = vmax.f32 %v1661_v48, %v1662_v57  ;;  %v1670_v0 = vmax.f32 %v1668_v41, %v1669_v59 }
 0x2cf   : > { %v7904_v1 = vpack.c.bf16 %v1804_v60, %v1804_v60  ;;  %v2122_v2 = vunpack.c.l.b16 %v7902_v33  ;;  %v2123_v3 = vunpack.c.l.b16 %v7903_v50  ;;  %v2186_v5 = vsel %vm2147_vm15, %v2121_v39, %v2185_v17 }
 0x2d0   : > { %v1651_v9 = vmax.f32 %v1649_v55, %v1650_v26  ;;  %v1657_v11 = vrot.slane %v1656_v31, 1  ;;  %v1664_v49 = vrot.slane %v1663_v62, 1  ;;  %v1671_v13 = vrot.slane %v1670_v0, 1 }
 0x2d1   : > { %v2124_v14 = vunpack.c.l.b16 %v7904_v1  ;;  %v2187_v15 = vsel %vm2149_vm0, %v2122_v2, %v2186_v5  ;;  %v953_v16 = vadd.f32 %v9707_v8, %v930_v12  ;;  %v931_v19 = vmul.f32 %v9712_v23, %v9620_v52 }
 0x2d2   : > { %v2188_v21 = vsel %vm2151_vm1, %v2123_v3, %v2187_v15  ;;  %v1658_v22 = vmax.f32 %v1656_v31, %v1657_v11  ;;  %v1665_v25 = vmax.f32 %v1663_v62, %v1664_v49  ;;  %v1672_v28 = vmax.f32 %v1670_v0, %v1671_v13 }
 0x2d3   : > { %v2189_v29 = vsel %vm2153_vm2, %v2124_v14, %v2188_v21  ;;  %v1805_v17 = vmax.f32 %v1651_v9, 0.0  ;;  %v1193_v30 = vcombine.high %v953_v16, %v953_v16  ;;  %v1200_v32 = vrot.slane %v953_v16, %v9541_v43 }
 0x2d4   : > { %v2209_v34 = vpack.c.b16 %v2189_v29, %v2189_v29  ;;  %v1806_v37 = vmax.f32 %v1658_v22, 0.0  ;;  %v1807_v18 = vmax.f32 %v1665_v25, 0.0  ;;  %v1808_v40 = vmax.f32 %v1672_v28, 0.0 }
 0x2d5   : > { %v7905_v45 = vpack.c.bf16 %v1805_v17, %v1805_v17  ;;  %v1207_v12 = vrot.slane %v1193_v30, %v9541_v43  ;;  %v1208_v42 = vcombine.high %v1200_v32, %v1200_v32  ;;  %v1673_v52 = vsel %vm1308_vm11, %v1200_v32, -inf }
 0x2d6   : > { %2226 = vst.msk [vmem:[#allocation2 + $0x1c] sm:$0xf] %vm2220_vm3, %v2209_v34  ;;  %v7906_v20 = vpack.c.bf16 %v1806_v37, %v1806_v37  ;;  %v7907_v58 = vpack.c.bf16 %v1807_v18, %v1807_v18  ;;  %v7908_v44 = vpack.c.bf16 %v1808_v40, %v1808_v40  ;;  %v1674_v46 = vrot.slane %v1673_v52, 4 }
 0x2d7   : > { %v2125_v27 = vunpack.c.l.b16 %v7905_v45  ;;  %v1209_v24 = vcombine.high %v1207_v12, %v1207_v12  ;;  %v1680_v36 = vsel %vm1308_vm11, %v1208_v42, -inf  ;;  %v1687_v47 = vsel %vm1308_vm11, %v1207_v12, -inf }
 0x2d8   : > { %v2126_v7 = vunpack.c.l.b16 %v7906_v20  ;;  %v2127_v61 = vunpack.c.l.b16 %v7907_v58  ;;  %v2128_v4 = vunpack.c.l.b16 %v7908_v44  ;;  %v1675_v48 = vmax.f32 %v1673_v52, %v1674_v46 }
 0x2d9   : > { %v1681_v41 = vrot.slane %v1680_v36, 4  ;;  %v1688_v10 = vrot.slane %v1687_v47, 4  ;;  %v1694_v51 = vsel %vm1308_vm11, %v1209_v24, -inf  ;;  %v954_v53 = vadd.f32 %v9707_v8, %v931_v19 }
 0x2da   : > { %v2190_v54 = vsel %vm2141_vm12, %v2126_v7, %v2125_v27  ;;  %v1676_v55 = vrot.slane %v1675_v48, 2  ;;  %v1695_v56 = vrot.slane %v1694_v51, 4  ;;  %v932_v57 = vmul.f32 %v9712_v23, %v9625_v63 }
 0x2db   : > { %v2191_v59 = vsel %vm2143_vm13, %v2127_v61, %v2190_v54  ;;  %v1682_v60 = vmax.f32 %v1680_v36, %v1681_v41  ;;  %v1689_v33 = vmax.f32 %v1687_v47, %v1688_v10  ;;  %v1210_v50 = vcombine.high %v954_v53, %v954_v53 }
 0x2dc   : > { %v1677_v39 = vmax.f32 %v1675_v48, %v1676_v55  ;;  %v1696_v26 = vmax.f32 %v1694_v51, %v1695_v56  ;;  %v2192_v31 = vsel %vm2145_vm14, %v2128_v4, %v2191_v59  ;;  %v1217_v62 = vrot.slane %v954_v53, %v9541_v43 }
 0x2dd   : > { %v1683_v0 = vrot.slane %v1682_v60, 2  ;;  %v1690_v1 = vrot.slane %v1689_v33, 2  ;;  %v1224_v2 = vrot.slane %v1210_v50, %v9541_v43  ;;  %v955_v3 = vadd.f32 %v9707_v8, %v932_v57 }
 0x2de   : > { %v1678_v5 = vrot.slane %v1677_v39, 1  ;;  %v1697_v9 = vrot.slane %v1696_v26, 2  ;;  %v1225_v63 = vcombine.high %v1217_v62, %v1217_v62  ;;  %v1701_v23 = vsel %vm1308_vm11, %v1217_v62, -inf }
 0x2df   : > { %v1684_v11 = vmax.f32 %v1682_v60, %v1683_v0  ;;  %v1691_v49 = vmax.f32 %v1689_v33, %v1690_v1  ;;  %v1226_v13 = vcombine.high %v1224_v2, %v1224_v2  ;;  %v1702_v14 = vrot.slane %v1701_v23, 4 }
 0x2e0   : > { %v1679_v15 = vmax.f32 %v1677_v39, %v1678_v5  ;;  %v1698_v16 = vmax.f32 %v1696_v26, %v1697_v9  ;;  %v1708_v19 = vsel %vm1308_vm11, %v1225_v63, -inf  ;;  %v1715_v21 = vsel %vm1308_vm11, %v1224_v2, -inf }
 0x2e1   : > { %v1685_v22 = vrot.slane %v1684_v11, 1  ;;  %v1692_v25 = vrot.slane %v1691_v49, 1  ;;  %v1703_v28 = vmax.f32 %v1701_v23, %v1702_v14  ;;  %v1709_v29 = vrot.slane %v1708_v19, 4 }
 0x2e2   : > { %v1699_v8 = vrot.slane %v1698_v16, 1  ;;  %v1809_v17 = vmax.f32 %v1679_v15, 0.0  ;;  %v1716_v30 = vrot.slane %v1715_v21, 4  ;;  %v1722_v32 = vsel %vm1308_vm11, %v1226_v13, -inf }
 0x2e3   : > { %v1686_v34 = vmax.f32 %v1684_v11, %v1685_v22  ;;  %v1693_v37 = vmax.f32 %v1691_v49, %v1692_v25  ;;  %v1704_v18 = vrot.slane %v1703_v28, 2  ;;  %v1710_v40 = vmax.f32 %v1708_v19, %v1709_v29  ;;  %v9781_v19 = vld [vmem:[#allocation2 + $0x8] sm:$0xf] }
 0x2e4   : > { %v1700_v45 = vmax.f32 %v1698_v16, %v1699_v8  ;;  %v7909_v12 = vpack.c.bf16 %v1809_v17, %v1809_v17  ;;  %v1717_v42 = vmax.f32 %v1715_v21, %v1716_v30  ;;  %v1723_v52 = vrot.slane %v1722_v32, 4  ;;  %v2229_v16 = vld [vmem:[#allocation2 + $0x4] sm:$0x8]  ;;  %v9786_v30 = vld [vmem:[#allocation2 + $0x10] sm:$0xf] }
 0x2e5   : > { %v1810_v20 = vmax.f32 %v1686_v34, 0.0  ;;  %v1811_v58 = vmax.f32 %v1693_v37, 0.0  ;;  %v1705_v44 = vmax.f32 %v1703_v28, %v1704_v18  ;;  %v1711_v46 = vrot.slane %v1710_v40, 2 }
 0x2e6   : > { %v1812_v27 = vmax.f32 %v1700_v45, 0.0  ;;  %v2129_v24 = vunpack.c.l.b16 %v7909_v12  ;;  %v1718_v36 = vrot.slane %v1717_v42, 2  ;;  %v1724_v47 = vmax.f32 %v1722_v32, %v1723_v52  ;;  %v9793_v52 = vld [vmem:[#allocation2 + $0xc] sm:$0xf] }
 0x2e7   : > { %v7910_v7 = vpack.c.bf16 %v1810_v20, %v1810_v20  ;;  %v7911_v61 = vpack.c.bf16 %v1811_v58, %v1811_v58  ;;  %v1706_v4 = vrot.slane %v1705_v44, 1  ;;  %v1712_v48 = vmax.f32 %v1710_v40, %v1711_v46 }
 0x2e8   : > { %v7912_v41 = vpack.c.bf16 %v1812_v27, %v1812_v27  ;;  %v2193_v10 = vsel %vm2147_vm15, %v2129_v24, %v2192_v31  ;;  %v1719_v51 = vmax.f32 %v1717_v42, %v1718_v36  ;;  %v1725_v53 = vrot.slane %v1724_v47, 2 }
 0x2e9   : > { %v2130_v54 = vunpack.c.l.b16 %v7910_v7  ;;  %v2131_v55 = vunpack.c.l.b16 %v7911_v61  ;;  %v1707_v56 = vmax.f32 %v1705_v44, %v1706_v4  ;;  %v1713_v57 = vrot.slane %v1712_v48, 1 }
 0x2ea   : > { %v2132_v59 = vunpack.c.l.b16 %v7912_v41  ;;  %v1720_v60 = vrot.slane %v1719_v51, 1  ;;  %v1726_v33 = vmax.f32 %v1724_v47, %v1725_v53  ;;  %v1227_v50 = vcombine.high %v955_v3, %v955_v3 }
 0x2eb   : > { %v2194_v39 = vsel %vm2149_vm0, %v2130_v54, %v2193_v10  ;;  %v1714_v26 = vmax.f32 %v1712_v48, %v1713_v57  ;;  %v1813_v62 = vmax.f32 %v1707_v56, 0.0  ;;  %v1234_v0 = vrot.slane %v955_v3, %v9541_v43  ;;  %v9804_v56 = vld [vmem:[#allocation2 + $0x18] sm:$0xf] }
 0x2ec   : > { %v2195_v1 = vsel %vm2151_vm1, %v2131_v55, %v2194_v39  ;;  %v1721_v2 = vmax.f32 %v1719_v51, %v1720_v60  ;;  %v1727_v31 = vrot.slane %v1726_v33, 1  ;;  %v1241_v5 = vrot.slane %v1227_v50, %v9541_v43 }
 0x2ed   : > { %v2196_v9 = vsel %vm2153_vm2, %v2132_v59, %v2195_v1  ;;  %v1814_v63 = vmax.f32 %v1714_v26, 0.0  ;;  %v7913_v23 = vpack.c.bf16 %v1813_v62, %v1813_v62  ;;  %v1242_v11 = vcombine.high %v1234_v0, %v1234_v0 }
 0x2ee   : > { %v2210_v49 = vpack.c.b16 %v2196_v9, %v2196_v9  ;;  %v1728_v13 = vmax.f32 %v1726_v33, %v1727_v31  ;;  %v1815_v14 = vmax.f32 %v1721_v2, 0.0  ;;  %v1243_v15 = vcombine.high %v1241_v5, %v1241_v5  ;;  %v9810_v31 = vld [vmem:[#allocation2 + $0x14] sm:$0xf] }
 0x2ef   : > { %v7914_v21 = vpack.c.bf16 %v1814_v63, %v1814_v63  ;;  %v2133_v3 = vunpack.c.l.b16 %v7913_v23  ;;  %v1729_v22 = vsel %vm1308_vm11, %v1234_v0, -inf  ;;  %v1736_v25 = vsel %vm1308_vm11, %v1242_v11, -inf }
 0x2f0   : > { %2227 = vst.msk [vmem:[#allocation2 + $0x20] sm:$0xf] %vm2220_vm3, %v2210_v49  ;;  %v1816_v28 = vmax.f32 %v1728_v13, 0.0  ;;  %v7915_v29 = vpack.c.bf16 %v1815_v14, %v1815_v14  ;;  %v1730_v8 = vrot.slane %v1729_v22, 4  ;;  %v1737_v17 = vrot.slane %v1736_v25, 4 }
 0x2f1   : > { %v2134_v32 = vunpack.c.l.b16 %v7914_v21  ;;  %v1743_v34 = vsel %vm1308_vm11, %v1241_v5, -inf  ;;  %v1750_v37 = vsel %vm1308_vm11, %v1243_v15, -inf  ;;  %v9791_v18 = vcombine.low %v2229_v16, %v9781_v19  ;;  %v9816_v49 = vld [vmem:[#allocation2 + $0x1c] sm:$0xf] }
 0x2f2   : > { %v7916_v40 = vpack.c.bf16 %v1816_v28, %v1816_v28  ;;  %v2135_v45 = vunpack.c.l.b16 %v7915_v29  ;;  %v1731_v12 = vmax.f32 %v1729_v22, %v1730_v8  ;;  %v1738_v42 = vmax.f32 %v1736_v25, %v1737_v17 }
 0x2f3   : > { %v2197_v20 = vsel %vm2141_vm12, %v2134_v32, %v2133_v3  ;;  %v1744_v58 = vrot.slane %v1743_v34, 4  ;;  %v1751_v44 = vrot.slane %v1750_v37, 4  ;;  %v9798_v46 = vcombine.low %v9793_v52, %v9786_v30 }
 0x2f4   : > { %v2136_v27 = vunpack.c.l.b16 %v7916_v40  ;;  %v1732_v24 = vrot.slane %v1731_v12, 2  ;;  %v1739_v36 = vrot.slane %v1738_v42, 2  ;;  %v2198_v47 = vsel %vm2143_vm13, %v2135_v45, %v2197_v20 }
 0x2f5   : > { %v1745_v7 = vmax.f32 %v1743_v34, %v1744_v58  ;;  %v1752_v61 = vmax.f32 %v1750_v37, %v1751_v44  ;;  %v2281_v4 = vshrl.u32 %v9791_v18, 16  ;;  %v2284_v10 = vshll.u32 %v9791_v18, 16 }
 0x2f6   : > { %v1733_v48 = vmax.f32 %v1731_v12, %v1732_v24  ;;  %v1740_v41 = vmax.f32 %v1738_v42, %v1739_v36  ;;  %v2289_v55 = vshrl.u32 %v9798_v46, 16  ;;  %v2292_v33 = vshll.u32 %v9798_v46, 16 }
 0x2f7   : > { %v1746_v51 = vrot.slane %v1745_v7, 2  ;;  %v1753_v53 = vrot.slane %v1752_v61, 2  ;;  %v2283_v54 = vrot.slane %v2281_v4, 3  ;;  %v2286_v60 = vrot.slane %v2284_v10, 4  ;;  %v9808_v0 = vld [vmem:[#allocation2 + $0x20] sm:$0xf] }
 0x2f8   : > { %v1734_v57 = vrot.slane %v1733_v48, 1  ;;  %v1741_v59 = vrot.slane %v1740_v41, 1  ;;  %v2199_v26 = vsel %vm2145_vm14, %v2136_v27, %v2198_v47  ;;  %v2291_v62 = vrot.slane %v2289_v55, 3  ;;  %v8334_v47 = vld [vmem:[#allocation9 + $0x8] sm:$0xff]  }
 0x2f9   : > { %v1747_v50 = vmax.f32 %v1745_v7, %v1746_v51  ;;  %v1754_v39 = vmax.f32 %v1752_v61, %v1753_v53  ;;  %v2294_v5 = vrot.slane %v2292_v33, 4  ;;  %v2287_v23 = vor.u32 %v2286_v60, %v2283_v54  ;;  %v8335_v54 = vld [vmem:[#allocation9 + $0x10] sm:$0xff]  }
 0x2fa   : > { %v1735_v1 = vmax.f32 %v1733_v48, %v1734_v57  ;;  %v1742_v2 = vmax.f32 %v1740_v41, %v1741_v59  ;;  %v9814_v11 = vcombine.low %v9810_v31, %v9804_v56  ;;  %v9820_v16 = vcombine.low %v9816_v49, %v9808_v0  ;;  %v8337_v57 = vld [vmem:[#allocation9 + $0x18] sm:$0xff]   ;;  %v8338_v59 = vld [vmem:[#allocation9 + $0x40] sm:$0xff]  }
 0x2fb   : > { %v1748_v9 = vrot.slane %v1747_v50, 1  ;;  %v1755_v63 = vrot.slane %v1754_v39, 1  ;;  %v2295_v15 = vor.u32 %v2294_v5, %v2291_v62  ;;  %v2431_v62 = vrot.slane %v9798_v46, 3 }
 0x2fc   : > { %v1817_v13 = vmax.f32 %v1735_v1, 0.0  ;;  %v1818_v14 = vmax.f32 %v1742_v2, 0.0  ;;  %v2298_v22 = vshrl.u32 %v9814_v11, 16  ;;  %v2301_v25 = vshll.u32 %v9814_v11, 16 }
 0x2fd   : > { %v1749_v21 = vmax.f32 %v1747_v50, %v1748_v9  ;;  %v1756_v3 = vmax.f32 %v1754_v39, %v1755_v63  ;;  %v2296_v8 = vsel %vm2279_vm4, %v2287_v23, %v2295_v15  ;;  %v2307_v17 = vshrl.u32 %v9820_v16, 16 }
 0x2fe   : > { %v7917_v28 = vpack.c.bf16 %v1817_v13, %v1817_v13  ;;  %v7918_v29 = vpack.c.bf16 %v1818_v14, %v1818_v14  ;;  %8033 = vmatprep.mubr.msk.bf16.mxu1 %vm2348_vm5, %v2296_v8  ;;  %v2300_v37 = vrot.slane %v2298_v22, 3  ;;  %v2303_v40 = vrot.slane %v2301_v25, 4  ;;  %v8339_v13 = vld [vmem:[#allocation9 + $0x48] sm:$0xff]   ;;  %v9857_v22 = vld [vmem:[#allocation2 + $0xc] sm:$0xf]  ;;  %v9862_v8 = vld [vmem:[#allocation2 + $0x10] sm:$0xff]  }
 0x2ff   : > { %v1819_v32 = vmax.f32 %v1749_v21, 0.0  ;;  %v1820_v34 = vmax.f32 %v1756_v3, 0.0  ;;  %v2309_v12 = vrot.slane %v2307_v17, 3  ;;  %v2310_v42 = vshll.u32 %v9820_v16, 16  ;;  %v8343_v3 = vld [vmem:[#allocation9 + $0x58] sm:$0xff]  }
 0x300   : > { %v2137_v45 = vunpack.c.l.b16 %v7917_v28  ;;  %v2138_v44 = vunpack.c.l.b16 %v7918_v29  ;;  %v2304_v27 = vor.u32 %v2303_v40, %v2300_v37  ;;  %v2430_v2 = vrot.slane %v9791_v18, 3  ;;  %v2662_v25 = vld [vmem:[#allocation2 + $0x8] sm:$0xf]  ;;  %v8344_v28 = vld [vmem:[#allocation9 + $0x60] sm:$0xff]  }
 0x301   : > { %v7919_v20 = vpack.c.bf16 %v1819_v32, %v1819_v32  ;;  %v7920_v58 = vpack.c.bf16 %v1820_v34, %v1820_v34  ;;  %v2312_v36 = vrot.slane %v2310_v42, 4  ;;  %v2433_v63 = vrot.slane %v9814_v11, 3  ;;  %v8347_v37 = vld [vmem:[#allocation9 + $0x70] sm:$0xff]  }
 0x302   : > { %v2200_v24 = vsel %vm2147_vm15, %v2137_v45, %v2199_v26  ;;  %v2305_v4 = vsel %vm2279_vm4, %v2295_v15, %v2304_v27  ;;  %v2432_v9 = vsel %vm2429_vm6, %v2430_v2, %v2431_v62  ;;  %v2435_v23 = vrot.slane %v9820_v16, 3  ;;  %v8340_v15 = vld [vmem:[#allocation9 + $0x50] sm:$0xff]   ;;  %v8353_v45 = vld [vmem:[#allocation2 + $0x18] sm:$0xff]  }
 0x303   : > { %v2139_v7 = vunpack.c.l.b16 %v7919_v20  ;;  %v2201_v61 = vsel %vm2149_vm0, %v2138_v44, %v2200_v24  ;;  %v2140_v48 = vunpack.c.l.b16 %v7920_v58  ;;  %8034 = vmatmul.mubr.msk.bf16.vlgmr.msra.gmra.mrb[0].mxu1 %vm2348_vm5, %v2305_v4  ;;  %v2313_v41 = vor.u32 %v2312_v36, %v2309_v12 }
 0x304   : > { %8042 = vmatpush3.bf16.msra.mxu1 %v9685_v35  ;;  %v2434_v14 = vsel %vm2429_vm6, %v2431_v62, %v2433_v63  ;;  %v2436_v18 = vsel %vm2429_vm6, %v2433_v63, %v2435_v23  ;;  %v7491_v16 = vcombine.low %v9781_v19, %v9793_v52  ;;  %v7503_v29 = vcombine.low %v2662_v25, %v9857_v22  ;;  %v8346_v19 = vld [vmem:[#allocation9 + $0x68] sm:$0xff]   ;;  %v8375_v25 = vld [vmem:[#allocation13 + $0x50] ss:$8 sps:$4 sm:$0xff]  }
 0x305   : > { %v2202_v10 = vsel %vm2151_vm1, %v2139_v7, %v2201_v61  ;;  %v2314_v53 = vsel %vm2279_vm4, %v2304_v27, %v2313_v41  ;;  %8043 = vmatprep.subr.bf16.mxu1 %v8334_v47  ;;  %v7492_v17 = vcombine.low %v9786_v30, %v9810_v31  ;;  %v7493_v32 = vcombine.low %v9804_v56, %v9816_v49  ;;  %v8351_v49 = vld [vmem:[#allocation9 + $0x78] sm:$0xff]   ;;  %v8352_v27 = vld [vmem:[#allocation9 + $0x80] sm:$0xff]  }
 0x306   : > { %v2203_v51 = vsel %vm2153_vm2, %v2140_v48, %v2202_v10  ;;  %8037 = vmatprep.mubr.msk.bf16.mxu1 %vm2348_vm5, %v2314_v53  ;;  %v2707_v52 = vshll.u32 %v7503_v29, 16  ;;  %v2712_v34 = vshll.u32 %v9862_v8, 16  ;;  %v2705_v12 = vshrl.u32 %v7503_v29, 16  ;;  %v8355_v48 = vld [vmem:[#allocation9 + $0x88] sm:$0xff]  }
 0x307   : > { %v2211_v55 = vpack.c.b16 %v2203_v51, %v2203_v51  ;;  %v2720_v20 = vshll.u32 %v8353_v45, 16  ;;  %v2716_v36 = vshrl.u32 %v9862_v8, 16  ;;  %v2866_v62 = vrot.slane %v8353_v45, 1  ;;  %v8378_v29 = vld [vmem:[#allocation13 + $0x60] ss:$8 sps:$4 sm:$0xff]  }
 0x308   : > { %8044 = vmatpush3.bf16.msra.mxu1 %v8334_v47  ;;  %v2709_v40 = vrot.slane %v2707_v52, 1  ;;  %v2714_v42 = vrot.slane %v2712_v34, 1  ;;  %v2724_v47 = vshrl.u32 %v8353_v45, 16  ;;  %v8381_v52 = vld [vmem:[#allocation13 + $0x70] ss:$8 sps:$4 sm:$0xff]  }
 0x309   : > { %2228 = vst.msk [vmem:[#allocation2 + $0x24] sm:$0xf] %vm2220_vm3, %v2211_v55  ;;  %8045 = vmatprep.subr.bf16.mxu1 %v8335_v54  ;;  %v2722_v24 = vrot.slane %v2720_v20, 1  ;;  %v8356_v55 = vld [vmem:[#allocation9 + $0x90] sm:$0xff]   ;;  %v8404_v20 = vld [vmem:[#allocation13 + $0x134] ss:$8 sps:$4 sm:$0xff]  }
 0x30a   : > { %v2710_v31 = vor.u32 %v2709_v40, %v2705_v12  ;;  %v2718_v61 = vor.u32 %v2716_v36, %v2714_v42  ;;  %v8389_v34 = vld [vmem:[#allocation13 + $0x84] ss:$8 sps:$4 sm:$0xff]   ;;  %v8387_v40 = vld [vmem:[#allocation13 + $0x80] ss:$8 sps:$4 sm:$0xff]   ;;  %v8395_v12 = vld [vmem:[#allocation13 + $0x94] ss:$8 sps:$4 sm:$0xff]  }
 0x30b   : > { %v2726_v4 = vor.u32 %v2724_v47, %v2722_v24  ;;  %v8398_v45 = vld [vmem:[#allocation13 + $0x124] ss:$8 sps:$4 sm:$0xff]   ;;  %v8416_v47 = vld [vmem:[#allocation13 + $0x154] ss:$8 sps:$4 sm:$0xff]   ;;  %vm3665_vm11 = vsmask.f32 3328 }
 0x30c   : > { %8046 = vmatpush3.bf16.msra.mxu1 %v8335_v54  ;;  %v2715_v58 = vsel %vm2703_vm7, %v2710_v31, %v2714_v42  ;;  %v2849_v54 = vld [vmem:[#allocation2 + $0x8] sm:$0xe]  ;;  %v8396_v42 = vld [vmem:[#allocation13 + $0x120] ss:$8 sps:$4 sm:$0xff]   ;;  %v8401_v31 = vld [vmem:[#allocation13 + $0xa4] ss:$8 sps:$4 sm:$0xff]  }
 0x30d   : > { %8047 = vmatprep.subr.bf16.mxu1 %v8337_v57  ;;  %v8413_v36 = vld [vmem:[#allocation13 + $0xc4] ss:$8 sps:$4 sm:$0xff]  }
 0x310   : > { %v9838_v60 = vld [vmem:[#allocation2 + $0x24] sm:$0xf]  ;;  %8048 = vmatpush3.bf16.msra.mxu1 %v8337_v57  ;;  %v7516_v57 = vcombine.low %v2849_v54, %v9857_v22  ;;  %v8377_v22 = vld [vmem:[#allocation13 + $0x54] ss:$8 sps:$4 sm:$0xff]  }
 0x311   : > { %v7473_v35 = vcombine.low %v9838_v60, %v9838_v60  ;;  %8057 = vmatprep.subr.bf16.mxu1 %v8338_v59  ;;  %v8341_v46 = vld [vmem:[#allocation2 + $0x24] ss:$0 sps:$4 sm:$0x77]   ;;  %v7494_v56 = vcombine.low %v9808_v0, %v9838_v60  ;;  %v8357_v0 = vld [vmem:[#allocation2 + $0x28] ss:$0 sps:$4 sm:$0x11]  }
 0x312   : > { %v2437_v21 = vrot.slane %v8341_v46, 3  ;;  %v8354_v30 = vld [vmem:[#allocation2 + $0x20] sm:$0xff]   ;;  %v2736_v10 = vshll.u32 %v8357_v0, 16  ;;  %v8363_v46 = vld [vmem:[#allocation13 + $0x10] ss:$8 sps:$4 sm:$0xff]  }
 0x313   : > { %v2316_v33 = vshrl.u32 %v7473_v35, 16  ;;  %v2319_v50 = vshll.u32 %v7473_v35, 16  ;;  %v2728_v44 = vshll.u32 %v8354_v30, 16  ;;  %v2732_v53 = vshrl.u32 %v8354_v30, 16  ;;  %v8425_v54 = vld [vmem:[#allocation13 + $0xe4] ss:$8 sps:$4 sm:$0xff]  }
 0x314   : > { %v2438_v11 = vsel %vm2429_vm6, %v2435_v23, %v2437_v21  ;;  %v2738_v60 = vrot.slane %v2736_v10, 1  ;;  %v2864_v35 = vrot.slane %v9862_v8, 1  ;;  %v8362_v23 = vld [vmem:[#allocation13 + $0x4] ss:$8 sps:$4 sm:$0xff]   ;;  %v8371_v21 = vld [vmem:[#allocation13 + $0x34] ss:$8 sps:$4 sm:$0xff]  }
 0x315   : > { %v2318_v39 = vrot.slane %v2316_v33, 3  ;;  %v2321_v26 = vrot.slane %v2319_v50, 4  ;;  %v2730_v7 = vrot.slane %v2728_v44, 1  ;;  %v2863_v33 = vrot.slane %v7516_v57, 1  ;;  %v8359_v50 = vld [vmem:[#allocation9 + $0x98] sm:$0xff]   ;;  %4064 = vmatprep.subr.bf16.mxu0 %v8362_v23 }
 0x316   : > { %v2867_v2 = vsel %vm2862_vm8, %v2864_v35, %v2866_v62  ;;  %v8386_v8 = vld [vmem:[#allocation13 + $0x104] ss:$8 sps:$4 sm:$0xff]   ;;  %v8417_v10 = vld [vmem:[#allocation13 + $0xd0] ss:$8 sps:$4 sm:$0xff]  }
 0x317   : > { %v2322_v1 = vor.u32 %v2321_v26, %v2318_v39  ;;  %v2731_v51 = vsel %vm2703_vm7, %v2726_v4, %v2730_v7  ;;  %v2865_v26 = vsel %vm2862_vm8, %v2863_v33, %v2864_v35  ;;  %v8410_v44 = vld [vmem:[#allocation13 + $0x144] ss:$8 sps:$4 sm:$0xff]  }
 0x318   : > { %v8422_v4 = vld [vmem:[#allocation13 + $0x164] ss:$8 sps:$4 sm:$0xff]  }
 0x319   : > { %v2323_v5 = vsel %vm2279_vm4, %v2313_v41, %v2322_v1  ;;  %v2723_v41 = vsel %vm2703_vm7, %v2718_v61, %v2722_v24  ;;  %v2868_v1 = vrot.slane %v8354_v30, 1  ;;  %v8393_v30 = vld [vmem:[#allocation13 + $0x90] ss:$8 sps:$4 sm:$0xff]   ;;  %v8408_v24 = vld [vmem:[#allocation13 + $0x140] ss:$8 sps:$4 sm:$0xff]  }
 0x31a   : > { %8038 = vmatmul.mubr.msk.bf16.gmra.mrb[4].mxu1 %vm2348_vm5, %v2323_v5  ;;  %v8414_v61 = vld [vmem:[#allocation13 + $0x150] ss:$8 sps:$4 sm:$0xff]  }
 0x31b   : > { %8049 = vmatprep.mubr.msk.bf16.mxu1 %vm2348_vm5, %v2432_v9  ;;  %v2869_v5 = vsel %vm2862_vm8, %v2866_v62, %v2868_v1  ;;  %v2870_v9 = vrot.slane %v8357_v0, 1  ;;  %v8419_v0 = vld [vmem:[#allocation13 + $0xd4] ss:$8 sps:$4 sm:$0xff]   ;;  %v8426_v62 = vld [vmem:[#allocation13 + $0x170] ss:$8 sps:$4 sm:$0xff]  }
 0x31d   : > { %v2871_v63 = vsel %vm2862_vm8, %v2868_v1, %v2870_v9 }
 0x322   : > { %8050 = vmatmul.mubr.msk.bf16.vlgmr.msra.gmra.mrb[0].mxu1 %vm2348_vm5, %v2434_v14  ;;  %v8365_v14 = vld [vmem:[#allocation13 + $0x14] ss:$8 sps:$4 sm:$0xff]  }
 0x323   : > { %8058 = vmatpush3.bf16.msra.mxu1 %v8338_v59  ;;  %8053 = vmatprep.mubr.msk.bf16.mxu1 %vm2348_vm5, %v2436_v18  ;;  %v2734_v59 = vor.u32 %v2732_v53, %v2730_v7  ;;  %v8368_v18 = vld [vmem:[#allocation13 + $0x24] ss:$8 sps:$4 sm:$0xff]   ;;  %v8411_v7 = vld [vmem:[#allocation13 + $0xc0] ss:$8 sps:$4 sm:$0xff]  }
 0x324   : > { %8059 = vmatprep.subr.bf16.mxu1 %v8339_v13 }
 0x325   : > { %v2739_v39 = vsel %vm2703_vm7, %v2734_v59, %v2738_v60 }
 0x327   : > { %8060 = vmatpush3.bf16.msra.mxu1 %v8339_v13  ;;  %v8360_v13 = vld [vmem:[#allocation13] ss:$8 sps:$4 sm:$0xff]  }
 0x328   : > { %8061 = vmatprep.subr.bf16.mxu1 %v8340_v15  ;;  %4065 = vmatpush1.bf16.msra.mxu0 %v8360_v13 }
 0x329   : > { %4066 = vmatprep.subr.bf16.mxu0 %v8365_v14 }
 0x32a   : > { %8054 = vmatmul.mubr.msk.bf16.gmra.mrb[4].mxu1 %vm2348_vm5, %v2438_v11  ;;  %v8374_v11 = vld [vmem:[#allocation13 + $0x44] ss:$8 sps:$4 sm:$0xff]  }
 0x32b   : > { %8062 = vmatpush3.bf16.msra.mxu1 %v8340_v15  ;;  %8065 = vmatprep.mubr.msk.bf16.mxu1 %vm2348_vm5, %v7491_v16  ;;  %v8366_v15 = vld [vmem:[#allocation13 + $0x20] ss:$8 sps:$4 sm:$0xff]  }
 0x32c   : > { %8063 = vmatprep.subr.bf16.mxu1 %v8343_v3  ;;  %4067 = vmatpush1.bf16.msra.mxu0 %v8363_v46  ;;  %v8372_v16 = vld [vmem:[#allocation13 + $0x40] ss:$8 sps:$4 sm:$0xff]  }
 0x32d   : > { %4068 = vmatprep.subr.bf16.mxu0 %v8368_v18 }
 0x32f   : > { %8064 = vmatpush3.bf16.msra.mxu1 %v8343_v3  ;;  %v8369_v3 = vld [vmem:[#allocation13 + $0x30] ss:$8 sps:$4 sm:$0xff]  }
 0x330   : > { %8073 = vmatprep.subr.bf16.mxu1 %v8344_v28  ;;  %4069 = vmatpush1.bf16.msra.mxu0 %v8366_v15 }
 0x331   : > { %4070 = vmatprep.subr.bf16.mxu0 %v8371_v21 }
 0x332   : > { %8066 = vmatmul.mubr.msk.bf16.vlgmr.msra.gmra.mrb[0].mxu1 %vm2348_vm5, %v7492_v17  ;;  %v8383_v17 = vld [vmem:[#allocation13 + $0x74] ss:$8 sps:$4 sm:$0xff]  }
 0x333   : > { %8074 = vmatpush3.bf16.msra.mxu1 %v8344_v28  ;;  %8069 = vmatprep.mubr.msk.bf16.mxu1 %vm2348_vm5, %v7493_v32  ;;  %v8380_v28 = vld [vmem:[#allocation13 + $0x64] ss:$8 sps:$4 sm:$0xff]   ;;  %v8392_v32 = vld [vmem:[#allocation13 + $0x114] ss:$8 sps:$4 sm:$0xff]  }
 0x334   : > { %8075 = vmatprep.subr.bf16.mxu1 %v8346_v19  ;;  %4071 = vmatpush1.bf16.msra.mxu0 %v8369_v3 }
 0x335   : > { %4072 = vmatprep.subr.bf16.mxu0 %v8374_v11  ;;  %v8429_v11 = vld [vmem:[#allocation13 + $0xf0] ss:$8 sps:$4 sm:$0xff]  }
 0x337   : > { %8076 = vmatpush3.bf16.msra.mxu1 %v8346_v19  ;;  %v8384_v19 = vld [vmem:[#allocation13 + $0x100] ss:$8 sps:$4 sm:$0xff]  }
 0x338   : > { %8077 = vmatprep.subr.bf16.mxu1 %v8347_v37  ;;  %4073 = vmatpush1.bf16.msra.mxu0 %v8372_v16 }
 0x339   : > { %4074 = vmatprep.subr.bf16.mxu0 %v8377_v22 }
 0x33a   : > { %8070 = vmatmul.mubr.msk.bf16.gmra.mrb[4].mxu1 %vm2348_vm5, %v7494_v56  ;;  %v8399_v56 = vld [vmem:[#allocation13 + $0xa0] ss:$8 sps:$4 sm:$0xff]  }
 0x33b   : > { %8078 = vmatpush3.bf16.msra.mxu1 %v8347_v37  ;;  %8081 = vmatprep.mubr.msk.bf16.mxu1 %vm2348_vm5, %v2715_v58  ;;  %v8390_v37 = vld [vmem:[#allocation13 + $0x110] ss:$8 sps:$4 sm:$0xff]   ;;  %v8407_v58 = vld [vmem:[#allocation13 + $0xb4] ss:$8 sps:$4 sm:$0xff]  }
 0x33c   : > { %8079 = vmatprep.subr.bf16.mxu1 %v8351_v49  ;;  %4075 = vmatpush1.bf16.msra.mxu0 %v8375_v25 }
 0x33d   : > { %4076 = vmatprep.subr.bf16.mxu0 %v8380_v28 }
 0x33f   : > { %8080 = vmatpush3.bf16.msra.mxu1 %v8351_v49  ;;  %v8402_v49 = vld [vmem:[#allocation13 + $0x130] ss:$8 sps:$4 sm:$0xff]  }
 0x340   : > { %8089 = vmatprep.subr.bf16.mxu1 %v8352_v27  ;;  %4077 = vmatpush1.bf16.msra.mxu0 %v8378_v29 }
 0x341   : > { %4078 = vmatprep.subr.bf16.mxu0 %v8383_v17 }
 0x342   : > { %8082 = vmatmul.mubr.msk.bf16.vlgmr.msra.gmra.mrb[0].mxu1 %vm2348_vm5, %v2723_v41  ;;  %v9896_v41 = vld [vmem:[#allocation12] ss:$0 sm:$0xff] }
 0x343   : > { %8090 = vmatpush3.bf16.msra.mxu1 %v8352_v27  ;;  %8085 = vmatprep.mubr.msk.bf16.mxu1 %vm2348_vm5, %v2731_v51  ;;  %v8405_v27 = vld [vmem:[#allocation13 + $0xb0] ss:$8 sps:$4 sm:$0xff]   ;;  %v8420_v51 = vld [vmem:[#allocation13 + $0x160] ss:$8 sps:$4 sm:$0xff]  }
 0x344   : > { %8091 = vmatprep.subr.bf16.mxu1 %v8355_v48  ;;  %4079 = vmatpush1.bf16.msra.mxu0 %v8381_v52 }
 0x345   : > { %4080 = vmatprep.subr.bf16.mxu0 %v8389_v34 }
 0x347   : > { %8092 = vmatpush3.bf16.msra.mxu1 %v8355_v48  ;;  %v9894_v48 = vld [vmem:[#allocation10] ss:$0 sm:$0xff] }
 0x348   : > { %8093 = vmatprep.subr.bf16.mxu1 %v8356_v55  ;;  %4081 = vmatpush1.bf16.msra.mxu0 %v8387_v40 }
 0x349   : > { %4082 = vmatprep.subr.bf16.mxu0 %v8395_v12 }
 0x34a   : > { %8086 = vmatmul.mubr.msk.bf16.gmra.mrb[4].mxu1 %vm2348_vm5, %v2739_v39 }
 0x34b   : > { %8094 = vmatpush3.bf16.msra.mxu1 %v8356_v55  ;;  %8097 = vmatprep.mubr.msk.bf16.mxu1 %vm2348_vm5, %v2865_v26  ;;  %v8428_v55 = vld [vmem:[#allocation13 + $0x174] ss:$8 sps:$4 sm:$0xff]   ;;  %v8423_v26 = vld [vmem:[#allocation13 + $0xe0] ss:$8 sps:$4 sm:$0xff]  }
 0x34c   : > { %8095 = vmatprep.subr.bf16.mxu1 %v8359_v50  ;;  %4083 = vmatpush1.bf16.msra.mxu0 %v8393_v30 }
 0x34d   : > { %4084 = vmatprep.subr.bf16.mxu0 %v8401_v31 }
 0x34f   : > { %8096 = vmatpush3.bf16.msra.mxu1 %v8359_v50 }
 0x350   : > { %4117 = vmatprep.subr.bf16.mxu1 %v8386_v8  ;;  %4085 = vmatpush1.bf16.msra.mxu0 %v8399_v56 }
 0x351   : > { %4086 = vmatprep.subr.bf16.mxu0 %v8407_v58 }
 0x352   : > { %8098 = vmatmul.mubr.msk.bf16.vlgmr.msra.gmra.mrb[0].mxu1 %vm2348_vm5, %v2867_v2 }
 0x353   : > { %8101 = vmatprep.mubr.msk.bf16.mxu1 %vm2348_vm5, %v2869_v5  ;;  %4118 = vmatpush1.bf16.msra.mxu1 %v8384_v19  ;;  %v8431_v5 = vld [vmem:[#allocation13 + $0xf4] ss:$8 sps:$4 sm:$0xff]  }
 0x354   : > { %4119 = vmatprep.subr.bf16.mxu1 %v8392_v32  ;;  %4087 = vmatpush1.bf16.msra.mxu0 %v8405_v27 }
 0x355   : > { %4088 = vmatprep.subr.bf16.mxu0 %v8413_v36 }
 0x357   : > { %4120 = vmatpush1.bf16.msra.mxu1 %v8390_v37 }
 0x358   : > { %4121 = vmatprep.subr.bf16.mxu1 %v8398_v45  ;;  %4089 = vmatpush1.bf16.msra.mxu0 %v8411_v7 }
 0x359   : > { %4090 = vmatprep.subr.bf16.mxu0 %v8419_v0 }
 0x35a   : > { %8102 = vmatmul.mubr.msk.bf16.gmra.mrb[4].mxu1 %vm2348_vm5, %v2871_v63 }
 0x35b   : > { %4149 = vmatprep.mubr.bf16.mxu1 %v9092_v6  ;;  %4122 = vmatpush1.bf16.msra.mxu1 %v8396_v42 }
 0x35c   : > { %4123 = vmatprep.subr.bf16.mxu1 %v8404_v20  ;;  %4091 = vmatpush1.bf16.msra.mxu0 %v8417_v10 }
 0x35d   : > { %4092 = vmatprep.subr.bf16.mxu0 %v8425_v54 }
 0x35f   : > { %4124 = vmatpush1.bf16.msra.mxu1 %v8402_v49 }
 0x360   : > { %4125 = vmatprep.subr.bf16.mxu1 %v8410_v44  ;;  %4093 = vmatpush1.bf16.msra.mxu0 %v8423_v26 }
 0x361   : > { %4094 = vmatprep.subr.bf16.mxu0 %v8431_v5 }
 0x363   : > { %4126 = vmatpush1.bf16.msra.mxu1 %v8408_v24 }
 0x364   : > { %4127 = vmatprep.subr.bf16.mxu1 %v8416_v47  ;;  %4095 = vmatpush1.bf16.msra.mxu0 %v8429_v11 }
 0x367   : > { %4128 = vmatpush1.bf16.msra.mxu1 %v8414_v61 }
 0x368   : > { %4129 = vmatprep.subr.bf16.mxu1 %v8422_v4 }
 0x36b   : > { %4130 = vmatpush1.bf16.msra.mxu1 %v8420_v51 }
 0x36c   : > { %4131 = vmatprep.subr.bf16.mxu1 %v8428_v55 }
 0x36f   : > { %4132 = vmatpush1.bf16.msra.mxu1 %v8426_v62 }
 0x425   : > { %v8099_v53 = vpop.f32.mrb[0].mxu1 }
 0x426   : > { %v2990_v57 = vmul.f32 %v8099_v53, %v9894_v48  ;;  %v2942_v59 = vpop.f32.mrb[1].mxu1 }
 0x427   : > { %v2988_v60 = vmul.f32 %v9894_v48, %v2942_v59  ;;  %v8100_v35 = vpop.f32.mrb[2].mxu1 }
 0x428   : > { %v3005_v33 = vadd.f32 %v9896_v41, %v2990_v57  ;;  %v2991_v50 = vmul.f32 %v8100_v35, %v9894_v48  ;;  %v2945_v39 = vpop.f32.mrb[3].mxu1 }
 0x429   : > { %v3003_v1 = vadd.f32 %v9896_v41, %v2988_v60  ;;  %v2989_v2 = vmul.f32 %v9894_v48, %v2945_v39 }
 0x42a   : > { %v3053_v9 = vcombine.high %v3005_v33, %v3005_v33  ;;  %v3060_v63 = vrot.slane %v3005_v33, %v9541_v43  ;;  %v9906_v23 = vadd.f32 %v9896_v41, %v2991_v50 }
 0x42b   : > { %v3019_v13 = vcombine.high %v3003_v1, %v3003_v1  ;;  %v3026_v14 = vrot.slane %v3003_v1, %v9541_v43  ;;  %v9910_v46 = vadd.f32 %v9896_v41, %v2989_v2 }
 0x42c   : > { %v3067_v18 = vrot.slane %v3053_v9, %v9541_v43  ;;  %v3068_v15 = vcombine.high %v3060_v63, %v3060_v63  ;;  %v3244_v21 = vsel %vm3187_vm9, %v3060_v63, -inf  ;;  %v3070_v3 = vcombine.high %v9906_v23, %v9906_v23 }
 0x42d   : > { %v3245_v16 = vrot.slane %v3244_v21, 4  ;;  %v3033_v22 = vrot.slane %v3019_v13, %v9541_v43  ;;  %v3034_v25 = vcombine.high %v3026_v14, %v3026_v14  ;;  %v3188_v28 = vsel %vm3187_vm9, %v3026_v14, -inf  ;;  %v9918_v29 = vpop.f32.mrb[4].mxu1 }
 0x42e   : > { %v3069_v8 = vcombine.high %v3067_v18, %v3067_v18  ;;  %v3251_v17 = vsel %vm3187_vm9, %v3068_v15, -inf  ;;  %v3258_v19 = vsel %vm3187_vm9, %v3067_v18, -inf  ;;  %v3189_v52 = vrot.slane %v3188_v28, 4  ;;  %v9922_v32 = vpop.f32.mrb[5].mxu1 }
 0x42f   : > { %v3246_v34 = vmax.f32 %v3244_v21, %v3245_v16  ;;  %v3252_v37 = vrot.slane %v3251_v17, 4  ;;  %v3259_v40 = vrot.slane %v3258_v19, 4  ;;  %v3035_v45 = vcombine.high %v3033_v22, %v3033_v22  ;;  %v9924_v12 = vpop.f32.mrb[6].mxu1 }
 0x430   : > { %v3265_v42 = vsel %vm3187_vm9, %v3069_v8, -inf  ;;  %v3190_v30 = vmax.f32 %v3188_v28, %v3189_v52  ;;  %v3195_v56 = vsel %vm3187_vm9, %v3034_v25, -inf  ;;  %v3202_v31 = vsel %vm3187_vm9, %v3033_v22, -inf  ;;  %v9929_v49 = vpop.f32.mrb[7].mxu1 }
 0x431   : > { %v3247_v20 = vrot.slane %v3246_v34, 2  ;;  %v3253_v58 = vmax.f32 %v3251_v17, %v3252_v37  ;;  %v3260_v44 = vmax.f32 %v3258_v19, %v3259_v40  ;;  %v3266_v27 = vrot.slane %v3265_v42, 4 }
 0x432   : > { %v3191_v24 = vrot.slane %v3190_v30, 2  ;;  %v3196_v36 = vrot.slane %v3195_v56, 4  ;;  %v3203_v47 = vrot.slane %v3202_v31, 4  ;;  %v3209_v7 = vsel %vm3187_vm9, %v3035_v45, -inf }
 0x433   : > { %v3248_v61 = vmax.f32 %v3246_v34, %v3247_v20  ;;  %v3254_v0 = vrot.slane %v3253_v58, 2  ;;  %v3261_v4 = vrot.slane %v3260_v44, 2  ;;  %v3267_v10 = vmax.f32 %v3265_v42, %v3266_v27 }
 0x434   : > { %v3192_v51 = vmax.f32 %v3190_v30, %v3191_v24  ;;  %v3197_v53 = vmax.f32 %v3195_v56, %v3196_v36  ;;  %v3204_v54 = vmax.f32 %v3202_v31, %v3203_v47  ;;  %v3210_v55 = vrot.slane %v3209_v7, 4 }
 0x435   : > { %v3249_v57 = vrot.slane %v3248_v61, 1  ;;  %v3255_v59 = vmax.f32 %v3253_v58, %v3254_v0  ;;  %v3262_v60 = vmax.f32 %v3260_v44, %v3261_v4  ;;  %v3268_v35 = vrot.slane %v3267_v10, 2 }
 0x436   : > { %v3193_v33 = vrot.slane %v3192_v51, 1  ;;  %v3198_v50 = vrot.slane %v3197_v53, 2  ;;  %v3205_v39 = vrot.slane %v3204_v54, 2  ;;  %v3211_v26 = vmax.f32 %v3209_v7, %v3210_v55 }
 0x437   : > { %v3250_v62 = vmax.f32 %v3248_v61, %v3249_v57  ;;  %v3256_v1 = vrot.slane %v3255_v59, 1  ;;  %v3263_v2 = vrot.slane %v3262_v60, 1  ;;  %v3269_v5 = vmax.f32 %v3267_v10, %v3268_v35 }
 0x438   : > { %v3194_v9 = vmax.f32 %v3192_v51, %v3193_v33  ;;  %v3199_v63 = vmax.f32 %v3197_v53, %v3198_v50  ;;  %v3206_v13 = vmax.f32 %v3204_v54, %v3205_v39  ;;  %v3212_v14 = vrot.slane %v3211_v26, 2 }
 0x439   : > { %v3257_v18 = vmax.f32 %v3255_v59, %v3256_v1  ;;  %v3264_v15 = vmax.f32 %v3262_v60, %v3263_v2  ;;  %v3270_v21 = vrot.slane %v3269_v5, 1  ;;  %v3420_v11 = vmax.f32 %v3250_v62, 0.0 }
 0x43a   : > { %v3200_v16 = vrot.slane %v3199_v63, 1  ;;  %v3207_v22 = vrot.slane %v3206_v13, 1  ;;  %v3213_v25 = vmax.f32 %v3211_v26, %v3212_v14  ;;  %v3412_v28 = vmax.f32 %v3194_v9, 0.0 }
 0x43b   : > { %v3271_v8 = vmax.f32 %v3269_v5, %v3270_v21  ;;  %v3421_v17 = vmax.f32 %v3257_v18, 0.0  ;;  %v3422_v19 = vmax.f32 %v3264_v15, 0.0  ;;  %v7929_v52 = vpack.c.bf16 %v3420_v11, %v3420_v11 }
 0x43c   : > { %v3201_v34 = vmax.f32 %v3199_v63, %v3200_v16  ;;  %v3208_v37 = vmax.f32 %v3206_v13, %v3207_v22  ;;  %v3214_v40 = vrot.slane %v3213_v25, 1  ;;  %v7921_v45 = vpack.c.bf16 %v3412_v28, %v3412_v28 }
 0x43d   : > { %v3423_v42 = vmax.f32 %v3271_v8, 0.0  ;;  %v7930_v30 = vpack.c.bf16 %v3421_v17, %v3421_v17  ;;  %v7931_v56 = vpack.c.bf16 %v3422_v19, %v3422_v19  ;;  %v3580_v31 = vunpack.c.l.b16 %v7929_v52 }
 0x43e   : > { %v3215_v20 = vmax.f32 %v3213_v25, %v3214_v40  ;;  %v3413_v58 = vmax.f32 %v3201_v34, 0.0  ;;  %v3414_v44 = vmax.f32 %v3208_v37, 0.0  ;;  %v3572_v27 = vunpack.c.l.b16 %v7921_v45 }
 0x43f   : > { %v7932_v24 = vpack.c.bf16 %v3423_v42, %v3423_v42  ;;  %v3581_v36 = vunpack.c.l.b16 %v7930_v30  ;;  %v3582_v47 = vunpack.c.l.b16 %v7931_v56  ;;  %v3077_v7 = vrot.slane %v9906_v23, %v9541_v43 }
 0x440   : > { %v3415_v61 = vmax.f32 %v3215_v20, 0.0  ;;  %v7922_v0 = vpack.c.bf16 %v3413_v58, %v3413_v58  ;;  %v7923_v4 = vpack.c.bf16 %v3414_v44, %v3414_v44  ;;  %v3084_v10 = vrot.slane %v3070_v3, %v9541_v43 }
 0x441   : > { %v3583_v51 = vunpack.c.l.b16 %v7932_v24  ;;  %v3611_v53 = vsel %vm2141_vm12, %v3581_v36, %v3580_v31  ;;  %v3085_v54 = vcombine.high %v3077_v7, %v3077_v7  ;;  %v3272_v55 = vsel %vm3187_vm9, %v3077_v7, -inf }
 0x442   : > { %v3612_v57 = vsel %vm2143_vm13, %v3582_v47, %v3611_v53  ;;  %v7924_v59 = vpack.c.bf16 %v3415_v61, %v3415_v61  ;;  %v3573_v60 = vunpack.c.l.b16 %v7922_v0  ;;  %v3574_v35 = vunpack.c.l.b16 %v7923_v4 }
 0x443   : > { %v3086_v33 = vcombine.high %v3084_v10, %v3084_v10  ;;  %v3273_v50 = vrot.slane %v3272_v55, 4  ;;  %v3279_v39 = vsel %vm3187_vm9, %v3085_v54, -inf  ;;  %v3286_v26 = vsel %vm3187_vm9, %v3084_v10, -inf }
 0x444   : > { %v3575_v62 = vunpack.c.l.b16 %v7924_v59  ;;  %v3604_v23 = vsel %vm2141_vm12, %v3573_v60, %v3572_v27  ;;  %v3280_v3 = vrot.slane %v3279_v39, 4  ;;  %v3287_v1 = vrot.slane %v3286_v26, 4 }
 0x445   : > { %v3605_v2 = vsel %vm2143_vm13, %v3574_v35, %v3604_v23  ;;  %v3274_v5 = vmax.f32 %v3272_v55, %v3273_v50  ;;  %v3293_v9 = vsel %vm3187_vm9, %v3086_v33, -inf  ;;  %v3613_v63 = vsel %vm2145_vm14, %v3583_v51, %v3612_v57 }
 0x446   : > { %v3281_v13 = vmax.f32 %v3279_v39, %v3280_v3  ;;  %v3288_v14 = vmax.f32 %v3286_v26, %v3287_v1  ;;  %v3294_v18 = vrot.slane %v3293_v9, 4  ;;  %v3036_v15 = vcombine.high %v9910_v46, %v9910_v46 }
 0x447   : > { %v3275_v21 = vrot.slane %v3274_v5, 2  ;;  %v3043_v11 = vrot.slane %v9910_v46, %v9541_v43  ;;  %v9952_v16 = vsel %vm2145_vm14, %v3575_v62, %v3605_v2  ;;  %v2994_v22 = vmul.f32 %v9918_v29, %v9894_v48 }
 0x448   : > { %v3282_v25 = vrot.slane %v3281_v13, 2  ;;  %v3289_v28 = vrot.slane %v3288_v14, 2  ;;  %v3295_v8 = vmax.f32 %v3293_v9, %v3294_v18  ;;  %v3050_v17 = vrot.slane %v3036_v15, %v9541_v43 }
 0x449   : > { %v3276_v19 = vmax.f32 %v3274_v5, %v3275_v21  ;;  %v3051_v52 = vcombine.high %v3043_v11, %v3043_v11  ;;  %v3216_v34 = vsel %vm3187_vm9, %v3043_v11, -inf  ;;  %v3009_v37 = vadd.f32 %v9896_v41, %v2994_v22 }
 0x44a   : > { %v3283_v40 = vmax.f32 %v3281_v13, %v3282_v25  ;;  %v3290_v45 = vmax.f32 %v3288_v14, %v3289_v28  ;;  %v3296_v46 = vrot.slane %v3295_v8, 2  ;;  %v3052_v42 = vcombine.high %v3050_v17, %v3050_v17 }
 0x44b   : > { %v3277_v30 = vrot.slane %v3276_v19, 1  ;;  %v3217_v56 = vrot.slane %v3216_v34, 4  ;;  %v3223_v31 = vsel %vm3187_vm9, %v3051_v52, -inf  ;;  %v3230_v29 = vsel %vm3187_vm9, %v3050_v17, -inf }
 0x44c   : > { %v3284_v20 = vrot.slane %v3283_v40, 1  ;;  %v3291_v58 = vrot.slane %v3290_v45, 1  ;;  %v3297_v44 = vmax.f32 %v3295_v8, %v3296_v46  ;;  %v3224_v27 = vrot.slane %v3223_v31, 4 }
 0x44d   : > { %v3278_v24 = vmax.f32 %v3276_v19, %v3277_v30  ;;  %v3218_v36 = vmax.f32 %v3216_v34, %v3217_v56  ;;  %v3231_v47 = vrot.slane %v3230_v29, 4  ;;  %v3237_v7 = vsel %vm3187_vm9, %v3052_v42, -inf }
 0x44e   : > { %v3285_v61 = vmax.f32 %v3283_v40, %v3284_v20  ;;  %v3292_v0 = vmax.f32 %v3290_v45, %v3291_v58  ;;  %v3298_v4 = vrot.slane %v3297_v44, 1  ;;  %v3225_v10 = vmax.f32 %v3223_v31, %v3224_v27 }
 0x44f   : > { %v3424_v51 = vmax.f32 %v3278_v24, 0.0  ;;  %v3219_v53 = vrot.slane %v3218_v36, 2  ;;  %v3232_v54 = vmax.f32 %v3230_v29, %v3231_v47  ;;  %v3238_v55 = vrot.slane %v3237_v7, 4 }
 0x450   : > { %v3299_v57 = vmax.f32 %v3297_v44, %v3298_v4  ;;  %v3425_v59 = vmax.f32 %v3285_v61, 0.0  ;;  %v3426_v60 = vmax.f32 %v3292_v0, 0.0  ;;  %v3226_v35 = vrot.slane %v3225_v10, 2 }
 0x451   : > { %v7933_v33 = vpack.c.bf16 %v3424_v51, %v3424_v51  ;;  %v3220_v50 = vmax.f32 %v3218_v36, %v3219_v53  ;;  %v3233_v39 = vrot.slane %v3232_v54, 2  ;;  %v3239_v26 = vmax.f32 %v3237_v7, %v3238_v55 }
 0x452   : > { %v3427_v62 = vmax.f32 %v3299_v57, 0.0  ;;  %v7934_v23 = vpack.c.bf16 %v3425_v59, %v3425_v59  ;;  %v7935_v3 = vpack.c.bf16 %v3426_v60, %v3426_v60  ;;  %v3227_v1 = vmax.f32 %v3225_v10, %v3226_v35 }
 0x453   : > { %v3584_v2 = vunpack.c.l.b16 %v7933_v33  ;;  %v3221_v5 = vrot.slane %v3220_v50, 1  ;;  %v3234_v9 = vmax.f32 %v3232_v54, %v3233_v39  ;;  %v3240_v13 = vrot.slane %v3239_v26, 2 }
 0x454   : > { %v7936_v14 = vpack.c.bf16 %v3427_v62, %v3427_v62  ;;  %v3585_v18 = vunpack.c.l.b16 %v7934_v23  ;;  %v3586_v15 = vunpack.c.l.b16 %v7935_v3  ;;  %v3228_v21 = vrot.slane %v3227_v1, 1 }
 0x455   : > { %v3614_v11 = vsel %vm2147_vm15, %v3584_v2, %v3613_v63  ;;  %v3222_v22 = vmax.f32 %v3220_v50, %v3221_v5  ;;  %v3235_v25 = vrot.slane %v3234_v9, 1  ;;  %v3241_v28 = vmax.f32 %v3239_v26, %v3240_v13 }
 0x456   : > { %v3587_v8 = vunpack.c.l.b16 %v7936_v14  ;;  %v3615_v17 = vsel %vm2149_vm0, %v3585_v18, %v3614_v11  ;;  %v3229_v19 = vmax.f32 %v3227_v1, %v3228_v21  ;;  %v3121_v52 = vcombine.high %v3009_v37, %v3009_v37 }
 0x457   : > { %v3616_v34 = vsel %vm2151_vm1, %v3586_v15, %v3615_v17  ;;  %v3236_v40 = vmax.f32 %v3234_v9, %v3235_v25  ;;  %v3242_v45 = vrot.slane %v3241_v28, 1  ;;  %v3416_v46 = vmax.f32 %v3222_v22, 0.0 }
 0x458   : > { %v3617_v42 = vsel %vm2153_vm2, %v3587_v8, %v3616_v34  ;;  %v3417_v30 = vmax.f32 %v3229_v19, 0.0  ;;  %v3128_v56 = vrot.slane %v3009_v37, %v9541_v43  ;;  %v3135_v63 = vrot.slane %v3121_v52, %v9541_v43 }
 0x459   : > { %v3633_v31 = vpack.c.b16 %v3617_v42, %v3617_v42  ;;  %v3243_v29 = vmax.f32 %v3241_v28, %v3242_v45  ;;  %v3418_v20 = vmax.f32 %v3236_v40, 0.0  ;;  %v7925_v58 = vpack.c.bf16 %v3416_v46, %v3416_v46 }
 0x45a   : > { %v7926_v44 = vpack.c.bf16 %v3417_v30, %v3417_v30  ;;  %v3136_v27 = vcombine.high %v3128_v56, %v3128_v56  ;;  %v3137_v24 = vcombine.high %v3135_v63, %v3135_v63  ;;  %v3356_v36 = vsel %vm3187_vm9, %v3128_v56, -inf }
 0x45b   : > { %3641 = vst [vmem:[#allocation3 + $0xc] sm:$0xf] %v3633_v31  ;;  %v3419_v47 = vmax.f32 %v3243_v29, 0.0  ;;  %v7927_v7 = vpack.c.bf16 %v3418_v20, %v3418_v20  ;;  %v3576_v61 = vunpack.c.l.b16 %v7925_v58  ;;  %v3357_v0 = vrot.slane %v3356_v36, 4 }
 0x45c   : > { %v3577_v4 = vunpack.c.l.b16 %v7926_v44  ;;  %v3363_v10 = vsel %vm3187_vm9, %v3136_v27, -inf  ;;  %v3370_v37 = vsel %vm3187_vm9, %v3135_v63, -inf  ;;  %v3377_v51 = vsel %vm3187_vm9, %v3137_v24, -inf }
 0x45d   : > { %v7928_v53 = vpack.c.bf16 %v3419_v47, %v3419_v47  ;;  %v3578_v54 = vunpack.c.l.b16 %v7927_v7  ;;  %v3607_v55 = vsel %vm2147_vm15, %v3576_v61, %v9952_v16  ;;  %v3358_v57 = vmax.f32 %v3356_v36, %v3357_v0 }
 0x45e   : > { %v3608_v59 = vsel %vm2149_vm0, %v3577_v4, %v3607_v55  ;;  %v3364_v60 = vrot.slane %v3363_v10, 4  ;;  %v3371_v35 = vrot.slane %v3370_v37, 4  ;;  %v3378_v33 = vrot.slane %v3377_v51, 4 }
 0x45f   : > { %v3579_v50 = vunpack.c.l.b16 %v7928_v53  ;;  %v3609_v39 = vsel %vm2151_vm1, %v3578_v54, %v3608_v59  ;;  %v3359_v26 = vrot.slane %v3358_v57, 2  ;;  %v2992_v62 = vmul.f32 %v9894_v48, %v9922_v32 }
 0x460   : > { %v3365_v23 = vmax.f32 %v3363_v10, %v3364_v60  ;;  %v3372_v3 = vmax.f32 %v3370_v37, %v3371_v35  ;;  %v3379_v1 = vmax.f32 %v3377_v51, %v3378_v33  ;;  %v2993_v9 = vmul.f32 %v9894_v48, %v9929_v49 }
 0x461   : > { %v3610_v2 = vsel %vm2153_vm2, %v3579_v50, %v3609_v39  ;;  %v3360_v5 = vmax.f32 %v3358_v57, %v3359_v26  ;;  %v3007_v16 = vadd.f32 %v9896_v41, %v2992_v62  ;;  %v2995_v32 = vmul.f32 %v9924_v12, %v9894_v48 }
 0x462   : > { %v3632_v13 = vpack.c.b16 %v3610_v2, %v3610_v2  ;;  %v3366_v14 = vrot.slane %v3365_v23, 2  ;;  %v3373_v18 = vrot.slane %v3372_v3, 2  ;;  %v3380_v15 = vrot.slane %v3379_v1, 2 }
 0x463   : > { %v3361_v21 = vrot.slane %v3360_v5, 1  ;;  %v3087_v11 = vcombine.high %v3007_v16, %v3007_v16  ;;  %v3094_v22 = vrot.slane %v3007_v16, %v9541_v43  ;;  %v9986_v17 = vadd.f32 %v9896_v41, %v2993_v9 }
 0x464   : > { %3640 = vst [vmem:[#allocation3 + $0x8] sm:$0xf] %v3632_v13  ;;  %v3367_v25 = vmax.f32 %v3365_v23, %v3366_v14  ;;  %v3374_v28 = vmax.f32 %v3372_v3, %v3373_v18  ;;  %v3381_v8 = vmax.f32 %v3379_v1, %v3380_v15  ;;  %v3010_v24 = vadd.f32 %v9896_v41, %v2995_v32 }
 0x465   : > { %v3362_v19 = vmax.f32 %v3360_v5, %v3361_v21  ;;  %v3101_v49 = vrot.slane %v3087_v11, %v9541_v43  ;;  %v3102_v52 = vcombine.high %v3094_v22, %v3094_v22  ;;  %v3300_v34 = vsel %vm3187_vm9, %v3094_v22, -inf }
 0x466   : > { %v3368_v40 = vrot.slane %v3367_v25, 1  ;;  %v3375_v45 = vrot.slane %v3374_v28, 1  ;;  %v3382_v46 = vrot.slane %v3381_v8, 1  ;;  %v3301_v42 = vrot.slane %v3300_v34, 4 }
 0x467   : > { %v3436_v30 = vmax.f32 %v3362_v19, 0.0  ;;  %v3103_v56 = vcombine.high %v3101_v49, %v3101_v49  ;;  %v3307_v48 = vsel %vm3187_vm9, %v3102_v52, -inf  ;;  %v3314_v12 = vsel %vm3187_vm9, %v3101_v49, -inf }
 0x468   : > { %v3369_v63 = vmax.f32 %v3367_v25, %v3368_v40  ;;  %v3376_v31 = vmax.f32 %v3374_v28, %v3375_v45  ;;  %v3383_v29 = vmax.f32 %v3381_v8, %v3382_v46  ;;  %v3302_v20 = vmax.f32 %v3300_v34, %v3301_v42 }
 0x469   : > { %v3308_v58 = vrot.slane %v3307_v48, 4  ;;  %v3315_v44 = vrot.slane %v3314_v12, 4  ;;  %v3321_v27 = vsel %vm3187_vm9, %v3103_v56, -inf  ;;  %v7945_v7 = vpack.c.bf16 %v3436_v30, %v3436_v30 }
 0x46a   : > { %v3437_v36 = vmax.f32 %v3369_v63, 0.0  ;;  %v3438_v47 = vmax.f32 %v3376_v31, 0.0  ;;  %v3303_v61 = vrot.slane %v3302_v20, 2  ;;  %v3322_v10 = vrot.slane %v3321_v27, 4 }
 0x46b   : > { %v3309_v0 = vmax.f32 %v3307_v48, %v3308_v58  ;;  %v3316_v4 = vmax.f32 %v3314_v12, %v3315_v44  ;;  %v3439_v37 = vmax.f32 %v3383_v29, 0.0  ;;  %v3138_v60 = vcombine.high %v3010_v24, %v3010_v24 }
 0x46c   : > { %v7946_v51 = vpack.c.bf16 %v3437_v36, %v3437_v36  ;;  %v7947_v53 = vpack.c.bf16 %v3438_v47, %v3438_v47  ;;  %v3304_v54 = vmax.f32 %v3302_v20, %v3303_v61  ;;  %v3323_v59 = vmax.f32 %v3321_v27, %v3322_v10 }
 0x46d   : > { %v3310_v55 = vrot.slane %v3309_v0, 2  ;;  %v3317_v57 = vrot.slane %v3316_v4, 2  ;;  %v3596_v35 = vunpack.c.l.b16 %v7945_v7  ;;  %v3145_v62 = vrot.slane %v3010_v24, %v9541_v43 }
 0x46e   : > { %v3597_v33 = vunpack.c.l.b16 %v7946_v51  ;;  %v3305_v50 = vrot.slane %v3304_v54, 1  ;;  %v3324_v26 = vrot.slane %v3323_v59, 2  ;;  %v7948_v23 = vpack.c.bf16 %v3439_v37, %v3439_v37 }
 0x46f   : > { %v3311_v39 = vmax.f32 %v3309_v0, %v3310_v55  ;;  %v3318_v41 = vmax.f32 %v3316_v4, %v3317_v57  ;;  %v3598_v3 = vunpack.c.l.b16 %v7947_v53  ;;  %v3152_v2 = vrot.slane %v3138_v60, %v9541_v43 }
 0x470   : > { %v3306_v1 = vmax.f32 %v3304_v54, %v3305_v50  ;;  %v3625_v5 = vsel %vm2141_vm12, %v3597_v33, %v3596_v35  ;;  %v3325_v13 = vmax.f32 %v3323_v59, %v3324_v26  ;;  %v3153_v18 = vcombine.high %v3145_v62, %v3145_v62 }
 0x471   : > { %v3312_v16 = vrot.slane %v3311_v39, 1  ;;  %v3319_v9 = vrot.slane %v3318_v41, 1  ;;  %v3154_v15 = vcombine.high %v3152_v2, %v3152_v2  ;;  %v3384_v21 = vsel %vm3187_vm9, %v3145_v62, -inf }
 0x472   : > { %v3428_v14 = vmax.f32 %v3306_v1, 0.0  ;;  %v3326_v32 = vrot.slane %v3325_v13, 1  ;;  %v3385_v25 = vrot.slane %v3384_v21, 4  ;;  %v3391_v8 = vsel %vm3187_vm9, %v3153_v18, -inf }
 0x473   : > { %v3313_v11 = vmax.f32 %v3311_v39, %v3312_v16  ;;  %v3320_v22 = vmax.f32 %v3318_v41, %v3319_v9  ;;  %v3398_v19 = vsel %vm3187_vm9, %v3152_v2, -inf  ;;  %v3405_v49 = vsel %vm3187_vm9, %v3154_v15, -inf }
 0x474   : > { %v9998_v28 = vpack.c.bf16 %v3428_v14, %v3428_v14  ;;  %v3327_v52 = vmax.f32 %v3325_v13, %v3326_v32  ;;  %v3386_v45 = vmax.f32 %v3384_v21, %v3385_v25  ;;  %v3599_v46 = vunpack.c.l.b16 %v7948_v23 }
 0x475   : > { %v3429_v34 = vmax.f32 %v3313_v11, 0.0  ;;  %v3430_v40 = vmax.f32 %v3320_v22, 0.0  ;;  %v3392_v42 = vrot.slane %v3391_v8, 4  ;;  %v3399_v30 = vrot.slane %v3398_v19, 4 }
 0x476   : > { %v3406_v56 = vrot.slane %v3405_v49, 4  ;;  %v3626_v48 = vsel %vm2143_vm13, %v3598_v3, %v3625_v5  ;;  %v3431_v12 = vmax.f32 %v3327_v52, 0.0  ;;  %v3387_v63 = vrot.slane %v3386_v45, 2 }
 0x477   : > { %v3104_v31 = vcombine.high %v9986_v17, %v9986_v17  ;;  %v7938_v29 = vpack.c.bf16 %v3429_v34, %v3429_v34  ;;  %v3393_v20 = vmax.f32 %v3391_v8, %v3392_v42  ;;  %v3400_v58 = vmax.f32 %v3398_v19, %v3399_v30 }
 0x478   : > { %v3407_v44 = vmax.f32 %v3405_v49, %v3406_v56  ;;  %v10006_v27 = vpack.c.bf16 %v3430_v40, %v3430_v40  ;;  %v3588_v24 = vunpack.c.l.b16 %v9998_v28  ;;  %v3388_v36 = vmax.f32 %v3386_v45, %v3387_v63 }
 0x479   : > { %v3394_v47 = vrot.slane %v3393_v20, 2  ;;  %v3401_v7 = vrot.slane %v3400_v58, 2  ;;  %v3111_v0 = vrot.slane %v9986_v17, %v9541_v43  ;;  %v10011_v4 = vpack.c.bf16 %v3431_v12, %v3431_v12 }
 0x47a   : > { %v3408_v61 = vrot.slane %v3407_v44, 2  ;;  %v3389_v10 = vrot.slane %v3388_v36, 1  ;;  %v3627_v37 = vsel %vm2145_vm14, %v3599_v46, %v3626_v48  ;;  %v3118_v51 = vrot.slane %v3104_v31, %v9541_v43 }
 0x47b   : > { %v3589_v53 = vunpack.c.l.b16 %v7938_v29  ;;  %v3395_v54 = vmax.f32 %v3393_v20, %v3394_v47  ;;  %v3402_v55 = vmax.f32 %v3400_v58, %v3401_v7  ;;  %v3119_v60 = vcombine.high %v3111_v0, %v3111_v0 }
 0x47c   : > { %v3409_v57 = vmax.f32 %v3407_v44, %v3408_v61  ;;  %v3390_v59 = vmax.f32 %v3388_v36, %v3389_v10  ;;  %v3120_v35 = vcombine.high %v3118_v51, %v3118_v51  ;;  %v3328_v33 = vsel %vm3187_vm9, %v3111_v0, -inf }
 0x47d   : > { %v3396_v50 = vrot.slane %v3395_v54, 1  ;;  %v3403_v39 = vrot.slane %v3402_v55, 1  ;;  %v3329_v17 = vrot.slane %v3328_v33, 4  ;;  %v3335_v62 = vsel %vm3187_vm9, %v3119_v60, -inf }
 0x47e   : > { %v3410_v41 = vrot.slane %v3409_v57, 1  ;;  %v3440_v26 = vmax.f32 %v3390_v59, 0.0  ;;  %v3342_v23 = vsel %vm3187_vm9, %v3118_v51, -inf  ;;  %v3349_v3 = vsel %vm3187_vm9, %v3120_v35, -inf }
 0x47f   : > { %v3397_v1 = vmax.f32 %v3395_v54, %v3396_v50  ;;  %v3404_v2 = vmax.f32 %v3402_v55, %v3403_v39  ;;  %v3330_v16 = vmax.f32 %v3328_v33, %v3329_v17  ;;  %v3336_v13 = vrot.slane %v3335_v62, 4  ;;  %v3645_v17 = vld [vmem:[#allocation3 + $0x8] sm:$0xf] }
 0x480   : > { %v3411_v5 = vmax.f32 %v3409_v57, %v3410_v41  ;;  %v7949_v9 = vpack.c.bf16 %v3440_v26, %v3440_v26  ;;  %v3343_v14 = vrot.slane %v3342_v23, 4  ;;  %v3350_v18 = vrot.slane %v3349_v3, 4  ;;  %v3646_v26 = vld [vmem:[#allocation3 + $0xc] sm:$0xf] }
 0x481   : > { %v3441_v15 = vmax.f32 %v3397_v1, 0.0  ;;  %v3442_v21 = vmax.f32 %v3404_v2, 0.0  ;;  %v3331_v22 = vrot.slane %v3330_v16, 2  ;;  %v3337_v25 = vmax.f32 %v3335_v62, %v3336_v13 }
 0x482   : > { %v3443_v11 = vmax.f32 %v3411_v5, 0.0  ;;  %v3600_v32 = vunpack.c.l.b16 %v7949_v9  ;;  %v3344_v28 = vmax.f32 %v3342_v23, %v3343_v14  ;;  %v3351_v8 = vmax.f32 %v3349_v3, %v3350_v18 }
 0x483   : > { %v7950_v19 = vpack.c.bf16 %v3441_v15, %v3441_v15  ;;  %v7951_v49 = vpack.c.bf16 %v3442_v21, %v3442_v21  ;;  %v3332_v34 = vmax.f32 %v3330_v16, %v3331_v22  ;;  %v3338_v45 = vrot.slane %v3337_v25, 2  ;;  %v3644_v21 = vld [vmem:[#allocation3 + $0x4] sm:$0x8] }
 0x484   : > { %v7952_v52 = vpack.c.bf16 %v3443_v11, %v3443_v11  ;;  %v3628_v40 = vsel %vm2147_vm15, %v3600_v32, %v3627_v37  ;;  %v3345_v46 = vrot.slane %v3344_v28, 2  ;;  %v3352_v42 = vrot.slane %v3351_v8, 2 }
 0x485   : > { %v3590_v30 = vunpack.c.l.b16 %v10006_v27  ;;  %v3618_v56 = vsel %vm2141_vm12, %v3589_v53, %v3588_v24  ;;  %v3601_v48 = vunpack.c.l.b16 %v7950_v19  ;;  %v3333_v12 = vrot.slane %v3332_v34, 1  ;;  %v8436_v19 = vld [vmem:[#allocation3 + $0x18] ss:$0 sps:$4 sm:$0x11]  }
 0x486   : > { %v3602_v63 = vunpack.c.l.b16 %v7951_v49  ;;  %v3339_v31 = vmax.f32 %v3337_v25, %v3338_v45  ;;  %v3346_v29 = vmax.f32 %v3344_v28, %v3345_v46  ;;  %v3353_v20 = vmax.f32 %v3351_v8, %v3352_v42 }
 0x487   : > { %v3591_v58 = vunpack.c.l.b16 %v10011_v4  ;;  %v3603_v44 = vunpack.c.l.b16 %v7952_v52  ;;  %v3629_v36 = vsel %vm2149_vm0, %v3601_v48, %v3628_v40  ;;  %v3334_v47 = vmax.f32 %v3332_v34, %v3333_v12 }
 0x488   : > { %v3630_v7 = vsel %vm2151_vm1, %v3602_v63, %v3629_v36  ;;  %v3340_v61 = vrot.slane %v3339_v31, 1  ;;  %v3347_v0 = vrot.slane %v3346_v29, 1  ;;  %v3354_v10 = vrot.slane %v3353_v20, 1 }
 0x489   : > { %v3619_v27 = vsel %vm2143_vm13, %v3590_v30, %v3618_v56  ;;  %v3631_v24 = vsel %vm2153_vm2, %v3603_v44, %v3630_v7  ;;  %v3432_v37 = vmax.f32 %v3334_v47, 0.0  ;;  %v7562_v1 = vcombine.low %v3645_v17, %v3646_v26 }
 0x48a   : > { %v3635_v51 = vpack.c.b16 %v3631_v24, %v3631_v24  ;;  %v3341_v53 = vmax.f32 %v3339_v31, %v3340_v61  ;;  %v3348_v54 = vmax.f32 %v3346_v29, %v3347_v0  ;;  %v3355_v55 = vmax.f32 %v3353_v20, %v3354_v10 }
 0x48b   : > { %v7941_v57 = vpack.c.bf16 %v3432_v37, %v3432_v37  ;;  %v3620_v35 = vsel %vm2145_vm14, %v3591_v58, %v3619_v27  ;;  %v3667_v14 = vshrl.u32 %v7562_v1, 16  ;;  %v3670_v18 = vshll.u32 %v7562_v1, 16 }
 0x48c   : > { %3643 = vst [vmem:[#allocation3 + $0x14] sm:$0xf] %v3635_v51  ;;  %v3433_v4 = vmax.f32 %v3341_v53, 0.0  ;;  %v3434_v59 = vmax.f32 %v3348_v54, 0.0  ;;  %v3435_v60 = vmax.f32 %v3355_v55, 0.0  ;;  %v3687_v15 = vrot.slane %v7562_v1, 5 }
 0x48d   : > { %v3592_v33 = vunpack.c.l.b16 %v7941_v57  ;;  %v3669_v11 = vrot.slane %v3667_v14, 4  ;;  %v3672_v22 = vrot.slane %v3670_v18, 5  ;;  %v7559_v28 = vcombine.low %v3644_v21, %v3645_v17 }
 0x48e   : > { %v7942_v50 = vpack.c.bf16 %v3433_v4, %v3433_v4  ;;  %v7943_v39 = vpack.c.bf16 %v3434_v59, %v3434_v59  ;;  %v7944_v41 = vpack.c.bf16 %v3435_v60, %v3435_v60  ;;  %v3775_v32 = vshrl.u32 %v3687_v15, 16 }
 0x48f   : > { %v3621_v62 = vsel %vm2147_vm15, %v3592_v33, %v3620_v35  ;;  %v3778_v25 = vshll.u32 %v3687_v15, 16  ;;  %v3673_v49 = vor.u32 %v3672_v22, %v3669_v11  ;;  %v3741_v45 = vshrl.u32 %v7559_v28, 16 }
 0x490   : > { %v3593_v23 = vunpack.c.l.b16 %v7942_v50  ;;  %v3594_v3 = vunpack.c.l.b16 %v7943_v39  ;;  %v3595_v2 = vunpack.c.l.b16 %v7944_v41  ;;  %v3777_v34 = vrot.slane %v3775_v32, 3 }
 0x491   : > { %v3780_v40 = vrot.slane %v3778_v25, 4  ;;  %v3690_v30 = vrot.slane %v8436_v19, 5  ;;  %v3758_v63 = vshrl.u32 %v3673_v49, 16  ;;  %v3743_v29 = vrot.slane %v3741_v45, 3  ;;  %v8438_v45 = vld [vmem:[#allocation18] ss:$16 sps:$4 sm:$0xff]  }
 0x492   : > { %v3622_v5 = vsel %vm2149_vm0, %v3593_v23, %v3621_v62  ;;  %v3744_v20 = vshll.u32 %v7559_v28, 16  ;;  %v3761_v10 = vshll.u32 %v3673_v49, 16 }
 0x493   : > { %v3623_v16 = vsel %vm2151_vm1, %v3594_v3, %v3622_v5  ;;  %v3648_v8 = vld [vmem:[#allocation3 + $0x14] sm:$0xf]  ;;  %v3781_v31 = vor.u32 %v3780_v40, %v3777_v34  ;;  %v3760_v37 = vrot.slane %v3758_v63, 3  ;;  %v8443_v40 = vld [vmem:[#allocation18 + $0xc] ss:$16 sps:$4 sm:$0xff]  }
 0x494   : > { %v3624_v9 = vsel %vm2153_vm2, %v3595_v2, %v3623_v16  ;;  %v7561_v53 = vcombine.low %v3648_v8, %v3648_v8  ;;  %v3763_v39 = vrot.slane %v3761_v10, 4  ;;  %6303 = vmatprep.subr.bf16.mxu0 %v8443_v40  ;;  %v8455_v63 = vld [vmem:[#allocation18 + $0x4c] ss:$16 sps:$4 sm:$0xff]   ;;  %v8470_v10 = vld [vmem:[#allocation18 + $0xa4] ss:$16 sps:$4 sm:$0xff]   ;;  %v10043_v40 = vsub.s32 0, %v9533_v38 }
 0x495   : > { %v3634_v13 = vpack.c.b16 %v3624_v9, %v3624_v9 }
 0x496   : > { %v3795_v14 = vshll.u32 %v7561_v53, 16  ;;  %v3764_v18 = vor.u32 %v3763_v39, %v3760_v37  ;;  %v8471_v37 = vld [vmem:[#allocation18 + $0xa8] ss:$16 sps:$4 sm:$0xff]  }
 0x497   : > { %3642 = vst [vmem:[#allocation3 + $0x10] sm:$0xf] %v3634_v13  ;;  %v3792_v13 = vshrl.u32 %v7561_v53, 16  ;;  %v8479_v53 = vld [vmem:[#allocation18 + $0xcc] ss:$16 sps:$4 sm:$0xff]  }
 0x498   : > { %v8489_v39 = vld [vmem:[#allocation18 + $0x108] ss:$16 sps:$4 sm:$0xff]  }
 0x499   : > { %v3794_v28 = vrot.slane %v3792_v13, 3  ;;  %v8507_v13 = vld [vmem:[#allocation18 + $0x168] ss:$16 sps:$4 sm:$0xff]  }
 0x49e   : > { %v3647_v52 = vld [vmem:[#allocation3 + $0x10] sm:$0xf] }
 0x49f   : > { %v7563_v46 = vcombine.low %v3647_v52, %v3648_v8  ;;  %v7560_v42 = vcombine.low %v3646_v26, %v3647_v52  ;;  %v3746_v26 = vrot.slane %v3744_v20, 4  ;;  %v3797_v8 = vrot.slane %v3795_v14, 4  ;;  %v8458_v20 = vld [vmem:[#allocation18 + $0x64] ss:$16 sps:$4 sm:$0xff]  }
 0x4a0   : > { %v8512_v14 = vld [vmem:[#allocation18 + $0x184] ss:$16 sps:$4 sm:$0xff]  }
 0x4a1   : > { %v3688_v56 = vrot.slane %v7563_v46, 5  ;;  %v3675_v48 = vshrl.u32 %v7563_v46, 16  ;;  %v3678_v12 = vshll.u32 %v7563_v46, 16  ;;  %v3749_v58 = vshrl.u32 %v7560_v42, 16  ;;  %v8441_v46 = vld [vmem:[#allocation18 + $0x8] ss:$16 sps:$4 sm:$0xff]  }
 0x4a2   : > { %v3752_v7 = vshll.u32 %v7560_v42, 16  ;;  %v3747_v11 = vor.u32 %v3746_v26, %v3743_v29  ;;  %v3798_v52 = vor.u32 %v3797_v8, %v3794_v28  ;;  %v8446_v42 = vld [vmem:[#allocation18 + $0x24] ss:$16 sps:$4 sm:$0xff]   ;;  %v8453_v29 = vld [vmem:[#allocation18 + $0x48] ss:$16 sps:$4 sm:$0xff]  }
 0x4a3   : > { %v3689_v44 = vsel %vm3686_vm10, %v3687_v15, %v3688_v56  ;;  %v3677_v36 = vrot.slane %v3675_v48, 4  ;;  %v3680_v47 = vrot.slane %v3678_v12, 5  ;;  %v3691_v27 = vsel %vm3686_vm10, %v3688_v56, %v3690_v30  ;;  %v8449_v30 = vld [vmem:[#allocation18 + $0x2c] ss:$16 sps:$4 sm:$0xff]   ;;  %v8444_v56 = vld [vmem:[#allocation18 + $0x20] ss:$16 sps:$4 sm:$0xff]  }
 0x4a4   : > { %v3783_v61 = vshrl.u32 %v3689_v44, 16  ;;  %v3786_v0 = vshll.u32 %v3689_v44, 16  ;;  %v3810_v51 = vshrl.u32 %v3691_v27, 16  ;;  %v3751_v57 = vrot.slane %v3749_v58, 3  ;;  %v8447_v48 = vld [vmem:[#allocation18 + $0x28] ss:$16 sps:$4 sm:$0xff]  }
 0x4a5   : > { %v3681_v24 = vor.u32 %v3680_v47, %v3677_v36  ;;  %v3813_v4 = vshll.u32 %v3691_v27, 16  ;;  %v3754_v60 = vrot.slane %v3752_v7, 4  ;;  %v8452_v12 = vld [vmem:[#allocation18 + $0x44] ss:$16 sps:$4 sm:$0xff]   ;;  %v8461_v58 = vld [vmem:[#allocation18 + $0x6c] ss:$16 sps:$4 sm:$0xff]  }
 0x4a6   : > { %v3785_v54 = vrot.slane %v3783_v61, 3  ;;  %v3788_v55 = vrot.slane %v3786_v0, 4  ;;  %v3812_v3 = vrot.slane %v3810_v51, 3  ;;  %v8456_v44 = vld [vmem:[#allocation18 + $0x60] ss:$16 sps:$4 sm:$0xff]  }
 0x4a7   : > { %v3682_v59 = vsel %vm3665_vm11, %v3673_v49, %v3681_v24  ;;  %v3801_v35 = vshrl.u32 %v3681_v24, 16  ;;  %v3804_v33 = vshll.u32 %v3681_v24, 16  ;;  %v3815_v16 = vrot.slane %v3813_v4, 4  ;;  %v8459_v36 = vld [vmem:[#allocation18 + $0x68] ss:$16 sps:$4 sm:$0xff]  }
 0x4a8   : > { %v3789_v50 = vor.u32 %v3788_v55, %v3785_v54  ;;  %v3766_v41 = vshrl.u32 %v3682_v59, 16  ;;  %v3769_v17 = vshll.u32 %v3682_v59, 16  ;;  %v3755_v9 = vor.u32 %v3754_v60, %v3751_v57  ;;  %v8464_v47 = vld [vmem:[#allocation18 + $0x84] ss:$16 sps:$4 sm:$0xff]   ;;  %v8467_v7 = vld [vmem:[#allocation18 + $0x8c] ss:$16 sps:$4 sm:$0xff]  }
 0x4a9   : > { %v3803_v62 = vrot.slane %v3801_v35, 3  ;;  %v3806_v23 = vrot.slane %v3804_v33, 4  ;;  %v3816_v32 = vor.u32 %v3815_v16, %v3812_v3  ;;  %v8462_v61 = vld [vmem:[#allocation18 + $0x80] ss:$16 sps:$4 sm:$0xff]   ;;  %v8465_v0 = vld [vmem:[#allocation18 + $0x88] ss:$16 sps:$4 sm:$0xff]  }
 0x4aa   : > { %v3790_v1 = vsel %vm2279_vm4, %v3781_v31, %v3789_v50  ;;  %v3768_v2 = vrot.slane %v3766_v41, 3  ;;  %v3771_v5 = vrot.slane %v3769_v17, 4  ;;  %v3756_v25 = vsel %vm2279_vm4, %v3747_v11, %v3755_v9  ;;  %v8450_v31 = vld [vmem:[#allocation18 + $0x40] ss:$16 sps:$4 sm:$0xff]   ;;  %v8473_v27 = vld [vmem:[#allocation18 + $0xac] ss:$16 sps:$4 sm:$0xff]  }
 0x4ab   : > { %4150 = vmatmul.mubr.bf16.vlgmr.msra.gmra.mrb[8].mxu1 %v3790_v1  ;;  %v3807_v21 = vor.u32 %v3806_v23, %v3803_v62  ;;  %v3817_v49 = vsel %vm2279_vm4, %v3789_v50, %v3816_v32  ;;  %v3799_v34 = vsel %vm2279_vm4, %v3755_v9, %v3798_v52  ;;  %v8468_v24 = vld [vmem:[#allocation18 + $0xa0] ss:$16 sps:$4 sm:$0xff]   ;;  %v8476_v51 = vld [vmem:[#allocation18 + $0xc4] ss:$16 sps:$4 sm:$0xff]   ;;  %v8477_v55 = vld [vmem:[#allocation18 + $0xc8] ss:$16 sps:$4 sm:$0xff]  }
 0x4ac   : > { %v3772_v15 = vor.u32 %v3771_v5, %v3768_v2  ;;  %4159 = vmatprep.mubr.bf16.mxu1 %v9092_v6  ;;  %v8440_v6 = vld [vmem:[#allocation18 + $0x4] ss:$16 sps:$4 sm:$0xff]   ;;  %v8474_v54 = vld [vmem:[#allocation18 + $0xc0] ss:$16 sps:$4 sm:$0xff]   ;;  %v8485_v4 = vld [vmem:[#allocation18 + $0xec] ss:$16 sps:$4 sm:$0xff]  }
 0x4ad   : > { %6174 = vmatprep.subr.bf16.mxu1 %v8440_v6  ;;  %v8482_v57 = vld [vmem:[#allocation18 + $0xe4] ss:$16 sps:$4 sm:$0xff]   ;;  %v8480_v59 = vld [vmem:[#allocation18 + $0xe0] ss:$16 sps:$4 sm:$0xff]   ;;  %v8483_v60 = vld [vmem:[#allocation18 + $0xe8] ss:$16 sps:$4 sm:$0xff]  }
 0x4ae   : > { %v3773_v22 = vsel %vm2279_vm4, %v3764_v18, %v3772_v15  ;;  %v3808_v19 = vsel %vm2279_vm4, %v3772_v15, %v3807_v21  ;;  %6175 = vmatpush1.bf16.msra.mxu1 %v8438_v45  ;;  %v8488_v35 = vld [vmem:[#allocation18 + $0x104] ss:$16 sps:$4 sm:$0xff]   ;;  %v8491_v33 = vld [vmem:[#allocation18 + $0x10c] ss:$16 sps:$4 sm:$0xff]   ;;  %v8486_v50 = vld [vmem:[#allocation18 + $0x100] ss:$16 sps:$4 sm:$0xff]  }
 0x4af   : > { %4096 = vmatprep.mubr.bf16.mxu0 %v3773_v22  ;;  %6176 = vmatprep.subr.bf16.mxu1 %v8446_v42  ;;  %v8494_v41 = vld [vmem:[#allocation18 + $0x124] ss:$16 sps:$4 sm:$0xff]   ;;  %v8497_v17 = vld [vmem:[#allocation18 + $0x12c] ss:$16 sps:$4 sm:$0xff]   ;;  %v8492_v26 = vld [vmem:[#allocation18 + $0x120] ss:$16 sps:$4 sm:$0xff]  }
 0x4b0   : > { %4097 = vmatmul.mubr.bf16.vlgmr.msra.gmra.mrb[32].mxu0 %v3756_v25  ;;  %v8495_v62 = vld [vmem:[#allocation18 + $0x128] ss:$16 sps:$4 sm:$0xff]   ;;  %v8500_v23 = vld [vmem:[#allocation18 + $0x144] ss:$16 sps:$4 sm:$0xff]   ;;  %v8503_v3 = vld [vmem:[#allocation18 + $0x14c] ss:$16 sps:$4 sm:$0xff]  }
 0x4b1   : > { %4106 = vmatprep.mubr.bf16.mxu0 %v3808_v19  ;;  %6304 = vmatpush1.bf16.msra.mxu0 %v8441_v46  ;;  %v8498_v1 = vld [vmem:[#allocation18 + $0x140] ss:$16 sps:$4 sm:$0xff]   ;;  %v8501_v2 = vld [vmem:[#allocation18 + $0x148] ss:$16 sps:$4 sm:$0xff]   ;;  %v8506_v5 = vld [vmem:[#allocation18 + $0x164] ss:$16 sps:$4 sm:$0xff]  }
 0x4b2   : > { %6305 = vmatprep.subr.bf16.mxu0 %v8449_v30  ;;  %6177 = vmatpush1.bf16.msra.mxu1 %v8444_v56  ;;  %v8509_v16 = vld [vmem:[#allocation18 + $0x16c] ss:$16 sps:$4 sm:$0xff]   ;;  %v8504_v9 = vld [vmem:[#allocation18 + $0x160] ss:$16 sps:$4 sm:$0xff]   ;;  %v8513_v21 = vld [vmem:[#allocation18 + $0x188] ss:$16 sps:$4 sm:$0xff]  }
 0x4b3   : > { %4160 = vmatmul.mubr.bf16.gmra.mrb[12].mxu1 %v3817_v49  ;;  %6178 = vmatprep.subr.bf16.mxu1 %v8452_v12  ;;  %v8515_v18 = vld [vmem:[#allocation18 + $0x18c] ss:$16 sps:$4 sm:$0xff]   ;;  %v8510_v15 = vld [vmem:[#allocation18 + $0x180] ss:$16 sps:$4 sm:$0xff]   ;;  %v8518_v22 = vld [vmem:[#allocation18 + $0x1a4] ss:$16 sps:$4 sm:$0xff]  }
 0x4b4   : > { %v8516_v11 = vld [vmem:[#allocation18 + $0x1a0] ss:$16 sps:$4 sm:$0xff]   ;;  %v8519_v32 = vld [vmem:[#allocation18 + $0x1a8] ss:$16 sps:$4 sm:$0xff]   ;;  %v8521_v25 = vld [vmem:[#allocation18 + $0x1ac] ss:$16 sps:$4 sm:$0xff]  }
 0x4b5   : > { %6306 = vmatpush1.bf16.msra.mxu0 %v8447_v48  ;;  %v8524_v28 = vld [vmem:[#allocation18 + $0x1c4] ss:$16 sps:$4 sm:$0xff]   ;;  %v8527_v8 = vld [vmem:[#allocation18 + $0x1cc] ss:$16 sps:$4 sm:$0xff]   ;;  %v8522_v19 = vld [vmem:[#allocation18 + $0x1c0] ss:$16 sps:$4 sm:$0xff]  }
 0x4b6   : > { %6307 = vmatprep.subr.bf16.mxu0 %v8455_v63  ;;  %6179 = vmatpush1.bf16.msra.mxu1 %v8450_v31  ;;  %v8525_v49 = vld [vmem:[#allocation18 + $0x1c8] ss:$16 sps:$4 sm:$0xff]   ;;  %v8530_v52 = vld [vmem:[#allocation18 + $0x1e4] ss:$16 sps:$4 sm:$0xff]   ;;  %v4170_v46 = vld [vmem:[#allocation15] sm:$0x3] }
 0x4b7   : > { %6180 = vmatprep.subr.bf16.mxu1 %v8458_v20  ;;  %v10046_v42 = vsub.s32 1, %v9533_v38  ;;  %v8528_v30 = vld [vmem:[#allocation18 + $0x1e0] ss:$16 sps:$4 sm:$0xff]   ;;  %v8531_v48 = vld [vmem:[#allocation18 + $0x1e8] ss:$16 sps:$4 sm:$0xff]  }
 0x4b8   : > { %4107 = vmatmul.mubr.bf16.gmra.mrb[36].mxu0 %v3799_v34  ;;  %v8533_v34 = vld [vmem:[#allocation18 + $0x1ec] ss:$16 sps:$4 sm:$0xff]   ;;  %v8536_v31 = vld [vmem:[#allocation18 + $0x204] ss:$16 sps:$4 sm:$0xff]  }
 0x4b9   : > { %6308 = vmatpush1.bf16.msra.mxu0 %v8453_v29  ;;  %v4190_v63 = vld [vmem:[#allocation16] sm:$0x3]  ;;  %v10049_v29 = vrot.slane %v4170_v46, %v10043_v40 }
 0x4ba   : > { %6309 = vmatprep.subr.bf16.mxu0 %v8461_v58  ;;  %6181 = vmatpush1.bf16.msra.mxu1 %v8456_v44  ;;  %v8539_v20 = vld [vmem:[#allocation18 + $0x20c] ss:$16 sps:$4 sm:$0xff]   ;;  %v10052_v44 = vrot.slane %v4170_v46, %v10046_v42 }
 0x4bb   : > { %6182 = vmatprep.subr.bf16.mxu1 %v8464_v47  ;;  %v10055_v47 = vrot.slane %v4190_v63, %v10043_v40 }
 0x4bd   : > { %6310 = vmatpush1.bf16.msra.mxu0 %v8459_v36 }
 0x4be   : > { %6311 = vmatprep.subr.bf16.mxu0 %v8467_v7  ;;  %6183 = vmatpush1.bf16.msra.mxu1 %v8462_v61 }
 0x4bf   : > { %6184 = vmatprep.subr.bf16.mxu1 %v8470_v10 }
 0x4c1   : > { %6312 = vmatpush1.bf16.msra.mxu0 %v8465_v0  ;;  %v10058_v0 = vrot.slane %v4190_v63, %v10046_v42 }
 0x4c2   : > { %6313 = vmatprep.subr.bf16.mxu0 %v8473_v27  ;;  %6185 = vmatpush1.bf16.msra.mxu1 %v8468_v24 }
 0x4c3   : > { %6186 = vmatprep.subr.bf16.mxu1 %v8476_v51 }
 0x4c5   : > { %6314 = vmatpush1.bf16.msra.mxu0 %v8471_v37 }
 0x4c6   : > { %6315 = vmatprep.subr.bf16.mxu0 %v8479_v53  ;;  %6187 = vmatpush1.bf16.msra.mxu1 %v8474_v54 }
 0x4c7   : > { %6188 = vmatprep.subr.bf16.mxu1 %v8482_v57 }
 0x4c9   : > { %6316 = vmatpush1.bf16.msra.mxu0 %v8477_v55 }
 0x4ca   : > { %6317 = vmatprep.subr.bf16.mxu0 %v8485_v4  ;;  %6189 = vmatpush1.bf16.msra.mxu1 %v8480_v59 }
 0x4cb   : > { %6190 = vmatprep.subr.bf16.mxu1 %v8488_v35 }
 0x4cd   : > { %6318 = vmatpush1.bf16.msra.mxu0 %v8483_v60 }
 0x4ce   : > { %6319 = vmatprep.subr.bf16.mxu0 %v8491_v33  ;;  %6191 = vmatpush1.bf16.msra.mxu1 %v8486_v50 }
 0x4cf   : > { %6192 = vmatprep.subr.bf16.mxu1 %v8494_v41 }
 0x4d1   : > { %6320 = vmatpush1.bf16.msra.mxu0 %v8489_v39 }
 0x4d2   : > { %6321 = vmatprep.subr.bf16.mxu0 %v8497_v17  ;;  %6193 = vmatpush1.bf16.msra.mxu1 %v8492_v26 }
 0x4d3   : > { %6194 = vmatprep.subr.bf16.mxu1 %v8500_v23 }
 0x4d5   : > { %6322 = vmatpush1.bf16.msra.mxu0 %v8495_v62 }
 0x4d6   : > { %6323 = vmatprep.subr.bf16.mxu0 %v8503_v3  ;;  %6195 = vmatpush1.bf16.msra.mxu1 %v8498_v1 }
 0x4d7   : > { %6196 = vmatprep.subr.bf16.mxu1 %v8506_v5 }
 0x4d9   : > { %6324 = vmatpush1.bf16.msra.mxu0 %v8501_v2 }
 0x4da   : > { %6325 = vmatprep.subr.bf16.mxu0 %v8509_v16  ;;  %6197 = vmatpush1.bf16.msra.mxu1 %v8504_v9 }
 0x4db   : > { %6198 = vmatprep.subr.bf16.mxu1 %v8512_v14 }
 0x4dd   : > { %6326 = vmatpush1.bf16.msra.mxu0 %v8507_v13 }
 0x4de   : > { %6327 = vmatprep.subr.bf16.mxu0 %v8515_v18  ;;  %6199 = vmatpush1.bf16.msra.mxu1 %v8510_v15 }
 0x4df   : > { %6200 = vmatprep.subr.bf16.mxu1 %v8518_v22 }
 0x4e1   : > { %6328 = vmatpush1.bf16.msra.mxu0 %v8513_v21 }
 0x4e2   : > { %6329 = vmatprep.subr.bf16.mxu0 %v8521_v25  ;;  %6201 = vmatpush1.bf16.msra.mxu1 %v8516_v11 }
 0x4e3   : > { %6202 = vmatprep.subr.bf16.mxu1 %v8524_v28 }
 0x4e5   : > { %6330 = vmatpush1.bf16.msra.mxu0 %v8519_v32 }
 0x4e6   : > { %6331 = vmatprep.subr.bf16.mxu0 %v8527_v8  ;;  %6203 = vmatpush1.bf16.msra.mxu1 %v8522_v19 }
 0x4e7   : > { %6204 = vmatprep.subr.bf16.mxu1 %v8530_v52 }
 0x4e9   : > { %6332 = vmatpush1.bf16.msra.mxu0 %v8525_v49 }
 0x4ea   : > { %6333 = vmatprep.subr.bf16.mxu0 %v8533_v34  ;;  %6205 = vmatpush1.bf16.msra.mxu1 %v8528_v30 }
 0x4eb   : > { %6217 = vmatprep.subr.bf16.mxu1 %v8536_v31 }
 0x4ed   : > { %6334 = vmatpush1.bf16.msra.mxu0 %v8531_v48 }
 0x4ee   : > { %6346 = vmatprep.subr.bf16.mxu0 %v8539_v20 }
 0x57e   : > { %v4151_v6 = vpop.f32.mrb[8].mxu1 }
 0x57f   : > { %v4153_v45 = vpop.f32.mrb[9].mxu1 }
 0x580   : > { %v4155_v56 = vpop.f32.mrb[10].mxu1 }
 0x581   : > { %v4157_v12 = vpop.f32.mrb[11].mxu1 }
 0x583   : > { %v4098_v58 = vpop.f32.mrb[32].mxu0 }
 0x584   : > { %v4152_v36 = vadd.f32 %v4151_v6, %v4098_v58  ;;  %v4100_v7 = vpop.f32.mrb[33].mxu0 }
 0x585   : > { %v4154_v61 = vadd.f32 %v4153_v45, %v4100_v7  ;;  %v4102_v10 = vpop.f32.mrb[34].mxu0 }
 0x586   : > { %v4182_v27 = vmul.f32 %v10049_v29, %v4152_v36  ;;  %v4156_v24 = vadd.f32 %v4155_v56, %v4102_v10  ;;  %v4104_v37 = vpop.f32.mrb[35].mxu0  ;;  %v4161_v51 = vpop.f32.mrb[12].mxu1 }
 0x587   : > { %v4183_v53 = vmul.f32 %v10052_v44, %v4154_v61  ;;  %v4158_v54 = vadd.f32 %v4157_v12, %v4104_v37  ;;  %v4163_v55 = vpop.f32.mrb[13].mxu1 }
 0x588   : > { %v4202_v57 = vadd.f32 %v10055_v47, %v4182_v27  ;;  %v4184_v4 = vmul.f32 %v10049_v29, %v4156_v24  ;;  %v4165_v59 = vpop.f32.mrb[14].mxu1 }
 0x589   : > { %v4203_v60 = vadd.f32 %v10058_v0, %v4183_v53  ;;  %v4185_v35 = vmul.f32 %v10052_v44, %v4158_v54  ;;  %v10066_v33 = vpop.f32.mrb[15].mxu1 }
 0x58a   : > { %v4204_v50 = vadd.f32 %v10055_v47, %v4184_v4 }
 0x58b   : > { %v4218_v39 = vcombine.low %v4202_v57, %v4203_v60  ;;  %v4219_v41 = vcombine.high %v4202_v57, %v4203_v60  ;;  %v4205_v17 = vadd.f32 %v10058_v0, %v4185_v35  ;;  %v4108_v26 = vpop.f32.mrb[36].mxu0 }
 0x58c   : > { %v4162_v62 = vadd.f32 %v4161_v51, %v4108_v26  ;;  %v4110_v23 = vpop.f32.mrb[37].mxu0 }
 0x58d   : > { %v4226_v3 = vrot.slane %v4218_v39, %v9541_v43  ;;  %v4233_v1 = vrot.slane %v4219_v41, %v9541_v43  ;;  %v4236_v2 = vcombine.low %v4204_v50, %v4205_v17  ;;  %v4237_v5 = vcombine.high %v4204_v50, %v4205_v17  ;;  %v4112_v16 = vpop.f32.mrb[38].mxu0 }
 0x58e   : > { %v4186_v9 = vmul.f32 %v10049_v29, %v4162_v62  ;;  %v4164_v13 = vadd.f32 %v4163_v55, %v4110_v23  ;;  %v10073_v14 = vadd.f32 %v4165_v59, %v4112_v16  ;;  %v10075_v18 = vpop.f32.mrb[39].mxu0 }
 0x58f   : > { %v4234_v15 = vcombine.high %v4226_v3, %v4226_v3  ;;  %v4235_v21 = vcombine.high %v4233_v1, %v4233_v1  ;;  %v4296_v11 = vrot.slane %v4226_v3, %v9541_v43  ;;  %v4312_v22 = vrot.slane %v4233_v1, %v9541_v43 }
 0x590   : > { %v10080_v32 = vrot.slane %v4236_v2, %v9541_v43  ;;  %v10083_v25 = vrot.slane %v4237_v5, %v9541_v43  ;;  %v10086_v28 = vadd.f32 %v10055_v47, %v4186_v9  ;;  %v10089_v8 = vmul.f32 %v10052_v44, %v4164_v13 }
 0x591   : > { %v4297_v19 = vcombine.high %v4296_v11, %v4296_v11  ;;  %v4304_v49 = vrot.slane %v4234_v15, %v9541_v43  ;;  %v4313_v52 = vcombine.high %v4312_v22, %v4312_v22  ;;  %v4320_v34 = vrot.slane %v4235_v21, %v9541_v43 }
 0x592   : > { %v4450_v6 = vsel %vm3187_vm9, %v4296_v11, -inf  ;;  %v4478_v45 = vsel %vm3187_vm9, %v4312_v22, -inf  ;;  %v4252_v46 = vcombine.high %v10080_v32, %v10080_v32  ;;  %v4253_v30 = vcombine.high %v10083_v25, %v10083_v25 }
 0x593   : > { %v4305_v56 = vcombine.high %v4304_v49, %v4304_v49  ;;  %v4321_v48 = vcombine.high %v4320_v34, %v4320_v34  ;;  %v4451_v12 = vrot.slane %v4450_v6, 4  ;;  %v4457_v63 = vsel %vm3187_vm9, %v4297_v19, -inf }
 0x594   : > { %v4458_v31 = vrot.slane %v4457_v63, 4  ;;  %v4464_v20 = vsel %vm3187_vm9, %v4304_v49, -inf  ;;  %v4479_v58 = vrot.slane %v4478_v45, 4  ;;  %v4485_v36 = vsel %vm3187_vm9, %v4313_v52, -inf }
 0x595   : > { %v4452_v7 = vmax.f32 %v4450_v6, %v4451_v12  ;;  %v4465_v61 = vrot.slane %v4464_v20, 4  ;;  %v4471_v10 = vsel %vm3187_vm9, %v4305_v56, -inf  ;;  %v4486_v27 = vrot.slane %v4485_v36, 4 }
 0x596   : > { %v4459_v24 = vmax.f32 %v4457_v63, %v4458_v31  ;;  %v4472_v37 = vrot.slane %v4471_v10, 4  ;;  %v4480_v51 = vmax.f32 %v4478_v45, %v4479_v58  ;;  %v4492_v53 = vsel %vm3187_vm9, %v4320_v34, -inf }
 0x597   : > { %v4453_v54 = vrot.slane %v4452_v7, 2  ;;  %v4466_v55 = vmax.f32 %v4464_v20, %v4465_v61  ;;  %v4487_v57 = vmax.f32 %v4485_v36, %v4486_v27  ;;  %v4493_v4 = vrot.slane %v4492_v53, 4 }
 0x598   : > { %v4460_v59 = vrot.slane %v4459_v24, 2  ;;  %v4473_v60 = vmax.f32 %v4471_v10, %v4472_v37  ;;  %v4481_v35 = vrot.slane %v4480_v51, 2  ;;  %v4499_v50 = vsel %vm3187_vm9, %v4321_v48, -inf }
 0x599   : > { %v4454_v39 = vmax.f32 %v4452_v7, %v4453_v54  ;;  %v4467_v41 = vrot.slane %v4466_v55, 2  ;;  %v4488_v17 = vrot.slane %v4487_v57, 2  ;;  %v4494_v26 = vmax.f32 %v4492_v53, %v4493_v4 }
 0x59a   : > { %v4461_v62 = vmax.f32 %v4459_v24, %v4460_v59  ;;  %v4474_v23 = vrot.slane %v4473_v60, 2  ;;  %v4482_v3 = vmax.f32 %v4480_v51, %v4481_v35  ;;  %v4500_v1 = vrot.slane %v4499_v50, 4 }
 0x59b   : > { %v4455_v2 = vrot.slane %v4454_v39, 1  ;;  %v4468_v5 = vmax.f32 %v4466_v55, %v4467_v41  ;;  %v4489_v16 = vmax.f32 %v4487_v57, %v4488_v17  ;;  %v4495_v9 = vrot.slane %v4494_v26, 2 }
 0x59c   : > { %v4462_v13 = vrot.slane %v4461_v62, 1  ;;  %v4475_v15 = vmax.f32 %v4473_v60, %v4474_v23  ;;  %v4483_v21 = vrot.slane %v4482_v3, 1  ;;  %v4501_v11 = vmax.f32 %v4499_v50, %v4500_v1 }
 0x59d   : > { %v4456_v22 = vmax.f32 %v4454_v39, %v4455_v2  ;;  %v4469_v19 = vrot.slane %v4468_v5, 1  ;;  %v4490_v49 = vrot.slane %v4489_v16, 1  ;;  %v4496_v52 = vmax.f32 %v4494_v26, %v4495_v9 }
 0x59e   : > { %v4463_v34 = vmax.f32 %v4461_v62, %v4462_v13  ;;  %v4476_v6 = vrot.slane %v4475_v15, 1  ;;  %v4484_v45 = vmax.f32 %v4482_v3, %v4483_v21  ;;  %v4502_v56 = vrot.slane %v4501_v11, 2 }
 0x59f   : > { %v4470_v48 = vmax.f32 %v4468_v5, %v4469_v19  ;;  %v4491_v12 = vmax.f32 %v4489_v16, %v4490_v49  ;;  %v4497_v63 = vrot.slane %v4496_v52, 1  ;;  %v4674_v31 = vmax.f32 %v4456_v22, 0.0 }
 0x5a0   : > { %v4477_v20 = vmax.f32 %v4475_v15, %v4476_v6  ;;  %v4503_v58 = vmax.f32 %v4501_v11, %v4502_v56  ;;  %v4675_v36 = vmax.f32 %v4463_v34, 0.0  ;;  %v4678_v7 = vmax.f32 %v4484_v45, 0.0 }
 0x5a1   : > { %v4498_v61 = vmax.f32 %v4496_v52, %v4497_v63  ;;  %v4676_v10 = vmax.f32 %v4470_v48, 0.0  ;;  %v4679_v27 = vmax.f32 %v4491_v12, 0.0  ;;  %v4328_v24 = vrot.slane %v10080_v32, %v9541_v43 }
 0x5a2   : > { %v4504_v37 = vrot.slane %v4503_v58, 1  ;;  %v4677_v51 = vmax.f32 %v4477_v20, 0.0  ;;  %v7953_v53 = vpack.c.bf16 %v4675_v36, %v4674_v31  ;;  %v4336_v54 = vrot.slane %v4252_v46, %v9541_v43 }
 0x5a3   : > { %v4680_v55 = vmax.f32 %v4498_v61, 0.0  ;;  %v7955_v57 = vpack.c.bf16 %v4679_v27, %v4678_v7  ;;  %v4329_v4 = vcombine.high %v4328_v24, %v4328_v24  ;;  %v4344_v59 = vrot.slane %v10083_v25, %v9541_v43 }
 0x5a4   : > { %v4505_v60 = vmax.f32 %v4503_v58, %v4504_v37  ;;  %v7954_v35 = vpack.c.bf16 %v4677_v51, %v4676_v10  ;;  %v4818_v50 = vunpack.c.l.b16 %v7953_v53  ;;  %v4819_v39 = vunpack.c.h.b16 %v7953_v53 }
 0x5a5   : > { %v4822_v41 = vunpack.c.l.b16 %v7955_v57  ;;  %v4823_v17 = vunpack.c.h.b16 %v7955_v57  ;;  %v4337_v26 = vcombine.high %v4336_v54, %v4336_v54  ;;  %v4345_v62 = vcombine.high %v4344_v59, %v4344_v59 }
 0x5a6   : > { %v4681_v23 = vmax.f32 %v4505_v60, 0.0  ;;  %v4820_v3 = vunpack.c.l.b16 %v7954_v35  ;;  %v4821_v1 = vunpack.c.h.b16 %v7954_v35  ;;  %v4352_v32 = vrot.slane %v4253_v30, %v9541_v43 }
 0x5a7   : > { %v4506_v46 = vsel %vm3187_vm9, %v4328_v24, -inf  ;;  %v4513_v2 = vsel %vm3187_vm9, %v4329_v4, -inf  ;;  %v4520_v5 = vsel %vm3187_vm9, %v4336_v54, -inf  ;;  %v4527_v16 = vsel %vm3187_vm9, %v4337_v26, -inf }
 0x5a8   : > { %v7956_v9 = vpack.c.bf16 %v4681_v23, %v4680_v55  ;;  %v4850_v13 = vsel %vm2141_vm12, %v4820_v3, %v4818_v50  ;;  %v4857_v15 = vsel %vm2141_vm12, %v4821_v1, %v4819_v39  ;;  %v4353_v21 = vcombine.high %v4352_v32, %v4352_v32 }
 0x5a9   : > { %v4851_v11 = vsel %vm2143_vm13, %v4822_v41, %v4850_v13  ;;  %v4858_v22 = vsel %vm2143_vm13, %v4823_v17, %v4857_v15  ;;  %v4507_v25 = vrot.slane %v4506_v46, 4  ;;  %v4514_v30 = vrot.slane %v4513_v2, 4 }
 0x5aa   : > { %v4824_v19 = vunpack.c.l.b16 %v7956_v9  ;;  %v4825_v49 = vunpack.c.h.b16 %v7956_v9  ;;  %v4521_v52 = vrot.slane %v4520_v5, 4  ;;  %v4528_v34 = vrot.slane %v4527_v16, 4 }
 0x5ab   : > { %v4508_v6 = vmax.f32 %v4506_v46, %v4507_v25  ;;  %v4515_v45 = vmax.f32 %v4513_v2, %v4514_v30  ;;  %v4534_v56 = vsel %vm3187_vm9, %v4344_v59, -inf  ;;  %v4541_v48 = vsel %vm3187_vm9, %v4345_v62, -inf }
 0x5ac   : > { %v4852_v12 = vsel %vm2145_vm14, %v4824_v19, %v4851_v11  ;;  %v4859_v63 = vsel %vm2145_vm14, %v4825_v49, %v4858_v22  ;;  %v4522_v31 = vmax.f32 %v4520_v5, %v4521_v52  ;;  %v4529_v20 = vmax.f32 %v4527_v16, %v4528_v34 }
 0x5ad   : > { %v4509_v58 = vrot.slane %v4508_v6, 2  ;;  %v4516_v36 = vrot.slane %v4515_v45, 2  ;;  %v4535_v7 = vrot.slane %v4534_v56, 4  ;;  %v4542_v61 = vrot.slane %v4541_v48, 4 }
 0x5ae   : > { %v4523_v10 = vrot.slane %v4522_v31, 2  ;;  %v4530_v27 = vrot.slane %v4529_v20, 2  ;;  %v4548_v24 = vsel %vm3187_vm9, %v4352_v32, -inf  ;;  %v4555_v37 = vsel %vm3187_vm9, %v4353_v21, -inf }
 0x5af   : > { %v4510_v51 = vmax.f32 %v4508_v6, %v4509_v58  ;;  %v4517_v53 = vmax.f32 %v4515_v45, %v4516_v36  ;;  %v4536_v54 = vmax.f32 %v4534_v56, %v4535_v7  ;;  %v4543_v55 = vmax.f32 %v4541_v48, %v4542_v61 }
 0x5b0   : > { %v4524_v57 = vmax.f32 %v4522_v31, %v4523_v10  ;;  %v4531_v4 = vmax.f32 %v4529_v20, %v4530_v27  ;;  %v4549_v59 = vrot.slane %v4548_v24, 4  ;;  %v4556_v60 = vrot.slane %v4555_v37, 4 }
 0x5b1   : > { %v4511_v35 = vrot.slane %v4510_v51, 1  ;;  %v4518_v50 = vrot.slane %v4517_v53, 1  ;;  %v4537_v39 = vrot.slane %v4536_v54, 2  ;;  %v4544_v41 = vrot.slane %v4543_v55, 2 }
 0x5b2   : > { %v4525_v17 = vrot.slane %v4524_v57, 1  ;;  %v4532_v26 = vrot.slane %v4531_v4, 1  ;;  %v4550_v62 = vmax.f32 %v4548_v24, %v4549_v59  ;;  %v4557_v23 = vmax.f32 %v4555_v37, %v4556_v60 }
 0x5b3   : > { %v4512_v3 = vmax.f32 %v4510_v51, %v4511_v35  ;;  %v4519_v1 = vmax.f32 %v4517_v53, %v4518_v50  ;;  %v4538_v32 = vmax.f32 %v4536_v54, %v4537_v39  ;;  %v4545_v46 = vmax.f32 %v4543_v55, %v4544_v41 }
 0x5b4   : > { %v4526_v2 = vmax.f32 %v4524_v57, %v4525_v17  ;;  %v4533_v5 = vmax.f32 %v4531_v4, %v4532_v26  ;;  %v4551_v16 = vrot.slane %v4550_v62, 2  ;;  %v4558_v9 = vrot.slane %v4557_v23, 2 }
 0x5b5   : > { %v4539_v13 = vrot.slane %v4538_v32, 1  ;;  %v4546_v15 = vrot.slane %v4545_v46, 1  ;;  %v4682_v21 = vmax.f32 %v4512_v3, 0.0  ;;  %v4683_v11 = vmax.f32 %v4519_v1, 0.0 }
 0x5b6   : > { %v4552_v22 = vmax.f32 %v4550_v62, %v4551_v16  ;;  %v4559_v25 = vmax.f32 %v4557_v23, %v4558_v9  ;;  %v4684_v30 = vmax.f32 %v4526_v2, 0.0  ;;  %v4685_v19 = vmax.f32 %v4533_v5, 0.0 }
 0x5b7   : > { %v4540_v49 = vmax.f32 %v4538_v32, %v4539_v13  ;;  %v4547_v52 = vmax.f32 %v4545_v46, %v4546_v15  ;;  %v7957_v34 = vpack.c.bf16 %v4683_v11, %v4682_v21  ;;  %v4207_v6 = vadd.f32 %v10058_v0, %v10089_v8 }
 0x5b8   : > { %v4553_v45 = vrot.slane %v4552_v22, 1  ;;  %v4560_v56 = vrot.slane %v4559_v25, 1  ;;  %v7958_v48 = vpack.c.bf16 %v4685_v19, %v4684_v30 }
 0x5b9   : > { %v4686_v31 = vmax.f32 %v4540_v49, 0.0  ;;  %v4687_v20 = vmax.f32 %v4547_v52, 0.0  ;;  %v4826_v58 = vunpack.c.l.b16 %v7957_v34  ;;  %v4827_v36 = vunpack.c.h.b16 %v7957_v34 }
 0x5ba   : > { %v4554_v7 = vmax.f32 %v4552_v22, %v4553_v45  ;;  %v4561_v61 = vmax.f32 %v4559_v25, %v4560_v56  ;;  %v4828_v10 = vunpack.c.l.b16 %v7958_v48  ;;  %v4829_v27 = vunpack.c.h.b16 %v7958_v48 }
 0x5bb   : > { %v7959_v24 = vpack.c.bf16 %v4687_v20, %v4686_v31  ;;  %v4853_v37 = vsel %vm2147_vm15, %v4826_v58, %v4852_v12  ;;  %v4860_v51 = vsel %vm2147_vm15, %v4827_v36, %v4859_v63  ;;  %v4254_v53 = vcombine.low %v10086_v28, %v4207_v6 }
 0x5bc   : > { %v4688_v54 = vmax.f32 %v4554_v7, 0.0  ;;  %v4689_v8 = vmax.f32 %v4561_v61, 0.0  ;;  %v4854_v55 = vsel %vm2149_vm0, %v4828_v10, %v4853_v37  ;;  %v4861_v57 = vsel %vm2149_vm0, %v4829_v27, %v4860_v51 }
 0x5bd   : > { %v4830_v4 = vunpack.c.l.b16 %v7959_v24  ;;  %v4831_v59 = vunpack.c.h.b16 %v7959_v24  ;;  %v4255_v60 = vcombine.high %v10086_v28, %v4207_v6  ;;  %v4262_v35 = vrot.slane %v4254_v53, %v9541_v43 }
 0x5be   : > { %v7960_v50 = vpack.c.bf16 %v4689_v8, %v4688_v54  ;;  %v4168_v12 = vadd.f32 %v10066_v33, %v10075_v18  ;;  %v10148_v28 = vmul.f32 %v10049_v29, %v10073_v14 }
 0x5bf   : > { %v4855_v63 = vsel %vm2151_vm1, %v4830_v4, %v4854_v55  ;;  %v4862_v39 = vsel %vm2151_vm1, %v4831_v59, %v4861_v57  ;;  %v4269_v41 = vrot.slane %v4255_v60, %v9541_v43  ;;  %v4270_v17 = vcombine.high %v4262_v35, %v4262_v35 }
 0x5c0   : > { %v4832_v26 = vunpack.c.l.b16 %v7960_v50  ;;  %v4833_v62 = vunpack.c.h.b16 %v7960_v50  ;;  %v4360_v23 = vrot.slane %v4262_v35, %v9541_v43  ;;  %v10153_v18 = vmul.f32 %v10052_v44, %v4168_v12 }
 0x5c1   : > { %v4271_v3 = vcombine.high %v4269_v41, %v4269_v41  ;;  %v4368_v1 = vrot.slane %v4270_v17, %v9541_v43  ;;  %v4376_v33 = vrot.slane %v4269_v41, %v9541_v43 }
 0x5c2   : > { %v10156_v32 = vsel %vm2153_vm2, %v4832_v26, %v4855_v63  ;;  %v10159_v46 = vsel %vm2153_vm2, %v4833_v62, %v4862_v39  ;;  %v4361_v2 = vcombine.high %v4360_v23, %v4360_v23  ;;  %v4562_v5 = vsel %vm3187_vm9, %v4360_v23, -inf }
 0x5c3   : > { %v10164_v29 = vpack.c.b16 %v10159_v46, %v10156_v32  ;;  %v4369_v14 = vcombine.high %v4368_v1, %v4368_v1  ;;  %v4377_v16 = vcombine.high %v4376_v33, %v4376_v33  ;;  %v4384_v9 = vrot.slane %v4271_v3, %v9541_v43 }
 0x5c4   : > { %v4563_v13 = vrot.slane %v4562_v5, 4  ;;  %v4569_v44 = vsel %vm3187_vm9, %v4361_v2, -inf  ;;  %v4576_v15 = vsel %vm3187_vm9, %v4368_v1, -inf  ;;  %v4590_v21 = vsel %vm3187_vm9, %v4376_v33, -inf }
 0x5c5   : > { %v4385_v11 = vcombine.high %v4384_v9, %v4384_v9  ;;  %v4570_v22 = vrot.slane %v4569_v44, 4  ;;  %v4577_v25 = vrot.slane %v4576_v15, 4  ;;  %v4583_v30 = vsel %vm3187_vm9, %v4369_v14, -inf }
 0x5c6   : > { %v4564_v19 = vmax.f32 %v4562_v5, %v4563_v13  ;;  %v4584_v49 = vrot.slane %v4583_v30, 4  ;;  %v4591_v52 = vrot.slane %v4590_v21, 4  ;;  %v4597_v34 = vsel %vm3187_vm9, %v4377_v16, -inf }
 0x5c7   : > { %v4571_v6 = vmax.f32 %v4569_v44, %v4570_v22  ;;  %v4578_v45 = vmax.f32 %v4576_v15, %v4577_v25  ;;  %v4598_v56 = vrot.slane %v4597_v34, 4  ;;  %v4604_v48 = vsel %vm3187_vm9, %v4384_v9, -inf }
 0x5c8   : > { %v4565_v31 = vrot.slane %v4564_v19, 2  ;;  %v4585_v20 = vmax.f32 %v4583_v30, %v4584_v49  ;;  %v4592_v58 = vmax.f32 %v4590_v21, %v4591_v52  ;;  %v4605_v36 = vrot.slane %v4604_v48, 4 }
 0x5c9   : > { %v4572_v7 = vrot.slane %v4571_v6, 2  ;;  %v4579_v61 = vrot.slane %v4578_v45, 2  ;;  %v4599_v10 = vmax.f32 %v4597_v34, %v4598_v56  ;;  %v4611_v27 = vsel %vm3187_vm9, %v4385_v11, -inf }
 0x5ca   : > { %v4566_v24 = vmax.f32 %v4564_v19, %v4565_v31  ;;  %v4586_v37 = vrot.slane %v4585_v20, 2  ;;  %v4593_v51 = vrot.slane %v4592_v58, 2  ;;  %v4606_v53 = vmax.f32 %v4604_v48, %v4605_v36 }
 0x5cb   : > { %v4573_v54 = vmax.f32 %v4571_v6, %v4572_v7  ;;  %v4580_v8 = vmax.f32 %v4578_v45, %v4579_v61  ;;  %v4600_v55 = vrot.slane %v4599_v10, 2  ;;  %v4612_v57 = vrot.slane %v4611_v27, 4 }
 0x5cc   : > { %v4567_v4 = vrot.slane %v4566_v24, 1  ;;  %v4587_v59 = vmax.f32 %v4585_v20, %v4586_v37  ;;  %v4594_v60 = vmax.f32 %v4592_v58, %v4593_v51  ;;  %v4607_v35 = vrot.slane %v4606_v53, 2 }
 0x5cd   : > { %v4574_v50 = vrot.slane %v4573_v54, 1  ;;  %v4581_v12 = vrot.slane %v4580_v8, 1  ;;  %v4601_v63 = vmax.f32 %v4599_v10, %v4600_v55  ;;  %v4613_v39 = vmax.f32 %v4611_v27, %v4612_v57 }
 0x5ce   : > { %v4568_v41 = vmax.f32 %v4566_v24, %v4567_v4  ;;  %v4588_v17 = vrot.slane %v4587_v59, 1  ;;  %v4595_v26 = vrot.slane %v4594_v60, 1  ;;  %v4608_v62 = vmax.f32 %v4606_v53, %v4607_v35 }
 0x5cf   : > { %v4575_v23 = vmax.f32 %v4573_v54, %v4574_v50  ;;  %v4582_v3 = vmax.f32 %v4580_v8, %v4581_v12  ;;  %v4602_v1 = vrot.slane %v4601_v63, 1  ;;  %v4614_v33 = vrot.slane %v4613_v39, 2 }
 0x5d0   : > { %v4589_v2 = vmax.f32 %v4587_v59, %v4588_v17  ;;  %v4596_v5 = vmax.f32 %v4594_v60, %v4595_v26  ;;  %v4609_v14 = vrot.slane %v4608_v62, 1  ;;  %v4208_v16 = vadd.f32 %v10055_v47, %v10148_v28 }
 0x5d1   : > { %v4603_v9 = vmax.f32 %v4601_v63, %v4602_v1  ;;  %v4615_v13 = vmax.f32 %v4613_v39, %v4614_v33  ;;  %v4690_v44 = vmax.f32 %v4568_v41, 0.0  ;;  %v4691_v15 = vmax.f32 %v4575_v23, 0.0 }
 0x5d2   : > { %v4610_v21 = vmax.f32 %v4608_v62, %v4609_v14  ;;  %v4692_v11 = vmax.f32 %v4582_v3, 0.0  ;;  %v4693_v22 = vmax.f32 %v4589_v2, 0.0  ;;  %v4209_v25 = vadd.f32 %v10058_v0, %v10153_v18 }
 0x5d3   : > { %v4616_v30 = vrot.slane %v4615_v13, 1  ;;  %v4694_v19 = vmax.f32 %v4596_v5, 0.0  ;;  %v4695_v49 = vmax.f32 %v4603_v9, 0.0  ;;  %v7961_v52 = vpack.c.bf16 %v4691_v15, %v4690_v44 }
 0x5d4   : > { %v7962_v34 = vpack.c.bf16 %v4693_v22, %v4692_v11  ;;  %v4272_v6 = vcombine.low %v4208_v16, %v4209_v25  ;;  %v4273_v45 = vcombine.high %v4208_v16, %v4209_v25  ;;  %v4696_v7 = vmax.f32 %v4610_v21, 0.0 }
 0x5d5   : > { %v4617_v56 = vmax.f32 %v4615_v13, %v4616_v30  ;;  %v7963_v48 = vpack.c.bf16 %v4695_v49, %v4694_v19  ;;  %v4834_v47 = vunpack.c.l.b16 %v7961_v52  ;;  %v4835_v28 = vunpack.c.h.b16 %v7961_v52 }
 0x5d6   : > { %v4836_v31 = vunpack.c.l.b16 %v7962_v34  ;;  %v4837_v20 = vunpack.c.h.b16 %v7962_v34  ;;  %v4280_v58 = vrot.slane %v4272_v6, %v9541_v43  ;;  %v4287_v36 = vrot.slane %v4273_v45, %v9541_v43 }
 0x5d7   : > { %v4697_v61 = vmax.f32 %v4617_v56, 0.0  ;;  %v4838_v0 = vunpack.c.l.b16 %v7963_v48  ;;  %v4839_v18 = vunpack.c.h.b16 %v7963_v48 }
 0x5d8   : > { %v4864_v10 = vsel %vm2141_vm12, %v4836_v31, %v4834_v47  ;;  %v4871_v27 = vsel %vm2141_vm12, %v4837_v20, %v4835_v28  ;;  %v4288_v24 = vcombine.high %v4280_v58, %v4280_v58  ;;  %v4289_v37 = vcombine.high %v4287_v36, %v4287_v36 }
 0x5d9   : > { %v7964_v51 = vpack.c.bf16 %v4697_v61, %v4696_v7  ;;  %v4865_v53 = vsel %vm2143_vm13, %v4838_v0, %v4864_v10  ;;  %v4872_v54 = vsel %vm2143_vm13, %v4839_v18, %v4871_v27  ;;  %v4392_v8 = vrot.slane %v4280_v58, %v9541_v43 }
 0x5da   : > { %v4400_v55 = vrot.slane %v4288_v24, %v9541_v43  ;;  %v4408_v57 = vrot.slane %v4287_v36, %v9541_v43  ;;  %v4416_v4 = vrot.slane %v4289_v37, %v9541_v43 }
 0x5db   : > { %v4840_v59 = vunpack.c.l.b16 %v7964_v51  ;;  %v4841_v60 = vunpack.c.h.b16 %v7964_v51  ;;  %v4393_v35 = vcombine.high %v4392_v8, %v4392_v8  ;;  %v4618_v50 = vsel %vm3187_vm9, %v4392_v8, -inf }
 0x5dc   : > { %v4401_v12 = vcombine.high %v4400_v55, %v4400_v55  ;;  %v4409_v63 = vcombine.high %v4408_v57, %v4408_v57  ;;  %v4417_v39 = vcombine.high %v4416_v4, %v4416_v4  ;;  %v4619_v41 = vrot.slane %v4618_v50, 4 }
 0x5dd   : > { %v10190_v17 = vsel %vm2145_vm14, %v4840_v59, %v4865_v53  ;;  %v10193_v26 = vsel %vm2145_vm14, %v4841_v60, %v4872_v54  ;;  %v4625_v62 = vsel %vm3187_vm9, %v4393_v35, -inf  ;;  %v4632_v23 = vsel %vm3187_vm9, %v4400_v55, -inf }
 0x5de   : > { %v4620_v3 = vmax.f32 %v4618_v50, %v4619_v41  ;;  %v4626_v1 = vrot.slane %v4625_v62, 4  ;;  %v4633_v33 = vrot.slane %v4632_v23, 4  ;;  %v4639_v2 = vsel %vm3187_vm9, %v4401_v12, -inf }
 0x5df   : > { %v4640_v5 = vrot.slane %v4639_v2, 4  ;;  %v4646_v14 = vsel %vm3187_vm9, %v4408_v57, -inf  ;;  %v4653_v16 = vsel %vm3187_vm9, %v4409_v63, -inf  ;;  %v4660_v9 = vsel %vm3187_vm9, %v4416_v4, -inf }
 0x5e0   : > { %v4621_v13 = vrot.slane %v4620_v3, 2  ;;  %v4627_v44 = vmax.f32 %v4625_v62, %v4626_v1  ;;  %v4634_v15 = vmax.f32 %v4632_v23, %v4633_v33  ;;  %v4647_v21 = vrot.slane %v4646_v14, 4 }
 0x5e1   : > { %v4641_v11 = vmax.f32 %v4639_v2, %v4640_v5  ;;  %v4654_v22 = vrot.slane %v4653_v16, 4  ;;  %v4661_v25 = vrot.slane %v4660_v9, 4  ;;  %v4667_v30 = vsel %vm3187_vm9, %v4417_v39, -inf }
 0x5e2   : > { %v4622_v19 = vmax.f32 %v4620_v3, %v4621_v13  ;;  %v4628_v49 = vrot.slane %v4627_v44, 2  ;;  %v4635_v52 = vrot.slane %v4634_v15, 2  ;;  %v4648_v34 = vmax.f32 %v4646_v14, %v4647_v21  ;;  %v4884_v3 = vld [vmem:[#allocation4 + $0x8] sm:$0x88] }
 0x5e3   : > { %v4642_v6 = vrot.slane %v4641_v11, 2  ;;  %v4655_v45 = vmax.f32 %v4653_v16, %v4654_v22  ;;  %v4662_v56 = vmax.f32 %v4660_v9, %v4661_v25  ;;  %v4668_v48 = vrot.slane %v4667_v30, 4 }
 0x5e4   : > { %v4623_v47 = vrot.slane %v4622_v19, 1  ;;  %v4629_v28 = vmax.f32 %v4627_v44, %v4628_v49  ;;  %v4636_v31 = vmax.f32 %v4634_v15, %v4635_v52  ;;  %v4649_v20 = vrot.slane %v4648_v34, 2 }
 0x5e5   : > { %v4643_v58 = vmax.f32 %v4641_v11, %v4642_v6  ;;  %v4656_v36 = vrot.slane %v4655_v45, 2  ;;  %v4663_v7 = vrot.slane %v4662_v56, 2  ;;  %v4669_v61 = vmax.f32 %v4667_v30, %v4668_v48 }
 0x5e6   : > { %v4624_v0 = vmax.f32 %v4622_v19, %v4623_v47  ;;  %v4630_v18 = vrot.slane %v4629_v28, 1  ;;  %v4637_v10 = vrot.slane %v4636_v31, 1  ;;  %v4650_v27 = vmax.f32 %v4648_v34, %v4649_v20 }
 0x5e7   : > { %v4644_v24 = vrot.slane %v4643_v58, 1  ;;  %v4657_v37 = vmax.f32 %v4655_v45, %v4656_v36  ;;  %v4664_v51 = vmax.f32 %v4662_v56, %v4663_v7  ;;  %v4670_v53 = vrot.slane %v4669_v61, 2 }
 0x5e8   : > { %v4631_v54 = vmax.f32 %v4629_v28, %v4630_v18  ;;  %v4638_v8 = vmax.f32 %v4636_v31, %v4637_v10  ;;  %v4651_v55 = vrot.slane %v4650_v27, 1  ;;  %v4698_v50 = vmax.f32 %v4624_v0, 0.0 }
 0x5e9   : > { %v4645_v57 = vmax.f32 %v4643_v58, %v4644_v24  ;;  %v4658_v4 = vrot.slane %v4657_v37, 1  ;;  %v4665_v59 = vrot.slane %v4664_v51, 1  ;;  %v4671_v60 = vmax.f32 %v4669_v61, %v4670_v53 }
 0x5ea   : > { %v4652_v35 = vmax.f32 %v4650_v27, %v4651_v55  ;;  %v4699_v12 = vmax.f32 %v4631_v54, 0.0  ;;  %v4700_v63 = vmax.f32 %v4638_v8, 0.0  ;;  %v7629_v13 = vcombine.low %v4884_v3, %v10164_v29 }
 0x5eb   : > { %v4659_v39 = vmax.f32 %v4657_v37, %v4658_v4  ;;  %v4666_v41 = vmax.f32 %v4664_v51, %v4665_v59  ;;  %v4672_v62 = vrot.slane %v4671_v60, 1  ;;  %v4701_v23 = vmax.f32 %v4645_v57, 0.0 }
 0x5ec   : > { %v7965_v1 = vpack.c.bf16 %v4699_v12, %v4698_v50  ;;  %v4702_v2 = vmax.f32 %v4652_v35, 0.0  ;;  %v7630_v19 = vcombine.high %v4884_v3, %v10164_v29  ;;  %v5123_v29 = vshrl.u32 %v7629_v13, 16 }
 0x5ed   : > { %v4673_v33 = vmax.f32 %v4671_v60, %v4672_v62  ;;  %v4703_v5 = vmax.f32 %v4659_v39, 0.0  ;;  %v7966_v14 = vpack.c.bf16 %v4701_v23, %v4700_v63  ;;  %v4704_v44 = vmax.f32 %v4666_v41, 0.0  ;;  %v8534_v39 = vld [vmem:[#allocation18 + $0x200] ss:$16 sps:$4 sm:$0xff]   ;;  %v8537_v41 = vld [vmem:[#allocation18 + $0x208] ss:$16 sps:$4 sm:$0xff]  }
 0x5ee   : > { %v4842_v16 = vunpack.c.l.b16 %v7965_v1  ;;  %v4843_v9 = vunpack.c.h.b16 %v7965_v1  ;;  %v5140_v31 = vshrl.u32 %v7630_v19, 16  ;;  %v5126_v58 = vshll.u32 %v7629_v13, 16  ;;  %v8542_v1 = vld [vmem:[#allocation18 + $0x224] ss:$16 sps:$4 sm:$0xff]   ;;  %v8543_v13 = vld [vmem:[#allocation18 + $0x228] ss:$16 sps:$4 sm:$0xff]  }
 0x5ef   : > { %v4705_v15 = vmax.f32 %v4673_v33, 0.0  ;;  %v7967_v21 = vpack.c.bf16 %v4703_v5, %v4702_v2  ;;  %v4844_v11 = vunpack.c.l.b16 %v7966_v14  ;;  %v4845_v22 = vunpack.c.h.b16 %v7966_v14  ;;  %v8545_v33 = vld [vmem:[#allocation18 + $0x22c] ss:$16 sps:$4 sm:$0xff]   ;;  %v8540_v14 = vld [vmem:[#allocation18 + $0x220] ss:$16 sps:$4 sm:$0xff]  }
 0x5f0   : > { %v4867_v25 = vsel %vm2147_vm15, %v4842_v16, %v10190_v17  ;;  %v4874_v30 = vsel %vm2147_vm15, %v4843_v9, %v10193_v26  ;;  %v5143_v17 = vshll.u32 %v7630_v19, 16  ;;  %v5142_v18 = vrot.slane %v5140_v31, 3  ;;  %v8552_v19 = vld [vmem:[#allocation18 + $0x260] ss:$16 sps:$4 sm:$0xff]   ;;  %v8572_v31 = vld [vmem:[#allocation18 + $0x2c4] ss:$16 sps:$4 sm:$0xff]  }
 0x5f1   : > { %v7968_v49 = vpack.c.bf16 %v4705_v15, %v4704_v44  ;;  %v4846_v52 = vunpack.c.l.b16 %v7967_v21  ;;  %v4847_v34 = vunpack.c.h.b16 %v7967_v21  ;;  %v4868_v6 = vsel %vm2149_vm0, %v4844_v11, %v4867_v25  ;;  %v8548_v15 = vld [vmem:[#allocation18 + $0x244] ss:$16 sps:$4 sm:$0xff]   ;;  %v8551_v21 = vld [vmem:[#allocation18 + $0x24c] ss:$16 sps:$4 sm:$0xff]   ;;  %v8546_v11 = vld [vmem:[#allocation18 + $0x240] ss:$16 sps:$4 sm:$0xff]  }
 0x5f2   : > { %v4875_v45 = vsel %vm2149_vm0, %v4845_v22, %v4874_v30  ;;  %v5145_v10 = vrot.slane %v5143_v17, 4  ;;  %v5125_v27 = vrot.slane %v5123_v29, 3  ;;  %v5128_v24 = vrot.slane %v5126_v58, 4  ;;  %v8549_v22 = vld [vmem:[#allocation18 + $0x248] ss:$16 sps:$4 sm:$0xff]  }
 0x5f3   : > { %v4848_v56 = vunpack.c.l.b16 %v7968_v49  ;;  %v4849_v48 = vunpack.c.h.b16 %v7968_v49  ;;  %v4869_v47 = vsel %vm2151_vm1, %v4846_v52, %v4868_v6  ;;  %v4876_v28 = vsel %vm2151_vm1, %v4847_v34, %v4875_v45  ;;  %v8554_v25 = vld [vmem:[#allocation18 + $0x264] ss:$16 sps:$4 sm:$0xff]   ;;  %v8557_v30 = vld [vmem:[#allocation18 + $0x26c] ss:$16 sps:$4 sm:$0xff]   ;;  %v8555_v49 = vld [vmem:[#allocation18 + $0x268] ss:$16 sps:$4 sm:$0xff]  }
 0x5f4   : > { %v5129_v12 = vor.u32 %v5128_v24, %v5125_v27  ;;  %v8560_v52 = vld [vmem:[#allocation18 + $0x284] ss:$16 sps:$4 sm:$0xff]   ;;  %v8563_v34 = vld [vmem:[#allocation18 + $0x28c] ss:$16 sps:$4 sm:$0xff]   ;;  %v8558_v6 = vld [vmem:[#allocation18 + $0x280] ss:$16 sps:$4 sm:$0xff]  }
 0x5f5   : > { %v4870_v20 = vsel %vm2153_vm2, %v4848_v56, %v4869_v47  ;;  %v4877_v26 = vsel %vm2153_vm2, %v4849_v48, %v4876_v28  ;;  %v8561_v45 = vld [vmem:[#allocation18 + $0x288] ss:$16 sps:$4 sm:$0xff]   ;;  %v8566_v56 = vld [vmem:[#allocation18 + $0x2a4] ss:$16 sps:$4 sm:$0xff]   ;;  %v8569_v48 = vld [vmem:[#allocation18 + $0x2ac] ss:$16 sps:$4 sm:$0xff]  }
 0x5f6   : > { %v8730_v36 = vpack.c.b16 %v4877_v26, %v4877_v26  ;;  %v10215_v7 = vpack.c.b16 %v4870_v20, %v10156_v32  ;;  %v8732_v61 = vpack.c.b16 %v4870_v20, %v4870_v20  ;;  %v10218_v0 = vpack.c.b16 %v4877_v26, %v10159_v46  ;;  %v8564_v47 = vld [vmem:[#allocation18 + $0x2a0] ss:$16 sps:$4 sm:$0xff]   ;;  %v8567_v28 = vld [vmem:[#allocation18 + $0x2a8] ss:$16 sps:$4 sm:$0xff]   ;;  %v8575_v17 = vld [vmem:[#allocation18 + $0x2cc] ss:$16 sps:$4 sm:$0xff]  }
 0x5f7   : > { %v5146_v46 = vor.u32 %v5145_v10, %v5142_v18  ;;  %v8570_v20 = vld [vmem:[#allocation18 + $0x2c0] ss:$16 sps:$4 sm:$0xff]   ;;  %v8573_v26 = vld [vmem:[#allocation18 + $0x2c8] ss:$16 sps:$4 sm:$0xff]   ;;  %v8578_v29 = vld [vmem:[#allocation18 + $0x2e4] ss:$16 sps:$4 sm:$0xff]  }
 0x5f8   : > { %v5148_v37 = vshrl.u32 %v8730_v36, 16  ;;  %v5151_v51 = vshll.u32 %v8730_v36, 16  ;;  %v5131_v53 = vshrl.u32 %v8732_v61, 16  ;;  %v5134_v54 = vshll.u32 %v8732_v61, 16  ;;  %v8581_v58 = vld [vmem:[#allocation18 + $0x2ec] ss:$16 sps:$4 sm:$0xff]  }
 0x5f9   : > { %v4912_v8 = vshrl.u32 %v10218_v0, 16  ;;  %v4915_v55 = vshll.u32 %v10218_v0, 16  ;;  %v8576_v36 = vld [vmem:[#allocation18 + $0x2e0] ss:$16 sps:$4 sm:$0xff]   ;;  %v8579_v61 = vld [vmem:[#allocation18 + $0x2e8] ss:$16 sps:$4 sm:$0xff]  }
 0x5fa   : > { %v5150_v57 = vrot.slane %v5148_v37, 3  ;;  %v5153_v4 = vrot.slane %v5151_v51, 4  ;;  %v5133_v32 = vrot.slane %v5131_v53, 3  ;;  %v5136_v59 = vrot.slane %v5134_v54, 4  ;;  %v8584_v18 = vld [vmem:[#allocation18 + $0x304] ss:$16 sps:$4 sm:$0xff]  }
 0x5fb   : > { %v4914_v60 = vrot.slane %v4912_v8, 4  ;;  %v4917_v35 = vrot.slane %v4915_v55, 5  ;;  %v8587_v10 = vld [vmem:[#allocation18 + $0x30c] ss:$16 sps:$4 sm:$0xff]   ;;  %v8582_v27 = vld [vmem:[#allocation18 + $0x300] ss:$16 sps:$4 sm:$0xff]  }
 0x5fc   : > { %v5154_v50 = vor.u32 %v5153_v4, %v5150_v57  ;;  %v5137_v63 = vor.u32 %v5136_v59, %v5133_v32  ;;  %v8585_v24 = vld [vmem:[#allocation18 + $0x308] ss:$16 sps:$4 sm:$0xff]   ;;  %v8590_v37 = vld [vmem:[#allocation18 + $0x324] ss:$16 sps:$4 sm:$0xff]   ;;  %v8593_v51 = vld [vmem:[#allocation18 + $0x32c] ss:$16 sps:$4 sm:$0xff]  }
 0x5fd   : > { %v4918_v62 = vor.u32 %v4917_v35, %v4914_v60  ;;  %v8588_v53 = vld [vmem:[#allocation18 + $0x320] ss:$16 sps:$4 sm:$0xff]   ;;  %v8591_v54 = vld [vmem:[#allocation18 + $0x328] ss:$16 sps:$4 sm:$0xff]   ;;  %v8596_v8 = vld [vmem:[#allocation18 + $0x344] ss:$16 sps:$4 sm:$0xff]  }
 0x5fe   : > { %v5155_v23 = vsel %vm2279_vm4, %v5146_v46, %v5154_v50  ;;  %v5138_v3 = vsel %vm2279_vm4, %v5129_v12, %v5137_v63  ;;  %v8599_v55 = vld [vmem:[#allocation18 + $0x34c] ss:$16 sps:$4 sm:$0xff]   ;;  %v8594_v57 = vld [vmem:[#allocation18 + $0x340] ss:$16 sps:$4 sm:$0xff]   ;;  %v8597_v4 = vld [vmem:[#allocation18 + $0x348] ss:$16 sps:$4 sm:$0xff]  }
 0x5ff   : > { %6206 = vmatprep.mubr.bf16.mxu1 %v5155_v23  ;;  %6335 = vmatprep.mubr.bf16.mxu0 %v5155_v23  ;;  %v5166_v2 = vshrl.u32 %v4918_v62, 16  ;;  %v5169_v5 = vshll.u32 %v4918_v62, 16  ;;  %v8602_v32 = vld [vmem:[#allocation18 + $0x364] ss:$16 sps:$4 sm:$0xff]   ;;  %v8605_v59 = vld [vmem:[#allocation18 + $0x36c] ss:$16 sps:$4 sm:$0xff]  }
 0x600   : > { %6207 = vmatmul.mubr.bf16.vlgmr.msra.gmra.mrb[16].mxu1 %v5138_v3  ;;  %6336 = vmatmul.mubr.bf16.vlgmr.msra.gmra.mrb[40].mxu0 %v5138_v3  ;;  %v10224_v60 = vld [vmem:[#allocation4 + $0x20] sm:$0x11]  ;;  %v8603_v46 = vld [vmem:[#allocation18 + $0x368] ss:$16 sps:$4 sm:$0xff]   ;;  %v8608_v50 = vld [vmem:[#allocation18 + $0x384] ss:$16 sps:$4 sm:$0xff]  }
 0x601   : > { %6218 = vmatpush1.bf16.msra.mxu1 %v8534_v39  ;;  %6347 = vmatpush1.bf16.msra.mxu0 %v8537_v41  ;;  %v5168_v16 = vrot.slane %v5166_v2, 3  ;;  %v5171_v9 = vrot.slane %v5169_v5, 4  ;;  %v8600_v35 = vld [vmem:[#allocation18 + $0x360] ss:$16 sps:$4 sm:$0xff]   ;;  %v4904_v12 = vshrl.u32 %v10215_v7, 16  ;;  %v4907_v63 = vshll.u32 %v10215_v7, 16 }
 0x602   : > { %6219 = vmatprep.subr.bf16.mxu1 %v8542_v1  ;;  %6348 = vmatprep.subr.bf16.mxu0 %v8545_v33  ;;  %v7636_v39 = vcombine.high %v10224_v60, %v10224_v60  ;;  %v8611_v41 = vld [vmem:[#allocation18 + $0x38c] ss:$16 sps:$4 sm:$0xff]   ;;  %v8606_v62 = vld [vmem:[#allocation18 + $0x380] ss:$16 sps:$4 sm:$0xff]   ;;  %v8609_v23 = vld [vmem:[#allocation18 + $0x388] ss:$16 sps:$4 sm:$0xff]  }
 0x603   : > { %v5172_v44 = vor.u32 %v5171_v9, %v5168_v16  ;;  %v8614_v3 = vld [vmem:[#allocation18 + $0x3a4] ss:$16 sps:$4 sm:$0xff]   ;;  %v4906_v1 = vrot.slane %v4904_v12, 4  ;;  %v4909_v33 = vrot.slane %v4907_v63, 5  ;;  %v4925_v2 = vrot.slane %v10218_v0, 5 }
 0x604   : > { %v4928_v5 = vrot.slane %v7636_v39, 5  ;;  %v8612_v16 = vld [vmem:[#allocation18 + $0x3a0] ss:$16 sps:$4 sm:$0xff]   ;;  %v8615_v9 = vld [vmem:[#allocation18 + $0x3a8] ss:$16 sps:$4 sm:$0xff]  }
 0x605   : > { %6220 = vmatpush1.bf16.msra.mxu1 %v8540_v14  ;;  %6249 = vmatprep.mubr.bf16.mxu1 %v5172_v44  ;;  %v8617_v14 = vld [vmem:[#allocation18 + $0x3ac] ss:$16 sps:$4 sm:$0xff]   ;;  %v8655_v12 = vld [vmem:[#allocation18 + $0x480] ss:$16 sps:$4 sm:$0xff]   ;;  %v8658_v63 = vld [vmem:[#allocation18 + $0x488] ss:$16 sps:$4 sm:$0xff]  }
 0x606   : > { %6349 = vmatpush1.bf16.msra.mxu0 %v8543_v13  ;;  %6378 = vmatprep.mubr.bf16.mxu0 %v5172_v44  ;;  %v8620_v13 = vld [vmem:[#allocation18 + $0x3c4] ss:$16 sps:$4 sm:$0xff]   ;;  %v4910_v44 = vor.u32 %v4909_v33, %v4906_v1  ;;  %v8672_v1 = vld [vmem:[#allocation18 + $0x4cc] ss:$16 sps:$4 sm:$0xff]   ;;  %v8667_v33 = vld [vmem:[#allocation18 + $0x4c0] ss:$16 sps:$4 sm:$0xff]  }
 0x607   : > { %6221 = vmatprep.subr.bf16.mxu1 %v8548_v15  ;;  %6350 = vmatprep.subr.bf16.mxu0 %v8551_v21  ;;  %v4929_v15 = vsel %vm3686_vm10, %v4925_v2, %v4928_v5  ;;  %v8623_v21 = vld [vmem:[#allocation18 + $0x3cc] ss:$16 sps:$4 sm:$0xff]   ;;  %v8663_v39 = vld [vmem:[#allocation18 + $0x4a4] ss:$16 sps:$4 sm:$0xff]  }
 0x608   : > { %v5203_v0 = vshll.u32 %v4929_v15, 16  ;;  %v8675_v5 = vld [vmem:[#allocation18 + $0x4e4] ss:$16 sps:$4 sm:$0xff]  }
 0x609   : > { %6222 = vmatpush1.bf16.msra.mxu1 %v8546_v11  ;;  %v8618_v11 = vld [vmem:[#allocation18 + $0x3c0] ss:$16 sps:$4 sm:$0xff]  }
 0x60a   : > { %6351 = vmatpush1.bf16.msra.mxu0 %v8549_v22  ;;  %6223 = vmatprep.subr.bf16.mxu1 %v8554_v25  ;;  %v5192_v22 = vshrl.u32 %v4925_v2, 16  ;;  %v5195_v25 = vshll.u32 %v4925_v2, 16  ;;  %v8670_v2 = vld [vmem:[#allocation18 + $0x4c8] ss:$16 sps:$4 sm:$0xff]  }
 0x60b   : > { %6352 = vmatprep.subr.bf16.mxu0 %v8557_v30  ;;  %v5200_v30 = vshrl.u32 %v4929_v15, 16  ;;  %v8679_v15 = vld [vmem:[#allocation18 + $0x500] ss:$16 sps:$4 sm:$0xff]  }
 0x60d   : > { %6224 = vmatpush1.bf16.msra.mxu1 %v8552_v19  ;;  %v8621_v19 = vld [vmem:[#allocation18 + $0x3c8] ss:$16 sps:$4 sm:$0xff]  }
 0x60e   : > { %6353 = vmatpush1.bf16.msra.mxu0 %v8555_v49  ;;  %6225 = vmatprep.subr.bf16.mxu1 %v8560_v52  ;;  %v8626_v49 = vld [vmem:[#allocation18 + $0x3e4] ss:$16 sps:$4 sm:$0xff]   ;;  %v5157_v52 = vshrl.u32 %v4910_v44, 16 }
 0x60f   : > { %6354 = vmatprep.subr.bf16.mxu0 %v8563_v34  ;;  %v5160_v34 = vshll.u32 %v4910_v44, 16  ;;  %v8684_v44 = vld [vmem:[#allocation18 + $0x50c] ss:$16 sps:$4 sm:$0xff]  }
 0x611   : > { %6226 = vmatpush1.bf16.msra.mxu1 %v8558_v6  ;;  %v8629_v6 = vld [vmem:[#allocation18 + $0x3ec] ss:$16 sps:$4 sm:$0xff]  }
 0x612   : > { %6355 = vmatpush1.bf16.msra.mxu0 %v8561_v45  ;;  %6227 = vmatprep.subr.bf16.mxu1 %v8566_v56  ;;  %v8624_v45 = vld [vmem:[#allocation18 + $0x3e0] ss:$16 sps:$4 sm:$0xff]   ;;  %v5194_v56 = vrot.slane %v5192_v22, 3  ;;  %v8690_v22 = vld [vmem:[#allocation18 + $0x52c] ss:$16 sps:$4 sm:$0xff]  }
 0x613   : > { %6356 = vmatprep.subr.bf16.mxu0 %v8569_v48  ;;  %v5197_v48 = vrot.slane %v5195_v25, 4  ;;  %v8685_v25 = vld [vmem:[#allocation18 + $0x520] ss:$16 sps:$4 sm:$0xff]  }
 0x615   : > { %6228 = vmatpush1.bf16.msra.mxu1 %v8564_v47  ;;  %v5202_v47 = vrot.slane %v5200_v30, 3  ;;  %v8688_v30 = vld [vmem:[#allocation18 + $0x528] ss:$16 sps:$4 sm:$0xff]  }
 0x616   : > { %6357 = vmatpush1.bf16.msra.mxu0 %v8567_v28  ;;  %6229 = vmatprep.subr.bf16.mxu1 %v8572_v31  ;;  %v5205_v28 = vrot.slane %v5203_v0, 4  ;;  %v8627_v31 = vld [vmem:[#allocation18 + $0x3e8] ss:$16 sps:$4 sm:$0xff]   ;;  %v8693_v0 = vld [vmem:[#allocation18 + $0x544] ss:$16 sps:$4 sm:$0xff]  }
 0x617   : > { %6358 = vmatprep.subr.bf16.mxu0 %v8575_v17  ;;  %v5159_v17 = vrot.slane %v5157_v52, 3  ;;  %v8694_v52 = vld [vmem:[#allocation18 + $0x548] ss:$16 sps:$4 sm:$0xff]  }
 0x619   : > { %6230 = vmatpush1.bf16.msra.mxu1 %v8570_v20  ;;  %v5162_v20 = vrot.slane %v5160_v34, 4  ;;  %v8699_v34 = vld [vmem:[#allocation18 + $0x564] ss:$16 sps:$4 sm:$0xff]  }
 0x61a   : > { %6359 = vmatpush1.bf16.msra.mxu0 %v8573_v26  ;;  %6231 = vmatprep.subr.bf16.mxu1 %v8578_v29  ;;  %v8632_v26 = vld [vmem:[#allocation18 + $0x404] ss:$16 sps:$4 sm:$0xff]   ;;  %v8635_v29 = vld [vmem:[#allocation18 + $0x40c] ss:$16 sps:$4 sm:$0xff]  }
 0x61b   : > { %6360 = vmatprep.subr.bf16.mxu0 %v8581_v58  ;;  %v8630_v58 = vld [vmem:[#allocation18 + $0x400] ss:$16 sps:$4 sm:$0xff]  }
 0x61d   : > { %6232 = vmatpush1.bf16.msra.mxu1 %v8576_v36  ;;  %v5198_v36 = vor.u32 %v5197_v48, %v5194_v56  ;;  %v8697_v56 = vld [vmem:[#allocation18 + $0x560] ss:$16 sps:$4 sm:$0xff]   ;;  %v8700_v48 = vld [vmem:[#allocation18 + $0x568] ss:$16 sps:$4 sm:$0xff]  }
 0x61e   : > { %6361 = vmatpush1.bf16.msra.mxu0 %v8579_v61  ;;  %6233 = vmatprep.subr.bf16.mxu1 %v8584_v18  ;;  %v5206_v61 = vor.u32 %v5205_v28, %v5202_v47  ;;  %v5163_v18 = vor.u32 %v5162_v20, %v5159_v17  ;;  %v8705_v47 = vld [vmem:[#allocation18 + $0x584] ss:$16 sps:$4 sm:$0xff]   ;;  %v8708_v28 = vld [vmem:[#allocation18 + $0x58c] ss:$16 sps:$4 sm:$0xff]   ;;  %v8703_v20 = vld [vmem:[#allocation18 + $0x580] ss:$16 sps:$4 sm:$0xff]  }
 0x61f   : > { %6362 = vmatprep.subr.bf16.mxu0 %v8587_v10  ;;  %v8633_v10 = vld [vmem:[#allocation18 + $0x408] ss:$16 sps:$4 sm:$0xff]  }
 0x621   : > { %6234 = vmatpush1.bf16.msra.mxu1 %v8582_v27  ;;  %v8639_v27 = vld [vmem:[#allocation18 + $0x424] ss:$16 sps:$4 sm:$0xff]  }
 0x622   : > { %6363 = vmatpush1.bf16.msra.mxu0 %v8585_v24  ;;  %6235 = vmatprep.subr.bf16.mxu1 %v8590_v37  ;;  %v8642_v24 = vld [vmem:[#allocation18 + $0x42c] ss:$16 sps:$4 sm:$0xff]   ;;  %v5207_v37 = vsel %vm2279_vm4, %v5198_v36, %v5206_v61  ;;  %v8709_v36 = vld [vmem:[#allocation18 + $0x5a0] ss:$16 sps:$4 sm:$0xff]   ;;  %v8712_v61 = vld [vmem:[#allocation18 + $0x5a8] ss:$16 sps:$4 sm:$0xff]  }
 0x623   : > { %6364 = vmatprep.subr.bf16.mxu0 %v8593_v51  ;;  %v8637_v51 = vld [vmem:[#allocation18 + $0x420] ss:$16 sps:$4 sm:$0xff]  }
 0x625   : > { %6236 = vmatpush1.bf16.msra.mxu1 %v8588_v53  ;;  %v8640_v53 = vld [vmem:[#allocation18 + $0x428] ss:$16 sps:$4 sm:$0xff]  }
 0x626   : > { %6365 = vmatpush1.bf16.msra.mxu0 %v8591_v54  ;;  %6237 = vmatprep.subr.bf16.mxu1 %v8596_v8  ;;  %v8645_v54 = vld [vmem:[#allocation18 + $0x444] ss:$16 sps:$4 sm:$0xff]   ;;  %v8648_v8 = vld [vmem:[#allocation18 + $0x44c] ss:$16 sps:$4 sm:$0xff]  }
 0x627   : > { %6366 = vmatprep.subr.bf16.mxu0 %v8599_v55  ;;  %v8643_v55 = vld [vmem:[#allocation18 + $0x440] ss:$16 sps:$4 sm:$0xff]  }
 0x629   : > { %6238 = vmatpush1.bf16.msra.mxu1 %v8594_v57  ;;  %v8646_v57 = vld [vmem:[#allocation18 + $0x448] ss:$16 sps:$4 sm:$0xff]  }
 0x62a   : > { %6367 = vmatpush1.bf16.msra.mxu0 %v8597_v4  ;;  %6239 = vmatprep.subr.bf16.mxu1 %v8602_v32  ;;  %v8651_v4 = vld [vmem:[#allocation18 + $0x464] ss:$16 sps:$4 sm:$0xff]   ;;  %v8654_v32 = vld [vmem:[#allocation18 + $0x46c] ss:$16 sps:$4 sm:$0xff]  }
 0x62b   : > { %6368 = vmatprep.subr.bf16.mxu0 %v8605_v59  ;;  %v8649_v59 = vld [vmem:[#allocation18 + $0x460] ss:$16 sps:$4 sm:$0xff]  }
 0x62d   : > { %6240 = vmatpush1.bf16.msra.mxu1 %v8600_v35  ;;  %v8652_v35 = vld [vmem:[#allocation18 + $0x468] ss:$16 sps:$4 sm:$0xff]  }
 0x62e   : > { %6369 = vmatpush1.bf16.msra.mxu0 %v8603_v46  ;;  %6241 = vmatprep.subr.bf16.mxu1 %v8608_v50  ;;  %v8657_v46 = vld [vmem:[#allocation18 + $0x484] ss:$16 sps:$4 sm:$0xff]   ;;  %v8660_v50 = vld [vmem:[#allocation18 + $0x48c] ss:$16 sps:$4 sm:$0xff]  }
 0x62f   : > { %6370 = vmatprep.subr.bf16.mxu0 %v8611_v41  ;;  %v8666_v41 = vld [vmem:[#allocation18 + $0x4ac] ss:$16 sps:$4 sm:$0xff]  }
 0x631   : > { %6242 = vmatpush1.bf16.msra.mxu1 %v8606_v62  ;;  %v8661_v62 = vld [vmem:[#allocation18 + $0x4a0] ss:$16 sps:$4 sm:$0xff]  }
 0x632   : > { %6371 = vmatpush1.bf16.msra.mxu0 %v8609_v23  ;;  %6243 = vmatprep.subr.bf16.mxu1 %v8614_v3  ;;  %v8664_v23 = vld [vmem:[#allocation18 + $0x4a8] ss:$16 sps:$4 sm:$0xff]   ;;  %v8669_v3 = vld [vmem:[#allocation18 + $0x4c4] ss:$16 sps:$4 sm:$0xff]  }
 0x633   : > { %6372 = vmatprep.subr.bf16.mxu0 %v8617_v14  ;;  %v8678_v14 = vld [vmem:[#allocation18 + $0x4ec] ss:$16 sps:$4 sm:$0xff]  }
 0x635   : > { %6244 = vmatpush1.bf16.msra.mxu1 %v8612_v16  ;;  %v8673_v16 = vld [vmem:[#allocation18 + $0x4e0] ss:$16 sps:$4 sm:$0xff]  }
 0x636   : > { %6373 = vmatpush1.bf16.msra.mxu0 %v8615_v9  ;;  %6245 = vmatprep.subr.bf16.mxu1 %v8620_v13  ;;  %v8676_v9 = vld [vmem:[#allocation18 + $0x4e8] ss:$16 sps:$4 sm:$0xff]   ;;  %v8681_v13 = vld [vmem:[#allocation18 + $0x504] ss:$16 sps:$4 sm:$0xff]  }
 0x637   : > { %6374 = vmatprep.subr.bf16.mxu0 %v8623_v21  ;;  %v8682_v21 = vld [vmem:[#allocation18 + $0x508] ss:$16 sps:$4 sm:$0xff]  }
 0x639   : > { %6246 = vmatpush1.bf16.msra.mxu1 %v8618_v11  ;;  %v8687_v11 = vld [vmem:[#allocation18 + $0x524] ss:$16 sps:$4 sm:$0xff]  }
 0x63a   : > { %6375 = vmatpush1.bf16.msra.mxu0 %v8621_v19  ;;  %6247 = vmatprep.subr.bf16.mxu1 %v8626_v49  ;;  %v8696_v19 = vld [vmem:[#allocation18 + $0x54c] ss:$16 sps:$4 sm:$0xff]   ;;  %v8691_v49 = vld [vmem:[#allocation18 + $0x540] ss:$16 sps:$4 sm:$0xff]  }
 0x63b   : > { %6376 = vmatprep.subr.bf16.mxu0 %v8629_v6  ;;  %v8702_v6 = vld [vmem:[#allocation18 + $0x56c] ss:$16 sps:$4 sm:$0xff]  }
 0x63d   : > { %6248 = vmatpush1.bf16.msra.mxu1 %v8624_v45  ;;  %v7635_v45 = vcombine.low %v10224_v60, %v10224_v60 }
 0x63e   : > { %6377 = vmatpush1.bf16.msra.mxu0 %v8627_v31  ;;  %6260 = vmatprep.subr.bf16.mxu1 %v8632_v26  ;;  %v4924_v31 = vrot.slane %v10215_v7, 5  ;;  %v8706_v26 = vld [vmem:[#allocation18 + $0x588] ss:$16 sps:$4 sm:$0xff]  }
 0x63f   : > { %6389 = vmatprep.subr.bf16.mxu0 %v8635_v29  ;;  %v4926_v17 = vrot.slane %v7635_v45, 5  ;;  %v8711_v29 = vld [vmem:[#allocation18 + $0x5a4] ss:$16 sps:$4 sm:$0xff]  }
 0x640   : > { %6250 = vmatmul.mubr.bf16.vlgmr.msra.gmra.mrb[16].mxu1 %v5163_v18  ;;  %v5175_v7 = vshrl.u32 %v4924_v31, 16 }
 0x641   : > { %6379 = vmatmul.mubr.bf16.vlgmr.msra.gmra.mrb[40].mxu0 %v5163_v18  ;;  %6261 = vmatpush1.bf16.msra.mxu1 %v8630_v58  ;;  %v8714_v58 = vld [vmem:[#allocation18 + $0x5ac] ss:$16 sps:$4 sm:$0xff]   ;;  %v4927_v60 = vsel %vm3686_vm10, %v4924_v31, %v4926_v17  ;;  %v8717_v18 = vld [vmem:[#allocation18 + $0x5c4] ss:$16 sps:$4 sm:$0xff]  }
 0x642   : > { %6292 = vmatprep.mubr.bf16.mxu1 %v5207_v37  ;;  %6390 = vmatpush1.bf16.msra.mxu0 %v8633_v10  ;;  %v8720_v10 = vld [vmem:[#allocation18 + $0x5cc] ss:$16 sps:$4 sm:$0xff]  }
 0x643   : > { %6421 = vmatprep.mubr.bf16.mxu0 %v5207_v37  ;;  %6262 = vmatprep.subr.bf16.mxu1 %v8639_v27  ;;  %v5178_v27 = vshll.u32 %v4924_v31, 16  ;;  %v5186_v37 = vshll.u32 %v4927_v60, 16 }
 0x644   : > { %6391 = vmatprep.subr.bf16.mxu0 %v8642_v24  ;;  %v5183_v24 = vshrl.u32 %v4927_v60, 16 }
 0x645   : > { %6263 = vmatpush1.bf16.msra.mxu1 %v8637_v51  ;;  %v8715_v51 = vld [vmem:[#allocation18 + $0x5c0] ss:$16 sps:$4 sm:$0xff]  }
 0x646   : > { %6392 = vmatpush1.bf16.msra.mxu0 %v8640_v53  ;;  %6264 = vmatprep.subr.bf16.mxu1 %v8645_v54  ;;  %v8718_v53 = vld [vmem:[#allocation18 + $0x5c8] ss:$16 sps:$4 sm:$0xff]   ;;  %v8723_v54 = vld [vmem:[#allocation18 + $0x5e4] ss:$16 sps:$4 sm:$0xff]  }
 0x647   : > { %6393 = vmatprep.subr.bf16.mxu0 %v8648_v8  ;;  %v8726_v8 = vld [vmem:[#allocation18 + $0x5ec] ss:$16 sps:$4 sm:$0xff]  }
 0x649   : > { %6265 = vmatpush1.bf16.msra.mxu1 %v8643_v55  ;;  %v5177_v55 = vrot.slane %v5175_v7, 3 }
 0x64a   : > { %6394 = vmatpush1.bf16.msra.mxu0 %v8646_v57  ;;  %6266 = vmatprep.subr.bf16.mxu1 %v8651_v4  ;;  %v5180_v57 = vrot.slane %v5178_v27, 4  ;;  %v5185_v4 = vrot.slane %v5183_v24, 3 }
 0x64b   : > { %6395 = vmatprep.subr.bf16.mxu0 %v8654_v32  ;;  %v5188_v32 = vrot.slane %v5186_v37, 4 }
 0x64d   : > { %6267 = vmatpush1.bf16.msra.mxu1 %v8649_v59  ;;  %v8721_v59 = vld [vmem:[#allocation18 + $0x5e0] ss:$16 sps:$4 sm:$0xff]  }
 0x64e   : > { %6396 = vmatpush1.bf16.msra.mxu0 %v8652_v35  ;;  %6268 = vmatprep.subr.bf16.mxu1 %v8657_v46  ;;  %v8724_v35 = vld [vmem:[#allocation18 + $0x5e8] ss:$16 sps:$4 sm:$0xff]   ;;  %v5181_v46 = vor.u32 %v5180_v57, %v5177_v55 }
 0x64f   : > { %6397 = vmatprep.subr.bf16.mxu0 %v8660_v50  ;;  %v5189_v50 = vor.u32 %v5188_v32, %v5185_v4 }
 0x651   : > { %6269 = vmatpush1.bf16.msra.mxu1 %v8655_v12  ;;  %v5190_v12 = vsel %vm2279_vm4, %v5181_v46, %v5189_v50 }
 0x652   : > { %6398 = vmatpush1.bf16.msra.mxu0 %v8658_v63  ;;  %6270 = vmatprep.subr.bf16.mxu1 %v8663_v39  ;;  %v6432_v63 = vld [vmem:[#allocation19] sm:$0xf]  ;;  %v6444_v39 = vsub.s32 2, %v9533_v38 }
 0x653   : > { %6399 = vmatprep.subr.bf16.mxu0 %v8666_v41  ;;  %v6448_v41 = vsub.s32 3, %v9533_v38 }
 0x655   : > { %6271 = vmatpush1.bf16.msra.mxu1 %v8661_v62  ;;  %v6462_v62 = vld [vmem:[#allocation21] sm:$0xf] }
 0x656   : > { %6400 = vmatpush1.bf16.msra.mxu0 %v8664_v23  ;;  %6272 = vmatprep.subr.bf16.mxu1 %v8669_v3  ;;  %v6437_v23 = vrot.slane %v6432_v63, %v10043_v40  ;;  %v6445_v3 = vrot.slane %v6432_v63, %v6444_v39 }
 0x657   : > { %6401 = vmatprep.subr.bf16.mxu0 %v8672_v1  ;;  %v6441_v1 = vrot.slane %v6432_v63, %v10046_v42 }
 0x659   : > { %6273 = vmatpush1.bf16.msra.mxu1 %v8667_v33  ;;  %v6467_v33 = vrot.slane %v6462_v62, %v10043_v40 }
 0x65a   : > { %6402 = vmatpush1.bf16.msra.mxu0 %v8670_v2  ;;  %6274 = vmatprep.subr.bf16.mxu1 %v8675_v5  ;;  %v6449_v2 = vrot.slane %v6432_v63, %v6448_v41 }
 0x65b   : > { %6403 = vmatprep.subr.bf16.mxu0 %v8678_v14  ;;  %v6475_v14 = vrot.slane %v6462_v62, %v6444_v39 }
 0x65d   : > { %6275 = vmatpush1.bf16.msra.mxu1 %v8673_v16  ;;  %v6471_v16 = vrot.slane %v6462_v62, %v10046_v42 }
 0x65e   : > { %6404 = vmatpush1.bf16.msra.mxu0 %v8676_v9  ;;  %6276 = vmatprep.subr.bf16.mxu1 %v8681_v13 }
 0x65f   : > { %6405 = vmatprep.subr.bf16.mxu0 %v8684_v44 }
 0x661   : > { %6277 = vmatpush1.bf16.msra.mxu1 %v8679_v15  ;;  %v6479_v15 = vrot.slane %v6462_v62, %v6448_v41 }
 0x662   : > { %6406 = vmatpush1.bf16.msra.mxu0 %v8682_v21  ;;  %6278 = vmatprep.subr.bf16.mxu1 %v8687_v11 }
 0x663   : > { %6407 = vmatprep.subr.bf16.mxu0 %v8690_v22 }
 0x665   : > { %6279 = vmatpush1.bf16.msra.mxu1 %v8685_v25 }
 0x666   : > { %6408 = vmatpush1.bf16.msra.mxu0 %v8688_v30  ;;  %6280 = vmatprep.subr.bf16.mxu1 %v8693_v0 }
 0x667   : > { %6409 = vmatprep.subr.bf16.mxu0 %v8696_v19 }
 0x669   : > { %6281 = vmatpush1.bf16.msra.mxu1 %v8691_v49 }
 0x66a   : > { %6410 = vmatpush1.bf16.msra.mxu0 %v8694_v52  ;;  %6282 = vmatprep.subr.bf16.mxu1 %v8699_v34 }
 0x66b   : > { %6411 = vmatprep.subr.bf16.mxu0 %v8702_v6 }
 0x66d   : > { %6283 = vmatpush1.bf16.msra.mxu1 %v8697_v56 }
 0x66e   : > { %6412 = vmatpush1.bf16.msra.mxu0 %v8700_v48  ;;  %6284 = vmatprep.subr.bf16.mxu1 %v8705_v47 }
 0x66f   : > { %6413 = vmatprep.subr.bf16.mxu0 %v8708_v28 }
 0x671   : > { %6285 = vmatpush1.bf16.msra.mxu1 %v8703_v20 }
 0x672   : > { %6414 = vmatpush1.bf16.msra.mxu0 %v8706_v26  ;;  %6286 = vmatprep.subr.bf16.mxu1 %v8711_v29 }
 0x673   : > { %6415 = vmatprep.subr.bf16.mxu0 %v8714_v58 }
 0x675   : > { %6287 = vmatpush1.bf16.msra.mxu1 %v8709_v36 }
 0x676   : > { %6416 = vmatpush1.bf16.msra.mxu0 %v8712_v61  ;;  %6288 = vmatprep.subr.bf16.mxu1 %v8717_v18 }
 0x677   : > { %6417 = vmatprep.subr.bf16.mxu0 %v8720_v10 }
 0x679   : > { %6289 = vmatpush1.bf16.msra.mxu1 %v8715_v51 }
 0x67a   : > { %6418 = vmatpush1.bf16.msra.mxu0 %v8718_v53  ;;  %6290 = vmatprep.subr.bf16.mxu1 %v8723_v54 }
 0x67b   : > { %6419 = vmatprep.subr.bf16.mxu0 %v8726_v8 }
 0x67d   : > { %6291 = vmatpush1.bf16.msra.mxu1 %v8721_v59 }
 0x67e   : > { %6420 = vmatpush1.bf16.msra.mxu0 %v8724_v35 }
 0x680   : > { %6293 = vmatmul.mubr.bf16.vlgmr.msra.gmra.mrb[16].mxu1 %v5190_v12 }
 0x681   : > { %6422 = vmatmul.mubr.bf16.vlgmr.msra.gmra.mrb[40].mxu0 %v5190_v12 }
 0x753   : > { %v6294_v5 = vpop.f32.mrb[16].mxu1 }
 0x754   : > { %v6454_v9 = vmul.f32 %v6437_v23, %v6294_v5  ;;  %v6423_v13 = vpop.f32.mrb[40].mxu0  ;;  %v6296_v44 = vpop.f32.mrb[17].mxu1 }
 0x755   : > { %v6456_v21 = vmul.f32 %v6445_v3, %v6423_v13  ;;  %v6455_v11 = vmul.f32 %v6441_v1, %v6296_v44  ;;  %v6425_v38 = vpop.f32.mrb[41].mxu0  ;;  %v6298_v22 = vpop.f32.mrb[18].mxu1 }
 0x756   : > { %v6484_v25 = vadd.f32 %v6467_v33, %v6454_v9  ;;  %v6457_v30 = vmul.f32 %v6449_v2, %v6425_v38  ;;  %v6458_v0 = vmul.f32 %v6437_v23, %v6298_v22  ;;  %v6427_v19 = vpop.f32.mrb[42].mxu0  ;;  %v6300_v49 = vpop.f32.mrb[19].mxu1 }
 0x757   : > { %v6486_v52 = vadd.f32 %v6475_v14, %v6456_v21  ;;  %v6485_v40 = vadd.f32 %v6471_v16, %v6455_v11  ;;  %v6460_v34 = vmul.f32 %v6445_v3, %v6427_v19  ;;  %v6459_v6 = vmul.f32 %v6441_v1, %v6300_v49  ;;  %v6429_v45 = vpop.f32.mrb[43].mxu0 }
 0x758   : > { %v6487_v56 = vadd.f32 %v6479_v15, %v6457_v30  ;;  %v6488_v42 = vadd.f32 %v6467_v33, %v6458_v0  ;;  %v6461_v48 = vmul.f32 %v6449_v2, %v6429_v45 }
 0x759   : > { %v6500_v47 = vcombine.low %v6484_v25, %v6485_v40  ;;  %v6501_v28 = vcombine.high %v6484_v25, %v6485_v40  ;;  %v10244_v31 = vadd.f32 %v6475_v14, %v6460_v34  ;;  %v6489_v17 = vadd.f32 %v6471_v16, %v6459_v6 }
 0x75a   : > { %v6502_v20 = vcombine.low %v6486_v52, %v6487_v56  ;;  %v6503_v26 = vcombine.high %v6486_v52, %v6487_v56  ;;  %v10246_v29 = vadd.f32 %v6479_v15, %v6461_v48 }
 0x75b   : > { %v6510_v58 = vrot.slane %v6500_v47, %v9541_v43  ;;  %v6517_v60 = vrot.slane %v6501_v28, %v9541_v43  ;;  %v6536_v36 = vcombine.low %v6488_v42, %v6489_v17  ;;  %v6537_v61 = vcombine.high %v6488_v42, %v6489_v17 }
 0x75c   : > { %v6524_v18 = vrot.slane %v6502_v20, %v9541_v43  ;;  %v6531_v10 = vrot.slane %v6503_v26, %v9541_v43  ;;  %v6538_v7 = vcombine.low %v10244_v31, %v10246_v29  ;;  %v6539_v27 = vcombine.high %v10244_v31, %v10246_v29 }
 0x75d   : > { %v10257_v24 = vrot.slane %v6536_v36, %v9541_v43  ;;  %v10260_v37 = vrot.slane %v6537_v61, %v9541_v43 }
 0x75e   : > { %v6532_v51 = vcombine.low %v6510_v58, %v6524_v18  ;;  %v6533_v53 = vcombine.high %v6510_v58, %v6524_v18  ;;  %v6534_v54 = vcombine.low %v6517_v60, %v6531_v10  ;;  %v6535_v8 = vcombine.high %v6517_v60, %v6531_v10 }
 0x75f   : > { %v7829_v55 = vcombine.low %v6524_v18, %v6524_v18  ;;  %v7830_v57 = vcombine.high %v6524_v18, %v6524_v18  ;;  %v7831_v4 = vcombine.low %v6531_v10, %v6531_v10  ;;  %v7832_v32 = vcombine.high %v6531_v10, %v6531_v10 }
 0x760   : > { %v6579_v59 = vrot.slane %v6532_v51, %v9541_v43  ;;  %v6596_v35 = vrot.slane %v6533_v53, %v9541_v43  ;;  %v10265_v46 = vrot.slane %v6534_v54, %v9541_v43  ;;  %v10268_v50 = vrot.slane %v6535_v8, %v9541_v43 }
 0x761   : > { %v6586_v12 = vrot.slane %v7829_v55, %v9541_v43  ;;  %v6603_v63 = vrot.slane %v7830_v57, %v9541_v43  ;;  %v10273_v39 = vrot.slane %v7831_v4, %v9541_v43  ;;  %v10276_v41 = vrot.slane %v7832_v32, %v9541_v43 }
 0x762   : > { %v6587_v62 = vcombine.high %v6579_v59, %v6579_v59  ;;  %v6604_v23 = vcombine.high %v6596_v35, %v6596_v35  ;;  %v6621_v3 = vcombine.high %v10265_v46, %v10265_v46  ;;  %v6638_v1 = vcombine.high %v10268_v50, %v10268_v50 }
 0x763   : > { %v6588_v33 = vcombine.high %v6586_v12, %v6586_v12  ;;  %v6605_v2 = vcombine.high %v6603_v63, %v6603_v63  ;;  %v6622_v5 = vcombine.high %v10273_v39, %v10273_v39  ;;  %v6639_v14 = vcombine.high %v10276_v41, %v10276_v41 }
 0x764   : > { %v6740_v16 = vsel %vm3187_vm9, %v6579_v59, -inf  ;;  %v6747_v9 = vsel %vm3187_vm9, %v6587_v62, -inf  ;;  %v6754_v13 = vsel %vm3187_vm9, %v6586_v12, -inf  ;;  %v6768_v44 = vsel %vm3187_vm9, %v6596_v35, -inf }
 0x765   : > { %v6741_v15 = vrot.slane %v6740_v16, 4  ;;  %v6748_v21 = vrot.slane %v6747_v9, 4  ;;  %v6755_v11 = vrot.slane %v6754_v13, 4  ;;  %v6761_v38 = vsel %vm3187_vm9, %v6588_v33, -inf }
 0x766   : > { %v6762_v22 = vrot.slane %v6761_v38, 4  ;;  %v6769_v25 = vrot.slane %v6768_v44, 4  ;;  %v6775_v30 = vsel %vm3187_vm9, %v6604_v23, -inf  ;;  %v6782_v0 = vsel %vm3187_vm9, %v6603_v63, -inf }
 0x767   : > { %v6742_v19 = vmax.f32 %v6740_v16, %v6741_v15  ;;  %v6749_v49 = vmax.f32 %v6747_v9, %v6748_v21  ;;  %v6756_v52 = vmax.f32 %v6754_v13, %v6755_v11  ;;  %v6776_v40 = vrot.slane %v6775_v30, 4 }
 0x768   : > { %v6763_v34 = vmax.f32 %v6761_v38, %v6762_v22  ;;  %v6770_v6 = vmax.f32 %v6768_v44, %v6769_v25  ;;  %v6783_v45 = vrot.slane %v6782_v0, 4  ;;  %v6789_v56 = vsel %vm3187_vm9, %v6605_v2, -inf }
 0x769   : > { %v6743_v42 = vrot.slane %v6742_v19, 2  ;;  %v6750_v48 = vrot.slane %v6749_v49, 2  ;;  %v6757_v47 = vrot.slane %v6756_v52, 2  ;;  %v6777_v28 = vmax.f32 %v6775_v30, %v6776_v40 }
 0x76a   : > { %v6764_v17 = vrot.slane %v6763_v34, 2  ;;  %v6771_v20 = vrot.slane %v6770_v6, 2  ;;  %v6784_v26 = vmax.f32 %v6782_v0, %v6783_v45  ;;  %v6790_v58 = vrot.slane %v6789_v56, 4 }
 0x76b   : > { %v6744_v60 = vmax.f32 %v6742_v19, %v6743_v42  ;;  %v6751_v36 = vmax.f32 %v6749_v49, %v6750_v48  ;;  %v6758_v61 = vmax.f32 %v6756_v52, %v6757_v47  ;;  %v6778_v18 = vrot.slane %v6777_v28, 2 }
 0x76c   : > { %v6765_v10 = vmax.f32 %v6763_v34, %v6764_v17  ;;  %v6772_v51 = vmax.f32 %v6770_v6, %v6771_v20  ;;  %v6785_v53 = vrot.slane %v6784_v26, 2  ;;  %v6791_v54 = vmax.f32 %v6789_v56, %v6790_v58 }
 0x76d   : > { %v6745_v8 = vrot.slane %v6744_v60, 1  ;;  %v6752_v55 = vrot.slane %v6751_v36, 1  ;;  %v6759_v57 = vrot.slane %v6758_v61, 1  ;;  %v6779_v4 = vmax.f32 %v6777_v28, %v6778_v18 }
 0x76e   : > { %v6766_v32 = vrot.slane %v6765_v10, 1  ;;  %v6773_v59 = vrot.slane %v6772_v51, 1  ;;  %v6786_v35 = vmax.f32 %v6784_v26, %v6785_v53  ;;  %v6792_v12 = vrot.slane %v6791_v54, 2 }
 0x76f   : > { %v10294_v63 = vmax.f32 %v6744_v60, %v6745_v8  ;;  %v10296_v62 = vmax.f32 %v6751_v36, %v6752_v55  ;;  %v10298_v23 = vmax.f32 %v6758_v61, %v6759_v57  ;;  %v6780_v33 = vrot.slane %v6779_v4, 1 }
 0x770   : > { %v10300_v2 = vmax.f32 %v6765_v10, %v6766_v32  ;;  %v10302_v16 = vmax.f32 %v6772_v51, %v6773_v59  ;;  %v6787_v9 = vrot.slane %v6786_v35, 1  ;;  %v6793_v13 = vmax.f32 %v6791_v54, %v6792_v12 }
 0x771   : > { %v10304_v44 = vmax.f32 %v6779_v4, %v6780_v33  ;;  %v6796_v15 = vsel %vm3187_vm9, %v10265_v46, -inf  ;;  %v6803_v21 = vsel %vm3187_vm9, %v6621_v3, -inf  ;;  %v6810_v11 = vsel %vm3187_vm9, %v10273_v39, -inf }
 0x772   : > { %v10311_v38 = vmax.f32 %v6786_v35, %v6787_v9  ;;  %v6794_v22 = vrot.slane %v6793_v13, 1  ;;  %v6797_v25 = vrot.slane %v6796_v15, 4  ;;  %v6804_v30 = vrot.slane %v6803_v21, 4 }
 0x773   : > { %v6811_v0 = vrot.slane %v6810_v11, 4  ;;  %v6817_v19 = vsel %vm3187_vm9, %v6622_v5, -inf  ;;  %v6824_v49 = vsel %vm3187_vm9, %v10268_v50, -inf  ;;  %v6831_v46 = vsel %vm3187_vm9, %v6638_v1, -inf }
 0x774   : > { %v10323_v3 = vmax.f32 %v6793_v13, %v6794_v22  ;;  %v6798_v52 = vmax.f32 %v6796_v15, %v6797_v25  ;;  %v6805_v40 = vmax.f32 %v6803_v21, %v6804_v30  ;;  %v6818_v34 = vrot.slane %v6817_v19, 4 }
 0x775   : > { %v6812_v6 = vmax.f32 %v6810_v11, %v6811_v0  ;;  %v6825_v45 = vrot.slane %v6824_v49, 4  ;;  %v6832_v56 = vrot.slane %v6831_v46, 4  ;;  %v6838_v39 = vsel %vm3187_vm9, %v10276_v41, -inf }
 0x776   : > { %v6799_v5 = vrot.slane %v6798_v52, 2  ;;  %v6806_v42 = vrot.slane %v6805_v40, 2  ;;  %v6819_v48 = vmax.f32 %v6817_v19, %v6818_v34  ;;  %v6839_v47 = vrot.slane %v6838_v39, 4 }
 0x777   : > { %v6813_v28 = vrot.slane %v6812_v6, 2  ;;  %v6826_v17 = vmax.f32 %v6824_v49, %v6825_v45  ;;  %v6833_v50 = vmax.f32 %v6831_v46, %v6832_v56  ;;  %v6845_v1 = vsel %vm3187_vm9, %v6639_v14, -inf }
 0x778   : > { %v6800_v20 = vmax.f32 %v6798_v52, %v6799_v5  ;;  %v6807_v26 = vmax.f32 %v6805_v40, %v6806_v42  ;;  %v6820_v58 = vrot.slane %v6819_v48, 2  ;;  %v6840_v60 = vmax.f32 %v6838_v39, %v6839_v47 }
 0x779   : > { %v6814_v36 = vmax.f32 %v6812_v6, %v6813_v28  ;;  %v6827_v61 = vrot.slane %v6826_v17, 2  ;;  %v6834_v18 = vrot.slane %v6833_v50, 2  ;;  %v6846_v10 = vrot.slane %v6845_v1, 4 }
 0x77a   : > { %v6801_v51 = vrot.slane %v6800_v20, 1  ;;  %v6808_v53 = vrot.slane %v6807_v26, 1  ;;  %v6821_v54 = vmax.f32 %v6819_v48, %v6820_v58  ;;  %v6841_v8 = vrot.slane %v6840_v60, 2 }
 0x77b   : > { %v6815_v55 = vrot.slane %v6814_v36, 1  ;;  %v6828_v57 = vmax.f32 %v6826_v17, %v6827_v61  ;;  %v6835_v4 = vmax.f32 %v6833_v50, %v6834_v18  ;;  %v6847_v32 = vmax.f32 %v6845_v1, %v6846_v10 }
 0x77c   : > { %v6802_v59 = vmax.f32 %v6800_v20, %v6801_v51  ;;  %v6809_v41 = vmax.f32 %v6807_v26, %v6808_v53  ;;  %v6822_v35 = vrot.slane %v6821_v54, 1  ;;  %v6842_v14 = vmax.f32 %v6840_v60, %v6841_v8 }
 0x77d   : > { %v6816_v12 = vmax.f32 %v6814_v36, %v6815_v55  ;;  %v6829_v33 = vrot.slane %v6828_v57, 1  ;;  %v6836_v9 = vrot.slane %v6835_v4, 1  ;;  %v6848_v13 = vrot.slane %v6847_v32, 2 }
 0x77e   : > { %v6823_v15 = vmax.f32 %v6821_v54, %v6822_v35  ;;  %v6843_v21 = vrot.slane %v6842_v14, 1  ;;  %v6964_v11 = vmax.f32 %v10294_v63, 0.0  ;;  %v6965_v22 = vmax.f32 %v10296_v62, 0.0 }
 0x77f   : > { %v6830_v25 = vmax.f32 %v6828_v57, %v6829_v33  ;;  %v6837_v30 = vmax.f32 %v6835_v4, %v6836_v9  ;;  %v6849_v0 = vmax.f32 %v6847_v32, %v6848_v13  ;;  %v6966_v19 = vmax.f32 %v10298_v23, 0.0 }
 0x780   : > { %v6844_v49 = vmax.f32 %v6842_v14, %v6843_v21  ;;  %v6967_v46 = vmax.f32 %v10300_v2, 0.0  ;;  %v6968_v52 = vmax.f32 %v10302_v16, 0.0  ;;  %v6969_v40 = vmax.f32 %v10304_v44, 0.0 }
 0x781   : > { %v6850_v34 = vrot.slane %v6849_v0, 1  ;;  %v6970_v6 = vmax.f32 %v10311_v38, 0.0  ;;  %v6971_v45 = vmax.f32 %v10323_v3, 0.0  ;;  %v6972_v63 = vmax.f32 %v6802_v59, 0.0 }
 0x782   : > { %v6973_v56 = vmax.f32 %v6809_v41, 0.0  ;;  %v6974_v62 = vmax.f32 %v6816_v12, 0.0  ;;  %v6975_v39 = vmax.f32 %v6823_v15, 0.0  ;;  %v6976_v5 = vmax.f32 %v6830_v25, 0.0 }
 0x783   : > { %v6851_v42 = vmax.f32 %v6849_v0, %v6850_v34  ;;  %v6977_v48 = vmax.f32 %v6837_v30, 0.0  ;;  %v6978_v23 = vmax.f32 %v6844_v49, 0.0  ;;  %v7969_v47 = vpack.c.bf16 %v6965_v22, %v6964_v11 }
 0x784   : > { %v7970_v28 = vpack.c.bf16 %v6967_v46, %v6966_v19  ;;  %v7971_v2 = vpack.c.bf16 %v6969_v40, %v6968_v52  ;;  %v7972_v17 = vpack.c.bf16 %v6971_v45, %v6970_v6  ;;  %v7973_v16 = vpack.c.bf16 %v6973_v56, %v6972_v63 }
 0x785   : > { %v6979_v50 = vmax.f32 %v6851_v42, 0.0  ;;  %v7974_v44 = vpack.c.bf16 %v6975_v39, %v6974_v62  ;;  %v7975_v1 = vpack.c.bf16 %v6977_v48, %v6976_v5  ;;  %v7108_v20 = vunpack.c.l.b16 %v7969_v47 }
 0x786   : > { %v7109_v38 = vunpack.c.h.b16 %v7969_v47  ;;  %v7110_v26 = vunpack.c.l.b16 %v7970_v28  ;;  %v7111_v3 = vunpack.c.h.b16 %v7970_v28  ;;  %v7112_v58 = vunpack.c.l.b16 %v7971_v2 }
 0x787   : > { %v7976_v60 = vpack.c.bf16 %v6979_v50, %v6978_v23  ;;  %v7113_v36 = vunpack.c.h.b16 %v7971_v2  ;;  %v7114_v61 = vunpack.c.l.b16 %v7972_v17  ;;  %v7115_v18 = vunpack.c.h.b16 %v7972_v17 }
 0x788   : > { %v7116_v10 = vunpack.c.l.b16 %v7973_v16  ;;  %v7117_v51 = vunpack.c.h.b16 %v7973_v16  ;;  %v7118_v53 = vunpack.c.l.b16 %v7974_v44  ;;  %v7119_v54 = vunpack.c.h.b16 %v7974_v44 }
 0x789   : > { %v7120_v8 = vunpack.c.l.b16 %v7975_v1  ;;  %v7121_v55 = vunpack.c.h.b16 %v7975_v1  ;;  %v7122_v57 = vunpack.c.l.b16 %v7976_v60  ;;  %v7123_v4 = vunpack.c.h.b16 %v7976_v60 }
 0x78a   : > { %v7140_v32 = vsel %vm2141_vm12, %v7112_v58, %v7108_v20  ;;  %v7147_v59 = vsel %vm2141_vm12, %v7113_v36, %v7109_v38  ;;  %v7154_v41 = vsel %vm2141_vm12, %v7114_v61, %v7110_v26  ;;  %v7161_v35 = vsel %vm2141_vm12, %v7115_v18, %v7111_v3 }
 0x78b   : > { %v7141_v14 = vsel %vm2143_vm13, %v7116_v10, %v7140_v32  ;;  %v7148_v12 = vsel %vm2143_vm13, %v7117_v51, %v7147_v59  ;;  %v7155_v33 = vsel %vm2143_vm13, %v7118_v53, %v7154_v41  ;;  %v7162_v9 = vsel %vm2143_vm13, %v7119_v54, %v7161_v35 }
 0x78c   : > { %v10348_v13 = vsel %vm2145_vm14, %v7120_v8, %v7141_v14  ;;  %v10351_v15 = vsel %vm2145_vm14, %v7121_v55, %v7148_v12  ;;  %v10354_v21 = vsel %vm2145_vm14, %v7122_v57, %v7155_v33  ;;  %v10357_v11 = vsel %vm2145_vm14, %v7123_v4, %v7162_v9 }
 0x78d   : > { %v6560_v22 = vrot.slane %v6538_v7, %v9541_v43  ;;  %v6567_v25 = vrot.slane %v6539_v27, %v9541_v43 }
 0x78f   : > { %v6568_v30 = vcombine.low %v10257_v24, %v6560_v22  ;;  %v6569_v0 = vcombine.high %v10257_v24, %v6560_v22  ;;  %v6570_v19 = vcombine.low %v10260_v37, %v6567_v25  ;;  %v6571_v49 = vcombine.high %v10260_v37, %v6567_v25 }
 0x790   : > { %v7833_v46 = vcombine.low %v6560_v22, %v6560_v22  ;;  %v7834_v52 = vcombine.high %v6560_v22, %v6560_v22  ;;  %v7835_v40 = vcombine.low %v6567_v25, %v6567_v25  ;;  %v7836_v34 = vcombine.high %v6567_v25, %v6567_v25 }
 0x791   : > { %v6647_v6 = vrot.slane %v6568_v30, %v9541_v43  ;;  %v6664_v7 = vrot.slane %v6569_v0, %v9541_v43  ;;  %v10374_v45 = vrot.slane %v6570_v19, %v9541_v43  ;;  %v10377_v31 = vrot.slane %v6571_v49, %v9541_v43 }
 0x792   : > { %v6654_v29 = vrot.slane %v7833_v46, %v9541_v43  ;;  %v6671_v27 = vrot.slane %v7834_v52, %v9541_v43  ;;  %v10382_v24 = vrot.slane %v7835_v40, %v9541_v43  ;;  %v10385_v37 = vrot.slane %v7836_v34, %v9541_v43 }
 0x793   : > { %v6655_v63 = vcombine.high %v6647_v6, %v6647_v6  ;;  %v6672_v56 = vcombine.high %v6664_v7, %v6664_v7  ;;  %v6689_v62 = vcombine.high %v10374_v45, %v10374_v45  ;;  %v6706_v39 = vcombine.high %v10377_v31, %v10377_v31 }
 0x794   : > { %v6656_v5 = vcombine.high %v6654_v29, %v6654_v29  ;;  %v6673_v42 = vcombine.high %v6671_v27, %v6671_v27  ;;  %v6690_v48 = vcombine.high %v10382_v24, %v10382_v24  ;;  %v6707_v23 = vcombine.high %v10385_v37, %v10385_v37 }
 0x795   : > { %v6852_v47 = vsel %vm3187_vm9, %v6647_v6, -inf  ;;  %v6859_v43 = vsel %vm3187_vm9, %v6655_v63, -inf  ;;  %v6866_v28 = vsel %vm3187_vm9, %v6654_v29, -inf  ;;  %v6880_v2 = vsel %vm3187_vm9, %v6664_v7, -inf }
 0x796   : > { %v6853_v17 = vrot.slane %v6852_v47, 4  ;;  %v6860_v16 = vrot.slane %v6859_v43, 4  ;;  %v6867_v50 = vrot.slane %v6866_v28, 4  ;;  %v6873_v44 = vsel %vm3187_vm9, %v6656_v5, -inf }
 0x797   : > { %v6874_v1 = vrot.slane %v6873_v44, 4  ;;  %v6881_v20 = vrot.slane %v6880_v2, 4  ;;  %v6887_v38 = vsel %vm3187_vm9, %v6672_v56, -inf  ;;  %v6894_v26 = vsel %vm3187_vm9, %v6671_v27, -inf }
 0x798   : > { %v6854_v3 = vmax.f32 %v6852_v47, %v6853_v17  ;;  %v6861_v58 = vmax.f32 %v6859_v43, %v6860_v16  ;;  %v6868_v60 = vmax.f32 %v6866_v28, %v6867_v50  ;;  %v6888_v36 = vrot.slane %v6887_v38, 4 }
 0x799   : > { %v6875_v61 = vmax.f32 %v6873_v44, %v6874_v1  ;;  %v6882_v18 = vmax.f32 %v6880_v2, %v6881_v20  ;;  %v6895_v10 = vrot.slane %v6894_v26, 4  ;;  %v6901_v51 = vsel %vm3187_vm9, %v6673_v42, -inf }
 0x79a   : > { %v6855_v53 = vrot.slane %v6854_v3, 2  ;;  %v6862_v54 = vrot.slane %v6861_v58, 2  ;;  %v6869_v8 = vrot.slane %v6868_v60, 2  ;;  %v6889_v55 = vmax.f32 %v6887_v38, %v6888_v36 }
 0x79b   : > { %v6876_v57 = vrot.slane %v6875_v61, 2  ;;  %v6883_v4 = vrot.slane %v6882_v18, 2  ;;  %v6896_v32 = vmax.f32 %v6894_v26, %v6895_v10  ;;  %v6902_v59 = vrot.slane %v6901_v51, 4 }
 0x79c   : > { %v6856_v41 = vmax.f32 %v6854_v3, %v6855_v53  ;;  %v6863_v35 = vmax.f32 %v6861_v58, %v6862_v54  ;;  %v6870_v14 = vmax.f32 %v6868_v60, %v6869_v8  ;;  %v6890_v12 = vrot.slane %v6889_v55, 2 }
 0x79d   : > { %v6877_v33 = vmax.f32 %v6875_v61, %v6876_v57  ;;  %v6884_v9 = vmax.f32 %v6882_v18, %v6883_v4  ;;  %v6897_v22 = vrot.slane %v6896_v32, 2  ;;  %v6903_v25 = vmax.f32 %v6901_v51, %v6902_v59 }
 0x79e   : > { %v6857_v30 = vrot.slane %v6856_v41, 1  ;;  %v6864_v0 = vrot.slane %v6863_v35, 1  ;;  %v6871_v19 = vrot.slane %v6870_v14, 1  ;;  %v6891_v49 = vmax.f32 %v6889_v55, %v6890_v12 }
 0x79f   : > { %v6878_v46 = vrot.slane %v6877_v33, 1  ;;  %v6885_v52 = vrot.slane %v6884_v9, 1  ;;  %v6898_v40 = vmax.f32 %v6896_v32, %v6897_v22  ;;  %v6904_v34 = vrot.slane %v6903_v25, 2 }
 0x7a0   : > { %v10403_v6 = vmax.f32 %v6856_v41, %v6857_v30  ;;  %v10405_v7 = vmax.f32 %v6863_v35, %v6864_v0  ;;  %v10407_v29 = vmax.f32 %v6870_v14, %v6871_v19  ;;  %v6892_v27 = vrot.slane %v6891_v49, 1 }
 0x7a1   : > { %v10409_v63 = vmax.f32 %v6877_v33, %v6878_v46  ;;  %v10411_v56 = vmax.f32 %v6884_v9, %v6885_v52  ;;  %v6899_v5 = vrot.slane %v6898_v40, 1  ;;  %v6905_v42 = vmax.f32 %v6903_v25, %v6904_v34 }
 0x7a2   : > { %v10413_v47 = vmax.f32 %v6891_v49, %v6892_v27  ;;  %v6908_v43 = vsel %vm3187_vm9, %v10374_v45, -inf  ;;  %v6915_v28 = vsel %vm3187_vm9, %v6689_v62, -inf  ;;  %v6922_v2 = vsel %vm3187_vm9, %v10382_v24, -inf }
 0x7a3   : > { %v10420_v17 = vmax.f32 %v6898_v40, %v6899_v5  ;;  %v6906_v16 = vrot.slane %v6905_v42, 1  ;;  %v6909_v50 = vrot.slane %v6908_v43, 4  ;;  %v6916_v44 = vrot.slane %v6915_v28, 4 }
 0x7a4   : > { %v6923_v1 = vrot.slane %v6922_v2, 4  ;;  %v6929_v20 = vsel %vm3187_vm9, %v6690_v48, -inf  ;;  %v6936_v38 = vsel %vm3187_vm9, %v10377_v31, -inf  ;;  %v6943_v45 = vsel %vm3187_vm9, %v6706_v39, -inf }
 0x7a5   : > { %v10432_v62 = vmax.f32 %v6905_v42, %v6906_v16  ;;  %v6910_v26 = vmax.f32 %v6908_v43, %v6909_v50  ;;  %v6917_v3 = vmax.f32 %v6915_v28, %v6916_v44  ;;  %v6930_v58 = vrot.slane %v6929_v20, 4 }
 0x7a6   : > { %v6924_v60 = vmax.f32 %v6922_v2, %v6923_v1  ;;  %v6937_v36 = vrot.slane %v6936_v38, 4  ;;  %v6944_v61 = vrot.slane %v6943_v45, 4  ;;  %v6950_v24 = vsel %vm3187_vm9, %v10385_v37, -inf }
 0x7a7   : > { %v6911_v48 = vrot.slane %v6910_v26, 2  ;;  %v6918_v18 = vrot.slane %v6917_v3, 2  ;;  %v6931_v10 = vmax.f32 %v6929_v20, %v6930_v58  ;;  %v6951_v51 = vrot.slane %v6950_v24, 4 }
 0x7a8   : > { %v6925_v53 = vrot.slane %v6924_v60, 2  ;;  %v6938_v54 = vmax.f32 %v6936_v38, %v6937_v36  ;;  %v6945_v31 = vmax.f32 %v6943_v45, %v6944_v61  ;;  %v6957_v39 = vsel %vm3187_vm9, %v6707_v23, -inf }
 0x7a9   : > { %v6912_v8 = vmax.f32 %v6910_v26, %v6911_v48  ;;  %v6919_v55 = vmax.f32 %v6917_v3, %v6918_v18  ;;  %v6932_v57 = vrot.slane %v6931_v10, 2  ;;  %v6952_v4 = vmax.f32 %v6950_v24, %v6951_v51 }
 0x7aa   : > { %v6926_v32 = vmax.f32 %v6924_v60, %v6925_v53  ;;  %v6939_v59 = vrot.slane %v6938_v54, 2  ;;  %v6946_v41 = vrot.slane %v6945_v31, 2  ;;  %v6958_v35 = vrot.slane %v6957_v39, 4 }
 0x7ab   : > { %v6913_v14 = vrot.slane %v6912_v8, 1  ;;  %v6920_v12 = vrot.slane %v6919_v55, 1  ;;  %v6933_v33 = vmax.f32 %v6931_v10, %v6932_v57  ;;  %v6953_v9 = vrot.slane %v6952_v4, 2 }
 0x7ac   : > { %v6927_v22 = vrot.slane %v6926_v32, 1  ;;  %v6940_v25 = vmax.f32 %v6938_v54, %v6939_v59  ;;  %v6947_v30 = vmax.f32 %v6945_v31, %v6946_v41  ;;  %v6959_v0 = vmax.f32 %v6957_v39, %v6958_v35 }
 0x7ad   : > { %v6914_v19 = vmax.f32 %v6912_v8, %v6913_v14  ;;  %v6921_v37 = vmax.f32 %v6919_v55, %v6920_v12  ;;  %v6934_v49 = vrot.slane %v6933_v33, 1  ;;  %v6954_v23 = vmax.f32 %v6952_v4, %v6953_v9 }
 0x7ae   : > { %v6928_v46 = vmax.f32 %v6926_v32, %v6927_v22  ;;  %v6941_v52 = vrot.slane %v6940_v25, 1  ;;  %v6948_v40 = vrot.slane %v6947_v30, 1  ;;  %v6960_v34 = vrot.slane %v6959_v0, 2 }
 0x7af   : > { %v6935_v27 = vmax.f32 %v6933_v33, %v6934_v49  ;;  %v6955_v5 = vrot.slane %v6954_v23, 1  ;;  %v6980_v42 = vmax.f32 %v10403_v6, 0.0  ;;  %v6981_v43 = vmax.f32 %v10405_v7, 0.0 }
 0x7b0   : > { %v6942_v28 = vmax.f32 %v6940_v25, %v6941_v52  ;;  %v6949_v2 = vmax.f32 %v6947_v30, %v6948_v40  ;;  %v6961_v16 = vmax.f32 %v6959_v0, %v6960_v34  ;;  %v6982_v50 = vmax.f32 %v10407_v29, 0.0 }
 0x7b1   : > { %v6956_v44 = vmax.f32 %v6954_v23, %v6955_v5  ;;  %v6983_v1 = vmax.f32 %v10409_v63, 0.0  ;;  %v6984_v20 = vmax.f32 %v10411_v56, 0.0  ;;  %v6985_v38 = vmax.f32 %v10413_v47, 0.0 }
 0x7b2   : > { %v6962_v45 = vrot.slane %v6961_v16, 1  ;;  %v6986_v26 = vmax.f32 %v10420_v17, 0.0  ;;  %v6987_v3 = vmax.f32 %v10432_v62, 0.0  ;;  %v6988_v6 = vmax.f32 %v6914_v19, 0.0 }
 0x7b3   : > { %v6989_v58 = vmax.f32 %v6921_v37, 0.0  ;;  %v6990_v7 = vmax.f32 %v6928_v46, 0.0  ;;  %v6991_v60 = vmax.f32 %v6935_v27, 0.0  ;;  %v6992_v36 = vmax.f32 %v6942_v28, 0.0 }
 0x7b4   : > { %v6963_v61 = vmax.f32 %v6961_v16, %v6962_v45  ;;  %v6993_v24 = vmax.f32 %v6949_v2, 0.0  ;;  %v6994_v29 = vmax.f32 %v6956_v44, 0.0  ;;  %v7977_v48 = vpack.c.bf16 %v6981_v43, %v6980_v42 }
 0x7b5   : > { %v7978_v18 = vpack.c.bf16 %v6983_v1, %v6982_v50  ;;  %v7979_v63 = vpack.c.bf16 %v6985_v38, %v6984_v20  ;;  %v7980_v10 = vpack.c.bf16 %v6987_v3, %v6986_v26  ;;  %v7981_v56 = vpack.c.bf16 %v6989_v58, %v6988_v6 }
 0x7b6   : > { %v6995_v51 = vmax.f32 %v6963_v61, 0.0  ;;  %v7982_v47 = vpack.c.bf16 %v6991_v60, %v6990_v7  ;;  %v7983_v53 = vpack.c.bf16 %v6993_v24, %v6992_v36  ;;  %v7124_v54 = vunpack.c.l.b16 %v7977_v48 }
 0x7b7   : > { %v7125_v17 = vunpack.c.h.b16 %v7977_v48  ;;  %v7126_v31 = vunpack.c.l.b16 %v7978_v18  ;;  %v7127_v62 = vunpack.c.h.b16 %v7978_v18  ;;  %v7128_v39 = vunpack.c.l.b16 %v7979_v63 }
 0x7b8   : > { %v7984_v8 = vpack.c.bf16 %v6995_v51, %v6994_v29  ;;  %v7129_v55 = vunpack.c.h.b16 %v7979_v63  ;;  %v7130_v57 = vunpack.c.l.b16 %v7980_v10  ;;  %v7131_v4 = vunpack.c.h.b16 %v7980_v10 }
 0x7b9   : > { %v7132_v32 = vunpack.c.l.b16 %v7981_v56  ;;  %v7133_v59 = vunpack.c.h.b16 %v7981_v56  ;;  %v7134_v41 = vunpack.c.l.b16 %v7982_v47  ;;  %v7135_v35 = vunpack.c.h.b16 %v7982_v47 }
 0x7ba   : > { %v7136_v14 = vunpack.c.l.b16 %v7983_v53  ;;  %v7137_v12 = vunpack.c.h.b16 %v7983_v53  ;;  %v7138_v33 = vunpack.c.l.b16 %v7984_v8  ;;  %v7139_v9 = vunpack.c.h.b16 %v7984_v8 }
 0x7bb   : > { %v7143_v22 = vsel %vm2147_vm15, %v7124_v54, %v10348_v13  ;;  %v7150_v25 = vsel %vm2147_vm15, %v7125_v17, %v10351_v15  ;;  %v7157_v30 = vsel %vm2147_vm15, %v7126_v31, %v10354_v21  ;;  %v7164_v0 = vsel %vm2147_vm15, %v7127_v62, %v10357_v11 }
 0x7bc   : > { %v7144_v19 = vsel %vm2149_vm0, %v7128_v39, %v7143_v22  ;;  %v7151_v37 = vsel %vm2149_vm0, %v7129_v55, %v7150_v25  ;;  %v7158_v49 = vsel %vm2149_vm0, %v7130_v57, %v7157_v30  ;;  %v7165_v23 = vsel %vm2149_vm0, %v7131_v4, %v7164_v0 }
 0x7bd   : > { %v7145_v13 = vsel %vm2151_vm1, %v7132_v32, %v7144_v19  ;;  %v7152_v15 = vsel %vm2151_vm1, %v7133_v59, %v7151_v37  ;;  %v7159_v46 = vsel %vm2151_vm1, %v7134_v41, %v7158_v49  ;;  %v7166_v21 = vsel %vm2151_vm1, %v7135_v35, %v7165_v23 }
 0x7be   : > { %v7146_v52 = vsel %vm2153_vm2, %v7136_v14, %v7145_v13  ;;  %v7153_v11 = vsel %vm2153_vm2, %v7137_v12, %v7152_v15  ;;  %v7160_v40 = vsel %vm2153_vm2, %v7138_v33, %v7159_v46  ;;  %v7167_v34 = vsel %vm2153_vm2, %v7139_v9, %v7166_v21 }
 0x7bf   : > { %v7168_v27 = vpack.c.b16 %v7153_v11, %v7146_v52  ;;  %v7169_v5 = vpack.c.b16 %v7167_v34, %v7160_v40 }
 0x7c1   : > { %7172 = vst [vmem:[%s9461_s20] sm:$0xff] %v7168_v27  ;;  %7173 = vst [vmem:[%s9461_s20 + $0x8] sm:$0xff] %v7169_v5 }
 0x7c2 PF: > { %s10510_s19 = sld [smem:[#allocation28_spill]] }
 0x7c8   : > { %s29_s25 = sadd.s32 1, %s10510_s19  }
 0x7c9   : > { %p26_p4 = scmp.ge.s32.totalorder %s29_s25, 4  }
 0x7cb   :  { %28 = sbr.rel (!%p26_p4) target bundleno = 8 (0x8), region = 155 }
 0x7d2   :  { %7195 = vsyncpa [#allocation6], 1 }
 0x7d3   :  { %7197 = vsyncpa [#allocation6 + $0x1], 1 }
 0x7d4   :  { %7198 = vsyncpa [#allocation8], 1 }
 0x7d5   :  { %7199 = vsyncpa [#allocation11], 1 }
 0x7d6   :  { %7200 = vsyncpa [#allocation14], 1 }
 0x7d7   :  { %7201 = vsyncpa [#allocation17], 1 }
 0x7d8   :  { %7202 = vsyncpa [#allocation20], 1 }

// kernel: simple_cnn_forward.3
= control target key start
LH: loop header
LB: loop body
LE: loop exit
PB: predicated region body
PF: predicated region fallthrough
CT: control target
= control target key end

     0   :  { %14 = vsyncpa [#allocation4], 0  ;;  %s12243_s0 = inlined_call_operand.vmem [shape: bf16[2,4096], index: 0, kind: input, shape index: {}]   ;;  %s12244_s1 = inlined_call_operand.hbm [shape: bf16[4096,512], index: 1, kind: input, shape index: {}]   ;;  %s12245_s2 = inlined_call_operand.hbm [shape: f32[1,512], index: 2, kind: input, shape index: {}]   ;;  %s12246_s3 = inlined_call_operand.hbm [shape: bf16[512,256], index: 3, kind: input, shape index: {}]   ;;  %s12247_s4 = inlined_call_operand.hbm [shape: f32[1,256], index: 4, kind: input, shape index: {}]   ;;  %s12248_s5 = inlined_call_operand.vmem [shape: bf16[256,64], index: 5, kind: input, shape index: {}]   ;;  %s12249_s6 = inlined_call_operand.hbm [shape: f32[1,64], index: 6, kind: input, shape index: {}]   ;;  %s12250_s7 = inlined_call_operand.vmem [shape: bf16[64,8], index: 7, kind: input, shape index: {}]   ;;  %s12251_s8 = inlined_call_operand.hbm [shape: f32[1,8], index: 8, kind: input, shape index: {}]   ;;  %s12252_s9 = inlined_call_operand.hbm [shape: f32[2,8], index: 9, kind: output, shape index: {}]  }
   0x1   :  { %15 = vsyncpa [#allocation7], 0 }
   0x2   :  { %16 = vsyncpa [#allocation10], 0 }
   0x3   :  { %17 = vsyncpa [#allocation13], 0 }
   0x4   :  { %18 = vsyncpa [#allocation5], 0  ;;  %s11767_s30 = smov [#allocation6]   ;;  %s11768_s11 = smov [#allocation9]  }
   0x5   :  { %s39_s10 = sshll.u32 %s11767_s30, 4  ;;  %s61_s12 = sshll.u32 %s11768_s11, 4  ;;  %s40_s10 = int_to_ptr.vmem [resolvable:$true] %s39_s10  ;;  %s62_s12 = int_to_ptr.vmem [resolvable:$true] %s61_s12 }
   0x6   :  { %s11603_s15 = scalar_lea.hbm %s12245_s2, 64 }
   0x7   :  { %p11604_p0 = scmp.ne.s32.totalorder %s12245_s2, %s11603_s15  ;;  %p11607_p1 = scmp.lt.u32.totalorder %s11603_s15, %s12245_s2 }
   0x9   :  { %p11609_p2 = pnand %p11607_p1, %p11604_p0 }
   0xb   :  { %11612 = shalt.err (!%p11609_p2)
}
   0xc   :  { %s11613_s20 = scalar_lea.vmem %s40_s10, 64  ;;  %p11618_p4 = scmp.lt.s32.totalorder %s40_s10, %s40_s10 }
   0xd   :  { %p11614_p3 = scmp.ne.s32.totalorder %s40_s10, %s11613_s20  ;;  %p11619_p5 = scmp.lt.s32.totalorder %s11613_s20, %s11613_s20 }
   0xf   :  { %p11620_p6 = por %p11619_p5, %p11618_p4 }
  0x11   :  { %p11621_p7 = pnand %p11620_p6, %p11614_p3 }
  0x13   :  { %11624 = shalt.err (!%p11621_p7)
}
  0x14   :  { %42 = dma.hbm_to_vmem [thread:$0]  %s12245_s2, 64, %s40_s10, [#allocation7]  }
  0x15   :  { %s11625_s25 = scalar_lea.hbm %s12247_s4, 32 }
  0x16   :  { %p11626_p8 = scmp.ne.s32.totalorder %s12247_s4, %s11625_s25  ;;  %p11629_p9 = scmp.lt.u32.totalorder %s11625_s25, %s12247_s4 }
  0x18   :  { %p11631_p10 = pnand %p11629_p9, %p11626_p8 }
  0x1a   :  { %11634 = shalt.err (!%p11631_p10)
}
  0x1b   :  { %s11635_s30 = scalar_lea.vmem %s62_s12, 32  ;;  %p11640_p12 = scmp.lt.s32.totalorder %s62_s12, %s62_s12 }
  0x1c   :  { %p11636_p11 = scmp.ne.s32.totalorder %s62_s12, %s11635_s30  ;;  %p11641_p13 = scmp.lt.s32.totalorder %s11635_s30, %s11635_s30 }
  0x1e   :  { %p11642_p0 = por %p11641_p13, %p11640_p12 }
  0x20   :  { %p11643_p1 = pnand %p11642_p0, %p11636_p11 }
  0x22   :  { %11646 = shalt.err (!%p11643_p1)
}
  0x23   :  { %64 = dma.hbm_to_vmem [thread:$0]  %s12247_s4, 32, %s62_s12, [#allocation10]  }
  0x24   :  { %s11769_s11 = smov [#allocation3]   ;;  %s11647_s16 = scalar_lea.hbm %s12244_s1, 131072 }
  0x25   :  { %s26_s13 = sshll.u32 %s11769_s11, 4  ;;  %p11648_p2 = scmp.ne.s32.totalorder %s12244_s1, %s11647_s16  ;;  %s27_s13 = int_to_ptr.vmem [resolvable:$true] %s26_s13 }
  0x26   :  { %p11651_p3 = scmp.lt.u32.totalorder %s11647_s16, %s12244_s1 }
  0x28   :  { %p11653_p4 = pnand %p11651_p3, %p11648_p2 }
  0x2a   :  { %11656 = shalt.err (!%p11653_p4)
}
  0x2b   :  { %s11657_s21 = scalar_lea.vmem %s27_s13, 131072  ;;  %p11662_p6 = scmp.lt.s32.totalorder %s27_s13, %s27_s13 }
  0x2c   :  { %p11658_p5 = scmp.ne.s32.totalorder %s27_s13, %s11657_s21  ;;  %p11663_p7 = scmp.lt.s32.totalorder %s11657_s21, %s11657_s21 }
  0x2e   :  { %p11664_p8 = por %p11663_p7, %p11662_p6 }
  0x30   :  { %p11665_p9 = pnand %p11664_p8, %p11658_p5 }
  0x32   :  { %11668 = shalt.err (!%p11665_p9)
}
  0x33   :  { %s11770_s4 = smov 256   ;;  %s11771_s12 = smov 16  }
  0x34   :  { %32 = dma.hbm_to_vmem [thread:$0]  %s12244_s1, 131072, %s27_s13, [#allocation4], %s11770_s4, %s11770_s4, %s11771_s12  }
  0x35   :  { %s11772_s24 = smov [#allocation8]   ;;  %s11669_s28 = scalar_lea.hbm %s12246_s3, 8192 }
  0x36   :  { %s48_s25 = sshll.u32 %s11772_s24, 4  ;;  %p11670_p10 = scmp.ne.s32.totalorder %s12246_s3, %s11669_s28  ;;  %s49_s25 = int_to_ptr.vmem [resolvable:$true] %s48_s25 }
  0x37   :  { %p11673_p11 = scmp.lt.u32.totalorder %s11669_s28, %s12246_s3 }
  0x39   :  { %p11675_p12 = pnand %p11673_p11, %p11670_p10 }
  0x3b   :  { %11678 = shalt.err (!%p11675_p12)
}
  0x3c   :  { %s11679_s11 = scalar_lea.vmem %s49_s25, 8192  ;;  %p11684_p0 = scmp.lt.s32.totalorder %s49_s25, %s49_s25 }
  0x3d   :  { %p11680_p13 = scmp.ne.s32.totalorder %s49_s25, %s11679_s11  ;;  %p11685_p1 = scmp.lt.s32.totalorder %s11679_s11, %s11679_s11 }
  0x3f   :  { %p11686_p2 = por %p11685_p1, %p11684_p0 }
  0x41   :  { %p11687_p3 = pnand %p11686_p2, %p11680_p13 }
  0x43   :  { %11690 = shalt.err (!%p11687_p3)
}
  0x44   :  { %s11773_s1 = smov 128   ;;  %s11774_s13 = smov 8  }
  0x45   :  { %54 = dma.hbm_to_vmem [thread:$0]  %s12246_s3, 8192, %s49_s25, [#allocation7], %s11773_s1, %s11773_s1, %s11774_s13  }
  0x46   :  { %s11775_s16 = smov [#allocation11]   ;;  %s11776_s18 = smov [#allocation12]  }
  0x47   :  { %s73_s17 = sshll.u32 %s11775_s16, 4  ;;  %s85_s19 = sshll.u32 %s11776_s18, 4  ;;  %s74_s17 = int_to_ptr.vmem [resolvable:$true] %s73_s17  ;;  %s86_s19 = int_to_ptr.vmem [resolvable:$true] %s85_s19 }
  0x48   :  { %s11691_s4 = scalar_lea.hbm %s12249_s6, 16 }
  0x49   :  { %p11692_p4 = scmp.ne.s32.totalorder %s12249_s6, %s11691_s4  ;;  %p11695_p5 = scmp.lt.u32.totalorder %s11691_s4, %s12249_s6 }
  0x4b   :  { %p11697_p6 = pnand %p11695_p5, %p11692_p4 }
  0x4d   :  { %11700 = shalt.err (!%p11697_p6)
}
  0x4e   :  { %s11701_s3 = scalar_lea.vmem %s74_s17, 16  ;;  %s11705_s25 = scalar_lea.vmem %s74_s17, 32 }
  0x4f   :  { %p11702_p7 = scmp.ne.s32.totalorder %s74_s17, %s11701_s3  ;;  %p11706_p8 = scmp.lt.s32.totalorder %s74_s17, %s74_s17 }
  0x50   :  { %p11707_p9 = scmp.lt.s32.totalorder %s11705_s25, %s11701_s3 }
  0x52   :  { %p11708_p10 = por %p11707_p9, %p11706_p8 }
  0x54   :  { %p11709_p11 = pnand %p11708_p10, %p11702_p7 }
  0x56   :  { %11712 = shalt.err (!%p11709_p11)
}
  0x57   :  { %76 = dma.hbm_to_vmem [thread:$0]  %s12249_s6, 16, %s74_s17, [#allocation10]  }
  0x58   :  { %s11713_s30 = scalar_lea.hbm %s12251_s8, 16 }
  0x59   :  { %p11714_p12 = scmp.ne.s32.totalorder %s12251_s8, %s11713_s30  ;;  %p11717_p13 = scmp.lt.u32.totalorder %s11713_s30, %s12251_s8 }
  0x5b   :  { %p11719_p0 = pnand %p11717_p13, %p11714_p12 }
  0x5d   :  { %11722 = shalt.err (!%p11719_p0)
}
  0x5e   :  { %s11723_s13 = scalar_lea.vmem %s86_s19, 16  ;;  %s11727_s14 = scalar_lea.vmem %s86_s19, 32 }
  0x5f   :  { %p11724_p1 = scmp.ne.s32.totalorder %s86_s19, %s11723_s13  ;;  %p11728_p2 = scmp.lt.s32.totalorder %s86_s19, %s86_s19 }
  0x60   :  { %p11729_p3 = scmp.lt.s32.totalorder %s11727_s14, %s11723_s13 }
  0x62   :  { %p11730_p4 = por %p11729_p3, %p11728_p2 }
  0x64   :  { %p11731_p5 = pnand %p11730_p4, %p11724_p1 }
  0x66   :  { %11734 = shalt.err (!%p11731_p5)
}
  0x67   :  { %88 = dma.hbm_to_vmem [thread:$0]  %s12251_s8, 16, %s86_s19, [#allocation13]  }
  0x68   :  { %11757 = dma.done.wait [#allocation4], 131072  }
  0x69   :  { %11758 = vsyncadd [#allocation4], 4294836224 }
  0x6a   :  { %11759 = dma.done.wait [#allocation7], 8256  }
  0x6b   :  { %11760 = vsyncadd [#allocation7], 4294959040 }
  0x6c   :  { %11761 = dma.done.wait [#allocation10], 48  }
  0x6d   :  { %11762 = vsyncadd [#allocation10], 4294967248 }
  0x6e   :  { %11763 = dma.done.wait [#allocation13], 16  }
  0x6f   :  { %11764 = vsyncadd [#allocation13], 4294967280  ;;  %v9945_v0 = vld [vmem:[#allocation3 + $0x4] ss:$16 sps:$4 sm:$0xff]   ;;  %v9949_v2 = vld [vmem:[#allocation3] ss:$16 sps:$4 sm:$0xff]   ;;  %v1150_v38 = vlaneseq }
  0x70   :  { %v9947_v1 = vld [vmem:[#allocation3 + $0x204] ss:$16 sps:$4 sm:$0xff]   ;;  %6494 = vmatprep.subr.bf16.mxu1 %v9945_v0  ;;  %v9950_v3 = vld [vmem:[#allocation3 + $0x200] ss:$16 sps:$4 sm:$0xff]   ;;  %v11777_v36 = vmov 1966171168  }
  0x71   :  { %6535 = vmatprep.subr.bf16.mxu0 %v9947_v1  ;;  %v9951_v4 = vld [vmem:[#allocation3 + $0x24] ss:$16 sps:$4 sm:$0xff]   ;;  %6495 = vmatpush1.bf16.msra.mxu1 %v9949_v2  ;;  %v9955_v6 = vld [vmem:[#allocation3 + $0x20] ss:$16 sps:$4 sm:$0xff]   ;;  %v1148_v37 = vunpack.c.l.s4 %v11777_v36  ;;  %v11904_v43 = vshrl.u32 %v1150_v38, 7  ;;  %vm11780_vm0 = vmmov 0  }
  0x72   :  { %6536 = vmatpush1.bf16.msra.mxu0 %v9950_v3  ;;  %v9953_v5 = vld [vmem:[#allocation3 + $0x224] ss:$16 sps:$4 sm:$0xff]   ;;  %6496 = vmatprep.subr.bf16.mxu1 %v9951_v4  ;;  %v9956_v7 = vld [vmem:[#allocation3 + $0x220] ss:$16 sps:$4 sm:$0xff]   ;;  %v10068_v36 = vld [vmem:[#allocation3 + $0x88] ss:$16 sps:$4 sm:$0xff]  }
  0x73   :  { %6537 = vmatprep.subr.bf16.mxu0 %v9953_v5  ;;  %v9957_v8 = vld [vmem:[#allocation3 + $0x44] ss:$16 sps:$4 sm:$0xff]   ;;  %v9961_v10 = vld [vmem:[#allocation3 + $0x40] ss:$16 sps:$4 sm:$0xff]   ;;  %v1149_v42 = vunpack.c.0.s8 %v1148_v37  ;;  %v10076_v38 = vld [vmem:[#allocation3 + $0xac] ss:$16 sps:$4 sm:$0xff]  }
  0x74   :  { %v9959_v9 = vld [vmem:[#allocation3 + $0x244] ss:$16 sps:$4 sm:$0xff]   ;;  %v9962_v11 = vld [vmem:[#allocation3 + $0x240] ss:$16 sps:$4 sm:$0xff]   ;;  %vm8592_vm1 = vcmask 523264   ;;  %s11781_s10 = smov [#allocation14]  }
  0x75   :  { %6497 = vmatpush1.bf16.msra.mxu1 %v9955_v6  ;;  %v9963_v12 = vld [vmem:[#allocation3 + $0x64] ss:$16 sps:$4 sm:$0xff]   ;;  %v9967_v14 = vld [vmem:[#allocation3 + $0x60] ss:$16 sps:$4 sm:$0xff]   ;;  %v11907_v49 = vsub.s32 %v1149_v42, %v11904_v43  ;;  %v10082_v42 = vld [vmem:[#allocation3 + $0xcc] ss:$16 sps:$4 sm:$0xff]  }
  0x76   :  { %6538 = vmatpush1.bf16.msra.mxu0 %v9956_v7  ;;  %6498 = vmatprep.subr.bf16.mxu1 %v9957_v8  ;;  %v9965_v13 = vld [vmem:[#allocation3 + $0x264] ss:$16 sps:$4 sm:$0xff]   ;;  %v9968_v15 = vld [vmem:[#allocation3 + $0x260] ss:$16 sps:$4 sm:$0xff]   ;;  %s8644_s11 = sshll.u32 %s11781_s10, 4  ;;  %vm8636_vm2 = vcmask 58368   ;;  %s8645_s11 = int_to_ptr.vmem [resolvable:$true] %s8644_s11 }
  0x77   :  { %6539 = vmatprep.subr.bf16.mxu0 %v9959_v9  ;;  %v9969_v16 = vld [vmem:[#allocation3 + $0x84] ss:$16 sps:$4 sm:$0xff]   ;;  %v9973_v18 = vld [vmem:[#allocation3 + $0x80] ss:$16 sps:$4 sm:$0xff]   ;;  %p11740_p7 = scmp.lt.s32.totalorder %s8645_s11, %s8645_s11 }
  0x78   :  { %v9971_v17 = vld [vmem:[#allocation3 + $0x284] ss:$16 sps:$4 sm:$0xff]   ;;  %v9974_v19 = vld [vmem:[#allocation3 + $0x280] ss:$16 sps:$4 sm:$0xff]  }
  0x79   :  { %6499 = vmatpush1.bf16.msra.mxu1 %v9961_v10  ;;  %v9975_v20 = vld [vmem:[#allocation3 + $0xa4] ss:$16 sps:$4 sm:$0xff]   ;;  %v9979_v22 = vld [vmem:[#allocation3 + $0xa0] ss:$16 sps:$4 sm:$0xff]  }
  0x7a   :  { %6540 = vmatpush1.bf16.msra.mxu0 %v9962_v11  ;;  %6500 = vmatprep.subr.bf16.mxu1 %v9963_v12  ;;  %v9977_v21 = vld [vmem:[#allocation3 + $0x2a4] ss:$16 sps:$4 sm:$0xff]   ;;  %v9980_v23 = vld [vmem:[#allocation3 + $0x2a0] ss:$16 sps:$4 sm:$0xff]  }
  0x7b   :  { %6541 = vmatprep.subr.bf16.mxu0 %v9965_v13  ;;  %v9981_v24 = vld [vmem:[#allocation3 + $0xc4] ss:$16 sps:$4 sm:$0xff]   ;;  %v9985_v26 = vld [vmem:[#allocation3 + $0xc0] ss:$16 sps:$4 sm:$0xff]  }
  0x7c   :  { %v9983_v25 = vld [vmem:[#allocation3 + $0x2c4] ss:$16 sps:$4 sm:$0xff]   ;;  %v9986_v27 = vld [vmem:[#allocation3 + $0x2c0] ss:$16 sps:$4 sm:$0xff]  }
  0x7d   :  { %6501 = vmatpush1.bf16.msra.mxu1 %v9967_v14  ;;  %v9987_v28 = vld [vmem:[#allocation3 + $0xe4] ss:$16 sps:$4 sm:$0xff]   ;;  %v9991_v30 = vld [vmem:[#allocation3 + $0xe0] ss:$16 sps:$4 sm:$0xff]  }
  0x7e   :  { %6542 = vmatpush1.bf16.msra.mxu0 %v9968_v15  ;;  %6502 = vmatprep.subr.bf16.mxu1 %v9969_v16  ;;  %v9989_v29 = vld [vmem:[#allocation3 + $0x2e4] ss:$16 sps:$4 sm:$0xff]   ;;  %v9992_v31 = vld [vmem:[#allocation3 + $0x2e0] ss:$16 sps:$4 sm:$0xff]   ;;  %v10046_v15 = vld [vmem:[#allocation3 + $0xc] ss:$16 sps:$4 sm:$0xff]  }
  0x7f   :  { %6543 = vmatprep.subr.bf16.mxu0 %v9971_v17  ;;  %v9993_v32 = vld [vmem:[#allocation3 + $0x104] ss:$16 sps:$4 sm:$0xff]   ;;  %v9997_v34 = vld [vmem:[#allocation3 + $0x100] ss:$16 sps:$4 sm:$0xff]  }
  0x80   :  { %v9995_v33 = vld [vmem:[#allocation3 + $0x304] ss:$16 sps:$4 sm:$0xff]   ;;  %v9998_v35 = vld [vmem:[#allocation3 + $0x300] ss:$16 sps:$4 sm:$0xff]  }
  0x81   :  { %6503 = vmatpush1.bf16.msra.mxu1 %v9973_v18  ;;  %v9999_v39 = vld [vmem:[#allocation3 + $0x124] ss:$16 sps:$4 sm:$0xff]   ;;  %v10003_v41 = vld [vmem:[#allocation3 + $0x120] ss:$16 sps:$4 sm:$0xff]  }
  0x82   :  { %6544 = vmatpush1.bf16.msra.mxu0 %v9974_v19  ;;  %6504 = vmatprep.subr.bf16.mxu1 %v9975_v20  ;;  %v10001_v40 = vld [vmem:[#allocation3 + $0x324] ss:$16 sps:$4 sm:$0xff]   ;;  %v10004_v44 = vld [vmem:[#allocation3 + $0x320] ss:$16 sps:$4 sm:$0xff]   ;;  %v10044_v19 = vld [vmem:[#allocation3 + $0x8] ss:$16 sps:$4 sm:$0xff]  }
  0x83   :  { %6545 = vmatprep.subr.bf16.mxu0 %v9977_v21  ;;  %v10005_v45 = vld [vmem:[#allocation3 + $0x144] ss:$16 sps:$4 sm:$0xff]   ;;  %v10009_v47 = vld [vmem:[#allocation3 + $0x140] ss:$16 sps:$4 sm:$0xff]   ;;  %v10052_v21 = vld [vmem:[#allocation3 + $0x2c] ss:$16 sps:$4 sm:$0xff]  }
  0x84   :  { %v10007_v46 = vld [vmem:[#allocation3 + $0x344] ss:$16 sps:$4 sm:$0xff]   ;;  %v10010_v48 = vld [vmem:[#allocation3 + $0x340] ss:$16 sps:$4 sm:$0xff]  }
  0x85   :  { %6505 = vmatpush1.bf16.msra.mxu1 %v9979_v22  ;;  %v10011_v50 = vld [vmem:[#allocation3 + $0x164] ss:$16 sps:$4 sm:$0xff]   ;;  %v10015_v53 = vld [vmem:[#allocation3 + $0x160] ss:$16 sps:$4 sm:$0xff]  }
  0x86   :  { %6546 = vmatpush1.bf16.msra.mxu0 %v9980_v23  ;;  %6506 = vmatprep.subr.bf16.mxu1 %v9981_v24  ;;  %v10013_v51 = vld [vmem:[#allocation3 + $0x364] ss:$16 sps:$4 sm:$0xff]   ;;  %v10016_v55 = vld [vmem:[#allocation3 + $0x360] ss:$16 sps:$4 sm:$0xff]   ;;  %v10050_v24 = vld [vmem:[#allocation3 + $0x28] ss:$16 sps:$4 sm:$0xff]  }
  0x87   :  { %6547 = vmatprep.subr.bf16.mxu0 %v9983_v25  ;;  %v114_v52 = vld [vmem:[%s12243_s0] sm:$0xff] }
  0x88   :  { %v1153_v54 = vrot.slane %v114_v52, %v11907_v49  ;;  %v10017_v56 = vld [vmem:[#allocation3 + $0x184] ss:$16 sps:$4 sm:$0xff]   ;;  %v10021_v59 = vld [vmem:[#allocation3 + $0x180] ss:$16 sps:$4 sm:$0xff]   ;;  %v1146_v5 = vcombine.high %v114_v52, %v114_v52  ;;  %v10094_v52 = vld [vmem:[#allocation3 + $0x10c] ss:$16 sps:$4 sm:$0xff]  }
  0x89   :  { %6507 = vmatpush1.bf16.msra.mxu1 %v9985_v26  ;;  %v10019_v57 = vld [vmem:[#allocation3 + $0x384] ss:$16 sps:$4 sm:$0xff]   ;;  %v10022_v61 = vld [vmem:[#allocation3 + $0x380] ss:$16 sps:$4 sm:$0xff]   ;;  %v10058_v26 = vld [vmem:[#allocation3 + $0x4c] ss:$16 sps:$4 sm:$0xff]  }
  0x8a   :  { %6548 = vmatpush1.bf16.msra.mxu0 %v9986_v27  ;;  %6508 = vmatprep.subr.bf16.mxu1 %v9987_v28  ;;  %v1161_v58 = vcombine.high %v1153_v54, %v1153_v54  ;;  %v10023_v62 = vld [vmem:[#allocation3 + $0x1a4] ss:$16 sps:$4 sm:$0xff]   ;;  %v10027_v1 = vld [vmem:[#allocation3 + $0x1a0] ss:$16 sps:$4 sm:$0xff]   ;;  %v11918_v10 = vrot.slane %v1146_v5, %v11907_v49  ;;  %v11921_v12 = vrot.slane %v1153_v54, %v11907_v49  ;;  %v10056_v28 = vld [vmem:[#allocation3 + $0x48] ss:$16 sps:$4 sm:$0xff]  }
  0x8b   :  { %6549 = vmatprep.subr.bf16.mxu0 %v9989_v29  ;;  %v10025_v63 = vld [vmem:[#allocation3 + $0x3a4] ss:$16 sps:$4 sm:$0xff]   ;;  %v10028_v2 = vld [vmem:[#allocation3 + $0x3a0] ss:$16 sps:$4 sm:$0xff]   ;;  %v10092_v54 = vld [vmem:[#allocation3 + $0x108] ss:$16 sps:$4 sm:$0xff]  }
  0x8c   :  { %v1183_v60 = vrot.slane %v1161_v58, %v11907_v49  ;;  %v10029_v3 = vld [vmem:[#allocation3 + $0x1c4] ss:$16 sps:$4 sm:$0xff]   ;;  %v10033_v6 = vld [vmem:[#allocation3 + $0x1c0] ss:$16 sps:$4 sm:$0xff]   ;;  %v1162_v16 = vcombine.high %v11918_v10, %v11918_v10  ;;  %v11927_v18 = vcombine.high %v11921_v12, %v11921_v12  ;;  %v10098_v58 = vld [vmem:[#allocation3 + $0x128] ss:$16 sps:$4 sm:$0xff]  }
  0x8d   :  { %6509 = vmatpush1.bf16.msra.mxu1 %v9991_v30  ;;  %v10031_v4 = vld [vmem:[#allocation3 + $0x3c4] ss:$16 sps:$4 sm:$0xff]   ;;  %v10034_v7 = vld [vmem:[#allocation3 + $0x3c0] ss:$16 sps:$4 sm:$0xff]   ;;  %v10064_v30 = vld [vmem:[#allocation3 + $0x6c] ss:$16 sps:$4 sm:$0xff]  }
  0x8e   :  { %6550 = vmatpush1.bf16.msra.mxu0 %v9992_v31  ;;  %6510 = vmatprep.subr.bf16.mxu1 %v9993_v32  ;;  %v11914_v0 = vcombine.high %v1183_v60, %v1183_v60  ;;  %v10035_v8 = vld [vmem:[#allocation3 + $0x1e4] ss:$16 sps:$4 sm:$0xff]   ;;  %v10039_v11 = vld [vmem:[#allocation3 + $0x1e0] ss:$16 sps:$4 sm:$0xff]   ;;  %v11930_v22 = vrot.slane %v1162_v16, %v11907_v49  ;;  %v10062_v32 = vld [vmem:[#allocation3 + $0x68] ss:$16 sps:$4 sm:$0xff]  }
  0x8f   :  { %6551 = vmatprep.subr.bf16.mxu0 %v9995_v33  ;;  %6526 = vmatprep.mubr.bf16.mxu1 %v1183_v60  ;;  %v10037_v9 = vld [vmem:[#allocation3 + $0x3e4] ss:$16 sps:$4 sm:$0xff]   ;;  %v10040_v13 = vld [vmem:[#allocation3 + $0x3e0] ss:$16 sps:$4 sm:$0xff]   ;;  %v10118_v5 = vld [vmem:[#allocation3 + $0x18c] ss:$16 sps:$4 sm:$0xff]  }
  0x90   :  { %6567 = vmatprep.mubr.bf16.mxu0 %v11914_v0  ;;  %v10043_v14 = vld [vmem:[#allocation3 + $0x404] ss:$16 sps:$4 sm:$0xff]   ;;  %v10041_v17 = vld [vmem:[#allocation3 + $0x400] ss:$16 sps:$4 sm:$0xff]  }
  0x91   :  { %6511 = vmatpush1.bf16.msra.mxu1 %v9997_v34  ;;  %v10049_v20 = vld [vmem:[#allocation3 + $0x424] ss:$16 sps:$4 sm:$0xff]   ;;  %v10047_v23 = vld [vmem:[#allocation3 + $0x420] ss:$16 sps:$4 sm:$0xff]   ;;  %v10070_v34 = vld [vmem:[#allocation3 + $0x8c] ss:$16 sps:$4 sm:$0xff]  }
  0x92   :  { %6552 = vmatpush1.bf16.msra.mxu0 %v9998_v35  ;;  %6512 = vmatprep.subr.bf16.mxu1 %v9999_v39  ;;  %v10055_v25 = vld [vmem:[#allocation3 + $0x444] ss:$16 sps:$4 sm:$0xff]   ;;  %v10053_v27 = vld [vmem:[#allocation3 + $0x440] ss:$16 sps:$4 sm:$0xff]  }
  0x93   :  { %6553 = vmatprep.subr.bf16.mxu0 %v10001_v40  ;;  %v10061_v29 = vld [vmem:[#allocation3 + $0x464] ss:$16 sps:$4 sm:$0xff]   ;;  %v10059_v31 = vld [vmem:[#allocation3 + $0x460] ss:$16 sps:$4 sm:$0xff]   ;;  %v10074_v40 = vld [vmem:[#allocation3 + $0xa8] ss:$16 sps:$4 sm:$0xff]  }
  0x94   :  { %v10067_v33 = vld [vmem:[#allocation3 + $0x484] ss:$16 sps:$4 sm:$0xff]   ;;  %v10065_v35 = vld [vmem:[#allocation3 + $0x480] ss:$16 sps:$4 sm:$0xff]  }
  0x95   :  { %6513 = vmatpush1.bf16.msra.mxu1 %v10003_v41  ;;  %v10073_v37 = vld [vmem:[#allocation3 + $0x4a4] ss:$16 sps:$4 sm:$0xff]   ;;  %v10071_v39 = vld [vmem:[#allocation3 + $0x4a0] ss:$16 sps:$4 sm:$0xff]  }
  0x96   :  { %6554 = vmatpush1.bf16.msra.mxu0 %v10004_v44  ;;  %6514 = vmatprep.subr.bf16.mxu1 %v10005_v45  ;;  %v10079_v41 = vld [vmem:[#allocation3 + $0x4c4] ss:$16 sps:$4 sm:$0xff]   ;;  %v10077_v44 = vld [vmem:[#allocation3 + $0x4c0] ss:$16 sps:$4 sm:$0xff]   ;;  %v10080_v45 = vld [vmem:[#allocation3 + $0xc8] ss:$16 sps:$4 sm:$0xff]  }
  0x97   :  { %6555 = vmatprep.subr.bf16.mxu0 %v10007_v46  ;;  %v10085_v46 = vld [vmem:[#allocation3 + $0x4e4] ss:$16 sps:$4 sm:$0xff]   ;;  %v10125_v16 = vld [vmem:[#allocation3 + $0x5c0] ss:$16 sps:$4 sm:$0xff]  }
  0x99   :  { %6515 = vmatpush1.bf16.msra.mxu1 %v10009_v47  ;;  %v10088_v47 = vld [vmem:[#allocation3 + $0xec] ss:$16 sps:$4 sm:$0xff]  }
  0x9a   :  { %6556 = vmatpush1.bf16.msra.mxu0 %v10010_v48  ;;  %6516 = vmatprep.subr.bf16.mxu1 %v10011_v50  ;;  %v10083_v48 = vld [vmem:[#allocation3 + $0x4e0] ss:$16 sps:$4 sm:$0xff]   ;;  %v10086_v50 = vld [vmem:[#allocation3 + $0xe8] ss:$16 sps:$4 sm:$0xff]  }
  0x9b   :  { %6557 = vmatprep.subr.bf16.mxu0 %v10013_v51  ;;  %v10091_v51 = vld [vmem:[#allocation3 + $0x504] ss:$16 sps:$4 sm:$0xff]  }
  0x9d   :  { %6517 = vmatpush1.bf16.msra.mxu1 %v10015_v53  ;;  %v10089_v53 = vld [vmem:[#allocation3 + $0x500] ss:$16 sps:$4 sm:$0xff]  }
  0x9e   :  { %6558 = vmatpush1.bf16.msra.mxu0 %v10016_v55  ;;  %6518 = vmatprep.subr.bf16.mxu1 %v10017_v56  ;;  %v10097_v55 = vld [vmem:[#allocation3 + $0x524] ss:$16 sps:$4 sm:$0xff]   ;;  %v10100_v56 = vld [vmem:[#allocation3 + $0x12c] ss:$16 sps:$4 sm:$0xff]  }
  0x9f   :  { %6559 = vmatprep.subr.bf16.mxu0 %v10019_v57  ;;  %v10095_v57 = vld [vmem:[#allocation3 + $0x520] ss:$16 sps:$4 sm:$0xff]  }
  0xa1   :  { %6519 = vmatpush1.bf16.msra.mxu1 %v10021_v59  ;;  %v10103_v59 = vld [vmem:[#allocation3 + $0x544] ss:$16 sps:$4 sm:$0xff]  }
  0xa2   :  { %6560 = vmatpush1.bf16.msra.mxu0 %v10022_v61  ;;  %6520 = vmatprep.subr.bf16.mxu1 %v10023_v62  ;;  %v10101_v61 = vld [vmem:[#allocation3 + $0x540] ss:$16 sps:$4 sm:$0xff]   ;;  %v10104_v62 = vld [vmem:[#allocation3 + $0x148] ss:$16 sps:$4 sm:$0xff]  }
  0xa3   :  { %6561 = vmatprep.subr.bf16.mxu0 %v10025_v63  ;;  %v10109_v63 = vld [vmem:[#allocation3 + $0x564] ss:$16 sps:$4 sm:$0xff]  }
  0xa5   :  { %6521 = vmatpush1.bf16.msra.mxu1 %v10027_v1  ;;  %v10112_v1 = vld [vmem:[#allocation3 + $0x16c] ss:$16 sps:$4 sm:$0xff]  }
  0xa6   :  { %6562 = vmatpush1.bf16.msra.mxu0 %v10028_v2  ;;  %6522 = vmatprep.subr.bf16.mxu1 %v10029_v3  ;;  %v10107_v2 = vld [vmem:[#allocation3 + $0x560] ss:$16 sps:$4 sm:$0xff]   ;;  %v10110_v3 = vld [vmem:[#allocation3 + $0x168] ss:$16 sps:$4 sm:$0xff]  }
  0xa7   :  { %6563 = vmatprep.subr.bf16.mxu0 %v10031_v4  ;;  %v10115_v4 = vld [vmem:[#allocation3 + $0x584] ss:$16 sps:$4 sm:$0xff]  }
  0xa9   :  { %6523 = vmatpush1.bf16.msra.mxu1 %v10033_v6  ;;  %v10113_v6 = vld [vmem:[#allocation3 + $0x580] ss:$16 sps:$4 sm:$0xff]  }
  0xaa   :  { %6564 = vmatpush1.bf16.msra.mxu0 %v10034_v7  ;;  %6524 = vmatprep.subr.bf16.mxu1 %v10035_v8  ;;  %v10116_v7 = vld [vmem:[#allocation3 + $0x188] ss:$16 sps:$4 sm:$0xff]   ;;  %v10121_v8 = vld [vmem:[#allocation3 + $0x5a4] ss:$16 sps:$4 sm:$0xff]  }
  0xab   :  { %6565 = vmatprep.subr.bf16.mxu0 %v10037_v9  ;;  %v10124_v9 = vld [vmem:[#allocation3 + $0x1ac] ss:$16 sps:$4 sm:$0xff]  }
  0xad   :  { %6525 = vmatpush1.bf16.msra.mxu1 %v10039_v11  ;;  %v10119_v11 = vld [vmem:[#allocation3 + $0x5a0] ss:$16 sps:$4 sm:$0xff]  }
  0xae   :  { %6566 = vmatpush1.bf16.msra.mxu0 %v10040_v13  ;;  %7150 = vmatprep.subr.bf16.mxu1 %v10046_v15  ;;  %v10122_v13 = vld [vmem:[#allocation3 + $0x1a8] ss:$16 sps:$4 sm:$0xff]   ;;  %v10130_v15 = vld [vmem:[#allocation3 + $0x1cc] ss:$16 sps:$4 sm:$0xff]  }
  0xaf   :  { %6576 = vmatprep.subr.bf16.mxu0 %v10043_v14  ;;  %v10127_v14 = vld [vmem:[#allocation3 + $0x5c4] ss:$16 sps:$4 sm:$0xff]  }
  0xb0   :  { %6527 = vmatmul.mubr.bf16.vlgmr.msra.gmra.mrb[0].mxu1 %v11921_v12 }
  0xb1   :  { %6568 = vmatmul.mubr.bf16.vlgmr.msra.gmra.mrb[0].mxu0 %v11927_v18  ;;  %7151 = vmatpush1.bf16.msra.mxu1 %v10044_v19  ;;  %v10133_v19 = vld [vmem:[#allocation3 + $0x5e4] ss:$16 sps:$4 sm:$0xff]  }
  0xb2   :  { %6577 = vmatpush1.bf16.msra.mxu0 %v10041_v17  ;;  %7152 = vmatprep.subr.bf16.mxu1 %v10052_v21  ;;  %v10128_v17 = vld [vmem:[#allocation3 + $0x1c8] ss:$16 sps:$4 sm:$0xff]   ;;  %v10131_v21 = vld [vmem:[#allocation3 + $0x5e0] ss:$16 sps:$4 sm:$0xff]  }
  0xb3   :  { %6578 = vmatprep.subr.bf16.mxu0 %v10049_v20  ;;  %6608 = vmatprep.mubr.bf16.mxu0 %v11930_v22  ;;  %v10136_v20 = vld [vmem:[#allocation3 + $0x1ec] ss:$16 sps:$4 sm:$0xff]  }
  0xb4   :  { %7182 = vmatprep.mubr.bf16.mxu1 %v1183_v60  ;;  %v10106_v60 = vld [vmem:[#allocation3 + $0x14c] ss:$16 sps:$4 sm:$0xff]  }
  0xb5   :  { %7153 = vmatpush1.bf16.msra.mxu1 %v10050_v24  ;;  %v10140_v24 = vld [vmem:[#allocation3 + $0x604] ss:$16 sps:$4 sm:$0xff]  }
  0xb6   :  { %6579 = vmatpush1.bf16.msra.mxu0 %v10047_v23  ;;  %7154 = vmatprep.subr.bf16.mxu1 %v10058_v26  ;;  %v10134_v23 = vld [vmem:[#allocation3 + $0x1e8] ss:$16 sps:$4 sm:$0xff]   ;;  %v10138_v26 = vld [vmem:[#allocation3 + $0x600] ss:$16 sps:$4 sm:$0xff]  }
  0xb7   :  { %6580 = vmatprep.subr.bf16.mxu0 %v10055_v25  ;;  %v10143_v25 = vld [vmem:[#allocation3 + $0x20c] ss:$16 sps:$4 sm:$0xff]  }
  0xb9   :  { %7155 = vmatpush1.bf16.msra.mxu1 %v10056_v28  ;;  %v10141_v28 = vld [vmem:[#allocation3 + $0x208] ss:$16 sps:$4 sm:$0xff]  }
  0xba   :  { %6581 = vmatpush1.bf16.msra.mxu0 %v10053_v27  ;;  %7156 = vmatprep.subr.bf16.mxu1 %v10064_v30  ;;  %v11937_v27 = vrot.slane %v11918_v10, %v11907_v49  ;;  %v10149_v30 = vld [vmem:[#allocation3 + $0x22c] ss:$16 sps:$4 sm:$0xff]   ;;  %v10147_v10 = vld [vmem:[#allocation3 + $0x228] ss:$16 sps:$4 sm:$0xff]  }
  0xbb   :  { %6582 = vmatprep.subr.bf16.mxu0 %v10061_v29  ;;  %v10146_v29 = vld [vmem:[#allocation3 + $0x624] ss:$16 sps:$4 sm:$0xff]  }
  0xbd   :  { %7157 = vmatpush1.bf16.msra.mxu1 %v10062_v32  ;;  %v10144_v32 = vld [vmem:[#allocation3 + $0x620] ss:$16 sps:$4 sm:$0xff]  }
  0xbe   :  { %6583 = vmatpush1.bf16.msra.mxu0 %v10059_v31  ;;  %7158 = vmatprep.subr.bf16.mxu1 %v10070_v34  ;;  %v11941_v31 = vcombine.high %v11930_v22, %v11930_v22  ;;  %v10155_v34 = vld [vmem:[#allocation3 + $0x24c] ss:$16 sps:$4 sm:$0xff]  }
  0xbf   :  { %6584 = vmatprep.subr.bf16.mxu0 %v10067_v33  ;;  %v10152_v33 = vld [vmem:[#allocation3 + $0x644] ss:$16 sps:$4 sm:$0xff]  }
  0xc1   :  { %7159 = vmatpush1.bf16.msra.mxu1 %v10068_v36  ;;  %v10153_v36 = vld [vmem:[#allocation3 + $0x248] ss:$16 sps:$4 sm:$0xff]  }
  0xc2   :  { %6585 = vmatpush1.bf16.msra.mxu0 %v10065_v35  ;;  %7160 = vmatprep.subr.bf16.mxu1 %v10076_v38  ;;  %v10150_v35 = vld [vmem:[#allocation3 + $0x640] ss:$16 sps:$4 sm:$0xff]  }
  0xc3   :  { %6586 = vmatprep.subr.bf16.mxu0 %v10073_v37  ;;  %v10158_v37 = vld [vmem:[#allocation3 + $0x664] ss:$16 sps:$4 sm:$0xff]   ;;  %v10156_v38 = vld [vmem:[#allocation3 + $0x660] ss:$16 sps:$4 sm:$0xff]  }
  0xc5   :  { %7161 = vmatpush1.bf16.msra.mxu1 %v10074_v40  ;;  %v10164_v40 = vld [vmem:[#allocation3 + $0x684] ss:$16 sps:$4 sm:$0xff]  }
  0xc6   :  { %6587 = vmatpush1.bf16.msra.mxu0 %v10071_v39  ;;  %7162 = vmatprep.subr.bf16.mxu1 %v10082_v42  ;;  %v10159_v39 = vld [vmem:[#allocation3 + $0x268] ss:$16 sps:$4 sm:$0xff]   ;;  %v10162_v42 = vld [vmem:[#allocation3 + $0x680] ss:$16 sps:$4 sm:$0xff]  }
  0xc7   :  { %6588 = vmatprep.subr.bf16.mxu0 %v10079_v41  ;;  %v10167_v41 = vld [vmem:[#allocation3 + $0x28c] ss:$16 sps:$4 sm:$0xff]  }
  0xc9   :  { %7163 = vmatpush1.bf16.msra.mxu1 %v10080_v45  ;;  %v10173_v45 = vld [vmem:[#allocation3 + $0x2ac] ss:$16 sps:$4 sm:$0xff]  }
  0xca   :  { %6589 = vmatpush1.bf16.msra.mxu0 %v10077_v44  ;;  %7164 = vmatprep.subr.bf16.mxu1 %v10088_v47  ;;  %v10170_v44 = vld [vmem:[#allocation3 + $0x6a4] ss:$16 sps:$4 sm:$0xff]   ;;  %v10171_v47 = vld [vmem:[#allocation3 + $0x2a8] ss:$16 sps:$4 sm:$0xff]  }
  0xcb   :  { %6590 = vmatprep.subr.bf16.mxu0 %v10085_v46  ;;  %v10168_v46 = vld [vmem:[#allocation3 + $0x6a0] ss:$16 sps:$4 sm:$0xff]  }
  0xcd   :  { %7165 = vmatpush1.bf16.msra.mxu1 %v10086_v50  ;;  %v10179_v50 = vld [vmem:[#allocation3 + $0x2cc] ss:$16 sps:$4 sm:$0xff]  }
  0xce   :  { %6591 = vmatpush1.bf16.msra.mxu0 %v10083_v48  ;;  %7166 = vmatprep.subr.bf16.mxu1 %v10094_v52  ;;  %v10176_v48 = vld [vmem:[#allocation3 + $0x6c4] ss:$16 sps:$4 sm:$0xff]   ;;  %v10177_v52 = vld [vmem:[#allocation3 + $0x2c8] ss:$16 sps:$4 sm:$0xff]  }
  0xcf   :  { %6592 = vmatprep.subr.bf16.mxu0 %v10091_v51  ;;  %v10174_v51 = vld [vmem:[#allocation3 + $0x6c0] ss:$16 sps:$4 sm:$0xff]  }
  0xd1   :  { %7167 = vmatpush1.bf16.msra.mxu1 %v10092_v54  ;;  %v10185_v54 = vld [vmem:[#allocation3 + $0x2ec] ss:$16 sps:$4 sm:$0xff]  }
  0xd2   :  { %6593 = vmatpush1.bf16.msra.mxu0 %v10089_v53  ;;  %7168 = vmatprep.subr.bf16.mxu1 %v10100_v56  ;;  %v10182_v53 = vld [vmem:[#allocation3 + $0x6e4] ss:$16 sps:$4 sm:$0xff]   ;;  %v10183_v56 = vld [vmem:[#allocation3 + $0x2e8] ss:$16 sps:$4 sm:$0xff]  }
  0xd3   :  { %6594 = vmatprep.subr.bf16.mxu0 %v10097_v55  ;;  %v10180_v55 = vld [vmem:[#allocation3 + $0x6e0] ss:$16 sps:$4 sm:$0xff]  }
  0xd5   :  { %7169 = vmatpush1.bf16.msra.mxu1 %v10098_v58  ;;  %v10191_v58 = vld [vmem:[#allocation3 + $0x30c] ss:$16 sps:$4 sm:$0xff]  }
  0xd6   :  { %6595 = vmatpush1.bf16.msra.mxu0 %v10095_v57  ;;  %7170 = vmatprep.subr.bf16.mxu1 %v10106_v60  ;;  %v10188_v57 = vld [vmem:[#allocation3 + $0x704] ss:$16 sps:$4 sm:$0xff]   ;;  %v10189_v60 = vld [vmem:[#allocation3 + $0x308] ss:$16 sps:$4 sm:$0xff]  }
  0xd7   :  { %6596 = vmatprep.subr.bf16.mxu0 %v10103_v59  ;;  %v10186_v59 = vld [vmem:[#allocation3 + $0x700] ss:$16 sps:$4 sm:$0xff]  }
  0xd9   :  { %7171 = vmatpush1.bf16.msra.mxu1 %v10104_v62  ;;  %v10197_v62 = vld [vmem:[#allocation3 + $0x32c] ss:$16 sps:$4 sm:$0xff]  }
  0xda   :  { %6597 = vmatpush1.bf16.msra.mxu0 %v10101_v61  ;;  %7172 = vmatprep.subr.bf16.mxu1 %v10112_v1  ;;  %v10194_v61 = vld [vmem:[#allocation3 + $0x724] ss:$16 sps:$4 sm:$0xff]   ;;  %v10195_v1 = vld [vmem:[#allocation3 + $0x328] ss:$16 sps:$4 sm:$0xff]  }
  0xdb   :  { %6598 = vmatprep.subr.bf16.mxu0 %v10109_v63  ;;  %v10192_v63 = vld [vmem:[#allocation3 + $0x720] ss:$16 sps:$4 sm:$0xff]  }
  0xdd   :  { %7173 = vmatpush1.bf16.msra.mxu1 %v10110_v3  ;;  %v10203_v3 = vld [vmem:[#allocation3 + $0x34c] ss:$16 sps:$4 sm:$0xff]  }
  0xde   :  { %6599 = vmatpush1.bf16.msra.mxu0 %v10107_v2  ;;  %7174 = vmatprep.subr.bf16.mxu1 %v10118_v5  ;;  %v10200_v2 = vld [vmem:[#allocation3 + $0x744] ss:$16 sps:$4 sm:$0xff]   ;;  %v10201_v5 = vld [vmem:[#allocation3 + $0x348] ss:$16 sps:$4 sm:$0xff]  }
  0xdf   :  { %6600 = vmatprep.subr.bf16.mxu0 %v10115_v4  ;;  %v10198_v4 = vld [vmem:[#allocation3 + $0x740] ss:$16 sps:$4 sm:$0xff]  }
  0xe1   :  { %7175 = vmatpush1.bf16.msra.mxu1 %v10116_v7  ;;  %v10209_v7 = vld [vmem:[#allocation3 + $0x36c] ss:$16 sps:$4 sm:$0xff]  }
  0xe2   :  { %6601 = vmatpush1.bf16.msra.mxu0 %v10113_v6  ;;  %7176 = vmatprep.subr.bf16.mxu1 %v10124_v9  ;;  %v10206_v6 = vld [vmem:[#allocation3 + $0x764] ss:$16 sps:$4 sm:$0xff]   ;;  %v10207_v9 = vld [vmem:[#allocation3 + $0x368] ss:$16 sps:$4 sm:$0xff]  }
  0xe3   :  { %6602 = vmatprep.subr.bf16.mxu0 %v10121_v8  ;;  %v10204_v8 = vld [vmem:[#allocation3 + $0x760] ss:$16 sps:$4 sm:$0xff]  }
  0xe5   :  { %7177 = vmatpush1.bf16.msra.mxu1 %v10122_v13  ;;  %v10215_v13 = vld [vmem:[#allocation3 + $0x38c] ss:$16 sps:$4 sm:$0xff]  }
  0xe6   :  { %6603 = vmatpush1.bf16.msra.mxu0 %v10119_v11  ;;  %7178 = vmatprep.subr.bf16.mxu1 %v10130_v15  ;;  %v10212_v11 = vld [vmem:[#allocation3 + $0x784] ss:$16 sps:$4 sm:$0xff]   ;;  %v10213_v15 = vld [vmem:[#allocation3 + $0x388] ss:$16 sps:$4 sm:$0xff]  }
  0xe7   :  { %6604 = vmatprep.subr.bf16.mxu0 %v10127_v14  ;;  %v10210_v14 = vld [vmem:[#allocation3 + $0x780] ss:$16 sps:$4 sm:$0xff]  }
  0xe9   :  { %7179 = vmatpush1.bf16.msra.mxu1 %v10128_v17  ;;  %v10221_v17 = vld [vmem:[#allocation3 + $0x3ac] ss:$16 sps:$4 sm:$0xff]  }
  0xea   :  { %6605 = vmatpush1.bf16.msra.mxu0 %v10125_v16  ;;  %7180 = vmatprep.subr.bf16.mxu1 %v10136_v20  ;;  %v10218_v16 = vld [vmem:[#allocation3 + $0x7a4] ss:$16 sps:$4 sm:$0xff]   ;;  %v10219_v20 = vld [vmem:[#allocation3 + $0x3a8] ss:$16 sps:$4 sm:$0xff]  }
  0xeb   :  { %6606 = vmatprep.subr.bf16.mxu0 %v10133_v19  ;;  %v10216_v19 = vld [vmem:[#allocation3 + $0x7a0] ss:$16 sps:$4 sm:$0xff]  }
  0xed   :  { %7181 = vmatpush1.bf16.msra.mxu1 %v10134_v23  ;;  %v10227_v23 = vld [vmem:[#allocation3 + $0x3cc] ss:$16 sps:$4 sm:$0xff]  }
  0xee   :  { %6607 = vmatpush1.bf16.msra.mxu0 %v10131_v21  ;;  %7191 = vmatprep.subr.bf16.mxu1 %v10143_v25  ;;  %v10224_v21 = vld [vmem:[#allocation3 + $0x7c4] ss:$16 sps:$4 sm:$0xff]   ;;  %v10222_v25 = vld [vmem:[#allocation3 + $0x7c0] ss:$16 sps:$4 sm:$0xff]  }
  0xef   :  { %6617 = vmatprep.subr.bf16.mxu0 %v10140_v24  ;;  %v11950_v24 = vld [vmem:[%s12243_s0 + $0x8] sm:$0xff] }
  0xf0   :  { %7183 = vmatmul.mubr.bf16.vlgmr.msra.gmra.mrb[4].mxu1 %v11921_v12  ;;  %v10161_v12 = vld [vmem:[#allocation3 + $0x26c] ss:$16 sps:$4 sm:$0xff]  }
  0xf1   :  { %6609 = vmatmul.mubr.bf16.vlgmr.msra.gmra.mrb[0].mxu0 %v11937_v27  ;;  %7192 = vmatpush1.bf16.msra.mxu1 %v10141_v28  ;;  %v10230_v28 = vld [vmem:[#allocation3 + $0x7e4] ss:$16 sps:$4 sm:$0xff]  }
  0xf2   :  { %6618 = vmatpush1.bf16.msra.mxu0 %v10138_v26  ;;  %7193 = vmatprep.subr.bf16.mxu1 %v10149_v30  ;;  %v10225_v26 = vld [vmem:[#allocation3 + $0x3c8] ss:$16 sps:$4 sm:$0xff]   ;;  %v11954_v30 = vrot.slane %v11950_v24, %v11907_v49 }
  0xf3   :  { %6619 = vmatprep.subr.bf16.mxu0 %v10146_v29  ;;  %6649 = vmatprep.mubr.bf16.mxu0 %v11941_v31  ;;  %v10233_v29 = vld [vmem:[#allocation3 + $0x3ec] ss:$16 sps:$4 sm:$0xff]  }
  0xf4   :  { %7223 = vmatprep.mubr.bf16.mxu1 %v11914_v0  ;;  %v10165_v0 = vld [vmem:[#allocation3 + $0x288] ss:$16 sps:$4 sm:$0xff]  }
  0xf5   :  { %7194 = vmatpush1.bf16.msra.mxu1 %v10147_v10  ;;  %v10231_v10 = vld [vmem:[#allocation3 + $0x3e8] ss:$16 sps:$4 sm:$0xff]  }
  0xf6   :  { %6620 = vmatpush1.bf16.msra.mxu0 %v10144_v32  ;;  %7195 = vmatprep.subr.bf16.mxu1 %v10155_v34  ;;  %v10228_v32 = vld [vmem:[#allocation3 + $0x7e0] ss:$16 sps:$4 sm:$0xff]   ;;  %v10239_v34 = vld [vmem:[#allocation3 + $0x40c] ss:$16 sps:$4 sm:$0xff]  }
  0xf7   :  { %6621 = vmatprep.subr.bf16.mxu0 %v10152_v33  ;;  %v10236_v33 = vld [vmem:[#allocation3 + $0x804] ss:$16 sps:$4 sm:$0xff]  }
  0xf9   :  { %7196 = vmatpush1.bf16.msra.mxu1 %v10153_v36  ;;  %v11960_v36 = vcombine.high %v11937_v27, %v11937_v27 }
  0xfa   :  { %6622 = vmatpush1.bf16.msra.mxu0 %v10150_v35  ;;  %7197 = vmatprep.subr.bf16.mxu1 %v10161_v12  ;;  %v1210_v35 = vcombine.high %v11954_v30, %v11954_v30  ;;  %v10237_v12 = vld [vmem:[#allocation3 + $0x408] ss:$16 sps:$4 sm:$0xff]  }
  0xfb   :  { %6623 = vmatprep.subr.bf16.mxu0 %v10158_v37  ;;  %v10234_v37 = vld [vmem:[#allocation3 + $0x800] ss:$16 sps:$4 sm:$0xff]  }
  0xfd   :  { %7198 = vmatpush1.bf16.msra.mxu1 %v10159_v39  ;;  %v10245_v39 = vld [vmem:[#allocation3 + $0x42c] ss:$16 sps:$4 sm:$0xff]  }
  0xfe   :  { %6624 = vmatpush1.bf16.msra.mxu0 %v10156_v38  ;;  %7199 = vmatprep.subr.bf16.mxu1 %v10167_v41  ;;  %v10242_v38 = vld [vmem:[#allocation3 + $0x824] ss:$16 sps:$4 sm:$0xff]   ;;  %v10240_v41 = vld [vmem:[#allocation3 + $0x820] ss:$16 sps:$4 sm:$0xff]  }
  0xff   :  { %6625 = vmatprep.subr.bf16.mxu0 %v10164_v40  ;;  %v11963_v40 = vrot.slane %v1210_v35, %v11907_v49  ;;  %v10323_v35 = vld [vmem:[#allocation3 + $0x5cc] ss:$16 sps:$4 sm:$0xff]  }
 0x101   :  { %7200 = vmatpush1.bf16.msra.mxu1 %v10165_v0  ;;  %v10248_v0 = vld [vmem:[#allocation3 + $0x844] ss:$16 sps:$4 sm:$0xff]  }
 0x102   :  { %6626 = vmatpush1.bf16.msra.mxu0 %v10162_v42  ;;  %7201 = vmatprep.subr.bf16.mxu1 %v10173_v45  ;;  %v10243_v42 = vld [vmem:[#allocation3 + $0x428] ss:$16 sps:$4 sm:$0xff]   ;;  %v10246_v45 = vld [vmem:[#allocation3 + $0x840] ss:$16 sps:$4 sm:$0xff]  }
 0x103   :  { %6627 = vmatprep.subr.bf16.mxu0 %v10170_v44  ;;  %v10251_v44 = vld [vmem:[#allocation3 + $0x44c] ss:$16 sps:$4 sm:$0xff]  }
 0x105   :  { %7202 = vmatpush1.bf16.msra.mxu1 %v10171_v47  ;;  %v10254_v47 = vld [vmem:[#allocation3 + $0x864] ss:$16 sps:$4 sm:$0xff]  }
 0x106   :  { %6628 = vmatpush1.bf16.msra.mxu0 %v10168_v46  ;;  %7203 = vmatprep.subr.bf16.mxu1 %v10179_v50  ;;  %v10249_v46 = vld [vmem:[#allocation3 + $0x448] ss:$16 sps:$4 sm:$0xff]  }
 0x107   :  { %6629 = vmatprep.subr.bf16.mxu0 %v10176_v48  ;;  %v10252_v48 = vld [vmem:[#allocation3 + $0x860] ss:$16 sps:$4 sm:$0xff]   ;;  %v10255_v50 = vld [vmem:[#allocation3 + $0x468] ss:$16 sps:$4 sm:$0xff]  }
 0x109   :  { %7204 = vmatpush1.bf16.msra.mxu1 %v10177_v52  ;;  %v10263_v52 = vld [vmem:[#allocation3 + $0x48c] ss:$16 sps:$4 sm:$0xff]  }
 0x10a   :  { %6630 = vmatpush1.bf16.msra.mxu0 %v10174_v51  ;;  %7205 = vmatprep.subr.bf16.mxu1 %v10185_v54  ;;  %v10260_v51 = vld [vmem:[#allocation3 + $0x884] ss:$16 sps:$4 sm:$0xff]  }
 0x10b   :  { %6631 = vmatprep.subr.bf16.mxu0 %v10182_v53  ;;  %v10258_v53 = vld [vmem:[#allocation3 + $0x880] ss:$16 sps:$4 sm:$0xff]   ;;  %v10266_v54 = vld [vmem:[#allocation3 + $0x8a4] ss:$16 sps:$4 sm:$0xff]  }
 0x10d   :  { %7206 = vmatpush1.bf16.msra.mxu1 %v10183_v56  ;;  %v10264_v56 = vld [vmem:[#allocation3 + $0x8a0] ss:$16 sps:$4 sm:$0xff]  }
 0x10e   :  { %6632 = vmatpush1.bf16.msra.mxu0 %v10180_v55  ;;  %7207 = vmatprep.subr.bf16.mxu1 %v10191_v58  ;;  %v10269_v55 = vld [vmem:[#allocation3 + $0x4ac] ss:$16 sps:$4 sm:$0xff]   ;;  %v10272_v58 = vld [vmem:[#allocation3 + $0x8c4] ss:$16 sps:$4 sm:$0xff]  }
 0x10f   :  { %6633 = vmatprep.subr.bf16.mxu0 %v10188_v57  ;;  %v10267_v57 = vld [vmem:[#allocation3 + $0x4a8] ss:$16 sps:$4 sm:$0xff]  }
 0x111   :  { %7208 = vmatpush1.bf16.msra.mxu1 %v10189_v60  ;;  %v10270_v60 = vld [vmem:[#allocation3 + $0x8c0] ss:$16 sps:$4 sm:$0xff]  }
 0x112   :  { %6634 = vmatpush1.bf16.msra.mxu0 %v10186_v59  ;;  %7209 = vmatprep.subr.bf16.mxu1 %v10197_v62  ;;  %v10275_v59 = vld [vmem:[#allocation3 + $0x4cc] ss:$16 sps:$4 sm:$0xff]   ;;  %v10278_v62 = vld [vmem:[#allocation3 + $0x8e4] ss:$16 sps:$4 sm:$0xff]  }
 0x113   :  { %6635 = vmatprep.subr.bf16.mxu0 %v10194_v61  ;;  %v10273_v61 = vld [vmem:[#allocation3 + $0x4c8] ss:$16 sps:$4 sm:$0xff]  }
 0x115   :  { %7210 = vmatpush1.bf16.msra.mxu1 %v10195_v1  ;;  %v10276_v1 = vld [vmem:[#allocation3 + $0x8e0] ss:$16 sps:$4 sm:$0xff]  }
 0x116   :  { %6636 = vmatpush1.bf16.msra.mxu0 %v10192_v63  ;;  %7211 = vmatprep.subr.bf16.mxu1 %v10203_v3  ;;  %v10281_v63 = vld [vmem:[#allocation3 + $0x4ec] ss:$16 sps:$4 sm:$0xff]   ;;  %v10284_v3 = vld [vmem:[#allocation3 + $0x904] ss:$16 sps:$4 sm:$0xff]  }
 0x117   :  { %6637 = vmatprep.subr.bf16.mxu0 %v10200_v2  ;;  %v10279_v2 = vld [vmem:[#allocation3 + $0x4e8] ss:$16 sps:$4 sm:$0xff]  }
 0x119   :  { %7212 = vmatpush1.bf16.msra.mxu1 %v10201_v5  ;;  %v10282_v5 = vld [vmem:[#allocation3 + $0x900] ss:$16 sps:$4 sm:$0xff]  }
 0x11a   :  { %6638 = vmatpush1.bf16.msra.mxu0 %v10198_v4  ;;  %7213 = vmatprep.subr.bf16.mxu1 %v10209_v7  ;;  %v10287_v4 = vld [vmem:[#allocation3 + $0x50c] ss:$16 sps:$4 sm:$0xff]   ;;  %v10290_v7 = vld [vmem:[#allocation3 + $0x924] ss:$16 sps:$4 sm:$0xff]  }
 0x11b   :  { %6639 = vmatprep.subr.bf16.mxu0 %v10206_v6  ;;  %v10285_v6 = vld [vmem:[#allocation3 + $0x508] ss:$16 sps:$4 sm:$0xff]  }
 0x11d   :  { %7214 = vmatpush1.bf16.msra.mxu1 %v10207_v9  ;;  %v10288_v9 = vld [vmem:[#allocation3 + $0x920] ss:$16 sps:$4 sm:$0xff]  }
 0x11e   :  { %6640 = vmatpush1.bf16.msra.mxu0 %v10204_v8  ;;  %7215 = vmatprep.subr.bf16.mxu1 %v10215_v13  ;;  %v10293_v8 = vld [vmem:[#allocation3 + $0x52c] ss:$16 sps:$4 sm:$0xff]   ;;  %v10296_v13 = vld [vmem:[#allocation3 + $0x944] ss:$16 sps:$4 sm:$0xff]  }
 0x11f   :  { %6641 = vmatprep.subr.bf16.mxu0 %v10212_v11  ;;  %v10291_v11 = vld [vmem:[#allocation3 + $0x528] ss:$16 sps:$4 sm:$0xff]  }
 0x121   :  { %7216 = vmatpush1.bf16.msra.mxu1 %v10213_v15  ;;  %v10294_v15 = vld [vmem:[#allocation3 + $0x940] ss:$16 sps:$4 sm:$0xff]  }
 0x122   :  { %6642 = vmatpush1.bf16.msra.mxu0 %v10210_v14  ;;  %7217 = vmatprep.subr.bf16.mxu1 %v10221_v17  ;;  %v10299_v14 = vld [vmem:[#allocation3 + $0x54c] ss:$16 sps:$4 sm:$0xff]   ;;  %v10302_v17 = vld [vmem:[#allocation3 + $0x964] ss:$16 sps:$4 sm:$0xff]  }
 0x123   :  { %6643 = vmatprep.subr.bf16.mxu0 %v10218_v16  ;;  %v10297_v16 = vld [vmem:[#allocation3 + $0x548] ss:$16 sps:$4 sm:$0xff]  }
 0x125   :  { %7218 = vmatpush1.bf16.msra.mxu1 %v10219_v20  ;;  %v10300_v20 = vld [vmem:[#allocation3 + $0x960] ss:$16 sps:$4 sm:$0xff]  }
 0x126   :  { %6644 = vmatpush1.bf16.msra.mxu0 %v10216_v19  ;;  %7219 = vmatprep.subr.bf16.mxu1 %v10227_v23  ;;  %v10305_v19 = vld [vmem:[#allocation3 + $0x56c] ss:$16 sps:$4 sm:$0xff]   ;;  %v10308_v23 = vld [vmem:[#allocation3 + $0x984] ss:$16 sps:$4 sm:$0xff]  }
 0x127   :  { %6645 = vmatprep.subr.bf16.mxu0 %v10224_v21  ;;  %v10303_v21 = vld [vmem:[#allocation3 + $0x568] ss:$16 sps:$4 sm:$0xff]  }
 0x129   :  { %7220 = vmatpush1.bf16.msra.mxu1 %v10225_v26  ;;  %v10306_v26 = vld [vmem:[#allocation3 + $0x980] ss:$16 sps:$4 sm:$0xff]  }
 0x12a   :  { %6646 = vmatpush1.bf16.msra.mxu0 %v10222_v25  ;;  %7221 = vmatprep.subr.bf16.mxu1 %v10233_v29  ;;  %v10311_v25 = vld [vmem:[#allocation3 + $0x58c] ss:$16 sps:$4 sm:$0xff]   ;;  %v10314_v29 = vld [vmem:[#allocation3 + $0x9a4] ss:$16 sps:$4 sm:$0xff]  }
 0x12b   :  { %6647 = vmatprep.subr.bf16.mxu0 %v10230_v28  ;;  %v10309_v28 = vld [vmem:[#allocation3 + $0x588] ss:$16 sps:$4 sm:$0xff]  }
 0x12d   :  { %7222 = vmatpush1.bf16.msra.mxu1 %v10231_v10  ;;  %v10312_v10 = vld [vmem:[#allocation3 + $0x9a0] ss:$16 sps:$4 sm:$0xff]  }
 0x12e   :  { %6648 = vmatpush1.bf16.msra.mxu0 %v10228_v32  ;;  %7232 = vmatprep.subr.bf16.mxu1 %v10239_v34  ;;  %v10317_v32 = vld [vmem:[#allocation3 + $0x5ac] ss:$16 sps:$4 sm:$0xff]   ;;  %v10320_v34 = vld [vmem:[#allocation3 + $0x9c4] ss:$16 sps:$4 sm:$0xff]  }
 0x12f   :  { %6658 = vmatprep.subr.bf16.mxu0 %v10236_v33  ;;  %v10315_v33 = vld [vmem:[#allocation3 + $0x5a8] ss:$16 sps:$4 sm:$0xff]  }
 0x130   :  { %7224 = vmatmul.mubr.bf16.vlgmr.msra.gmra.mrb[4].mxu1 %v11927_v18  ;;  %v10257_v18 = vld [vmem:[#allocation3 + $0x46c] ss:$16 sps:$4 sm:$0xff]  }
 0x131   :  { %6650 = vmatmul.mubr.bf16.vlgmr.msra.gmra.mrb[0].mxu0 %v11960_v36  ;;  %7233 = vmatpush1.bf16.msra.mxu1 %v10237_v12  ;;  %v10321_v12 = vld [vmem:[#allocation3 + $0x5c8] ss:$16 sps:$4 sm:$0xff]  }
 0x132   :  { %6659 = vmatpush1.bf16.msra.mxu0 %v10234_v37  ;;  %7234 = vmatprep.subr.bf16.mxu1 %v10245_v39  ;;  %v10318_v37 = vld [vmem:[#allocation3 + $0x9c0] ss:$16 sps:$4 sm:$0xff]   ;;  %v10329_v39 = vld [vmem:[#allocation3 + $0x5ec] ss:$16 sps:$4 sm:$0xff]  }
 0x133   :  { %6660 = vmatprep.subr.bf16.mxu0 %v10242_v38  ;;  %6690 = vmatprep.mubr.bf16.mxu0 %v11963_v40  ;;  %v10326_v38 = vld [vmem:[#allocation3 + $0x9e4] ss:$16 sps:$4 sm:$0xff]  }
 0x134   :  { %7264 = vmatprep.mubr.bf16.mxu1 %v11930_v22  ;;  %v10261_v22 = vld [vmem:[#allocation3 + $0x488] ss:$16 sps:$4 sm:$0xff]  }
 0x135   :  { %7235 = vmatpush1.bf16.msra.mxu1 %v10243_v42  ;;  %v10327_v42 = vld [vmem:[#allocation3 + $0x5e8] ss:$16 sps:$4 sm:$0xff]  }
 0x136   :  { %6661 = vmatpush1.bf16.msra.mxu0 %v10240_v41  ;;  %7236 = vmatprep.subr.bf16.mxu1 %v10251_v44  ;;  %v10324_v41 = vld [vmem:[#allocation3 + $0x9e0] ss:$16 sps:$4 sm:$0xff]   ;;  %v10335_v44 = vld [vmem:[#allocation3 + $0x60c] ss:$16 sps:$4 sm:$0xff]  }
 0x137   :  { %6662 = vmatprep.subr.bf16.mxu0 %v10248_v0  ;;  %v10332_v0 = vld [vmem:[#allocation3 + $0xa04] ss:$16 sps:$4 sm:$0xff]  }
 0x139   :  { %7237 = vmatpush1.bf16.msra.mxu1 %v10249_v46  ;;  %v10330_v46 = vld [vmem:[#allocation3 + $0xa00] ss:$16 sps:$4 sm:$0xff]  }
 0x13a   :  { %6663 = vmatpush1.bf16.msra.mxu0 %v10246_v45  ;;  %7238 = vmatprep.subr.bf16.mxu1 %v10257_v18  ;;  %v11971_v45 = vrot.slane %v11954_v30, %v11907_v49  ;;  %v10338_v18 = vld [vmem:[#allocation3 + $0xa24] ss:$16 sps:$4 sm:$0xff]   ;;  %v10336_v30 = vld [vmem:[#allocation3 + $0xa20] ss:$16 sps:$4 sm:$0xff]  }
 0x13b   :  { %6664 = vmatprep.subr.bf16.mxu0 %v10254_v47  ;;  %v10333_v47 = vld [vmem:[#allocation3 + $0x608] ss:$16 sps:$4 sm:$0xff]  }
 0x13d   :  { %7239 = vmatpush1.bf16.msra.mxu1 %v10255_v50  ;;  %v11975_v50 = vcombine.high %v11963_v40, %v11963_v40 }
 0x13e   :  { %6665 = vmatpush1.bf16.msra.mxu0 %v10252_v48  ;;  %7240 = vmatprep.subr.bf16.mxu1 %v10263_v52  ;;  %v10341_v48 = vld [vmem:[#allocation3 + $0x62c] ss:$16 sps:$4 sm:$0xff]   ;;  %v10344_v52 = vld [vmem:[#allocation3 + $0xa44] ss:$16 sps:$4 sm:$0xff]  }
 0x13f   :  { %6666 = vmatprep.subr.bf16.mxu0 %v10260_v51  ;;  %v10339_v51 = vld [vmem:[#allocation3 + $0x628] ss:$16 sps:$4 sm:$0xff]  }
 0x141   :  { %7241 = vmatpush1.bf16.msra.mxu1 %v10261_v22  ;;  %v10342_v22 = vld [vmem:[#allocation3 + $0xa40] ss:$16 sps:$4 sm:$0xff]  }
 0x142   :  { %6667 = vmatpush1.bf16.msra.mxu0 %v10258_v53  ;;  %7242 = vmatprep.subr.bf16.mxu1 %v10269_v55  ;;  %v10347_v53 = vld [vmem:[#allocation3 + $0x64c] ss:$16 sps:$4 sm:$0xff]   ;;  %v10350_v55 = vld [vmem:[#allocation3 + $0xa64] ss:$16 sps:$4 sm:$0xff]  }
 0x143   :  { %6668 = vmatprep.subr.bf16.mxu0 %v10266_v54  ;;  %v10345_v54 = vld [vmem:[#allocation3 + $0x648] ss:$16 sps:$4 sm:$0xff]  }
 0x145   :  { %7243 = vmatpush1.bf16.msra.mxu1 %v10267_v57  ;;  %v10351_v57 = vld [vmem:[#allocation3 + $0x668] ss:$16 sps:$4 sm:$0xff]  }
 0x146   :  { %6669 = vmatpush1.bf16.msra.mxu0 %v10264_v56  ;;  %7244 = vmatprep.subr.bf16.mxu1 %v10275_v59  ;;  %v10348_v56 = vld [vmem:[#allocation3 + $0xa60] ss:$16 sps:$4 sm:$0xff]   ;;  %v10359_v59 = vld [vmem:[#allocation3 + $0x68c] ss:$16 sps:$4 sm:$0xff]  }
 0x147   :  { %6670 = vmatprep.subr.bf16.mxu0 %v10272_v58  ;;  %v10356_v58 = vld [vmem:[#allocation3 + $0xa84] ss:$16 sps:$4 sm:$0xff]  }
 0x149   :  { %7245 = vmatpush1.bf16.msra.mxu1 %v10273_v61  ;;  %v10362_v61 = vld [vmem:[#allocation3 + $0xaa4] ss:$16 sps:$4 sm:$0xff]  }
 0x14a   :  { %6671 = vmatpush1.bf16.msra.mxu0 %v10270_v60  ;;  %7246 = vmatprep.subr.bf16.mxu1 %v10281_v63  ;;  %v10354_v60 = vld [vmem:[#allocation3 + $0xa80] ss:$16 sps:$4 sm:$0xff]  }
 0x14b   :  { %6672 = vmatprep.subr.bf16.mxu0 %v10278_v62  ;;  %v10365_v62 = vld [vmem:[#allocation3 + $0x6ac] ss:$16 sps:$4 sm:$0xff]   ;;  %v10360_v63 = vld [vmem:[#allocation3 + $0xaa0] ss:$16 sps:$4 sm:$0xff]  }
 0x14d   :  { %7247 = vmatpush1.bf16.msra.mxu1 %v10279_v2  ;;  %v10368_v2 = vld [vmem:[#allocation3 + $0xac4] ss:$16 sps:$4 sm:$0xff]  }
 0x14e   :  { %6673 = vmatpush1.bf16.msra.mxu0 %v10276_v1  ;;  %7248 = vmatprep.subr.bf16.mxu1 %v10287_v4  ;;  %v10363_v1 = vld [vmem:[#allocation3 + $0x6a8] ss:$16 sps:$4 sm:$0xff]  }
 0x14f   :  { %6674 = vmatprep.subr.bf16.mxu0 %v10284_v3  ;;  %v10371_v3 = vld [vmem:[#allocation3 + $0x6cc] ss:$16 sps:$4 sm:$0xff]  }
 0x151   :  { %7249 = vmatpush1.bf16.msra.mxu1 %v10285_v6 }
 0x152   :  { %6675 = vmatpush1.bf16.msra.mxu0 %v10282_v5  ;;  %7250 = vmatprep.subr.bf16.mxu1 %v10293_v8  ;;  %v10369_v8 = vld [vmem:[#allocation3 + $0x6c8] ss:$16 sps:$4 sm:$0xff]  }
 0x153   :  { %6676 = vmatprep.subr.bf16.mxu0 %v10290_v7  ;;  %v10366_v7 = vld [vmem:[#allocation3 + $0xac0] ss:$16 sps:$4 sm:$0xff]  }
 0x155   :  { %7251 = vmatpush1.bf16.msra.mxu1 %v10291_v11  ;;  %v10374_v11 = vld [vmem:[#allocation3 + $0xae4] ss:$16 sps:$4 sm:$0xff]  }
 0x156   :  { %6677 = vmatpush1.bf16.msra.mxu0 %v10288_v9  ;;  %7252 = vmatprep.subr.bf16.mxu1 %v10299_v14  ;;  %v10372_v14 = vld [vmem:[#allocation3 + $0xae0] ss:$16 sps:$4 sm:$0xff]  }
 0x157   :  { %6678 = vmatprep.subr.bf16.mxu0 %v10296_v13  ;;  %v10377_v13 = vld [vmem:[#allocation3 + $0x6ec] ss:$16 sps:$4 sm:$0xff]  }
 0x159   :  { %7253 = vmatpush1.bf16.msra.mxu1 %v10297_v16  ;;  %v10380_v16 = vld [vmem:[#allocation3 + $0xb04] ss:$16 sps:$4 sm:$0xff]  }
 0x15a   :  { %6679 = vmatpush1.bf16.msra.mxu0 %v10294_v15  ;;  %7254 = vmatprep.subr.bf16.mxu1 %v10305_v19  ;;  %v10375_v15 = vld [vmem:[#allocation3 + $0x6e8] ss:$16 sps:$4 sm:$0xff]   ;;  %v10378_v19 = vld [vmem:[#allocation3 + $0xb00] ss:$16 sps:$4 sm:$0xff]  }
 0x15b   :  { %6680 = vmatprep.subr.bf16.mxu0 %v10302_v17  ;;  %v10383_v17 = vld [vmem:[#allocation3 + $0x70c] ss:$16 sps:$4 sm:$0xff]  }
 0x15d   :  { %7255 = vmatpush1.bf16.msra.mxu1 %v10303_v21  ;;  %v10386_v21 = vld [vmem:[#allocation3 + $0xb24] ss:$16 sps:$4 sm:$0xff]  }
 0x15e   :  { %6681 = vmatpush1.bf16.msra.mxu0 %v10300_v20  ;;  %7256 = vmatprep.subr.bf16.mxu1 %v10311_v25  ;;  %v10381_v20 = vld [vmem:[#allocation3 + $0x708] ss:$16 sps:$4 sm:$0xff]   ;;  %v10384_v25 = vld [vmem:[#allocation3 + $0xb20] ss:$16 sps:$4 sm:$0xff]  }
 0x15f   :  { %6682 = vmatprep.subr.bf16.mxu0 %v10308_v23  ;;  %v10389_v23 = vld [vmem:[#allocation3 + $0x72c] ss:$16 sps:$4 sm:$0xff]  }
 0x161   :  { %7257 = vmatpush1.bf16.msra.mxu1 %v10309_v28  ;;  %v10392_v28 = vld [vmem:[#allocation3 + $0xb44] ss:$16 sps:$4 sm:$0xff]  }
 0x162   :  { %6683 = vmatpush1.bf16.msra.mxu0 %v10306_v26  ;;  %7258 = vmatprep.subr.bf16.mxu1 %v10317_v32  ;;  %v10387_v26 = vld [vmem:[#allocation3 + $0x728] ss:$16 sps:$4 sm:$0xff]   ;;  %v10390_v32 = vld [vmem:[#allocation3 + $0xb40] ss:$16 sps:$4 sm:$0xff]  }
 0x163   :  { %6684 = vmatprep.subr.bf16.mxu0 %v10314_v29  ;;  %v10395_v29 = vld [vmem:[#allocation3 + $0x74c] ss:$16 sps:$4 sm:$0xff]  }
 0x165   :  { %7259 = vmatpush1.bf16.msra.mxu1 %v10315_v33  ;;  %v10398_v33 = vld [vmem:[#allocation3 + $0xb64] ss:$16 sps:$4 sm:$0xff]  }
 0x166   :  { %6685 = vmatpush1.bf16.msra.mxu0 %v10312_v10  ;;  %7260 = vmatprep.subr.bf16.mxu1 %v10323_v35  ;;  %v10393_v10 = vld [vmem:[#allocation3 + $0x748] ss:$16 sps:$4 sm:$0xff]   ;;  %v10396_v35 = vld [vmem:[#allocation3 + $0xb60] ss:$16 sps:$4 sm:$0xff]  }
 0x167   :  { %6686 = vmatprep.subr.bf16.mxu0 %v10320_v34  ;;  %v10401_v34 = vld [vmem:[#allocation3 + $0x76c] ss:$16 sps:$4 sm:$0xff]  }
 0x169   :  { %7261 = vmatpush1.bf16.msra.mxu1 %v10321_v12  ;;  %v10404_v12 = vld [vmem:[#allocation3 + $0xb84] ss:$16 sps:$4 sm:$0xff]  }
 0x16a   :  { %6687 = vmatpush1.bf16.msra.mxu0 %v10318_v37  ;;  %7262 = vmatprep.subr.bf16.mxu1 %v10329_v39  ;;  %v10399_v37 = vld [vmem:[#allocation3 + $0x768] ss:$16 sps:$4 sm:$0xff]   ;;  %v10402_v39 = vld [vmem:[#allocation3 + $0xb80] ss:$16 sps:$4 sm:$0xff]  }
 0x16b   :  { %6688 = vmatprep.subr.bf16.mxu0 %v10326_v38  ;;  %v10407_v38 = vld [vmem:[#allocation3 + $0x78c] ss:$16 sps:$4 sm:$0xff]  }
 0x16d   :  { %7263 = vmatpush1.bf16.msra.mxu1 %v10327_v42  ;;  %v10410_v42 = vld [vmem:[#allocation3 + $0xba4] ss:$16 sps:$4 sm:$0xff]  }
 0x16e   :  { %6689 = vmatpush1.bf16.msra.mxu0 %v10324_v41  ;;  %7273 = vmatprep.subr.bf16.mxu1 %v10335_v44  ;;  %v10405_v41 = vld [vmem:[#allocation3 + $0x788] ss:$16 sps:$4 sm:$0xff]   ;;  %v10408_v44 = vld [vmem:[#allocation3 + $0xba0] ss:$16 sps:$4 sm:$0xff]  }
 0x16f   :  { %6699 = vmatprep.subr.bf16.mxu0 %v10332_v0  ;;  %v10413_v0 = vld [vmem:[#allocation3 + $0x7ac] ss:$16 sps:$4 sm:$0xff]  }
 0x170   :  { %7265 = vmatmul.mubr.bf16.vlgmr.msra.gmra.mrb[4].mxu1 %v11937_v27  ;;  %v10353_v27 = vld [vmem:[#allocation3 + $0x66c] ss:$16 sps:$4 sm:$0xff]  }
 0x171   :  { %6691 = vmatmul.mubr.bf16.vlgmr.msra.gmra.mrb[0].mxu0 %v11971_v45  ;;  %7274 = vmatpush1.bf16.msra.mxu1 %v10333_v47  ;;  %v10416_v47 = vld [vmem:[#allocation3 + $0xbc4] ss:$16 sps:$4 sm:$0xff]  }
 0x172   :  { %6700 = vmatpush1.bf16.msra.mxu0 %v10330_v46  ;;  %7275 = vmatprep.subr.bf16.mxu1 %v10341_v48  ;;  %v10411_v46 = vld [vmem:[#allocation3 + $0x7a8] ss:$16 sps:$4 sm:$0xff]   ;;  %v1195_v48 = vcombine.high %v11950_v24, %v11950_v24 }
 0x173   :  { %6701 = vmatprep.subr.bf16.mxu0 %v10338_v18  ;;  %6731 = vmatprep.mubr.bf16.mxu0 %v11975_v50  ;;  %v10419_v18 = vld [vmem:[#allocation3 + $0x7cc] ss:$16 sps:$4 sm:$0xff]  }
 0x174   :  { %7305 = vmatprep.mubr.bf16.mxu1 %v11941_v31  ;;  %v10357_v31 = vld [vmem:[#allocation3 + $0x688] ss:$16 sps:$4 sm:$0xff]  }
 0x175   :  { %7276 = vmatpush1.bf16.msra.mxu1 %v10339_v51  ;;  %v10417_v51 = vld [vmem:[#allocation3 + $0x7c8] ss:$16 sps:$4 sm:$0xff]  }
 0x176   :  { %6702 = vmatpush1.bf16.msra.mxu0 %v10336_v30  ;;  %7277 = vmatprep.subr.bf16.mxu1 %v10347_v53  ;;  %v10414_v30 = vld [vmem:[#allocation3 + $0xbc0] ss:$16 sps:$4 sm:$0xff]   ;;  %v10425_v53 = vld [vmem:[#allocation3 + $0x7ec] ss:$16 sps:$4 sm:$0xff]  }
 0x177   :  { %6703 = vmatprep.subr.bf16.mxu0 %v10344_v52  ;;  %v10422_v52 = vld [vmem:[#allocation3 + $0xbe4] ss:$16 sps:$4 sm:$0xff]  }
 0x179   :  { %7278 = vmatpush1.bf16.msra.mxu1 %v10345_v54  ;;  %v10420_v54 = vld [vmem:[#allocation3 + $0xbe0] ss:$16 sps:$4 sm:$0xff]  }
 0x17a   :  { %6704 = vmatpush1.bf16.msra.mxu0 %v10342_v22  ;;  %7279 = vmatprep.subr.bf16.mxu1 %v10353_v27  ;;  %v11988_v22 = vrot.slane %v1195_v48, %v11907_v49  ;;  %v10428_v27 = vld [vmem:[#allocation3 + $0xc04] ss:$16 sps:$4 sm:$0xff]   ;;  %v10495_v48 = vld [vmem:[#allocation3 + $0x968] ss:$16 sps:$4 sm:$0xff]  }
 0x17b   :  { %6705 = vmatprep.subr.bf16.mxu0 %v10350_v55  ;;  %v10423_v55 = vld [vmem:[#allocation3 + $0x7e8] ss:$16 sps:$4 sm:$0xff]  }
 0x17c   :  { %v1211_v24 = vcombine.high %v11988_v22, %v11988_v22 }
 0x17d   :  { %7280 = vmatpush1.bf16.msra.mxu1 %v10351_v57  ;;  %v11994_v57 = vcombine.high %v11971_v45, %v11971_v45 }
 0x17e   :  { %6706 = vmatpush1.bf16.msra.mxu0 %v10348_v56  ;;  %7281 = vmatprep.subr.bf16.mxu1 %v10359_v59  ;;  %v10431_v56 = vld [vmem:[#allocation3 + $0x80c] ss:$16 sps:$4 sm:$0xff]   ;;  %v10429_v59 = vld [vmem:[#allocation3 + $0x808] ss:$16 sps:$4 sm:$0xff]  }
 0x17f   :  { %6707 = vmatprep.subr.bf16.mxu0 %v10356_v58  ;;  %v10426_v58 = vld [vmem:[#allocation3 + $0xc00] ss:$16 sps:$4 sm:$0xff]  }
 0x181   :  { %7282 = vmatpush1.bf16.msra.mxu1 %v10357_v31  ;;  %v10437_v31 = vld [vmem:[#allocation3 + $0x82c] ss:$16 sps:$4 sm:$0xff]  }
 0x182   :  { %6708 = vmatpush1.bf16.msra.mxu0 %v10354_v60  ;;  %7283 = vmatprep.subr.bf16.mxu1 %v10365_v62  ;;  %v10434_v60 = vld [vmem:[#allocation3 + $0xc24] ss:$16 sps:$4 sm:$0xff]   ;;  %v10432_v62 = vld [vmem:[#allocation3 + $0xc20] ss:$16 sps:$4 sm:$0xff]  }
 0x183   :  { %6709 = vmatprep.subr.bf16.mxu0 %v10362_v61  ;;  %v11981_v4 = vpop.f32.mrb[0].mxu1  ;;  %v11997_v61 = vrot.slane %v1211_v24, %v11907_v49  ;;  %v10512_v24 = vld [vmem:[#allocation3 + $0xdc4] ss:$16 sps:$4 sm:$0xff]  }
 0x184   :  { %v11983_v5 = vpop.f32.mrb[1].mxu1 }
 0x185   :  { %v6532_v6 = vpop.f32.mrb[2].mxu1  ;;  %7284 = vmatpush1.bf16.msra.mxu1 %v10363_v1  ;;  %v10440_v1 = vld [vmem:[#allocation3 + $0xc44] ss:$16 sps:$4 sm:$0xff]  }
 0x186   :  { %6710 = vmatpush1.bf16.msra.mxu0 %v10360_v63  ;;  %v6533_v9 = vpop.f32.mrb[3].mxu1  ;;  %7285 = vmatprep.subr.bf16.mxu1 %v10371_v3  ;;  %v10435_v63 = vld [vmem:[#allocation3 + $0x828] ss:$16 sps:$4 sm:$0xff]   ;;  %v10438_v3 = vld [vmem:[#allocation3 + $0xc40] ss:$16 sps:$4 sm:$0xff]  }
 0x187   :  { %6711 = vmatprep.subr.bf16.mxu0 %v10368_v2  ;;  %v10443_v2 = vld [vmem:[#allocation3 + $0x84c] ss:$16 sps:$4 sm:$0xff]   ;;  %v10441_v6 = vld [vmem:[#allocation3 + $0x848] ss:$16 sps:$4 sm:$0xff]  }
 0x188   :  { %v10447_v9 = vld [vmem:[#allocation3 + $0x868] ss:$16 sps:$4 sm:$0xff]  }
 0x189   :  { %7286 = vmatpush1.bf16.msra.mxu1 %v10369_v8  ;;  %v10444_v8 = vld [vmem:[#allocation3 + $0xc60] ss:$16 sps:$4 sm:$0xff]  }
 0x18a   :  { %6712 = vmatpush1.bf16.msra.mxu0 %v10366_v7  ;;  %7287 = vmatprep.subr.bf16.mxu1 %v10377_v13  ;;  %v10446_v7 = vld [vmem:[#allocation3 + $0xc64] ss:$16 sps:$4 sm:$0xff]   ;;  %v10455_v13 = vld [vmem:[#allocation3 + $0x88c] ss:$16 sps:$4 sm:$0xff]  }
 0x18b   :  { %6713 = vmatprep.subr.bf16.mxu0 %v10374_v11  ;;  %v10452_v11 = vld [vmem:[#allocation3 + $0xc84] ss:$16 sps:$4 sm:$0xff]  }
 0x18d   :  { %7288 = vmatpush1.bf16.msra.mxu1 %v10375_v15  ;;  %v10458_v15 = vld [vmem:[#allocation3 + $0xca4] ss:$16 sps:$4 sm:$0xff]  }
 0x18e   :  { %6714 = vmatpush1.bf16.msra.mxu0 %v10372_v14  ;;  %7289 = vmatprep.subr.bf16.mxu1 %v10383_v17  ;;  %v10450_v14 = vld [vmem:[#allocation3 + $0xc80] ss:$16 sps:$4 sm:$0xff]  }
 0x18f   :  { %6715 = vmatprep.subr.bf16.mxu0 %v10380_v16  ;;  %v10461_v16 = vld [vmem:[#allocation3 + $0x8ac] ss:$16 sps:$4 sm:$0xff]   ;;  %v10456_v17 = vld [vmem:[#allocation3 + $0xca0] ss:$16 sps:$4 sm:$0xff]  }
 0x191   :  { %7290 = vmatpush1.bf16.msra.mxu1 %v10381_v20  ;;  %v10464_v20 = vld [vmem:[#allocation3 + $0xcc4] ss:$16 sps:$4 sm:$0xff]  }
 0x192   :  { %6716 = vmatpush1.bf16.msra.mxu0 %v10378_v19  ;;  %7291 = vmatprep.subr.bf16.mxu1 %v10389_v23  ;;  %v10459_v19 = vld [vmem:[#allocation3 + $0x8a8] ss:$16 sps:$4 sm:$0xff]   ;;  %v10462_v23 = vld [vmem:[#allocation3 + $0xcc0] ss:$16 sps:$4 sm:$0xff]  }
 0x193   :  { %6717 = vmatprep.subr.bf16.mxu0 %v10386_v21  ;;  %v10467_v21 = vld [vmem:[#allocation3 + $0x8cc] ss:$16 sps:$4 sm:$0xff]  }
 0x195   :  { %7292 = vmatpush1.bf16.msra.mxu1 %v10387_v26  ;;  %v10470_v26 = vld [vmem:[#allocation3 + $0xce4] ss:$16 sps:$4 sm:$0xff]  }
 0x196   :  { %6718 = vmatpush1.bf16.msra.mxu0 %v10384_v25  ;;  %7293 = vmatprep.subr.bf16.mxu1 %v10395_v29  ;;  %v10465_v25 = vld [vmem:[#allocation3 + $0x8c8] ss:$16 sps:$4 sm:$0xff]   ;;  %v10468_v29 = vld [vmem:[#allocation3 + $0xce0] ss:$16 sps:$4 sm:$0xff]  }
 0x197   :  { %6719 = vmatprep.subr.bf16.mxu0 %v10392_v28  ;;  %v10473_v28 = vld [vmem:[#allocation3 + $0x8ec] ss:$16 sps:$4 sm:$0xff]  }
 0x199   :  { %7294 = vmatpush1.bf16.msra.mxu1 %v10393_v10  ;;  %v10476_v10 = vld [vmem:[#allocation3 + $0xd04] ss:$16 sps:$4 sm:$0xff]  }
 0x19a   :  { %6720 = vmatpush1.bf16.msra.mxu0 %v10390_v32  ;;  %7295 = vmatprep.subr.bf16.mxu1 %v10401_v34  ;;  %v10471_v32 = vld [vmem:[#allocation3 + $0x8e8] ss:$16 sps:$4 sm:$0xff]   ;;  %v10474_v34 = vld [vmem:[#allocation3 + $0xd00] ss:$16 sps:$4 sm:$0xff]  }
 0x19b   :  { %6721 = vmatprep.subr.bf16.mxu0 %v10398_v33  ;;  %v10479_v33 = vld [vmem:[#allocation3 + $0x90c] ss:$16 sps:$4 sm:$0xff]  }
 0x19d   :  { %7296 = vmatpush1.bf16.msra.mxu1 %v10399_v37  ;;  %v10482_v37 = vld [vmem:[#allocation3 + $0xd24] ss:$16 sps:$4 sm:$0xff]  }
 0x19e   :  { %6722 = vmatpush1.bf16.msra.mxu0 %v10396_v35  ;;  %7297 = vmatprep.subr.bf16.mxu1 %v10407_v38  ;;  %v10477_v35 = vld [vmem:[#allocation3 + $0x908] ss:$16 sps:$4 sm:$0xff]   ;;  %v10480_v38 = vld [vmem:[#allocation3 + $0xd20] ss:$16 sps:$4 sm:$0xff]  }
 0x19f   :  { %6723 = vmatprep.subr.bf16.mxu0 %v10404_v12  ;;  %v10485_v12 = vld [vmem:[#allocation3 + $0x92c] ss:$16 sps:$4 sm:$0xff]  }
 0x1a1   :  { %7298 = vmatpush1.bf16.msra.mxu1 %v10405_v41  ;;  %v10488_v41 = vld [vmem:[#allocation3 + $0xd44] ss:$16 sps:$4 sm:$0xff]  }
 0x1a2   :  { %6724 = vmatpush1.bf16.msra.mxu0 %v10402_v39  ;;  %7299 = vmatprep.subr.bf16.mxu1 %v10413_v0  ;;  %v10483_v39 = vld [vmem:[#allocation3 + $0x928] ss:$16 sps:$4 sm:$0xff]   ;;  %v10486_v0 = vld [vmem:[#allocation3 + $0xd40] ss:$16 sps:$4 sm:$0xff]  }
 0x1a3   :  { %6725 = vmatprep.subr.bf16.mxu0 %v10410_v42  ;;  %v10491_v42 = vld [vmem:[#allocation3 + $0x94c] ss:$16 sps:$4 sm:$0xff]  }
 0x1a5   :  { %7300 = vmatpush1.bf16.msra.mxu1 %v10411_v46  ;;  %v10494_v46 = vld [vmem:[#allocation3 + $0xd64] ss:$16 sps:$4 sm:$0xff]  }
 0x1a6   :  { %6726 = vmatpush1.bf16.msra.mxu0 %v10408_v44  ;;  %7301 = vmatprep.subr.bf16.mxu1 %v10419_v18  ;;  %v10489_v44 = vld [vmem:[#allocation3 + $0x948] ss:$16 sps:$4 sm:$0xff]   ;;  %v10492_v18 = vld [vmem:[#allocation3 + $0xd60] ss:$16 sps:$4 sm:$0xff]  }
 0x1a7   :  { %6727 = vmatprep.subr.bf16.mxu0 %v10416_v47  ;;  %v10497_v47 = vld [vmem:[#allocation3 + $0x96c] ss:$16 sps:$4 sm:$0xff]  }
 0x1a9   :  { %7302 = vmatpush1.bf16.msra.mxu1 %v10417_v51  ;;  %v10503_v51 = vld [vmem:[#allocation3 + $0x98c] ss:$16 sps:$4 sm:$0xff]  }
 0x1aa   :  { %6728 = vmatpush1.bf16.msra.mxu0 %v10414_v30  ;;  %7303 = vmatprep.subr.bf16.mxu1 %v10425_v53  ;;  %v10500_v30 = vld [vmem:[#allocation3 + $0xd84] ss:$16 sps:$4 sm:$0xff]   ;;  %v10501_v53 = vld [vmem:[#allocation3 + $0x988] ss:$16 sps:$4 sm:$0xff]  }
 0x1ab   :  { %6729 = vmatprep.subr.bf16.mxu0 %v10422_v52  ;;  %v10498_v52 = vld [vmem:[#allocation3 + $0xd80] ss:$16 sps:$4 sm:$0xff]  }
 0x1ad   :  { %7304 = vmatpush1.bf16.msra.mxu1 %v10423_v55  ;;  %v10509_v55 = vld [vmem:[#allocation3 + $0x9ac] ss:$16 sps:$4 sm:$0xff]  }
 0x1ae   :  { %6730 = vmatpush1.bf16.msra.mxu0 %v10420_v54  ;;  %7314 = vmatprep.subr.bf16.mxu1 %v10431_v56  ;;  %v10506_v54 = vld [vmem:[#allocation3 + $0xda4] ss:$16 sps:$4 sm:$0xff]   ;;  %v10507_v56 = vld [vmem:[#allocation3 + $0x9a8] ss:$16 sps:$4 sm:$0xff]  }
 0x1af   :  { %6740 = vmatprep.subr.bf16.mxu0 %v10428_v27  ;;  %v10504_v27 = vld [vmem:[#allocation3 + $0xda0] ss:$16 sps:$4 sm:$0xff]  }
 0x1b0   :  { %7306 = vmatmul.mubr.bf16.vlgmr.msra.gmra.mrb[4].mxu1 %v11960_v36  ;;  %v10449_v36 = vld [vmem:[#allocation3 + $0x86c] ss:$16 sps:$4 sm:$0xff]  }
 0x1b1   :  { %6732 = vmatmul.mubr.bf16.vlgmr.msra.gmra.mrb[0].mxu0 %v11994_v57  ;;  %7315 = vmatpush1.bf16.msra.mxu1 %v10429_v59  ;;  %v10510_v59 = vld [vmem:[#allocation3 + $0xdc0] ss:$16 sps:$4 sm:$0xff]  }
 0x1b2   :  { %6741 = vmatpush1.bf16.msra.mxu0 %v10426_v58  ;;  %7316 = vmatprep.subr.bf16.mxu1 %v10437_v31  ;;  %v10515_v58 = vld [vmem:[#allocation3 + $0x9cc] ss:$16 sps:$4 sm:$0xff]   ;;  %v10518_v31 = vld [vmem:[#allocation3 + $0xde4] ss:$16 sps:$4 sm:$0xff]  }
 0x1b3   :  { %6742 = vmatprep.subr.bf16.mxu0 %v10434_v60  ;;  %6772 = vmatprep.mubr.bf16.mxu0 %v11997_v61  ;;  %v10513_v60 = vld [vmem:[#allocation3 + $0x9c8] ss:$16 sps:$4 sm:$0xff]  }
 0x1b4   :  { %7346 = vmatprep.mubr.bf16.mxu1 %v11963_v40  ;;  %v10453_v40 = vld [vmem:[#allocation3 + $0x888] ss:$16 sps:$4 sm:$0xff]  }
 0x1b5   :  { %7317 = vmatpush1.bf16.msra.mxu1 %v10435_v63  ;;  %v10516_v63 = vld [vmem:[#allocation3 + $0xde0] ss:$16 sps:$4 sm:$0xff]  }
 0x1b6   :  { %6743 = vmatpush1.bf16.msra.mxu0 %v10432_v62  ;;  %7318 = vmatprep.subr.bf16.mxu1 %v10443_v2  ;;  %v10521_v62 = vld [vmem:[#allocation3 + $0x9ec] ss:$16 sps:$4 sm:$0xff]   ;;  %v10525_v2 = vld [vmem:[#allocation3 + $0xe04] ss:$16 sps:$4 sm:$0xff]  }
 0x1b7   :  { %6744 = vmatprep.subr.bf16.mxu0 %v10440_v1  ;;  %v10519_v1 = vld [vmem:[#allocation3 + $0x9e8] ss:$16 sps:$4 sm:$0xff]  }
 0x1b9   :  { %7319 = vmatpush1.bf16.msra.mxu1 %v10441_v6  ;;  %v12005_v6 = vrot.slane %v11988_v22, %v11907_v49  ;;  %v10529_v22 = vld [vmem:[#allocation3 + $0xe20] ss:$16 sps:$4 sm:$0xff]  }
 0x1ba   :  { %6745 = vmatpush1.bf16.msra.mxu0 %v10438_v3  ;;  %7320 = vmatprep.subr.bf16.mxu1 %v10449_v36  ;;  %v10528_v3 = vld [vmem:[#allocation3 + $0xa0c] ss:$16 sps:$4 sm:$0xff]   ;;  %v10526_v36 = vld [vmem:[#allocation3 + $0xa08] ss:$16 sps:$4 sm:$0xff]  }
 0x1bb   :  { %6746 = vmatprep.subr.bf16.mxu0 %v10446_v7  ;;  %v10523_v7 = vld [vmem:[#allocation3 + $0xe00] ss:$16 sps:$4 sm:$0xff]  }
 0x1bd   :  { %7321 = vmatpush1.bf16.msra.mxu1 %v10447_v9  ;;  %v10534_v9 = vld [vmem:[#allocation3 + $0xa2c] ss:$16 sps:$4 sm:$0xff]  }
 0x1be   :  { %6747 = vmatpush1.bf16.msra.mxu0 %v10444_v8  ;;  %7322 = vmatprep.subr.bf16.mxu1 %v10455_v13  ;;  %v10531_v8 = vld [vmem:[#allocation3 + $0xe24] ss:$16 sps:$4 sm:$0xff]   ;;  %v10532_v13 = vld [vmem:[#allocation3 + $0xa28] ss:$16 sps:$4 sm:$0xff]  }
 0x1bf   :  { %6748 = vmatprep.subr.bf16.mxu0 %v10452_v11  ;;  %v12009_v11 = vcombine.high %v11997_v61, %v11997_v61 }
 0x1c1   :  { %7323 = vmatpush1.bf16.msra.mxu1 %v10453_v40  ;;  %v10540_v40 = vld [vmem:[#allocation3 + $0xa4c] ss:$16 sps:$4 sm:$0xff]  }
 0x1c2   :  { %6749 = vmatpush1.bf16.msra.mxu0 %v10450_v14  ;;  %7324 = vmatprep.subr.bf16.mxu1 %v10461_v16  ;;  %v10537_v14 = vld [vmem:[#allocation3 + $0xe44] ss:$16 sps:$4 sm:$0xff]   ;;  %v10538_v16 = vld [vmem:[#allocation3 + $0xa48] ss:$16 sps:$4 sm:$0xff]  }
 0x1c3   :  { %6750 = vmatprep.subr.bf16.mxu0 %v10458_v15  ;;  %v10535_v15 = vld [vmem:[#allocation3 + $0xe40] ss:$16 sps:$4 sm:$0xff]  }
 0x1c5   :  { %7325 = vmatpush1.bf16.msra.mxu1 %v10459_v19  ;;  %v10541_v19 = vld [vmem:[#allocation3 + $0xe60] ss:$16 sps:$4 sm:$0xff]  }
 0x1c6   :  { %6751 = vmatpush1.bf16.msra.mxu0 %v10456_v17  ;;  %7326 = vmatprep.subr.bf16.mxu1 %v10467_v21  ;;  %v10543_v17 = vld [vmem:[#allocation3 + $0xe64] ss:$16 sps:$4 sm:$0xff]  }
 0x1c7   :  { %6752 = vmatprep.subr.bf16.mxu0 %v10464_v20  ;;  %v10544_v20 = vld [vmem:[#allocation3 + $0xa68] ss:$16 sps:$4 sm:$0xff]   ;;  %v10549_v21 = vld [vmem:[#allocation3 + $0xe84] ss:$16 sps:$4 sm:$0xff]  }
 0x1c9   :  { %7327 = vmatpush1.bf16.msra.mxu1 %v10465_v25  ;;  %v10547_v25 = vld [vmem:[#allocation3 + $0xe80] ss:$16 sps:$4 sm:$0xff]  }
 0x1ca   :  { %6753 = vmatpush1.bf16.msra.mxu0 %v10462_v23  ;;  %7328 = vmatprep.subr.bf16.mxu1 %v10473_v28  ;;  %v10552_v23 = vld [vmem:[#allocation3 + $0xa8c] ss:$16 sps:$4 sm:$0xff]  }
 0x1cb   :  { %6754 = vmatprep.subr.bf16.mxu0 %v10470_v26  ;;  %v10555_v26 = vld [vmem:[#allocation3 + $0xea4] ss:$16 sps:$4 sm:$0xff]   ;;  %v10558_v28 = vld [vmem:[#allocation3 + $0xaac] ss:$16 sps:$4 sm:$0xff]  }
 0x1cd   :  { %7329 = vmatpush1.bf16.msra.mxu1 %v10471_v32  ;;  %v10556_v32 = vld [vmem:[#allocation3 + $0xaa8] ss:$16 sps:$4 sm:$0xff]  }
 0x1ce   :  { %6755 = vmatpush1.bf16.msra.mxu0 %v10468_v29  ;;  %7330 = vmatprep.subr.bf16.mxu1 %v10479_v33  ;;  %v10553_v29 = vld [vmem:[#allocation3 + $0xea0] ss:$16 sps:$4 sm:$0xff]   ;;  %v10564_v33 = vld [vmem:[#allocation3 + $0xacc] ss:$16 sps:$4 sm:$0xff]  }
 0x1cf   :  { %6756 = vmatprep.subr.bf16.mxu0 %v10476_v10  ;;  %v10561_v10 = vld [vmem:[#allocation3 + $0xec4] ss:$16 sps:$4 sm:$0xff]  }
 0x1d1   :  { %7331 = vmatpush1.bf16.msra.mxu1 %v10477_v35  ;;  %v10562_v35 = vld [vmem:[#allocation3 + $0xac8] ss:$16 sps:$4 sm:$0xff]  }
 0x1d2   :  { %6757 = vmatpush1.bf16.msra.mxu0 %v10474_v34  ;;  %7332 = vmatprep.subr.bf16.mxu1 %v10485_v12  ;;  %v10559_v34 = vld [vmem:[#allocation3 + $0xec0] ss:$16 sps:$4 sm:$0xff]   ;;  %v10570_v12 = vld [vmem:[#allocation3 + $0xaec] ss:$16 sps:$4 sm:$0xff]  }
 0x1d3   :  { %6758 = vmatprep.subr.bf16.mxu0 %v10482_v37  ;;  %v10567_v37 = vld [vmem:[#allocation3 + $0xee4] ss:$16 sps:$4 sm:$0xff]  }
 0x1d5   :  { %7333 = vmatpush1.bf16.msra.mxu1 %v10483_v39  ;;  %v10568_v39 = vld [vmem:[#allocation3 + $0xae8] ss:$16 sps:$4 sm:$0xff]  }
 0x1d6   :  { %6759 = vmatpush1.bf16.msra.mxu0 %v10480_v38  ;;  %7334 = vmatprep.subr.bf16.mxu1 %v10491_v42  ;;  %v10565_v38 = vld [vmem:[#allocation3 + $0xee0] ss:$16 sps:$4 sm:$0xff]   ;;  %v10576_v42 = vld [vmem:[#allocation3 + $0xb0c] ss:$16 sps:$4 sm:$0xff]  }
 0x1d7   :  { %6760 = vmatprep.subr.bf16.mxu0 %v10488_v41  ;;  %v10573_v41 = vld [vmem:[#allocation3 + $0xf04] ss:$16 sps:$4 sm:$0xff]  }
 0x1d9   :  { %7335 = vmatpush1.bf16.msra.mxu1 %v10489_v44  ;;  %v10574_v44 = vld [vmem:[#allocation3 + $0xb08] ss:$16 sps:$4 sm:$0xff]  }
 0x1da   :  { %6761 = vmatpush1.bf16.msra.mxu0 %v10486_v0  ;;  %7336 = vmatprep.subr.bf16.mxu1 %v10497_v47  ;;  %v10571_v0 = vld [vmem:[#allocation3 + $0xf00] ss:$16 sps:$4 sm:$0xff]   ;;  %v10582_v47 = vld [vmem:[#allocation3 + $0xb2c] ss:$16 sps:$4 sm:$0xff]  }
 0x1db   :  { %6762 = vmatprep.subr.bf16.mxu0 %v10494_v46  ;;  %v10579_v46 = vld [vmem:[#allocation3 + $0xf24] ss:$16 sps:$4 sm:$0xff]  }
 0x1dd   :  { %7337 = vmatpush1.bf16.msra.mxu1 %v10495_v48  ;;  %v10580_v48 = vld [vmem:[#allocation3 + $0xb28] ss:$16 sps:$4 sm:$0xff]  }
 0x1de   :  { %6763 = vmatpush1.bf16.msra.mxu0 %v10492_v18  ;;  %7338 = vmatprep.subr.bf16.mxu1 %v10503_v51  ;;  %v10577_v18 = vld [vmem:[#allocation3 + $0xf20] ss:$16 sps:$4 sm:$0xff]   ;;  %v10588_v51 = vld [vmem:[#allocation3 + $0xb4c] ss:$16 sps:$4 sm:$0xff]  }
 0x1df   :  { %6764 = vmatprep.subr.bf16.mxu0 %v10500_v30  ;;  %v10585_v30 = vld [vmem:[#allocation3 + $0xf44] ss:$16 sps:$4 sm:$0xff]  }
 0x1e1   :  { %7339 = vmatpush1.bf16.msra.mxu1 %v10501_v53  ;;  %v10586_v53 = vld [vmem:[#allocation3 + $0xb48] ss:$16 sps:$4 sm:$0xff]  }
 0x1e2   :  { %6765 = vmatpush1.bf16.msra.mxu0 %v10498_v52  ;;  %7340 = vmatprep.subr.bf16.mxu1 %v10509_v55  ;;  %v10583_v52 = vld [vmem:[#allocation3 + $0xf40] ss:$16 sps:$4 sm:$0xff]   ;;  %v10594_v55 = vld [vmem:[#allocation3 + $0xb6c] ss:$16 sps:$4 sm:$0xff]  }
 0x1e3   :  { %6766 = vmatprep.subr.bf16.mxu0 %v10506_v54  ;;  %v10591_v54 = vld [vmem:[#allocation3 + $0xf64] ss:$16 sps:$4 sm:$0xff]  }
 0x1e5   :  { %7341 = vmatpush1.bf16.msra.mxu1 %v10507_v56  ;;  %v10592_v56 = vld [vmem:[#allocation3 + $0xb68] ss:$16 sps:$4 sm:$0xff]  }
 0x1e6   :  { %6767 = vmatpush1.bf16.msra.mxu0 %v10504_v27  ;;  %7342 = vmatprep.subr.bf16.mxu1 %v10515_v58  ;;  %v10589_v27 = vld [vmem:[#allocation3 + $0xf60] ss:$16 sps:$4 sm:$0xff]   ;;  %v10600_v58 = vld [vmem:[#allocation3 + $0xb8c] ss:$16 sps:$4 sm:$0xff]  }
 0x1e7   :  { %6768 = vmatprep.subr.bf16.mxu0 %v10512_v24  ;;  %v10597_v24 = vld [vmem:[#allocation3 + $0xf84] ss:$16 sps:$4 sm:$0xff]  }
 0x1e9   :  { %7343 = vmatpush1.bf16.msra.mxu1 %v10513_v60  ;;  %v10598_v60 = vld [vmem:[#allocation3 + $0xb88] ss:$16 sps:$4 sm:$0xff]  }
 0x1ea   :  { %6769 = vmatpush1.bf16.msra.mxu0 %v10510_v59  ;;  %7344 = vmatprep.subr.bf16.mxu1 %v10521_v62  ;;  %v10595_v59 = vld [vmem:[#allocation3 + $0xf80] ss:$16 sps:$4 sm:$0xff]   ;;  %v10606_v62 = vld [vmem:[#allocation3 + $0xbac] ss:$16 sps:$4 sm:$0xff]  }
 0x1eb   :  { %6770 = vmatprep.subr.bf16.mxu0 %v10518_v31  ;;  %v10603_v31 = vld [vmem:[#allocation3 + $0xfa4] ss:$16 sps:$4 sm:$0xff]  }
 0x1ed   :  { %7345 = vmatpush1.bf16.msra.mxu1 %v10519_v1  ;;  %v10604_v1 = vld [vmem:[#allocation3 + $0xba8] ss:$16 sps:$4 sm:$0xff]  }
 0x1ee   :  { %6771 = vmatpush1.bf16.msra.mxu0 %v10516_v63  ;;  %7355 = vmatprep.subr.bf16.mxu1 %v10528_v3  ;;  %v10601_v63 = vld [vmem:[#allocation3 + $0xfa0] ss:$16 sps:$4 sm:$0xff]   ;;  %v10612_v3 = vld [vmem:[#allocation3 + $0xbcc] ss:$16 sps:$4 sm:$0xff]  }
 0x1ef   :  { %6781 = vmatprep.subr.bf16.mxu0 %v10525_v2  ;;  %v10609_v2 = vld [vmem:[#allocation3 + $0xfc4] ss:$16 sps:$4 sm:$0xff]  }
 0x1f0   :  { %7347 = vmatmul.mubr.bf16.vlgmr.msra.gmra.mrb[4].mxu1 %v11971_v45  ;;  %v10546_v45 = vld [vmem:[#allocation3 + $0xa6c] ss:$16 sps:$4 sm:$0xff]  }
 0x1f1   :  { %6773 = vmatmul.mubr.bf16.vlgmr.msra.gmra.mrb[0].mxu0 %v12005_v6  ;;  %7356 = vmatpush1.bf16.msra.mxu1 %v10526_v36  ;;  %v10607_v36 = vld [vmem:[#allocation3 + $0xfc0] ss:$16 sps:$4 sm:$0xff]  }
 0x1f2   :  { %6782 = vmatpush1.bf16.msra.mxu0 %v10523_v7  ;;  %7357 = vmatprep.subr.bf16.mxu1 %v10534_v9  ;;  %v12018_v7 = vld.sshfl [vmem:[%s12243_s0 + $0x10] sm:$0xff pattern:$0x75316420] }
 0x1f3   :  { %6783 = vmatprep.subr.bf16.mxu0 %v10531_v8  ;;  %6813 = vmatprep.mubr.bf16.mxu0 %v12009_v11  ;;  %v10610_v8 = vld [vmem:[#allocation3 + $0xbc8] ss:$16 sps:$4 sm:$0xff]   ;;  %v10615_v9 = vld [vmem:[#allocation3 + $0xfe4] ss:$16 sps:$4 sm:$0xff]  }
 0x1f4   :  { %7387 = vmatprep.mubr.bf16.mxu1 %v11975_v50  ;;  %v10550_v50 = vld [vmem:[#allocation3 + $0xa88] ss:$16 sps:$4 sm:$0xff]  }
 0x1f5   :  { %7358 = vmatpush1.bf16.msra.mxu1 %v10532_v13  ;;  %v10613_v13 = vld [vmem:[#allocation3 + $0xfe0] ss:$16 sps:$4 sm:$0xff]  }
 0x1f6   :  { %6784 = vmatpush1.bf16.msra.mxu0 %v10529_v22  ;;  %7359 = vmatprep.subr.bf16.mxu1 %v10540_v40  ;;  %v10618_v22 = vld [vmem:[#allocation3 + $0xbec] ss:$16 sps:$4 sm:$0xff]   ;;  %v10621_v40 = vld [vmem:[#allocation3 + $0x1004] ss:$16 sps:$4 sm:$0xff]  }
 0x1f7   :  { %6785 = vmatprep.subr.bf16.mxu0 %v10537_v14  ;;  %v10616_v14 = vld [vmem:[#allocation3 + $0xbe8] ss:$16 sps:$4 sm:$0xff]  }
 0x1f9   :  { %7360 = vmatpush1.bf16.msra.mxu1 %v10538_v16  ;;  %v1259_v16 = vcombine.high %v12018_v7, %v12018_v7 }
 0x1fa   :  { %6786 = vmatpush1.bf16.msra.mxu0 %v10535_v15  ;;  %7361 = vmatprep.subr.bf16.mxu1 %v10546_v45  ;;  %v10624_v15 = vld [vmem:[#allocation3 + $0xc0c] ss:$16 sps:$4 sm:$0xff]   ;;  %v10619_v45 = vld [vmem:[#allocation3 + $0x1000] ss:$16 sps:$4 sm:$0xff]  }
 0x1fb   :  { %6787 = vmatprep.subr.bf16.mxu0 %v10543_v17  ;;  %v12024_v17 = vcombine.high %v12005_v6, %v12005_v6 }
 0x1fd   :  { %7362 = vmatpush1.bf16.msra.mxu1 %v10544_v20  ;;  %v10627_v20 = vld [vmem:[#allocation3 + $0x1024] ss:$16 sps:$4 sm:$0xff]  }
 0x1fe   :  { %6788 = vmatpush1.bf16.msra.mxu0 %v10541_v19  ;;  %7363 = vmatprep.subr.bf16.mxu1 %v10552_v23  ;;  %v10622_v19 = vld [vmem:[#allocation3 + $0xc08] ss:$16 sps:$4 sm:$0xff]   ;;  %v12027_v23 = vrot.slane %v1259_v16, %v11907_v49  ;;  %v10705_v16 = vld [vmem:[#allocation3 + $0x11c4] ss:$16 sps:$4 sm:$0xff]  }
 0x1ff   :  { %6789 = vmatprep.subr.bf16.mxu0 %v10549_v21  ;;  %v10630_v21 = vld [vmem:[#allocation3 + $0xc2c] ss:$16 sps:$4 sm:$0xff]  }
 0x201   :  { %7364 = vmatpush1.bf16.msra.mxu1 %v10550_v50  ;;  %v10628_v50 = vld [vmem:[#allocation3 + $0xc28] ss:$16 sps:$4 sm:$0xff]  }
 0x202   :  { %6790 = vmatpush1.bf16.msra.mxu0 %v10547_v25  ;;  %7365 = vmatprep.subr.bf16.mxu1 %v10558_v28  ;;  %v10625_v25 = vld [vmem:[#allocation3 + $0x1020] ss:$16 sps:$4 sm:$0xff]   ;;  %v10636_v28 = vld [vmem:[#allocation3 + $0xc4c] ss:$16 sps:$4 sm:$0xff]  }
 0x203   :  { %6791 = vmatprep.subr.bf16.mxu0 %v10555_v26  ;;  %v10633_v26 = vld [vmem:[#allocation3 + $0x1044] ss:$16 sps:$4 sm:$0xff]  }
 0x205   :  { %7366 = vmatpush1.bf16.msra.mxu1 %v10556_v32  ;;  %v10634_v32 = vld [vmem:[#allocation3 + $0xc48] ss:$16 sps:$4 sm:$0xff]  }
 0x206   :  { %6792 = vmatpush1.bf16.msra.mxu0 %v10553_v29  ;;  %7367 = vmatprep.subr.bf16.mxu1 %v10564_v33  ;;  %v10631_v29 = vld [vmem:[#allocation3 + $0x1040] ss:$16 sps:$4 sm:$0xff]  }
 0x207   :  { %6793 = vmatprep.subr.bf16.mxu0 %v10561_v10  ;;  %v10639_v10 = vld [vmem:[#allocation3 + $0x1064] ss:$16 sps:$4 sm:$0xff]   ;;  %v10637_v33 = vld [vmem:[#allocation3 + $0x1060] ss:$16 sps:$4 sm:$0xff]  }
 0x209   :  { %7368 = vmatpush1.bf16.msra.mxu1 %v10562_v35  ;;  %v10645_v35 = vld [vmem:[#allocation3 + $0x1084] ss:$16 sps:$4 sm:$0xff]  }
 0x20a   :  { %6794 = vmatpush1.bf16.msra.mxu0 %v10559_v34  ;;  %7369 = vmatprep.subr.bf16.mxu1 %v10570_v12  ;;  %v10640_v34 = vld [vmem:[#allocation3 + $0xc68] ss:$16 sps:$4 sm:$0xff]   ;;  %v10643_v12 = vld [vmem:[#allocation3 + $0x1080] ss:$16 sps:$4 sm:$0xff]  }
 0x20b   :  { %6795 = vmatprep.subr.bf16.mxu0 %v10567_v37  ;;  %v10648_v37 = vld [vmem:[#allocation3 + $0xc8c] ss:$16 sps:$4 sm:$0xff]  }
 0x20d   :  { %7370 = vmatpush1.bf16.msra.mxu1 %v10568_v39  ;;  %v10654_v39 = vld [vmem:[#allocation3 + $0xcac] ss:$16 sps:$4 sm:$0xff]  }
 0x20e   :  { %6796 = vmatpush1.bf16.msra.mxu0 %v10565_v38  ;;  %7371 = vmatprep.subr.bf16.mxu1 %v10576_v42  ;;  %v10651_v38 = vld [vmem:[#allocation3 + $0x10a4] ss:$16 sps:$4 sm:$0xff]   ;;  %v10652_v42 = vld [vmem:[#allocation3 + $0xca8] ss:$16 sps:$4 sm:$0xff]  }
 0x20f   :  { %6797 = vmatprep.subr.bf16.mxu0 %v10573_v41  ;;  %v10649_v41 = vld [vmem:[#allocation3 + $0x10a0] ss:$16 sps:$4 sm:$0xff]  }
 0x211   :  { %7372 = vmatpush1.bf16.msra.mxu1 %v10574_v44  ;;  %v10660_v44 = vld [vmem:[#allocation3 + $0xccc] ss:$16 sps:$4 sm:$0xff]  }
 0x212   :  { %6798 = vmatpush1.bf16.msra.mxu0 %v10571_v0  ;;  %7373 = vmatprep.subr.bf16.mxu1 %v10582_v47  ;;  %v10657_v0 = vld [vmem:[#allocation3 + $0x10c4] ss:$16 sps:$4 sm:$0xff]   ;;  %v10658_v47 = vld [vmem:[#allocation3 + $0xcc8] ss:$16 sps:$4 sm:$0xff]  }
 0x213   :  { %6799 = vmatprep.subr.bf16.mxu0 %v10579_v46  ;;  %v10655_v46 = vld [vmem:[#allocation3 + $0x10c0] ss:$16 sps:$4 sm:$0xff]  }
 0x215   :  { %7374 = vmatpush1.bf16.msra.mxu1 %v10580_v48  ;;  %v10666_v48 = vld [vmem:[#allocation3 + $0xcec] ss:$16 sps:$4 sm:$0xff]  }
 0x216   :  { %6800 = vmatpush1.bf16.msra.mxu0 %v10577_v18  ;;  %7375 = vmatprep.subr.bf16.mxu1 %v10588_v51  ;;  %v10663_v18 = vld [vmem:[#allocation3 + $0x10e4] ss:$16 sps:$4 sm:$0xff]   ;;  %v10664_v51 = vld [vmem:[#allocation3 + $0xce8] ss:$16 sps:$4 sm:$0xff]  }
 0x217   :  { %6801 = vmatprep.subr.bf16.mxu0 %v10585_v30  ;;  %v10661_v30 = vld [vmem:[#allocation3 + $0x10e0] ss:$16 sps:$4 sm:$0xff]  }
 0x219   :  { %7376 = vmatpush1.bf16.msra.mxu1 %v10586_v53  ;;  %v10672_v53 = vld [vmem:[#allocation3 + $0xd0c] ss:$16 sps:$4 sm:$0xff]  }
 0x21a   :  { %6802 = vmatpush1.bf16.msra.mxu0 %v10583_v52  ;;  %7377 = vmatprep.subr.bf16.mxu1 %v10594_v55  ;;  %v10669_v52 = vld [vmem:[#allocation3 + $0x1104] ss:$16 sps:$4 sm:$0xff]   ;;  %v10670_v55 = vld [vmem:[#allocation3 + $0xd08] ss:$16 sps:$4 sm:$0xff]  }
 0x21b   :  { %6803 = vmatprep.subr.bf16.mxu0 %v10591_v54  ;;  %v10667_v54 = vld [vmem:[#allocation3 + $0x1100] ss:$16 sps:$4 sm:$0xff]  }
 0x21d   :  { %7378 = vmatpush1.bf16.msra.mxu1 %v10592_v56  ;;  %v10678_v56 = vld [vmem:[#allocation3 + $0xd2c] ss:$16 sps:$4 sm:$0xff]  }
 0x21e   :  { %6804 = vmatpush1.bf16.msra.mxu0 %v10589_v27  ;;  %7379 = vmatprep.subr.bf16.mxu1 %v10600_v58  ;;  %v10675_v27 = vld [vmem:[#allocation3 + $0x1124] ss:$16 sps:$4 sm:$0xff]   ;;  %v10676_v58 = vld [vmem:[#allocation3 + $0xd28] ss:$16 sps:$4 sm:$0xff]  }
 0x21f   :  { %6805 = vmatprep.subr.bf16.mxu0 %v10597_v24  ;;  %v10673_v24 = vld [vmem:[#allocation3 + $0x1120] ss:$16 sps:$4 sm:$0xff]  }
 0x221   :  { %7380 = vmatpush1.bf16.msra.mxu1 %v10598_v60  ;;  %v10684_v60 = vld [vmem:[#allocation3 + $0xd4c] ss:$16 sps:$4 sm:$0xff]  }
 0x222   :  { %6806 = vmatpush1.bf16.msra.mxu0 %v10595_v59  ;;  %7381 = vmatprep.subr.bf16.mxu1 %v10606_v62  ;;  %v10681_v59 = vld [vmem:[#allocation3 + $0x1144] ss:$16 sps:$4 sm:$0xff]   ;;  %v10682_v62 = vld [vmem:[#allocation3 + $0xd48] ss:$16 sps:$4 sm:$0xff]  }
 0x223   :  { %6807 = vmatprep.subr.bf16.mxu0 %v10603_v31  ;;  %v10679_v31 = vld [vmem:[#allocation3 + $0x1140] ss:$16 sps:$4 sm:$0xff]  }
 0x225   :  { %7382 = vmatpush1.bf16.msra.mxu1 %v10604_v1  ;;  %v10690_v1 = vld [vmem:[#allocation3 + $0xd6c] ss:$16 sps:$4 sm:$0xff]  }
 0x226   :  { %6808 = vmatpush1.bf16.msra.mxu0 %v10601_v63  ;;  %7383 = vmatprep.subr.bf16.mxu1 %v10612_v3  ;;  %v10687_v63 = vld [vmem:[#allocation3 + $0x1164] ss:$16 sps:$4 sm:$0xff]   ;;  %v10688_v3 = vld [vmem:[#allocation3 + $0xd68] ss:$16 sps:$4 sm:$0xff]  }
 0x227   :  { %6809 = vmatprep.subr.bf16.mxu0 %v10609_v2  ;;  %v10685_v2 = vld [vmem:[#allocation3 + $0x1160] ss:$16 sps:$4 sm:$0xff]  }
 0x229   :  { %7384 = vmatpush1.bf16.msra.mxu1 %v10610_v8  ;;  %v10696_v8 = vld [vmem:[#allocation3 + $0xd8c] ss:$16 sps:$4 sm:$0xff]  }
 0x22a   :  { %6810 = vmatpush1.bf16.msra.mxu0 %v10607_v36  ;;  %7385 = vmatprep.subr.bf16.mxu1 %v10618_v22  ;;  %v10693_v36 = vld [vmem:[#allocation3 + $0x1184] ss:$16 sps:$4 sm:$0xff]   ;;  %v10694_v22 = vld [vmem:[#allocation3 + $0xd88] ss:$16 sps:$4 sm:$0xff]  }
 0x22b   :  { %6811 = vmatprep.subr.bf16.mxu0 %v10615_v9  ;;  %v10691_v9 = vld [vmem:[#allocation3 + $0x1180] ss:$16 sps:$4 sm:$0xff]  }
 0x22d   :  { %7386 = vmatpush1.bf16.msra.mxu1 %v10616_v14  ;;  %v10702_v14 = vld [vmem:[#allocation3 + $0xdac] ss:$16 sps:$4 sm:$0xff]  }
 0x22e   :  { %6812 = vmatpush1.bf16.msra.mxu0 %v10613_v13  ;;  %7396 = vmatprep.subr.bf16.mxu1 %v10624_v15  ;;  %v10699_v13 = vld [vmem:[#allocation3 + $0x11a4] ss:$16 sps:$4 sm:$0xff]   ;;  %v10700_v15 = vld [vmem:[#allocation3 + $0xda8] ss:$16 sps:$4 sm:$0xff]  }
 0x22f   :  { %6822 = vmatprep.subr.bf16.mxu0 %v10621_v40  ;;  %v10697_v40 = vld [vmem:[#allocation3 + $0x11a0] ss:$16 sps:$4 sm:$0xff]  }
 0x230   :  { %7388 = vmatmul.mubr.bf16.vlgmr.msra.gmra.mrb[4].mxu1 %v11994_v57  ;;  %v10642_v57 = vld [vmem:[#allocation3 + $0xc6c] ss:$16 sps:$4 sm:$0xff]  }
 0x231   :  { %6814 = vmatmul.mubr.bf16.vlgmr.msra.gmra.mrb[0].mxu0 %v12024_v17  ;;  %7397 = vmatpush1.bf16.msra.mxu1 %v10622_v19  ;;  %v10703_v19 = vld [vmem:[#allocation3 + $0x11c0] ss:$16 sps:$4 sm:$0xff]  }
 0x232   :  { %6823 = vmatpush1.bf16.msra.mxu0 %v10619_v45  ;;  %7398 = vmatprep.subr.bf16.mxu1 %v10630_v21  ;;  %v10708_v45 = vld [vmem:[#allocation3 + $0xdcc] ss:$16 sps:$4 sm:$0xff]   ;;  %v10711_v21 = vld [vmem:[#allocation3 + $0x11e4] ss:$16 sps:$4 sm:$0xff]  }
 0x233   :  { %6824 = vmatprep.subr.bf16.mxu0 %v10627_v20  ;;  %6854 = vmatprep.mubr.bf16.mxu0 %v12027_v23  ;;  %v10706_v20 = vld [vmem:[#allocation3 + $0xdc8] ss:$16 sps:$4 sm:$0xff]  }
 0x234   :  { %7428 = vmatprep.mubr.bf16.mxu1 %v11997_v61  ;;  %v10646_v61 = vld [vmem:[#allocation3 + $0xc88] ss:$16 sps:$4 sm:$0xff]  }
 0x235   :  { %7399 = vmatpush1.bf16.msra.mxu1 %v10628_v50  ;;  %v10709_v50 = vld [vmem:[#allocation3 + $0x11e0] ss:$16 sps:$4 sm:$0xff]  }
 0x236   :  { %6825 = vmatpush1.bf16.msra.mxu0 %v10625_v25  ;;  %7400 = vmatprep.subr.bf16.mxu1 %v10636_v28  ;;  %v10714_v25 = vld [vmem:[#allocation3 + $0xdec] ss:$16 sps:$4 sm:$0xff]   ;;  %v10717_v28 = vld [vmem:[#allocation3 + $0x1204] ss:$16 sps:$4 sm:$0xff]  }
 0x237   :  { %6826 = vmatprep.subr.bf16.mxu0 %v10633_v26  ;;  %v10712_v26 = vld [vmem:[#allocation3 + $0xde8] ss:$16 sps:$4 sm:$0xff]  }
 0x239   :  { %7401 = vmatpush1.bf16.msra.mxu1 %v10634_v32  ;;  %v12035_v32 = vrot.slane %v12018_v7, %v11907_v49  ;;  %v10721_v7 = vld [vmem:[#allocation3 + $0x1220] ss:$16 sps:$4 sm:$0xff]  }
 0x23a   :  { %6827 = vmatpush1.bf16.msra.mxu0 %v10631_v29  ;;  %7402 = vmatprep.subr.bf16.mxu1 %v10642_v57  ;;  %v10720_v29 = vld [vmem:[#allocation3 + $0xe0c] ss:$16 sps:$4 sm:$0xff]   ;;  %v10718_v57 = vld [vmem:[#allocation3 + $0xe08] ss:$16 sps:$4 sm:$0xff]  }
 0x23b   :  { %6828 = vmatprep.subr.bf16.mxu0 %v10639_v10  ;;  %v10715_v10 = vld [vmem:[#allocation3 + $0x1200] ss:$16 sps:$4 sm:$0xff]  }
 0x23d   :  { %7403 = vmatpush1.bf16.msra.mxu1 %v10640_v34  ;;  %v10726_v34 = vld [vmem:[#allocation3 + $0xe2c] ss:$16 sps:$4 sm:$0xff]  }
 0x23e   :  { %6829 = vmatpush1.bf16.msra.mxu0 %v10637_v33  ;;  %7404 = vmatprep.subr.bf16.mxu1 %v10648_v37  ;;  %v10723_v33 = vld [vmem:[#allocation3 + $0x1224] ss:$16 sps:$4 sm:$0xff]   ;;  %v10724_v37 = vld [vmem:[#allocation3 + $0xe28] ss:$16 sps:$4 sm:$0xff]  }
 0x23f   :  { %6830 = vmatprep.subr.bf16.mxu0 %v10645_v35  ;;  %v12039_v35 = vcombine.high %v12027_v23, %v12027_v23 }
 0x241   :  { %7405 = vmatpush1.bf16.msra.mxu1 %v10646_v61  ;;  %v10732_v61 = vld [vmem:[#allocation3 + $0xe4c] ss:$16 sps:$4 sm:$0xff]  }
 0x242   :  { %6831 = vmatpush1.bf16.msra.mxu0 %v10643_v12  ;;  %7406 = vmatprep.subr.bf16.mxu1 %v10654_v39  ;;  %v10729_v12 = vld [vmem:[#allocation3 + $0x1244] ss:$16 sps:$4 sm:$0xff]   ;;  %v10730_v39 = vld [vmem:[#allocation3 + $0xe48] ss:$16 sps:$4 sm:$0xff]  }
 0x243   :  { %6832 = vmatprep.subr.bf16.mxu0 %v10651_v38  ;;  %v10727_v38 = vld [vmem:[#allocation3 + $0x1240] ss:$16 sps:$4 sm:$0xff]  }
 0x245   :  { %7407 = vmatpush1.bf16.msra.mxu1 %v10652_v42  ;;  %v10733_v42 = vld [vmem:[#allocation3 + $0x1260] ss:$16 sps:$4 sm:$0xff]  }
 0x246   :  { %6833 = vmatpush1.bf16.msra.mxu0 %v10649_v41  ;;  %7408 = vmatprep.subr.bf16.mxu1 %v10660_v44  ;;  %v10735_v41 = vld [vmem:[#allocation3 + $0x1264] ss:$16 sps:$4 sm:$0xff]  }
 0x247   :  { %6834 = vmatprep.subr.bf16.mxu0 %v10657_v0  ;;  %v10736_v0 = vld [vmem:[#allocation3 + $0xe68] ss:$16 sps:$4 sm:$0xff]   ;;  %v10741_v44 = vld [vmem:[#allocation3 + $0x1284] ss:$16 sps:$4 sm:$0xff]  }
 0x249   :  { %7409 = vmatpush1.bf16.msra.mxu1 %v10658_v47  ;;  %v10739_v47 = vld [vmem:[#allocation3 + $0x1280] ss:$16 sps:$4 sm:$0xff]  }
 0x24a   :  { %6835 = vmatpush1.bf16.msra.mxu0 %v10655_v46  ;;  %7410 = vmatprep.subr.bf16.mxu1 %v10666_v48  ;;  %v10744_v46 = vld [vmem:[#allocation3 + $0xe8c] ss:$16 sps:$4 sm:$0xff]  }
 0x24b   :  { %6836 = vmatprep.subr.bf16.mxu0 %v10663_v18  ;;  %v10747_v18 = vld [vmem:[#allocation3 + $0x12a4] ss:$16 sps:$4 sm:$0xff]   ;;  %v10750_v48 = vld [vmem:[#allocation3 + $0xeac] ss:$16 sps:$4 sm:$0xff]  }
 0x24d   :  { %7411 = vmatpush1.bf16.msra.mxu1 %v10664_v51  ;;  %v10748_v51 = vld [vmem:[#allocation3 + $0xea8] ss:$16 sps:$4 sm:$0xff]  }
 0x24e   :  { %6837 = vmatpush1.bf16.msra.mxu0 %v10661_v30  ;;  %7412 = vmatprep.subr.bf16.mxu1 %v10672_v53  ;;  %v10745_v30 = vld [vmem:[#allocation3 + $0x12a0] ss:$16 sps:$4 sm:$0xff]   ;;  %v10756_v53 = vld [vmem:[#allocation3 + $0xecc] ss:$16 sps:$4 sm:$0xff]  }
 0x24f   :  { %6838 = vmatprep.subr.bf16.mxu0 %v10669_v52  ;;  %v10753_v52 = vld [vmem:[#allocation3 + $0x12c4] ss:$16 sps:$4 sm:$0xff]  }
 0x251   :  { %7413 = vmatpush1.bf16.msra.mxu1 %v10670_v55  ;;  %v10754_v55 = vld [vmem:[#allocation3 + $0xec8] ss:$16 sps:$4 sm:$0xff]  }
 0x252   :  { %6839 = vmatpush1.bf16.msra.mxu0 %v10667_v54  ;;  %7414 = vmatprep.subr.bf16.mxu1 %v10678_v56  ;;  %v10751_v54 = vld [vmem:[#allocation3 + $0x12c0] ss:$16 sps:$4 sm:$0xff]   ;;  %v10762_v56 = vld [vmem:[#allocation3 + $0xeec] ss:$16 sps:$4 sm:$0xff]  }
 0x253   :  { %6840 = vmatprep.subr.bf16.mxu0 %v10675_v27  ;;  %v10759_v27 = vld [vmem:[#allocation3 + $0x12e4] ss:$16 sps:$4 sm:$0xff]  }
 0x255   :  { %7415 = vmatpush1.bf16.msra.mxu1 %v10676_v58  ;;  %v10760_v58 = vld [vmem:[#allocation3 + $0xee8] ss:$16 sps:$4 sm:$0xff]  }
 0x256   :  { %6841 = vmatpush1.bf16.msra.mxu0 %v10673_v24  ;;  %7416 = vmatprep.subr.bf16.mxu1 %v10684_v60  ;;  %v10757_v24 = vld [vmem:[#allocation3 + $0x12e0] ss:$16 sps:$4 sm:$0xff]   ;;  %v10768_v60 = vld [vmem:[#allocation3 + $0xf0c] ss:$16 sps:$4 sm:$0xff]  }
 0x257   :  { %6842 = vmatprep.subr.bf16.mxu0 %v10681_v59  ;;  %v10765_v59 = vld [vmem:[#allocation3 + $0x1304] ss:$16 sps:$4 sm:$0xff]  }
 0x259   :  { %7417 = vmatpush1.bf16.msra.mxu1 %v10682_v62  ;;  %v10766_v62 = vld [vmem:[#allocation3 + $0xf08] ss:$16 sps:$4 sm:$0xff]  }
 0x25a   :  { %6843 = vmatpush1.bf16.msra.mxu0 %v10679_v31  ;;  %7418 = vmatprep.subr.bf16.mxu1 %v10690_v1  ;;  %v10763_v31 = vld [vmem:[#allocation3 + $0x1300] ss:$16 sps:$4 sm:$0xff]   ;;  %v10774_v1 = vld [vmem:[#allocation3 + $0xf2c] ss:$16 sps:$4 sm:$0xff]  }
 0x25b   :  { %6844 = vmatprep.subr.bf16.mxu0 %v10687_v63  ;;  %v10771_v63 = vld [vmem:[#allocation3 + $0x1324] ss:$16 sps:$4 sm:$0xff]  }
 0x25d   :  { %7419 = vmatpush1.bf16.msra.mxu1 %v10688_v3  ;;  %v10772_v3 = vld [vmem:[#allocation3 + $0xf28] ss:$16 sps:$4 sm:$0xff]  }
 0x25e   :  { %6845 = vmatpush1.bf16.msra.mxu0 %v10685_v2  ;;  %7420 = vmatprep.subr.bf16.mxu1 %v10696_v8  ;;  %v10769_v2 = vld [vmem:[#allocation3 + $0x1320] ss:$16 sps:$4 sm:$0xff]   ;;  %v10780_v8 = vld [vmem:[#allocation3 + $0xf4c] ss:$16 sps:$4 sm:$0xff]  }
 0x25f   :  { %6846 = vmatprep.subr.bf16.mxu0 %v10693_v36  ;;  %v10777_v36 = vld [vmem:[#allocation3 + $0x1344] ss:$16 sps:$4 sm:$0xff]  }
 0x261   :  { %7421 = vmatpush1.bf16.msra.mxu1 %v10694_v22  ;;  %v10778_v22 = vld [vmem:[#allocation3 + $0xf48] ss:$16 sps:$4 sm:$0xff]  }
 0x262   :  { %6847 = vmatpush1.bf16.msra.mxu0 %v10691_v9  ;;  %7422 = vmatprep.subr.bf16.mxu1 %v10702_v14  ;;  %v10775_v9 = vld [vmem:[#allocation3 + $0x1340] ss:$16 sps:$4 sm:$0xff]   ;;  %v10786_v14 = vld [vmem:[#allocation3 + $0xf6c] ss:$16 sps:$4 sm:$0xff]  }
 0x263   :  { %6848 = vmatprep.subr.bf16.mxu0 %v10699_v13  ;;  %v10783_v13 = vld [vmem:[#allocation3 + $0x1364] ss:$16 sps:$4 sm:$0xff]  }
 0x265   :  { %7423 = vmatpush1.bf16.msra.mxu1 %v10700_v15  ;;  %v10784_v15 = vld [vmem:[#allocation3 + $0xf68] ss:$16 sps:$4 sm:$0xff]  }
 0x266   :  { %6849 = vmatpush1.bf16.msra.mxu0 %v10697_v40  ;;  %7424 = vmatprep.subr.bf16.mxu1 %v10708_v45  ;;  %v10781_v40 = vld [vmem:[#allocation3 + $0x1360] ss:$16 sps:$4 sm:$0xff]   ;;  %v10792_v45 = vld [vmem:[#allocation3 + $0xf8c] ss:$16 sps:$4 sm:$0xff]  }
 0x267   :  { %6850 = vmatprep.subr.bf16.mxu0 %v10705_v16  ;;  %v10789_v16 = vld [vmem:[#allocation3 + $0x1384] ss:$16 sps:$4 sm:$0xff]  }
 0x269   :  { %7425 = vmatpush1.bf16.msra.mxu1 %v10706_v20  ;;  %v10790_v20 = vld [vmem:[#allocation3 + $0xf88] ss:$16 sps:$4 sm:$0xff]  }
 0x26a   :  { %6851 = vmatpush1.bf16.msra.mxu0 %v10703_v19  ;;  %7426 = vmatprep.subr.bf16.mxu1 %v10714_v25  ;;  %v10787_v19 = vld [vmem:[#allocation3 + $0x1380] ss:$16 sps:$4 sm:$0xff]   ;;  %v10798_v25 = vld [vmem:[#allocation3 + $0xfac] ss:$16 sps:$4 sm:$0xff]  }
 0x26b   :  { %6852 = vmatprep.subr.bf16.mxu0 %v10711_v21  ;;  %v10795_v21 = vld [vmem:[#allocation3 + $0x13a4] ss:$16 sps:$4 sm:$0xff]  }
 0x26d   :  { %7427 = vmatpush1.bf16.msra.mxu1 %v10712_v26  ;;  %v10796_v26 = vld [vmem:[#allocation3 + $0xfa8] ss:$16 sps:$4 sm:$0xff]  }
 0x26e   :  { %6853 = vmatpush1.bf16.msra.mxu0 %v10709_v50  ;;  %7437 = vmatprep.subr.bf16.mxu1 %v10720_v29  ;;  %v10793_v50 = vld [vmem:[#allocation3 + $0x13a0] ss:$16 sps:$4 sm:$0xff]   ;;  %v10804_v29 = vld [vmem:[#allocation3 + $0xfcc] ss:$16 sps:$4 sm:$0xff]  }
 0x26f   :  { %6863 = vmatprep.subr.bf16.mxu0 %v10717_v28  ;;  %v10801_v28 = vld [vmem:[#allocation3 + $0x13c4] ss:$16 sps:$4 sm:$0xff]  }
 0x270   :  { %7429 = vmatmul.mubr.bf16.vlgmr.msra.gmra.mrb[4].mxu1 %v12005_v6  ;;  %v10738_v6 = vld [vmem:[#allocation3 + $0xe6c] ss:$16 sps:$4 sm:$0xff]  }
 0x271   :  { %6855 = vmatmul.mubr.bf16.vlgmr.msra.gmra.mrb[0].mxu0 %v12035_v32  ;;  %7438 = vmatpush1.bf16.msra.mxu1 %v10718_v57 }
 0x272   :  { %6864 = vmatpush1.bf16.msra.mxu0 %v10715_v10  ;;  %7439 = vmatprep.subr.bf16.mxu1 %v10726_v34  ;;  %v11601_v10 = vld [vmem:[%s12243_s0 + $0x10] sm:$0xff]  ;;  %v10802_v34 = vld [vmem:[#allocation3 + $0xfc8] ss:$16 sps:$4 sm:$0xff]  }
 0x273   :  { %6865 = vmatprep.subr.bf16.mxu0 %v10723_v33  ;;  %6895 = vmatprep.mubr.bf16.mxu0 %v12039_v35  ;;  %v1244_v57 = vcombine.high %v11601_v10, %v11601_v10  ;;  %v10799_v33 = vld [vmem:[#allocation3 + $0x13c0] ss:$16 sps:$4 sm:$0xff]  }
 0x274   :  { %7469 = vmatprep.mubr.bf16.mxu1 %v12009_v11  ;;  %v10742_v11 = vld [vmem:[#allocation3 + $0xe88] ss:$16 sps:$4 sm:$0xff]   ;;  %v10877_v10 = vld [vmem:[#allocation3 + $0x1560] ss:$16 sps:$4 sm:$0xff]  }
 0x275   :  { %7440 = vmatpush1.bf16.msra.mxu1 %v10724_v37  ;;  %v10810_v37 = vld [vmem:[#allocation3 + $0xfec] ss:$16 sps:$4 sm:$0xff]  }
 0x276   :  { %6866 = vmatpush1.bf16.msra.mxu0 %v10721_v7  ;;  %7441 = vmatprep.subr.bf16.mxu1 %v10732_v61  ;;  %v10807_v7 = vld [vmem:[#allocation3 + $0x13e4] ss:$16 sps:$4 sm:$0xff]   ;;  %v10805_v61 = vld [vmem:[#allocation3 + $0x13e0] ss:$16 sps:$4 sm:$0xff]  }
 0x277   :  { %6867 = vmatprep.subr.bf16.mxu0 %v10729_v12  ;;  %v12049_v12 = vrot.slane %v1244_v57, %v11907_v49  ;;  %v10880_v57 = vld [vmem:[#allocation3 + $0x1168] ss:$16 sps:$4 sm:$0xff]  }
 0x279   :  { %7442 = vmatpush1.bf16.msra.mxu1 %v10730_v39  ;;  %v10813_v39 = vld [vmem:[#allocation3 + $0x1404] ss:$16 sps:$4 sm:$0xff]  }
 0x27a   :  { %6868 = vmatpush1.bf16.msra.mxu0 %v10727_v38  ;;  %7443 = vmatprep.subr.bf16.mxu1 %v10738_v6  ;;  %v10808_v38 = vld [vmem:[#allocation3 + $0xfe8] ss:$16 sps:$4 sm:$0xff]   ;;  %v1260_v6 = vcombine.high %v12049_v12, %v12049_v12 }
 0x27b   :  { %6869 = vmatprep.subr.bf16.mxu0 %v10735_v41  ;;  %v10816_v41 = vld [vmem:[#allocation3 + $0x100c] ss:$16 sps:$4 sm:$0xff]  }
 0x27d   :  { %7444 = vmatpush1.bf16.msra.mxu1 %v10736_v0  ;;  %v10811_v0 = vld [vmem:[#allocation3 + $0x1400] ss:$16 sps:$4 sm:$0xff]  }
 0x27e   :  { %6870 = vmatpush1.bf16.msra.mxu0 %v10733_v42  ;;  %7445 = vmatprep.subr.bf16.mxu1 %v10744_v46  ;;  %v12055_v42 = vcombine.high %v12035_v32, %v12035_v32  ;;  %v10819_v46 = vld [vmem:[#allocation3 + $0x1424] ss:$16 sps:$4 sm:$0xff]  }
 0x27f   :  { %6871 = vmatprep.subr.bf16.mxu0 %v10741_v44  ;;  %v10814_v44 = vld [vmem:[#allocation3 + $0x1008] ss:$16 sps:$4 sm:$0xff]  }
 0x281   :  { %7446 = vmatpush1.bf16.msra.mxu1 %v10742_v11  ;;  %v12058_v11 = vrot.slane %v1260_v6, %v11907_v49  ;;  %v10897_v6 = vld [vmem:[#allocation3 + $0x15c4] ss:$16 sps:$4 sm:$0xff]  }
 0x282   :  { %6872 = vmatpush1.bf16.msra.mxu0 %v10739_v47  ;;  %7447 = vmatprep.subr.bf16.mxu1 %v10750_v48  ;;  %v10822_v47 = vld [vmem:[#allocation3 + $0x102c] ss:$16 sps:$4 sm:$0xff]   ;;  %v10820_v48 = vld [vmem:[#allocation3 + $0x1028] ss:$16 sps:$4 sm:$0xff]  }
 0x283   :  { %6873 = vmatprep.subr.bf16.mxu0 %v10747_v18  ;;  %v10817_v18 = vld [vmem:[#allocation3 + $0x1420] ss:$16 sps:$4 sm:$0xff]  }
 0x285   :  { %7448 = vmatpush1.bf16.msra.mxu1 %v10748_v51  ;;  %v10828_v51 = vld [vmem:[#allocation3 + $0x104c] ss:$16 sps:$4 sm:$0xff]  }
 0x286   :  { %6874 = vmatpush1.bf16.msra.mxu0 %v10745_v30  ;;  %7449 = vmatprep.subr.bf16.mxu1 %v10756_v53  ;;  %v10825_v30 = vld [vmem:[#allocation3 + $0x1444] ss:$16 sps:$4 sm:$0xff]   ;;  %v10826_v53 = vld [vmem:[#allocation3 + $0x1048] ss:$16 sps:$4 sm:$0xff]  }
 0x287   :  { %6875 = vmatprep.subr.bf16.mxu0 %v10753_v52  ;;  %v10823_v52 = vld [vmem:[#allocation3 + $0x1440] ss:$16 sps:$4 sm:$0xff]  }
 0x289   :  { %7450 = vmatpush1.bf16.msra.mxu1 %v10754_v55  ;;  %v10829_v55 = vld [vmem:[#allocation3 + $0x1460] ss:$16 sps:$4 sm:$0xff]  }
 0x28a   :  { %6876 = vmatpush1.bf16.msra.mxu0 %v10751_v54  ;;  %7451 = vmatprep.subr.bf16.mxu1 %v10762_v56  ;;  %v10831_v54 = vld [vmem:[#allocation3 + $0x1464] ss:$16 sps:$4 sm:$0xff]  }
 0x28b   :  { %6877 = vmatprep.subr.bf16.mxu0 %v10759_v27  ;;  %v10832_v27 = vld [vmem:[#allocation3 + $0x1068] ss:$16 sps:$4 sm:$0xff]   ;;  %v10837_v56 = vld [vmem:[#allocation3 + $0x1484] ss:$16 sps:$4 sm:$0xff]  }
 0x28d   :  { %7452 = vmatpush1.bf16.msra.mxu1 %v10760_v58  ;;  %v10835_v58 = vld [vmem:[#allocation3 + $0x1480] ss:$16 sps:$4 sm:$0xff]  }
 0x28e   :  { %6878 = vmatpush1.bf16.msra.mxu0 %v10757_v24  ;;  %7453 = vmatprep.subr.bf16.mxu1 %v10768_v60  ;;  %v10840_v24 = vld [vmem:[#allocation3 + $0x108c] ss:$16 sps:$4 sm:$0xff]  }
 0x28f   :  { %6879 = vmatprep.subr.bf16.mxu0 %v10765_v59  ;;  %v10843_v59 = vld [vmem:[#allocation3 + $0x14a4] ss:$16 sps:$4 sm:$0xff]   ;;  %v10846_v60 = vld [vmem:[#allocation3 + $0x10ac] ss:$16 sps:$4 sm:$0xff]  }
 0x291   :  { %7454 = vmatpush1.bf16.msra.mxu1 %v10766_v62  ;;  %v10844_v62 = vld [vmem:[#allocation3 + $0x10a8] ss:$16 sps:$4 sm:$0xff]  }
 0x292   :  { %6880 = vmatpush1.bf16.msra.mxu0 %v10763_v31  ;;  %7455 = vmatprep.subr.bf16.mxu1 %v10774_v1  ;;  %v10841_v31 = vld [vmem:[#allocation3 + $0x14a0] ss:$16 sps:$4 sm:$0xff]   ;;  %v10852_v1 = vld [vmem:[#allocation3 + $0x10cc] ss:$16 sps:$4 sm:$0xff]  }
 0x293   :  { %6881 = vmatprep.subr.bf16.mxu0 %v10771_v63  ;;  %v10849_v63 = vld [vmem:[#allocation3 + $0x14c4] ss:$16 sps:$4 sm:$0xff]  }
 0x295   :  { %7456 = vmatpush1.bf16.msra.mxu1 %v10772_v3  ;;  %v10850_v3 = vld [vmem:[#allocation3 + $0x10c8] ss:$16 sps:$4 sm:$0xff]  }
 0x296   :  { %6882 = vmatpush1.bf16.msra.mxu0 %v10769_v2  ;;  %7457 = vmatprep.subr.bf16.mxu1 %v10780_v8  ;;  %v10847_v2 = vld [vmem:[#allocation3 + $0x14c0] ss:$16 sps:$4 sm:$0xff]   ;;  %v10858_v8 = vld [vmem:[#allocation3 + $0x10ec] ss:$16 sps:$4 sm:$0xff]  }
 0x297   :  { %6883 = vmatprep.subr.bf16.mxu0 %v10777_v36  ;;  %v10855_v36 = vld [vmem:[#allocation3 + $0x14e4] ss:$16 sps:$4 sm:$0xff]  }
 0x299   :  { %7458 = vmatpush1.bf16.msra.mxu1 %v10778_v22  ;;  %v10856_v22 = vld [vmem:[#allocation3 + $0x10e8] ss:$16 sps:$4 sm:$0xff]  }
 0x29a   :  { %6884 = vmatpush1.bf16.msra.mxu0 %v10775_v9  ;;  %7459 = vmatprep.subr.bf16.mxu1 %v10786_v14  ;;  %v10853_v9 = vld [vmem:[#allocation3 + $0x14e0] ss:$16 sps:$4 sm:$0xff]   ;;  %v10864_v14 = vld [vmem:[#allocation3 + $0x110c] ss:$16 sps:$4 sm:$0xff]  }
 0x29b   :  { %6885 = vmatprep.subr.bf16.mxu0 %v10783_v13  ;;  %v10861_v13 = vld [vmem:[#allocation3 + $0x1504] ss:$16 sps:$4 sm:$0xff]  }
 0x29d   :  { %7460 = vmatpush1.bf16.msra.mxu1 %v10784_v15  ;;  %v10862_v15 = vld [vmem:[#allocation3 + $0x1108] ss:$16 sps:$4 sm:$0xff]  }
 0x29e   :  { %6886 = vmatpush1.bf16.msra.mxu0 %v10781_v40  ;;  %7461 = vmatprep.subr.bf16.mxu1 %v10792_v45  ;;  %v10859_v40 = vld [vmem:[#allocation3 + $0x1500] ss:$16 sps:$4 sm:$0xff]   ;;  %v10870_v45 = vld [vmem:[#allocation3 + $0x112c] ss:$16 sps:$4 sm:$0xff]  }
 0x29f   :  { %6887 = vmatprep.subr.bf16.mxu0 %v10789_v16  ;;  %v10867_v16 = vld [vmem:[#allocation3 + $0x1524] ss:$16 sps:$4 sm:$0xff]  }
 0x2a1   :  { %7462 = vmatpush1.bf16.msra.mxu1 %v10790_v20  ;;  %v10868_v20 = vld [vmem:[#allocation3 + $0x1128] ss:$16 sps:$4 sm:$0xff]  }
 0x2a2   :  { %6888 = vmatpush1.bf16.msra.mxu0 %v10787_v19  ;;  %7463 = vmatprep.subr.bf16.mxu1 %v10798_v25  ;;  %v10865_v19 = vld [vmem:[#allocation3 + $0x1520] ss:$16 sps:$4 sm:$0xff]   ;;  %v10876_v25 = vld [vmem:[#allocation3 + $0x114c] ss:$16 sps:$4 sm:$0xff]  }
 0x2a3   :  { %6889 = vmatprep.subr.bf16.mxu0 %v10795_v21  ;;  %v10873_v21 = vld [vmem:[#allocation3 + $0x1544] ss:$16 sps:$4 sm:$0xff]  }
 0x2a5   :  { %7464 = vmatpush1.bf16.msra.mxu1 %v10796_v26  ;;  %v10874_v26 = vld [vmem:[#allocation3 + $0x1148] ss:$16 sps:$4 sm:$0xff]  }
 0x2a6   :  { %6890 = vmatpush1.bf16.msra.mxu0 %v10793_v50  ;;  %7465 = vmatprep.subr.bf16.mxu1 %v10804_v29  ;;  %v10871_v50 = vld [vmem:[#allocation3 + $0x1540] ss:$16 sps:$4 sm:$0xff]   ;;  %v10882_v29 = vld [vmem:[#allocation3 + $0x116c] ss:$16 sps:$4 sm:$0xff]  }
 0x2a7   :  { %6891 = vmatprep.subr.bf16.mxu0 %v10801_v28  ;;  %v10879_v28 = vld [vmem:[#allocation3 + $0x1564] ss:$16 sps:$4 sm:$0xff]  }
 0x2a9   :  { %7466 = vmatpush1.bf16.msra.mxu1 %v10802_v34  ;;  %v10888_v34 = vld [vmem:[#allocation3 + $0x118c] ss:$16 sps:$4 sm:$0xff]  }
 0x2aa   :  { %6892 = vmatpush1.bf16.msra.mxu0 %v10799_v33  ;;  %7467 = vmatprep.subr.bf16.mxu1 %v10810_v37  ;;  %v10885_v33 = vld [vmem:[#allocation3 + $0x1584] ss:$16 sps:$4 sm:$0xff]   ;;  %v10886_v37 = vld [vmem:[#allocation3 + $0x1188] ss:$16 sps:$4 sm:$0xff]  }
 0x2ab   :  { %6893 = vmatprep.subr.bf16.mxu0 %v10807_v7  ;;  %v10883_v7 = vld [vmem:[#allocation3 + $0x1580] ss:$16 sps:$4 sm:$0xff]  }
 0x2ad   :  { %7468 = vmatpush1.bf16.msra.mxu1 %v10808_v38  ;;  %v10894_v38 = vld [vmem:[#allocation3 + $0x11ac] ss:$16 sps:$4 sm:$0xff]  }
 0x2ae   :  { %6894 = vmatpush1.bf16.msra.mxu0 %v10805_v61  ;;  %7478 = vmatprep.subr.bf16.mxu1 %v10816_v41  ;;  %v10891_v61 = vld [vmem:[#allocation3 + $0x15a4] ss:$16 sps:$4 sm:$0xff]   ;;  %v10892_v41 = vld [vmem:[#allocation3 + $0x11a8] ss:$16 sps:$4 sm:$0xff]  }
 0x2af   :  { %6904 = vmatprep.subr.bf16.mxu0 %v10813_v39  ;;  %v10889_v39 = vld [vmem:[#allocation3 + $0x15a0] ss:$16 sps:$4 sm:$0xff]  }
 0x2b0   :  { %7470 = vmatmul.mubr.bf16.vlgmr.msra.gmra.mrb[4].mxu1 %v12024_v17  ;;  %v10834_v17 = vld [vmem:[#allocation3 + $0x106c] ss:$16 sps:$4 sm:$0xff]  }
 0x2b1   :  { %6896 = vmatmul.mubr.bf16.vlgmr.msra.gmra.mrb[0].mxu0 %v12055_v42  ;;  %7479 = vmatpush1.bf16.msra.mxu1 %v10814_v44  ;;  %v10895_v44 = vld [vmem:[#allocation3 + $0x15c0] ss:$16 sps:$4 sm:$0xff]  }
 0x2b2   :  { %6905 = vmatpush1.bf16.msra.mxu0 %v10811_v0  ;;  %7480 = vmatprep.subr.bf16.mxu1 %v10822_v47  ;;  %v10900_v0 = vld [vmem:[#allocation3 + $0x11cc] ss:$16 sps:$4 sm:$0xff]   ;;  %v10903_v47 = vld [vmem:[#allocation3 + $0x15e4] ss:$16 sps:$4 sm:$0xff]  }
 0x2b3   :  { %6906 = vmatprep.subr.bf16.mxu0 %v10819_v46  ;;  %6936 = vmatprep.mubr.bf16.mxu0 %v12058_v11  ;;  %v10898_v46 = vld [vmem:[#allocation3 + $0x11c8] ss:$16 sps:$4 sm:$0xff]  }
 0x2b4   :  { %7510 = vmatprep.mubr.bf16.mxu1 %v12027_v23  ;;  %v10838_v23 = vld [vmem:[#allocation3 + $0x1088] ss:$16 sps:$4 sm:$0xff]  }
 0x2b5   :  { %7481 = vmatpush1.bf16.msra.mxu1 %v10820_v48  ;;  %v10901_v48 = vld [vmem:[#allocation3 + $0x15e0] ss:$16 sps:$4 sm:$0xff]  }
 0x2b6   :  { %6907 = vmatpush1.bf16.msra.mxu0 %v10817_v18  ;;  %7482 = vmatprep.subr.bf16.mxu1 %v10828_v51  ;;  %v10906_v18 = vld [vmem:[#allocation3 + $0x11ec] ss:$16 sps:$4 sm:$0xff]   ;;  %v10910_v51 = vld [vmem:[#allocation3 + $0x1604] ss:$16 sps:$4 sm:$0xff]  }
 0x2b7   :  { %6908 = vmatprep.subr.bf16.mxu0 %v10825_v30  ;;  %v10904_v30 = vld [vmem:[#allocation3 + $0x11e8] ss:$16 sps:$4 sm:$0xff]  }
 0x2b9   :  { %7483 = vmatpush1.bf16.msra.mxu1 %v10826_v53  ;;  %v12066_v53 = vrot.slane %v12049_v12, %v11907_v49  ;;  %v10914_v12 = vld [vmem:[#allocation3 + $0x1620] ss:$16 sps:$4 sm:$0xff]  }
 0x2ba   :  { %6909 = vmatpush1.bf16.msra.mxu0 %v10823_v52  ;;  %7484 = vmatprep.subr.bf16.mxu1 %v10834_v17  ;;  %v10913_v52 = vld [vmem:[#allocation3 + $0x120c] ss:$16 sps:$4 sm:$0xff]   ;;  %v10911_v17 = vld [vmem:[#allocation3 + $0x1208] ss:$16 sps:$4 sm:$0xff]  }
 0x2bb   :  { %6910 = vmatprep.subr.bf16.mxu0 %v10831_v54  ;;  %v10908_v54 = vld [vmem:[#allocation3 + $0x1600] ss:$16 sps:$4 sm:$0xff]  }
 0x2bd   :  { %7485 = vmatpush1.bf16.msra.mxu1 %v10832_v27  ;;  %v10919_v27 = vld [vmem:[#allocation3 + $0x122c] ss:$16 sps:$4 sm:$0xff]  }
 0x2be   :  { %6911 = vmatpush1.bf16.msra.mxu0 %v10829_v55  ;;  %7486 = vmatprep.subr.bf16.mxu1 %v10840_v24  ;;  %v10916_v55 = vld [vmem:[#allocation3 + $0x1624] ss:$16 sps:$4 sm:$0xff]   ;;  %v10917_v24 = vld [vmem:[#allocation3 + $0x1228] ss:$16 sps:$4 sm:$0xff]  }
 0x2bf   :  { %6912 = vmatprep.subr.bf16.mxu0 %v10837_v56  ;;  %v12070_v56 = vcombine.high %v12058_v11, %v12058_v11 }
 0x2c1   :  { %7487 = vmatpush1.bf16.msra.mxu1 %v10838_v23  ;;  %v10925_v23 = vld [vmem:[#allocation3 + $0x124c] ss:$16 sps:$4 sm:$0xff]  }
 0x2c2   :  { %6913 = vmatpush1.bf16.msra.mxu0 %v10835_v58  ;;  %7488 = vmatprep.subr.bf16.mxu1 %v10846_v60  ;;  %v10922_v58 = vld [vmem:[#allocation3 + $0x1644] ss:$16 sps:$4 sm:$0xff]   ;;  %v10923_v60 = vld [vmem:[#allocation3 + $0x1248] ss:$16 sps:$4 sm:$0xff]  }
 0x2c3   :  { %6914 = vmatprep.subr.bf16.mxu0 %v10843_v59  ;;  %v10920_v59 = vld [vmem:[#allocation3 + $0x1640] ss:$16 sps:$4 sm:$0xff]  }
 0x2c5   :  { %7489 = vmatpush1.bf16.msra.mxu1 %v10844_v62  ;;  %v10926_v62 = vld [vmem:[#allocation3 + $0x1660] ss:$16 sps:$4 sm:$0xff]  }
 0x2c6   :  { %6915 = vmatpush1.bf16.msra.mxu0 %v10841_v31  ;;  %7490 = vmatprep.subr.bf16.mxu1 %v10852_v1  ;;  %v10928_v31 = vld [vmem:[#allocation3 + $0x1664] ss:$16 sps:$4 sm:$0xff]  }
 0x2c7   :  { %6916 = vmatprep.subr.bf16.mxu0 %v10849_v63  ;;  %v10929_v63 = vld [vmem:[#allocation3 + $0x1268] ss:$16 sps:$4 sm:$0xff]   ;;  %v10934_v1 = vld [vmem:[#allocation3 + $0x1684] ss:$16 sps:$4 sm:$0xff]  }
 0x2c9   :  { %7491 = vmatpush1.bf16.msra.mxu1 %v10850_v3  ;;  %v10932_v3 = vld [vmem:[#allocation3 + $0x1680] ss:$16 sps:$4 sm:$0xff]  }
 0x2ca   :  { %6917 = vmatpush1.bf16.msra.mxu0 %v10847_v2  ;;  %7492 = vmatprep.subr.bf16.mxu1 %v10858_v8  ;;  %v10937_v2 = vld [vmem:[#allocation3 + $0x128c] ss:$16 sps:$4 sm:$0xff]  }
 0x2cb   :  { %6918 = vmatprep.subr.bf16.mxu0 %v10855_v36  ;;  %v10940_v36 = vld [vmem:[#allocation3 + $0x16a4] ss:$16 sps:$4 sm:$0xff]   ;;  %v10943_v8 = vld [vmem:[#allocation3 + $0x12ac] ss:$16 sps:$4 sm:$0xff]  }
 0x2cd   :  { %7493 = vmatpush1.bf16.msra.mxu1 %v10856_v22  ;;  %v10941_v22 = vld [vmem:[#allocation3 + $0x12a8] ss:$16 sps:$4 sm:$0xff]  }
 0x2ce   :  { %6919 = vmatpush1.bf16.msra.mxu0 %v10853_v9  ;;  %7494 = vmatprep.subr.bf16.mxu1 %v10864_v14  ;;  %v10938_v9 = vld [vmem:[#allocation3 + $0x16a0] ss:$16 sps:$4 sm:$0xff]   ;;  %v10949_v14 = vld [vmem:[#allocation3 + $0x12cc] ss:$16 sps:$4 sm:$0xff]  }
 0x2cf   :  { %6920 = vmatprep.subr.bf16.mxu0 %v10861_v13  ;;  %v10946_v13 = vld [vmem:[#allocation3 + $0x16c4] ss:$16 sps:$4 sm:$0xff]  }
 0x2d1   :  { %7495 = vmatpush1.bf16.msra.mxu1 %v10862_v15  ;;  %v10947_v15 = vld [vmem:[#allocation3 + $0x12c8] ss:$16 sps:$4 sm:$0xff]  }
 0x2d2   :  { %6921 = vmatpush1.bf16.msra.mxu0 %v10859_v40  ;;  %7496 = vmatprep.subr.bf16.mxu1 %v10870_v45  ;;  %v10944_v40 = vld [vmem:[#allocation3 + $0x16c0] ss:$16 sps:$4 sm:$0xff]   ;;  %v10955_v45 = vld [vmem:[#allocation3 + $0x12ec] ss:$16 sps:$4 sm:$0xff]  }
 0x2d3   :  { %6922 = vmatprep.subr.bf16.mxu0 %v10867_v16  ;;  %v10952_v16 = vld [vmem:[#allocation3 + $0x16e4] ss:$16 sps:$4 sm:$0xff]  }
 0x2d5   :  { %7497 = vmatpush1.bf16.msra.mxu1 %v10868_v20  ;;  %v10953_v20 = vld [vmem:[#allocation3 + $0x12e8] ss:$16 sps:$4 sm:$0xff]  }
 0x2d6   :  { %6923 = vmatpush1.bf16.msra.mxu0 %v10865_v19  ;;  %7498 = vmatprep.subr.bf16.mxu1 %v10876_v25  ;;  %v10950_v19 = vld [vmem:[#allocation3 + $0x16e0] ss:$16 sps:$4 sm:$0xff]   ;;  %v10961_v25 = vld [vmem:[#allocation3 + $0x130c] ss:$16 sps:$4 sm:$0xff]  }
 0x2d7   :  { %6924 = vmatprep.subr.bf16.mxu0 %v10873_v21  ;;  %v10958_v21 = vld [vmem:[#allocation3 + $0x1704] ss:$16 sps:$4 sm:$0xff]  }
 0x2d9   :  { %7499 = vmatpush1.bf16.msra.mxu1 %v10874_v26  ;;  %v10959_v26 = vld [vmem:[#allocation3 + $0x1308] ss:$16 sps:$4 sm:$0xff]  }
 0x2da   :  { %6925 = vmatpush1.bf16.msra.mxu0 %v10871_v50  ;;  %7500 = vmatprep.subr.bf16.mxu1 %v10882_v29  ;;  %v10956_v50 = vld [vmem:[#allocation3 + $0x1700] ss:$16 sps:$4 sm:$0xff]   ;;  %v10967_v29 = vld [vmem:[#allocation3 + $0x132c] ss:$16 sps:$4 sm:$0xff]  }
 0x2db   :  { %6926 = vmatprep.subr.bf16.mxu0 %v10879_v28  ;;  %v10964_v28 = vld [vmem:[#allocation3 + $0x1724] ss:$16 sps:$4 sm:$0xff]  }
 0x2dd   :  { %7501 = vmatpush1.bf16.msra.mxu1 %v10880_v57  ;;  %v10965_v57 = vld [vmem:[#allocation3 + $0x1328] ss:$16 sps:$4 sm:$0xff]  }
 0x2de   :  { %6927 = vmatpush1.bf16.msra.mxu0 %v10877_v10  ;;  %7502 = vmatprep.subr.bf16.mxu1 %v10888_v34  ;;  %v10962_v10 = vld [vmem:[#allocation3 + $0x1720] ss:$16 sps:$4 sm:$0xff]   ;;  %v10973_v34 = vld [vmem:[#allocation3 + $0x134c] ss:$16 sps:$4 sm:$0xff]  }
 0x2df   :  { %6928 = vmatprep.subr.bf16.mxu0 %v10885_v33  ;;  %v10970_v33 = vld [vmem:[#allocation3 + $0x1744] ss:$16 sps:$4 sm:$0xff]  }
 0x2e1   :  { %7503 = vmatpush1.bf16.msra.mxu1 %v10886_v37  ;;  %v10971_v37 = vld [vmem:[#allocation3 + $0x1348] ss:$16 sps:$4 sm:$0xff]  }
 0x2e2   :  { %6929 = vmatpush1.bf16.msra.mxu0 %v10883_v7  ;;  %7504 = vmatprep.subr.bf16.mxu1 %v10894_v38  ;;  %v10968_v7 = vld [vmem:[#allocation3 + $0x1740] ss:$16 sps:$4 sm:$0xff]   ;;  %v10979_v38 = vld [vmem:[#allocation3 + $0x136c] ss:$16 sps:$4 sm:$0xff]  }
 0x2e3   :  { %6930 = vmatprep.subr.bf16.mxu0 %v10891_v61  ;;  %v10976_v61 = vld [vmem:[#allocation3 + $0x1764] ss:$16 sps:$4 sm:$0xff]  }
 0x2e5   :  { %7505 = vmatpush1.bf16.msra.mxu1 %v10892_v41  ;;  %v10977_v41 = vld [vmem:[#allocation3 + $0x1368] ss:$16 sps:$4 sm:$0xff]  }
 0x2e6   :  { %6931 = vmatpush1.bf16.msra.mxu0 %v10889_v39  ;;  %7506 = vmatprep.subr.bf16.mxu1 %v10900_v0  ;;  %v10974_v39 = vld [vmem:[#allocation3 + $0x1760] ss:$16 sps:$4 sm:$0xff]   ;;  %v10985_v0 = vld [vmem:[#allocation3 + $0x138c] ss:$16 sps:$4 sm:$0xff]  }
 0x2e7   :  { %6932 = vmatprep.subr.bf16.mxu0 %v10897_v6  ;;  %v10982_v6 = vld [vmem:[#allocation3 + $0x1784] ss:$16 sps:$4 sm:$0xff]  }
 0x2e9   :  { %7507 = vmatpush1.bf16.msra.mxu1 %v10898_v46  ;;  %v10983_v46 = vld [vmem:[#allocation3 + $0x1388] ss:$16 sps:$4 sm:$0xff]  }
 0x2ea   :  { %6933 = vmatpush1.bf16.msra.mxu0 %v10895_v44  ;;  %7508 = vmatprep.subr.bf16.mxu1 %v10906_v18  ;;  %v10980_v44 = vld [vmem:[#allocation3 + $0x1780] ss:$16 sps:$4 sm:$0xff]   ;;  %v10991_v18 = vld [vmem:[#allocation3 + $0x13ac] ss:$16 sps:$4 sm:$0xff]  }
 0x2eb   :  { %6934 = vmatprep.subr.bf16.mxu0 %v10903_v47  ;;  %v10988_v47 = vld [vmem:[#allocation3 + $0x17a4] ss:$16 sps:$4 sm:$0xff]  }
 0x2ed   :  { %7509 = vmatpush1.bf16.msra.mxu1 %v10904_v30  ;;  %v10989_v30 = vld [vmem:[#allocation3 + $0x13a8] ss:$16 sps:$4 sm:$0xff]  }
 0x2ee   :  { %6935 = vmatpush1.bf16.msra.mxu0 %v10901_v48  ;;  %7519 = vmatprep.subr.bf16.mxu1 %v10913_v52  ;;  %v10986_v48 = vld [vmem:[#allocation3 + $0x17a0] ss:$16 sps:$4 sm:$0xff]   ;;  %v10997_v52 = vld [vmem:[#allocation3 + $0x13cc] ss:$16 sps:$4 sm:$0xff]  }
 0x2ef   :  { %6945 = vmatprep.subr.bf16.mxu0 %v10910_v51  ;;  %v10994_v51 = vld [vmem:[#allocation3 + $0x17c4] ss:$16 sps:$4 sm:$0xff]  }
 0x2f0   :  { %7511 = vmatmul.mubr.bf16.vlgmr.msra.gmra.mrb[4].mxu1 %v12035_v32  ;;  %v10931_v32 = vld [vmem:[#allocation3 + $0x126c] ss:$16 sps:$4 sm:$0xff]  }
 0x2f1   :  { %6937 = vmatmul.mubr.bf16.vlgmr.msra.gmra.mrb[0].mxu0 %v12066_v53  ;;  %7520 = vmatpush1.bf16.msra.mxu1 %v10911_v17  ;;  %v10992_v17 = vld [vmem:[#allocation3 + $0x17c0] ss:$16 sps:$4 sm:$0xff]  }
 0x2f2   :  { %6946 = vmatpush1.bf16.msra.mxu0 %v10908_v54  ;;  %7521 = vmatprep.subr.bf16.mxu1 %v10919_v27  ;;  %v12079_v54 = vld [vmem:[%s12243_s0 + $0x18] sm:$0xff]  ;;  %v11000_v27 = vld [vmem:[#allocation3 + $0x17e4] ss:$16 sps:$4 sm:$0xff]  }
 0x2f3   :  { %6947 = vmatprep.subr.bf16.mxu0 %v10916_v55  ;;  %6977 = vmatprep.mubr.bf16.mxu0 %v12070_v56  ;;  %v10995_v55 = vld [vmem:[#allocation3 + $0x13c8] ss:$16 sps:$4 sm:$0xff]  }
 0x2f4   :  { %7551 = vmatprep.mubr.bf16.mxu1 %v12039_v35  ;;  %v10935_v35 = vld [vmem:[#allocation3 + $0x1288] ss:$16 sps:$4 sm:$0xff]  }
 0x2f5   :  { %7522 = vmatpush1.bf16.msra.mxu1 %v10917_v24  ;;  %v12083_v24 = vrot.slane %v12079_v54, %v11907_v49 }
 0x2f6   :  { %6948 = vmatpush1.bf16.msra.mxu0 %v10914_v12  ;;  %7523 = vmatprep.subr.bf16.mxu1 %v10925_v23  ;;  %v11003_v12 = vld [vmem:[#allocation3 + $0x13ec] ss:$16 sps:$4 sm:$0xff]   ;;  %v11001_v23 = vld [vmem:[#allocation3 + $0x13e8] ss:$16 sps:$4 sm:$0xff]  }
 0x2f7   :  { %6949 = vmatprep.subr.bf16.mxu0 %v10922_v58  ;;  %v10998_v58 = vld [vmem:[#allocation3 + $0x17e0] ss:$16 sps:$4 sm:$0xff]  }
 0x2f9   :  { %7524 = vmatpush1.bf16.msra.mxu1 %v10923_v60  ;;  %v11009_v60 = vld [vmem:[#allocation3 + $0x140c] ss:$16 sps:$4 sm:$0xff]  }
 0x2fa   :  { %6950 = vmatpush1.bf16.msra.mxu0 %v10920_v59  ;;  %7525 = vmatprep.subr.bf16.mxu1 %v10931_v32  ;;  %v11006_v59 = vld [vmem:[#allocation3 + $0x1804] ss:$16 sps:$4 sm:$0xff]   ;;  %v12089_v32 = vcombine.high %v12066_v53, %v12066_v53 }
 0x2fb   :  { %6951 = vmatprep.subr.bf16.mxu0 %v10928_v31  ;;  %v1308_v31 = vcombine.high %v12083_v24, %v12083_v24 }
 0x2fd   :  { %7526 = vmatpush1.bf16.msra.mxu1 %v10929_v63  ;;  %v11007_v63 = vld [vmem:[#allocation3 + $0x1408] ss:$16 sps:$4 sm:$0xff]  }
 0x2fe   :  { %6952 = vmatpush1.bf16.msra.mxu0 %v10926_v62  ;;  %7527 = vmatprep.subr.bf16.mxu1 %v10937_v2  ;;  %v11004_v62 = vld [vmem:[#allocation3 + $0x1800] ss:$16 sps:$4 sm:$0xff]   ;;  %v11015_v2 = vld [vmem:[#allocation3 + $0x142c] ss:$16 sps:$4 sm:$0xff]  }
 0x2ff   :  { %6953 = vmatprep.subr.bf16.mxu0 %v10934_v1  ;;  %v11012_v1 = vld [vmem:[#allocation3 + $0x1824] ss:$16 sps:$4 sm:$0xff]  }
 0x301   :  { %7528 = vmatpush1.bf16.msra.mxu1 %v10935_v35  ;;  %v11010_v35 = vld [vmem:[#allocation3 + $0x1820] ss:$16 sps:$4 sm:$0xff]  }
 0x302   :  { %6954 = vmatpush1.bf16.msra.mxu0 %v10932_v3  ;;  %7529 = vmatprep.subr.bf16.mxu1 %v10943_v8  ;;  %v12092_v3 = vrot.slane %v1308_v31, %v11907_v49  ;;  %v11018_v8 = vld [vmem:[#allocation3 + $0x1844] ss:$16 sps:$4 sm:$0xff]   ;;  %v11085_v31 = vld [vmem:[#allocation3 + $0x15a8] ss:$16 sps:$4 sm:$0xff]  }
 0x303   :  { %6955 = vmatprep.subr.bf16.mxu0 %v10940_v36  ;;  %v11013_v36 = vld [vmem:[#allocation3 + $0x1428] ss:$16 sps:$4 sm:$0xff]  }
 0x305   :  { %7530 = vmatpush1.bf16.msra.mxu1 %v10941_v22  ;;  %v11016_v22 = vld [vmem:[#allocation3 + $0x1840] ss:$16 sps:$4 sm:$0xff]  }
 0x306   :  { %6956 = vmatpush1.bf16.msra.mxu0 %v10938_v9  ;;  %7531 = vmatprep.subr.bf16.mxu1 %v10949_v14  ;;  %v11021_v9 = vld [vmem:[#allocation3 + $0x144c] ss:$16 sps:$4 sm:$0xff]   ;;  %v11024_v14 = vld [vmem:[#allocation3 + $0x1864] ss:$16 sps:$4 sm:$0xff]  }
 0x307   :  { %6957 = vmatprep.subr.bf16.mxu0 %v10946_v13  ;;  %v11019_v13 = vld [vmem:[#allocation3 + $0x1448] ss:$16 sps:$4 sm:$0xff]  }
 0x309   :  { %7532 = vmatpush1.bf16.msra.mxu1 %v10947_v15  ;;  %v11025_v15 = vld [vmem:[#allocation3 + $0x1468] ss:$16 sps:$4 sm:$0xff]  }
 0x30a   :  { %6958 = vmatpush1.bf16.msra.mxu0 %v10944_v40  ;;  %7533 = vmatprep.subr.bf16.mxu1 %v10955_v45  ;;  %v11022_v40 = vld [vmem:[#allocation3 + $0x1860] ss:$16 sps:$4 sm:$0xff]   ;;  %v11033_v45 = vld [vmem:[#allocation3 + $0x148c] ss:$16 sps:$4 sm:$0xff]  }
 0x30b   :  { %6959 = vmatprep.subr.bf16.mxu0 %v10952_v16  ;;  %v11030_v16 = vld [vmem:[#allocation3 + $0x1884] ss:$16 sps:$4 sm:$0xff]  }
 0x30d   :  { %7534 = vmatpush1.bf16.msra.mxu1 %v10953_v20  ;;  %v11036_v20 = vld [vmem:[#allocation3 + $0x18a4] ss:$16 sps:$4 sm:$0xff]  }
 0x30e   :  { %6960 = vmatpush1.bf16.msra.mxu0 %v10950_v19  ;;  %7535 = vmatprep.subr.bf16.mxu1 %v10961_v25  ;;  %v11028_v19 = vld [vmem:[#allocation3 + $0x1880] ss:$16 sps:$4 sm:$0xff]  }
 0x30f   :  { %6961 = vmatprep.subr.bf16.mxu0 %v10958_v21  ;;  %v11039_v21 = vld [vmem:[#allocation3 + $0x14ac] ss:$16 sps:$4 sm:$0xff]   ;;  %v11034_v25 = vld [vmem:[#allocation3 + $0x18a0] ss:$16 sps:$4 sm:$0xff]  }
 0x311   :  { %7536 = vmatpush1.bf16.msra.mxu1 %v10959_v26  ;;  %v11042_v26 = vld [vmem:[#allocation3 + $0x18c4] ss:$16 sps:$4 sm:$0xff]  }
 0x312   :  { %6962 = vmatpush1.bf16.msra.mxu0 %v10956_v50  ;;  %7537 = vmatprep.subr.bf16.mxu1 %v10967_v29  ;;  %v11037_v50 = vld [vmem:[#allocation3 + $0x14a8] ss:$16 sps:$4 sm:$0xff]   ;;  %v11040_v29 = vld [vmem:[#allocation3 + $0x18c0] ss:$16 sps:$4 sm:$0xff]  }
 0x313   :  { %6963 = vmatprep.subr.bf16.mxu0 %v10964_v28  ;;  %v11045_v28 = vld [vmem:[#allocation3 + $0x14cc] ss:$16 sps:$4 sm:$0xff]  }
 0x315   :  { %7538 = vmatpush1.bf16.msra.mxu1 %v10965_v57  ;;  %v11048_v57 = vld [vmem:[#allocation3 + $0x18e4] ss:$16 sps:$4 sm:$0xff]  }
 0x316   :  { %6964 = vmatpush1.bf16.msra.mxu0 %v10962_v10  ;;  %7539 = vmatprep.subr.bf16.mxu1 %v10973_v34  ;;  %v11043_v10 = vld [vmem:[#allocation3 + $0x14c8] ss:$16 sps:$4 sm:$0xff]   ;;  %v11046_v34 = vld [vmem:[#allocation3 + $0x18e0] ss:$16 sps:$4 sm:$0xff]  }
 0x317   :  { %6965 = vmatprep.subr.bf16.mxu0 %v10970_v33  ;;  %v11051_v33 = vld [vmem:[#allocation3 + $0x14ec] ss:$16 sps:$4 sm:$0xff]  }
 0x319   :  { %7540 = vmatpush1.bf16.msra.mxu1 %v10971_v37  ;;  %v11054_v37 = vld [vmem:[#allocation3 + $0x1904] ss:$16 sps:$4 sm:$0xff]  }
 0x31a   :  { %6966 = vmatpush1.bf16.msra.mxu0 %v10968_v7  ;;  %7541 = vmatprep.subr.bf16.mxu1 %v10979_v38  ;;  %v11049_v7 = vld [vmem:[#allocation3 + $0x14e8] ss:$16 sps:$4 sm:$0xff]   ;;  %v11052_v38 = vld [vmem:[#allocation3 + $0x1900] ss:$16 sps:$4 sm:$0xff]  }
 0x31b   :  { %6967 = vmatprep.subr.bf16.mxu0 %v10976_v61  ;;  %v11057_v61 = vld [vmem:[#allocation3 + $0x150c] ss:$16 sps:$4 sm:$0xff]  }
 0x31d   :  { %7542 = vmatpush1.bf16.msra.mxu1 %v10977_v41  ;;  %v11060_v41 = vld [vmem:[#allocation3 + $0x1924] ss:$16 sps:$4 sm:$0xff]  }
 0x31e   :  { %6968 = vmatpush1.bf16.msra.mxu0 %v10974_v39  ;;  %7543 = vmatprep.subr.bf16.mxu1 %v10985_v0  ;;  %v11055_v39 = vld [vmem:[#allocation3 + $0x1508] ss:$16 sps:$4 sm:$0xff]   ;;  %v11058_v0 = vld [vmem:[#allocation3 + $0x1920] ss:$16 sps:$4 sm:$0xff]  }
 0x31f   :  { %6969 = vmatprep.subr.bf16.mxu0 %v10982_v6  ;;  %v11063_v6 = vld [vmem:[#allocation3 + $0x152c] ss:$16 sps:$4 sm:$0xff]  }
 0x321   :  { %7544 = vmatpush1.bf16.msra.mxu1 %v10983_v46  ;;  %v11066_v46 = vld [vmem:[#allocation3 + $0x1944] ss:$16 sps:$4 sm:$0xff]  }
 0x322   :  { %6970 = vmatpush1.bf16.msra.mxu0 %v10980_v44  ;;  %7545 = vmatprep.subr.bf16.mxu1 %v10991_v18  ;;  %v11061_v44 = vld [vmem:[#allocation3 + $0x1528] ss:$16 sps:$4 sm:$0xff]   ;;  %v11064_v18 = vld [vmem:[#allocation3 + $0x1940] ss:$16 sps:$4 sm:$0xff]  }
 0x323   :  { %6971 = vmatprep.subr.bf16.mxu0 %v10988_v47  ;;  %v11069_v47 = vld [vmem:[#allocation3 + $0x154c] ss:$16 sps:$4 sm:$0xff]  }
 0x325   :  { %7546 = vmatpush1.bf16.msra.mxu1 %v10989_v30  ;;  %v11072_v30 = vld [vmem:[#allocation3 + $0x1964] ss:$16 sps:$4 sm:$0xff]  }
 0x326   :  { %6972 = vmatpush1.bf16.msra.mxu0 %v10986_v48  ;;  %7547 = vmatprep.subr.bf16.mxu1 %v10997_v52  ;;  %v11067_v48 = vld [vmem:[#allocation3 + $0x1548] ss:$16 sps:$4 sm:$0xff]   ;;  %v11070_v52 = vld [vmem:[#allocation3 + $0x1960] ss:$16 sps:$4 sm:$0xff]  }
 0x327   :  { %6973 = vmatprep.subr.bf16.mxu0 %v10994_v51  ;;  %v11075_v51 = vld [vmem:[#allocation3 + $0x156c] ss:$16 sps:$4 sm:$0xff]  }
 0x329   :  { %7548 = vmatpush1.bf16.msra.mxu1 %v10995_v55  ;;  %v11078_v55 = vld [vmem:[#allocation3 + $0x1984] ss:$16 sps:$4 sm:$0xff]  }
 0x32a   :  { %6974 = vmatpush1.bf16.msra.mxu0 %v10992_v17  ;;  %7549 = vmatprep.subr.bf16.mxu1 %v11003_v12  ;;  %v11073_v17 = vld [vmem:[#allocation3 + $0x1568] ss:$16 sps:$4 sm:$0xff]   ;;  %v11076_v12 = vld [vmem:[#allocation3 + $0x1980] ss:$16 sps:$4 sm:$0xff]  }
 0x32b   :  { %6975 = vmatprep.subr.bf16.mxu0 %v11000_v27  ;;  %v11081_v27 = vld [vmem:[#allocation3 + $0x158c] ss:$16 sps:$4 sm:$0xff]  }
 0x32d   :  { %7550 = vmatpush1.bf16.msra.mxu1 %v11001_v23  ;;  %v11084_v23 = vld [vmem:[#allocation3 + $0x19a4] ss:$16 sps:$4 sm:$0xff]  }
 0x32e   :  { %6976 = vmatpush1.bf16.msra.mxu0 %v10998_v58  ;;  %7560 = vmatprep.subr.bf16.mxu1 %v11009_v60  ;;  %v11079_v58 = vld [vmem:[#allocation3 + $0x1588] ss:$16 sps:$4 sm:$0xff]   ;;  %v11082_v60 = vld [vmem:[#allocation3 + $0x19a0] ss:$16 sps:$4 sm:$0xff]  }
 0x32f   :  { %6986 = vmatprep.subr.bf16.mxu0 %v11006_v59  ;;  %v11087_v59 = vld [vmem:[#allocation3 + $0x15ac] ss:$16 sps:$4 sm:$0xff]  }
 0x330   :  { %7552 = vmatmul.mubr.bf16.vlgmr.msra.gmra.mrb[4].mxu1 %v12055_v42  ;;  %v11027_v42 = vld [vmem:[#allocation3 + $0x146c] ss:$16 sps:$4 sm:$0xff]  }
 0x331   :  { %6978 = vmatmul.mubr.bf16.vlgmr.msra.gmra.mrb[0].mxu0 %v12089_v32  ;;  %7561 = vmatpush1.bf16.msra.mxu1 %v11007_v63  ;;  %v11093_v63 = vld [vmem:[#allocation3 + $0x15cc] ss:$16 sps:$4 sm:$0xff]  }
 0x332   :  { %6987 = vmatpush1.bf16.msra.mxu0 %v11004_v62  ;;  %7562 = vmatprep.subr.bf16.mxu1 %v11015_v2  ;;  %v11090_v62 = vld [vmem:[#allocation3 + $0x19c4] ss:$16 sps:$4 sm:$0xff]   ;;  %v11091_v2 = vld [vmem:[#allocation3 + $0x15c8] ss:$16 sps:$4 sm:$0xff]  }
 0x333   :  { %6988 = vmatprep.subr.bf16.mxu0 %v11012_v1  ;;  %7018 = vmatprep.mubr.bf16.mxu0 %v12092_v3  ;;  %v11088_v1 = vld [vmem:[#allocation3 + $0x19c0] ss:$16 sps:$4 sm:$0xff]  }
 0x334   :  { %7592 = vmatprep.mubr.bf16.mxu1 %v12058_v11  ;;  %v11031_v11 = vld [vmem:[#allocation3 + $0x1488] ss:$16 sps:$4 sm:$0xff]  }
 0x335   :  { %7563 = vmatpush1.bf16.msra.mxu1 %v11013_v36  ;;  %v11099_v36 = vld [vmem:[#allocation3 + $0x15ec] ss:$16 sps:$4 sm:$0xff]  }
 0x336   :  { %6989 = vmatpush1.bf16.msra.mxu0 %v11010_v35  ;;  %7564 = vmatprep.subr.bf16.mxu1 %v11021_v9  ;;  %v11096_v35 = vld [vmem:[#allocation3 + $0x19e4] ss:$16 sps:$4 sm:$0xff]   ;;  %v11097_v9 = vld [vmem:[#allocation3 + $0x15e8] ss:$16 sps:$4 sm:$0xff]  }
 0x337   :  { %6990 = vmatprep.subr.bf16.mxu0 %v11018_v8  ;;  %v11094_v8 = vld [vmem:[#allocation3 + $0x19e0] ss:$16 sps:$4 sm:$0xff]  }
 0x339   :  { %7565 = vmatpush1.bf16.msra.mxu1 %v11019_v13  ;;  %v11105_v13 = vld [vmem:[#allocation3 + $0x160c] ss:$16 sps:$4 sm:$0xff]  }
 0x33a   :  { %6991 = vmatpush1.bf16.msra.mxu0 %v11016_v22  ;;  %7566 = vmatprep.subr.bf16.mxu1 %v11027_v42  ;;  %v11102_v22 = vld [vmem:[#allocation3 + $0x1a04] ss:$16 sps:$4 sm:$0xff]   ;;  %v11100_v42 = vld [vmem:[#allocation3 + $0x1a00] ss:$16 sps:$4 sm:$0xff]  }
 0x33b   :  { %6992 = vmatprep.subr.bf16.mxu0 %v11024_v14  ;;  %v12100_v14 = vrot.slane %v12083_v24, %v11907_v49  ;;  %v11106_v24 = vld [vmem:[#allocation3 + $0x1a20] ss:$16 sps:$4 sm:$0xff]  }
 0x33d   :  { %7567 = vmatpush1.bf16.msra.mxu1 %v11025_v15  ;;  %v11108_v15 = vld [vmem:[#allocation3 + $0x1a24] ss:$16 sps:$4 sm:$0xff]  }
 0x33e   :  { %6993 = vmatpush1.bf16.msra.mxu0 %v11022_v40  ;;  %7568 = vmatprep.subr.bf16.mxu1 %v11033_v45  ;;  %v11103_v40 = vld [vmem:[#allocation3 + $0x1608] ss:$16 sps:$4 sm:$0xff]   ;;  %v12104_v45 = vcombine.high %v12092_v3, %v12092_v3 }
 0x33f   :  { %6994 = vmatprep.subr.bf16.mxu0 %v11030_v16  ;;  %v11111_v16 = vld [vmem:[#allocation3 + $0x162c] ss:$16 sps:$4 sm:$0xff]  }
 0x341   :  { %7569 = vmatpush1.bf16.msra.mxu1 %v11031_v11  ;;  %v11114_v11 = vld [vmem:[#allocation3 + $0x1a44] ss:$16 sps:$4 sm:$0xff]  }
 0x342   :  { %6995 = vmatpush1.bf16.msra.mxu0 %v11028_v19  ;;  %7570 = vmatprep.subr.bf16.mxu1 %v11039_v21  ;;  %v11109_v19 = vld [vmem:[#allocation3 + $0x1628] ss:$16 sps:$4 sm:$0xff]   ;;  %v11112_v21 = vld [vmem:[#allocation3 + $0x1a40] ss:$16 sps:$4 sm:$0xff]  }
 0x343   :  { %6996 = vmatprep.subr.bf16.mxu0 %v11036_v20  ;;  %v11117_v20 = vld [vmem:[#allocation3 + $0x164c] ss:$16 sps:$4 sm:$0xff]  }
 0x345   :  { %7571 = vmatpush1.bf16.msra.mxu1 %v11037_v50  ;;  %v11120_v50 = vld [vmem:[#allocation3 + $0x1a64] ss:$16 sps:$4 sm:$0xff]  }
 0x346   :  { %6997 = vmatpush1.bf16.msra.mxu0 %v11034_v25  ;;  %7572 = vmatprep.subr.bf16.mxu1 %v11045_v28  ;;  %v11115_v25 = vld [vmem:[#allocation3 + $0x1648] ss:$16 sps:$4 sm:$0xff]  }
 0x347   :  { %6998 = vmatprep.subr.bf16.mxu0 %v11042_v26  ;;  %v11118_v26 = vld [vmem:[#allocation3 + $0x1a60] ss:$16 sps:$4 sm:$0xff]   ;;  %v11121_v28 = vld [vmem:[#allocation3 + $0x1668] ss:$16 sps:$4 sm:$0xff]  }
 0x349   :  { %7573 = vmatpush1.bf16.msra.mxu1 %v11043_v10  ;;  %v11129_v10 = vld [vmem:[#allocation3 + $0x168c] ss:$16 sps:$4 sm:$0xff]  }
 0x34a   :  { %6999 = vmatpush1.bf16.msra.mxu0 %v11040_v29  ;;  %7574 = vmatprep.subr.bf16.mxu1 %v11051_v33  ;;  %v11126_v29 = vld [vmem:[#allocation3 + $0x1a84] ss:$16 sps:$4 sm:$0xff]  }
 0x34b   :  { %7000 = vmatprep.subr.bf16.mxu0 %v11048_v57  ;;  %v11124_v57 = vld [vmem:[#allocation3 + $0x1a80] ss:$16 sps:$4 sm:$0xff]   ;;  %v11132_v33 = vld [vmem:[#allocation3 + $0x1aa4] ss:$16 sps:$4 sm:$0xff]  }
 0x34d   :  { %7575 = vmatpush1.bf16.msra.mxu1 %v11049_v7  ;;  %v11130_v7 = vld [vmem:[#allocation3 + $0x1aa0] ss:$16 sps:$4 sm:$0xff]  }
 0x34e   :  { %7001 = vmatpush1.bf16.msra.mxu0 %v11046_v34  ;;  %7576 = vmatprep.subr.bf16.mxu1 %v11057_v61  ;;  %v11135_v34 = vld [vmem:[#allocation3 + $0x16ac] ss:$16 sps:$4 sm:$0xff]   ;;  %v11138_v61 = vld [vmem:[#allocation3 + $0x1ac4] ss:$16 sps:$4 sm:$0xff]  }
 0x34f   :  { %7002 = vmatprep.subr.bf16.mxu0 %v11054_v37  ;;  %v11133_v37 = vld [vmem:[#allocation3 + $0x16a8] ss:$16 sps:$4 sm:$0xff]  }
 0x351   :  { %7577 = vmatpush1.bf16.msra.mxu1 %v11055_v39  ;;  %v11136_v39 = vld [vmem:[#allocation3 + $0x1ac0] ss:$16 sps:$4 sm:$0xff]  }
 0x352   :  { %7003 = vmatpush1.bf16.msra.mxu0 %v11052_v38  ;;  %7578 = vmatprep.subr.bf16.mxu1 %v11063_v6  ;;  %v11141_v38 = vld [vmem:[#allocation3 + $0x16cc] ss:$16 sps:$4 sm:$0xff]   ;;  %v11144_v6 = vld [vmem:[#allocation3 + $0x1ae4] ss:$16 sps:$4 sm:$0xff]  }
 0x353   :  { %7004 = vmatprep.subr.bf16.mxu0 %v11060_v41  ;;  %v11139_v41 = vld [vmem:[#allocation3 + $0x16c8] ss:$16 sps:$4 sm:$0xff]  }
 0x355   :  { %7579 = vmatpush1.bf16.msra.mxu1 %v11061_v44  ;;  %v11142_v44 = vld [vmem:[#allocation3 + $0x1ae0] ss:$16 sps:$4 sm:$0xff]  }
 0x356   :  { %7005 = vmatpush1.bf16.msra.mxu0 %v11058_v0  ;;  %7580 = vmatprep.subr.bf16.mxu1 %v11069_v47  ;;  %v11147_v0 = vld [vmem:[#allocation3 + $0x16ec] ss:$16 sps:$4 sm:$0xff]   ;;  %v11150_v47 = vld [vmem:[#allocation3 + $0x1b04] ss:$16 sps:$4 sm:$0xff]  }
 0x357   :  { %7006 = vmatprep.subr.bf16.mxu0 %v11066_v46  ;;  %v11145_v46 = vld [vmem:[#allocation3 + $0x16e8] ss:$16 sps:$4 sm:$0xff]  }
 0x359   :  { %7581 = vmatpush1.bf16.msra.mxu1 %v11067_v48  ;;  %v11148_v48 = vld [vmem:[#allocation3 + $0x1b00] ss:$16 sps:$4 sm:$0xff]  }
 0x35a   :  { %7007 = vmatpush1.bf16.msra.mxu0 %v11064_v18  ;;  %7582 = vmatprep.subr.bf16.mxu1 %v11075_v51  ;;  %v11153_v18 = vld [vmem:[#allocation3 + $0x170c] ss:$16 sps:$4 sm:$0xff]   ;;  %v11156_v51 = vld [vmem:[#allocation3 + $0x1b24] ss:$16 sps:$4 sm:$0xff]  }
 0x35b   :  { %7008 = vmatprep.subr.bf16.mxu0 %v11072_v30  ;;  %v11151_v30 = vld [vmem:[#allocation3 + $0x1708] ss:$16 sps:$4 sm:$0xff]  }
 0x35d   :  { %7583 = vmatpush1.bf16.msra.mxu1 %v11073_v17  ;;  %v11154_v17 = vld [vmem:[#allocation3 + $0x1b20] ss:$16 sps:$4 sm:$0xff]  }
 0x35e   :  { %7009 = vmatpush1.bf16.msra.mxu0 %v11070_v52  ;;  %7584 = vmatprep.subr.bf16.mxu1 %v11081_v27  ;;  %v11159_v52 = vld [vmem:[#allocation3 + $0x172c] ss:$16 sps:$4 sm:$0xff]   ;;  %v11162_v27 = vld [vmem:[#allocation3 + $0x1b44] ss:$16 sps:$4 sm:$0xff]  }
 0x35f   :  { %7010 = vmatprep.subr.bf16.mxu0 %v11078_v55  ;;  %v11157_v55 = vld [vmem:[#allocation3 + $0x1728] ss:$16 sps:$4 sm:$0xff]  }
 0x361   :  { %7585 = vmatpush1.bf16.msra.mxu1 %v11079_v58  ;;  %v11160_v58 = vld [vmem:[#allocation3 + $0x1b40] ss:$16 sps:$4 sm:$0xff]  }
 0x362   :  { %7011 = vmatpush1.bf16.msra.mxu0 %v11076_v12  ;;  %7586 = vmatprep.subr.bf16.mxu1 %v11087_v59  ;;  %v11165_v12 = vld [vmem:[#allocation3 + $0x174c] ss:$16 sps:$4 sm:$0xff]   ;;  %v11168_v59 = vld [vmem:[#allocation3 + $0x1b64] ss:$16 sps:$4 sm:$0xff]  }
 0x363   :  { %7012 = vmatprep.subr.bf16.mxu0 %v11084_v23  ;;  %v11163_v23 = vld [vmem:[#allocation3 + $0x1748] ss:$16 sps:$4 sm:$0xff]  }
 0x365   :  { %7587 = vmatpush1.bf16.msra.mxu1 %v11085_v31  ;;  %v11166_v31 = vld [vmem:[#allocation3 + $0x1b60] ss:$16 sps:$4 sm:$0xff]  }
 0x366   :  { %7013 = vmatpush1.bf16.msra.mxu0 %v11082_v60  ;;  %7588 = vmatprep.subr.bf16.mxu1 %v11093_v63  ;;  %v11171_v60 = vld [vmem:[#allocation3 + $0x176c] ss:$16 sps:$4 sm:$0xff]   ;;  %v11174_v63 = vld [vmem:[#allocation3 + $0x1b84] ss:$16 sps:$4 sm:$0xff]  }
 0x367   :  { %7014 = vmatprep.subr.bf16.mxu0 %v11090_v62  ;;  %v11169_v62 = vld [vmem:[#allocation3 + $0x1768] ss:$16 sps:$4 sm:$0xff]  }
 0x369   :  { %7589 = vmatpush1.bf16.msra.mxu1 %v11091_v2  ;;  %v11172_v2 = vld [vmem:[#allocation3 + $0x1b80] ss:$16 sps:$4 sm:$0xff]  }
 0x36a   :  { %7015 = vmatpush1.bf16.msra.mxu0 %v11088_v1  ;;  %7590 = vmatprep.subr.bf16.mxu1 %v11099_v36  ;;  %v11177_v1 = vld [vmem:[#allocation3 + $0x178c] ss:$16 sps:$4 sm:$0xff]   ;;  %v11180_v36 = vld [vmem:[#allocation3 + $0x1ba4] ss:$16 sps:$4 sm:$0xff]  }
 0x36b   :  { %7016 = vmatprep.subr.bf16.mxu0 %v11096_v35  ;;  %v11175_v35 = vld [vmem:[#allocation3 + $0x1788] ss:$16 sps:$4 sm:$0xff]  }
 0x36d   :  { %7591 = vmatpush1.bf16.msra.mxu1 %v11097_v9  ;;  %v11178_v9 = vld [vmem:[#allocation3 + $0x1ba0] ss:$16 sps:$4 sm:$0xff]  }
 0x36e   :  { %7017 = vmatpush1.bf16.msra.mxu0 %v11094_v8  ;;  %7601 = vmatprep.subr.bf16.mxu1 %v11105_v13  ;;  %v11183_v8 = vld [vmem:[#allocation3 + $0x17ac] ss:$16 sps:$4 sm:$0xff]   ;;  %v11186_v13 = vld [vmem:[#allocation3 + $0x1bc4] ss:$16 sps:$4 sm:$0xff]  }
 0x36f   :  { %7027 = vmatprep.subr.bf16.mxu0 %v11102_v22  ;;  %v11181_v22 = vld [vmem:[#allocation3 + $0x17a8] ss:$16 sps:$4 sm:$0xff]  }
 0x370   :  { %7593 = vmatmul.mubr.bf16.vlgmr.msra.gmra.mrb[4].mxu1 %v12066_v53  ;;  %v11123_v53 = vld [vmem:[#allocation3 + $0x166c] ss:$16 sps:$4 sm:$0xff]  }
 0x371   :  { %7019 = vmatmul.mubr.bf16.vlgmr.msra.gmra.mrb[0].mxu0 %v12100_v14  ;;  %7602 = vmatpush1.bf16.msra.mxu1 %v11103_v40  ;;  %v1293_v40 = vcombine.high %v12079_v54, %v12079_v54 }
 0x372   :  { %7028 = vmatpush1.bf16.msra.mxu0 %v11100_v42  ;;  %7603 = vmatprep.subr.bf16.mxu1 %v11111_v16  ;;  %v11189_v42 = vld [vmem:[#allocation3 + $0x17cc] ss:$16 sps:$4 sm:$0xff]   ;;  %v11187_v16 = vld [vmem:[#allocation3 + $0x17c8] ss:$16 sps:$4 sm:$0xff]  }
 0x373   :  { %7029 = vmatprep.subr.bf16.mxu0 %v11108_v15  ;;  %7059 = vmatprep.mubr.bf16.mxu0 %v12104_v45  ;;  %v11184_v15 = vld [vmem:[#allocation3 + $0x1bc0] ss:$16 sps:$4 sm:$0xff]  }
 0x374   :  { %7633 = vmatprep.mubr.bf16.mxu1 %v12070_v56  ;;  %v11127_v56 = vld [vmem:[#allocation3 + $0x1688] ss:$16 sps:$4 sm:$0xff]  }
 0x375   :  { %7604 = vmatpush1.bf16.msra.mxu1 %v11109_v19  ;;  %v11195_v19 = vld [vmem:[#allocation3 + $0x17ec] ss:$16 sps:$4 sm:$0xff]  }
 0x376   :  { %7030 = vmatpush1.bf16.msra.mxu0 %v11106_v24  ;;  %7605 = vmatprep.subr.bf16.mxu1 %v11117_v20  ;;  %v11192_v24 = vld [vmem:[#allocation3 + $0x1be4] ss:$16 sps:$4 sm:$0xff]   ;;  %v11190_v20 = vld [vmem:[#allocation3 + $0x1be0] ss:$16 sps:$4 sm:$0xff]  }
 0x377   :  { %7031 = vmatprep.subr.bf16.mxu0 %v11114_v11  ;;  %v12113_v11 = vrot.slane %v1293_v40, %v11907_v49  ;;  %v11265_v40 = vld [vmem:[#allocation3 + $0x1968] ss:$16 sps:$4 sm:$0xff]  }
 0x379   :  { %7606 = vmatpush1.bf16.msra.mxu1 %v11115_v25  ;;  %v11198_v25 = vld [vmem:[#allocation3 + $0x1c04] ss:$16 sps:$4 sm:$0xff]   ;;  %v1309_v54 = vcombine.high %v12113_v11, %v12113_v11 }
 0x37a   :  { %7032 = vmatpush1.bf16.msra.mxu0 %v11112_v21  ;;  %7607 = vmatprep.subr.bf16.mxu1 %v11123_v53  ;;  %v11193_v21 = vld [vmem:[#allocation3 + $0x17e8] ss:$16 sps:$4 sm:$0xff]   ;;  %v12119_v53 = vcombine.high %v12100_v14, %v12100_v14 }
 0x37b   :  { %7033 = vmatprep.subr.bf16.mxu0 %v11120_v50  ;;  %v11201_v50 = vld [vmem:[#allocation3 + $0x180c] ss:$16 sps:$4 sm:$0xff]  }
 0x37d   :  { %7608 = vmatpush1.bf16.msra.mxu1 %v11121_v28  ;;  %v11199_v28 = vld [vmem:[#allocation3 + $0x1808] ss:$16 sps:$4 sm:$0xff]  }
 0x37e   :  { %7034 = vmatpush1.bf16.msra.mxu0 %v11118_v26  ;;  %7609 = vmatprep.subr.bf16.mxu1 %v11129_v10  ;;  %v11196_v26 = vld [vmem:[#allocation3 + $0x1c00] ss:$16 sps:$4 sm:$0xff]   ;;  %v11207_v10 = vld [vmem:[#allocation3 + $0x182c] ss:$16 sps:$4 sm:$0xff]  }
 0x37f   :  { %7035 = vmatprep.subr.bf16.mxu0 %v11126_v29  ;;  %v11204_v29 = vld [vmem:[#allocation3 + $0x1c24] ss:$16 sps:$4 sm:$0xff]  }
 0x381   :  { %7610 = vmatpush1.bf16.msra.mxu1 %v11127_v56  ;;  %v11202_v56 = vld [vmem:[#allocation3 + $0x1c20] ss:$16 sps:$4 sm:$0xff]  }
 0x382   :  { %7036 = vmatpush1.bf16.msra.mxu0 %v11124_v57  ;;  %7611 = vmatprep.subr.bf16.mxu1 %v11135_v34  ;;  %v12122_v57 = vrot.slane %v1309_v54, %v11907_v49  ;;  %v11210_v34 = vld [vmem:[#allocation3 + $0x1c44] ss:$16 sps:$4 sm:$0xff]  }
 0x383   :  { %7037 = vmatprep.subr.bf16.mxu0 %v11132_v33  ;;  %v11205_v33 = vld [vmem:[#allocation3 + $0x1828] ss:$16 sps:$4 sm:$0xff]   ;;  %v11282_v54 = vld [vmem:[#allocation3 + $0x1dc4] ss:$16 sps:$4 sm:$0xff]  }
 0x385   :  { %7612 = vmatpush1.bf16.msra.mxu1 %v11133_v37  ;;  %v11208_v37 = vld [vmem:[#allocation3 + $0x1c40] ss:$16 sps:$4 sm:$0xff]  }
 0x386   :  { %7038 = vmatpush1.bf16.msra.mxu0 %v11130_v7  ;;  %7613 = vmatprep.subr.bf16.mxu1 %v11141_v38  ;;  %v11213_v7 = vld [vmem:[#allocation3 + $0x184c] ss:$16 sps:$4 sm:$0xff]   ;;  %v11216_v38 = vld [vmem:[#allocation3 + $0x1c64] ss:$16 sps:$4 sm:$0xff]  }
 0x387   :  { %7039 = vmatprep.subr.bf16.mxu0 %v11138_v61  ;;  %v11211_v61 = vld [vmem:[#allocation3 + $0x1848] ss:$16 sps:$4 sm:$0xff]  }
 0x389   :  { %7614 = vmatpush1.bf16.msra.mxu1 %v11139_v41  ;;  %v11217_v41 = vld [vmem:[#allocation3 + $0x1868] ss:$16 sps:$4 sm:$0xff]  }
 0x38a   :  { %7040 = vmatpush1.bf16.msra.mxu0 %v11136_v39  ;;  %7615 = vmatprep.subr.bf16.mxu1 %v11147_v0  ;;  %v11214_v39 = vld [vmem:[#allocation3 + $0x1c60] ss:$16 sps:$4 sm:$0xff]   ;;  %v11225_v0 = vld [vmem:[#allocation3 + $0x188c] ss:$16 sps:$4 sm:$0xff]  }
 0x38b   :  { %7041 = vmatprep.subr.bf16.mxu0 %v11144_v6  ;;  %v11222_v6 = vld [vmem:[#allocation3 + $0x1c84] ss:$16 sps:$4 sm:$0xff]  }
 0x38d   :  { %7616 = vmatpush1.bf16.msra.mxu1 %v11145_v46  ;;  %v11228_v46 = vld [vmem:[#allocation3 + $0x1ca4] ss:$16 sps:$4 sm:$0xff]  }
 0x38e   :  { %7042 = vmatpush1.bf16.msra.mxu0 %v11142_v44  ;;  %7617 = vmatprep.subr.bf16.mxu1 %v11153_v18  ;;  %v11220_v44 = vld [vmem:[#allocation3 + $0x1c80] ss:$16 sps:$4 sm:$0xff]  }
 0x38f   :  { %7043 = vmatprep.subr.bf16.mxu0 %v11150_v47  ;;  %v11231_v47 = vld [vmem:[#allocation3 + $0x18ac] ss:$16 sps:$4 sm:$0xff]   ;;  %v11226_v18 = vld [vmem:[#allocation3 + $0x1ca0] ss:$16 sps:$4 sm:$0xff]  }
 0x391   :  { %7618 = vmatpush1.bf16.msra.mxu1 %v11151_v30  ;;  %v11234_v30 = vld [vmem:[#allocation3 + $0x1cc4] ss:$16 sps:$4 sm:$0xff]  }
 0x392   :  { %7044 = vmatpush1.bf16.msra.mxu0 %v11148_v48  ;;  %7619 = vmatprep.subr.bf16.mxu1 %v11159_v52  ;;  %v11229_v48 = vld [vmem:[#allocation3 + $0x18a8] ss:$16 sps:$4 sm:$0xff]   ;;  %v11232_v52 = vld [vmem:[#allocation3 + $0x1cc0] ss:$16 sps:$4 sm:$0xff]  }
 0x393   :  { %7045 = vmatprep.subr.bf16.mxu0 %v11156_v51  ;;  %v11237_v51 = vld [vmem:[#allocation3 + $0x18cc] ss:$16 sps:$4 sm:$0xff]  }
 0x395   :  { %7620 = vmatpush1.bf16.msra.mxu1 %v11157_v55  ;;  %v11240_v55 = vld [vmem:[#allocation3 + $0x1ce4] ss:$16 sps:$4 sm:$0xff]  }
 0x396   :  { %7046 = vmatpush1.bf16.msra.mxu0 %v11154_v17  ;;  %7621 = vmatprep.subr.bf16.mxu1 %v11165_v12  ;;  %v11235_v17 = vld [vmem:[#allocation3 + $0x18c8] ss:$16 sps:$4 sm:$0xff]   ;;  %v11238_v12 = vld [vmem:[#allocation3 + $0x1ce0] ss:$16 sps:$4 sm:$0xff]  }
 0x397   :  { %7047 = vmatprep.subr.bf16.mxu0 %v11162_v27  ;;  %v11243_v27 = vld [vmem:[#allocation3 + $0x18ec] ss:$16 sps:$4 sm:$0xff]  }
 0x399   :  { %7622 = vmatpush1.bf16.msra.mxu1 %v11163_v23  ;;  %v11246_v23 = vld [vmem:[#allocation3 + $0x1d04] ss:$16 sps:$4 sm:$0xff]  }
 0x39a   :  { %7048 = vmatpush1.bf16.msra.mxu0 %v11160_v58  ;;  %7623 = vmatprep.subr.bf16.mxu1 %v11171_v60  ;;  %v11241_v58 = vld [vmem:[#allocation3 + $0x18e8] ss:$16 sps:$4 sm:$0xff]   ;;  %v11244_v60 = vld [vmem:[#allocation3 + $0x1d00] ss:$16 sps:$4 sm:$0xff]  }
 0x39b   :  { %7049 = vmatprep.subr.bf16.mxu0 %v11168_v59  ;;  %v11249_v59 = vld [vmem:[#allocation3 + $0x190c] ss:$16 sps:$4 sm:$0xff]  }
 0x39d   :  { %7624 = vmatpush1.bf16.msra.mxu1 %v11169_v62  ;;  %v11252_v62 = vld [vmem:[#allocation3 + $0x1d24] ss:$16 sps:$4 sm:$0xff]  }
 0x39e   :  { %7050 = vmatpush1.bf16.msra.mxu0 %v11166_v31  ;;  %7625 = vmatprep.subr.bf16.mxu1 %v11177_v1  ;;  %v11247_v31 = vld [vmem:[#allocation3 + $0x1908] ss:$16 sps:$4 sm:$0xff]   ;;  %v11250_v1 = vld [vmem:[#allocation3 + $0x1d20] ss:$16 sps:$4 sm:$0xff]  }
 0x39f   :  { %7051 = vmatprep.subr.bf16.mxu0 %v11174_v63  ;;  %v11255_v63 = vld [vmem:[#allocation3 + $0x192c] ss:$16 sps:$4 sm:$0xff]  }
 0x3a1   :  { %7626 = vmatpush1.bf16.msra.mxu1 %v11175_v35  ;;  %v11258_v35 = vld [vmem:[#allocation3 + $0x1d44] ss:$16 sps:$4 sm:$0xff]  }
 0x3a2   :  { %7052 = vmatpush1.bf16.msra.mxu0 %v11172_v2  ;;  %7627 = vmatprep.subr.bf16.mxu1 %v11183_v8  ;;  %v11253_v2 = vld [vmem:[#allocation3 + $0x1928] ss:$16 sps:$4 sm:$0xff]   ;;  %v11256_v8 = vld [vmem:[#allocation3 + $0x1d40] ss:$16 sps:$4 sm:$0xff]  }
 0x3a3   :  { %7053 = vmatprep.subr.bf16.mxu0 %v11180_v36  ;;  %v11261_v36 = vld [vmem:[#allocation3 + $0x194c] ss:$16 sps:$4 sm:$0xff]  }
 0x3a5   :  { %7628 = vmatpush1.bf16.msra.mxu1 %v11181_v22  ;;  %v11264_v22 = vld [vmem:[#allocation3 + $0x1d64] ss:$16 sps:$4 sm:$0xff]  }
 0x3a6   :  { %7054 = vmatpush1.bf16.msra.mxu0 %v11178_v9  ;;  %7629 = vmatprep.subr.bf16.mxu1 %v11189_v42  ;;  %v11259_v9 = vld [vmem:[#allocation3 + $0x1948] ss:$16 sps:$4 sm:$0xff]   ;;  %v11262_v42 = vld [vmem:[#allocation3 + $0x1d60] ss:$16 sps:$4 sm:$0xff]  }
 0x3a7   :  { %7055 = vmatprep.subr.bf16.mxu0 %v11186_v13  ;;  %v11267_v13 = vld [vmem:[#allocation3 + $0x196c] ss:$16 sps:$4 sm:$0xff]  }
 0x3a9   :  { %7630 = vmatpush1.bf16.msra.mxu1 %v11187_v16  ;;  %v11273_v16 = vld [vmem:[#allocation3 + $0x198c] ss:$16 sps:$4 sm:$0xff]  }
 0x3aa   :  { %7056 = vmatpush1.bf16.msra.mxu0 %v11184_v15  ;;  %7631 = vmatprep.subr.bf16.mxu1 %v11195_v19  ;;  %v11270_v15 = vld [vmem:[#allocation3 + $0x1d84] ss:$16 sps:$4 sm:$0xff]   ;;  %v11271_v19 = vld [vmem:[#allocation3 + $0x1988] ss:$16 sps:$4 sm:$0xff]  }
 0x3ab   :  { %7057 = vmatprep.subr.bf16.mxu0 %v11192_v24  ;;  %v11268_v24 = vld [vmem:[#allocation3 + $0x1d80] ss:$16 sps:$4 sm:$0xff]  }
 0x3ad   :  { %7632 = vmatpush1.bf16.msra.mxu1 %v11193_v21  ;;  %v11279_v21 = vld [vmem:[#allocation3 + $0x19ac] ss:$16 sps:$4 sm:$0xff]  }
 0x3ae   :  { %7058 = vmatpush1.bf16.msra.mxu0 %v11190_v20  ;;  %7642 = vmatprep.subr.bf16.mxu1 %v11201_v50  ;;  %v11276_v20 = vld [vmem:[#allocation3 + $0x1da4] ss:$16 sps:$4 sm:$0xff]   ;;  %v11277_v50 = vld [vmem:[#allocation3 + $0x19a8] ss:$16 sps:$4 sm:$0xff]  }
 0x3af   :  { %7068 = vmatprep.subr.bf16.mxu0 %v11198_v25  ;;  %v11274_v25 = vld [vmem:[#allocation3 + $0x1da0] ss:$16 sps:$4 sm:$0xff]  }
 0x3b0   :  { %7634 = vmatmul.mubr.bf16.vlgmr.msra.gmra.mrb[4].mxu1 %v12089_v32  ;;  %v11219_v32 = vld [vmem:[#allocation3 + $0x186c] ss:$16 sps:$4 sm:$0xff]  }
 0x3b1   :  { %7060 = vmatmul.mubr.bf16.vlgmr.msra.gmra.mrb[0].mxu0 %v12119_v53  ;;  %7643 = vmatpush1.bf16.msra.mxu1 %v11199_v28  ;;  %v11280_v28 = vld [vmem:[#allocation3 + $0x1dc0] ss:$16 sps:$4 sm:$0xff]  }
 0x3b2   :  { %7069 = vmatpush1.bf16.msra.mxu0 %v11196_v26  ;;  %7644 = vmatprep.subr.bf16.mxu1 %v11207_v10  ;;  %v11285_v26 = vld [vmem:[#allocation3 + $0x19cc] ss:$16 sps:$4 sm:$0xff]   ;;  %v11288_v10 = vld [vmem:[#allocation3 + $0x1de4] ss:$16 sps:$4 sm:$0xff]  }
 0x3b3   :  { %7070 = vmatprep.subr.bf16.mxu0 %v11204_v29  ;;  %7100 = vmatprep.mubr.bf16.mxu0 %v12122_v57  ;;  %v11283_v29 = vld [vmem:[#allocation3 + $0x19c8] ss:$16 sps:$4 sm:$0xff]  }
 0x3b4   :  { %7674 = vmatprep.mubr.bf16.mxu1 %v12092_v3  ;;  %v11223_v3 = vld [vmem:[#allocation3 + $0x1888] ss:$16 sps:$4 sm:$0xff]  }
 0x3b5   :  { %7645 = vmatpush1.bf16.msra.mxu1 %v11205_v33  ;;  %v11286_v33 = vld [vmem:[#allocation3 + $0x1de0] ss:$16 sps:$4 sm:$0xff]  }
 0x3b6   :  { %7071 = vmatpush1.bf16.msra.mxu0 %v11202_v56  ;;  %7646 = vmatprep.subr.bf16.mxu1 %v11213_v7  ;;  %v11291_v56 = vld [vmem:[#allocation3 + $0x19ec] ss:$16 sps:$4 sm:$0xff]   ;;  %v11295_v7 = vld [vmem:[#allocation3 + $0x1e04] ss:$16 sps:$4 sm:$0xff]  }
 0x3b7   :  { %7072 = vmatprep.subr.bf16.mxu0 %v11210_v34  ;;  %v11289_v34 = vld [vmem:[#allocation3 + $0x19e8] ss:$16 sps:$4 sm:$0xff]  }
 0x3b9   :  { %7647 = vmatpush1.bf16.msra.mxu1 %v11211_v61  ;;  %v12130_v61 = vrot.slane %v12113_v11, %v11907_v49  ;;  %v11299_v49 = vld [vmem:[#allocation3 + $0x1e20] ss:$16 sps:$4 sm:$0xff]   ;;  %v11302_v11 = vld [vmem:[#allocation3 + $0x1a28] ss:$16 sps:$4 sm:$0xff]  }
 0x3ba   :  { %7073 = vmatpush1.bf16.msra.mxu0 %v11208_v37  ;;  %7648 = vmatprep.subr.bf16.mxu1 %v11219_v32  ;;  %v11298_v37 = vld [vmem:[#allocation3 + $0x1a0c] ss:$16 sps:$4 sm:$0xff]   ;;  %v11296_v32 = vld [vmem:[#allocation3 + $0x1a08] ss:$16 sps:$4 sm:$0xff]  }
 0x3bb   :  { %7074 = vmatprep.subr.bf16.mxu0 %v11216_v38  ;;  %v11293_v38 = vld [vmem:[#allocation3 + $0x1e00] ss:$16 sps:$4 sm:$0xff]  }
 0x3bd   :  { %7649 = vmatpush1.bf16.msra.mxu1 %v11217_v41  ;;  %v11304_v41 = vld [vmem:[#allocation3 + $0x1a2c] ss:$16 sps:$4 sm:$0xff]  }
 0x3be   :  { %7075 = vmatpush1.bf16.msra.mxu0 %v11214_v39  ;;  %7650 = vmatprep.subr.bf16.mxu1 %v11225_v0  ;;  %v11301_v39 = vld [vmem:[#allocation3 + $0x1e24] ss:$16 sps:$4 sm:$0xff]  }
 0x3bf   :  { %7076 = vmatprep.subr.bf16.mxu0 %v11222_v6  ;;  %v12134_v6 = vcombine.high %v12122_v57, %v12122_v57  ;;  %v11307_v0 = vld [vmem:[#allocation3 + $0x1e44] ss:$16 sps:$4 sm:$0xff]  }
 0x3c1   :  { %7651 = vmatpush1.bf16.msra.mxu1 %v11223_v3  ;;  %v11305_v3 = vld [vmem:[#allocation3 + $0x1e40] ss:$16 sps:$4 sm:$0xff]  }
 0x3c2   :  { %7077 = vmatpush1.bf16.msra.mxu0 %v11220_v44  ;;  %7652 = vmatprep.subr.bf16.mxu1 %v11231_v47  ;;  %v11310_v44 = vld [vmem:[#allocation3 + $0x1a4c] ss:$16 sps:$4 sm:$0xff]   ;;  %v11313_v47 = vld [vmem:[#allocation3 + $0x1e64] ss:$16 sps:$4 sm:$0xff]  }
 0x3c3   :  { %7078 = vmatprep.subr.bf16.mxu0 %v11228_v46  ;;  %v11308_v46 = vld [vmem:[#allocation3 + $0x1a48] ss:$16 sps:$4 sm:$0xff]  }
 0x3c5   :  { %7653 = vmatpush1.bf16.msra.mxu1 %v11229_v48  ;;  %v11314_v48 = vld [vmem:[#allocation3 + $0x1a68] ss:$16 sps:$4 sm:$0xff]  }
 0x3c6   :  { %7079 = vmatpush1.bf16.msra.mxu0 %v11226_v18  ;;  %7654 = vmatprep.subr.bf16.mxu1 %v11237_v51  ;;  %v11311_v18 = vld [vmem:[#allocation3 + $0x1e60] ss:$16 sps:$4 sm:$0xff]   ;;  %v11322_v51 = vld [vmem:[#allocation3 + $0x1a8c] ss:$16 sps:$4 sm:$0xff]  }
 0x3c7   :  { %7080 = vmatprep.subr.bf16.mxu0 %v11234_v30  ;;  %v11319_v30 = vld [vmem:[#allocation3 + $0x1e84] ss:$16 sps:$4 sm:$0xff]  }
 0x3c9   :  { %7655 = vmatpush1.bf16.msra.mxu1 %v11235_v17  ;;  %v11325_v17 = vld [vmem:[#allocation3 + $0x1ea4] ss:$16 sps:$4 sm:$0xff]  }
 0x3ca   :  { %7081 = vmatpush1.bf16.msra.mxu0 %v11232_v52  ;;  %7656 = vmatprep.subr.bf16.mxu1 %v11243_v27  ;;  %v11317_v52 = vld [vmem:[#allocation3 + $0x1e80] ss:$16 sps:$4 sm:$0xff]  }
 0x3cb   :  { %7082 = vmatprep.subr.bf16.mxu0 %v11240_v55  ;;  %v11328_v55 = vld [vmem:[#allocation3 + $0x1aac] ss:$16 sps:$4 sm:$0xff]   ;;  %v11323_v27 = vld [vmem:[#allocation3 + $0x1ea0] ss:$16 sps:$4 sm:$0xff]  }
 0x3cd   :  { %7657 = vmatpush1.bf16.msra.mxu1 %v11241_v58  ;;  %v11331_v58 = vld [vmem:[#allocation3 + $0x1ec4] ss:$16 sps:$4 sm:$0xff]  }
 0x3ce   :  { %7083 = vmatpush1.bf16.msra.mxu0 %v11238_v12  ;;  %7658 = vmatprep.subr.bf16.mxu1 %v11249_v59  ;;  %v11326_v12 = vld [vmem:[#allocation3 + $0x1aa8] ss:$16 sps:$4 sm:$0xff]   ;;  %v11329_v59 = vld [vmem:[#allocation3 + $0x1ec0] ss:$16 sps:$4 sm:$0xff]  }
 0x3cf   :  { %7084 = vmatprep.subr.bf16.mxu0 %v11246_v23  ;;  %v11334_v23 = vld [vmem:[#allocation3 + $0x1acc] ss:$16 sps:$4 sm:$0xff]  }
 0x3d1   :  { %7659 = vmatpush1.bf16.msra.mxu1 %v11247_v31  ;;  %v11337_v31 = vld [vmem:[#allocation3 + $0x1ee4] ss:$16 sps:$4 sm:$0xff]  }
 0x3d2   :  { %7085 = vmatpush1.bf16.msra.mxu0 %v11244_v60  ;;  %7660 = vmatprep.subr.bf16.mxu1 %v11255_v63  ;;  %v11332_v60 = vld [vmem:[#allocation3 + $0x1ac8] ss:$16 sps:$4 sm:$0xff]   ;;  %v11335_v63 = vld [vmem:[#allocation3 + $0x1ee0] ss:$16 sps:$4 sm:$0xff]  }
 0x3d3   :  { %7086 = vmatprep.subr.bf16.mxu0 %v11252_v62  ;;  %v11340_v62 = vld [vmem:[#allocation3 + $0x1aec] ss:$16 sps:$4 sm:$0xff]  }
 0x3d5   :  { %7661 = vmatpush1.bf16.msra.mxu1 %v11253_v2  ;;  %v11343_v2 = vld [vmem:[#allocation3 + $0x1f04] ss:$16 sps:$4 sm:$0xff]  }
 0x3d6   :  { %7087 = vmatpush1.bf16.msra.mxu0 %v11250_v1  ;;  %7662 = vmatprep.subr.bf16.mxu1 %v11261_v36  ;;  %v11338_v1 = vld [vmem:[#allocation3 + $0x1ae8] ss:$16 sps:$4 sm:$0xff]   ;;  %v11341_v36 = vld [vmem:[#allocation3 + $0x1f00] ss:$16 sps:$4 sm:$0xff]  }
 0x3d7   :  { %7088 = vmatprep.subr.bf16.mxu0 %v11258_v35  ;;  %v11346_v35 = vld [vmem:[#allocation3 + $0x1b0c] ss:$16 sps:$4 sm:$0xff]  }
 0x3d9   :  { %7663 = vmatpush1.bf16.msra.mxu1 %v11259_v9  ;;  %v11349_v9 = vld [vmem:[#allocation3 + $0x1f24] ss:$16 sps:$4 sm:$0xff]  }
 0x3da   :  { %7089 = vmatpush1.bf16.msra.mxu0 %v11256_v8  ;;  %7664 = vmatprep.subr.bf16.mxu1 %v11267_v13  ;;  %v11344_v8 = vld [vmem:[#allocation3 + $0x1b08] ss:$16 sps:$4 sm:$0xff]   ;;  %v11347_v13 = vld [vmem:[#allocation3 + $0x1f20] ss:$16 sps:$4 sm:$0xff]  }
 0x3db   :  { %7090 = vmatprep.subr.bf16.mxu0 %v11264_v22  ;;  %v11352_v22 = vld [vmem:[#allocation3 + $0x1b2c] ss:$16 sps:$4 sm:$0xff]  }
 0x3dd   :  { %7665 = vmatpush1.bf16.msra.mxu1 %v11265_v40  ;;  %v11355_v40 = vld [vmem:[#allocation3 + $0x1f44] ss:$16 sps:$4 sm:$0xff]  }
 0x3de   :  { %7091 = vmatpush1.bf16.msra.mxu0 %v11262_v42  ;;  %7666 = vmatprep.subr.bf16.mxu1 %v11273_v16  ;;  %v11350_v42 = vld [vmem:[#allocation3 + $0x1b28] ss:$16 sps:$4 sm:$0xff]   ;;  %v11353_v16 = vld [vmem:[#allocation3 + $0x1f40] ss:$16 sps:$4 sm:$0xff]  }
 0x3df   :  { %7092 = vmatprep.subr.bf16.mxu0 %v11270_v15  ;;  %v11358_v15 = vld [vmem:[#allocation3 + $0x1b4c] ss:$16 sps:$4 sm:$0xff]  }
 0x3e1   :  { %7667 = vmatpush1.bf16.msra.mxu1 %v11271_v19  ;;  %v11361_v19 = vld [vmem:[#allocation3 + $0x1f64] ss:$16 sps:$4 sm:$0xff]  }
 0x3e2   :  { %7093 = vmatpush1.bf16.msra.mxu0 %v11268_v24  ;;  %7668 = vmatprep.subr.bf16.mxu1 %v11279_v21  ;;  %v11356_v24 = vld [vmem:[#allocation3 + $0x1b48] ss:$16 sps:$4 sm:$0xff]   ;;  %v11359_v21 = vld [vmem:[#allocation3 + $0x1f60] ss:$16 sps:$4 sm:$0xff]  }
 0x3e3   :  { %7094 = vmatprep.subr.bf16.mxu0 %v11276_v20  ;;  %v11364_v20 = vld [vmem:[#allocation3 + $0x1b6c] ss:$16 sps:$4 sm:$0xff]  }
 0x3e5   :  { %7669 = vmatpush1.bf16.msra.mxu1 %v11277_v50  ;;  %v11367_v50 = vld [vmem:[#allocation3 + $0x1f84] ss:$16 sps:$4 sm:$0xff]  }
 0x3e6   :  { %7095 = vmatpush1.bf16.msra.mxu0 %v11274_v25  ;;  %7670 = vmatprep.subr.bf16.mxu1 %v11285_v26  ;;  %v11362_v25 = vld [vmem:[#allocation3 + $0x1b68] ss:$16 sps:$4 sm:$0xff]   ;;  %v11365_v26 = vld [vmem:[#allocation3 + $0x1f80] ss:$16 sps:$4 sm:$0xff]  }
 0x3e7   :  { %7096 = vmatprep.subr.bf16.mxu0 %v11282_v54  ;;  %v11370_v54 = vld [vmem:[#allocation3 + $0x1b8c] ss:$16 sps:$4 sm:$0xff]  }
 0x3e9   :  { %7671 = vmatpush1.bf16.msra.mxu1 %v11283_v29  ;;  %v11373_v29 = vld [vmem:[#allocation3 + $0x1fa4] ss:$16 sps:$4 sm:$0xff]  }
 0x3ea   :  { %7097 = vmatpush1.bf16.msra.mxu0 %v11280_v28  ;;  %7672 = vmatprep.subr.bf16.mxu1 %v11291_v56  ;;  %v11368_v28 = vld [vmem:[#allocation3 + $0x1b88] ss:$16 sps:$4 sm:$0xff]   ;;  %v11371_v56 = vld [vmem:[#allocation3 + $0x1fa0] ss:$16 sps:$4 sm:$0xff]  }
 0x3eb   :  { %7098 = vmatprep.subr.bf16.mxu0 %v11288_v10  ;;  %v11376_v10 = vld [vmem:[#allocation3 + $0x1bac] ss:$16 sps:$4 sm:$0xff]  }
 0x3ed   :  { %7673 = vmatpush1.bf16.msra.mxu1 %v11289_v34  ;;  %v11379_v34 = vld [vmem:[#allocation3 + $0x1fc4] ss:$16 sps:$4 sm:$0xff]  }
 0x3ee   :  { %7099 = vmatpush1.bf16.msra.mxu0 %v11286_v33  ;;  %7683 = vmatprep.subr.bf16.mxu1 %v11298_v37  ;;  %v11374_v33 = vld [vmem:[#allocation3 + $0x1ba8] ss:$16 sps:$4 sm:$0xff]   ;;  %v11377_v37 = vld [vmem:[#allocation3 + $0x1fc0] ss:$16 sps:$4 sm:$0xff]  }
 0x3ef   :  { %7109 = vmatprep.subr.bf16.mxu0 %v11295_v7  ;;  %v11382_v7 = vld [vmem:[#allocation3 + $0x1bcc] ss:$16 sps:$4 sm:$0xff]  }
 0x3f0   :  { %7675 = vmatmul.mubr.bf16.vlgmr.msra.gmra.mrb[4].mxu1 %v12100_v14  ;;  %v11316_v14 = vld [vmem:[#allocation3 + $0x1a6c] ss:$16 sps:$4 sm:$0xff]  }
 0x3f1   :  { %7101 = vmatmul.mubr.bf16.vlgmr.msra.gmra.mrb[0].mxu0 %v12130_v61  ;;  %7684 = vmatpush1.bf16.msra.mxu1 %v11296_v32  ;;  %v11385_v32 = vld [vmem:[#allocation3 + $0x1fe4] ss:$16 sps:$4 sm:$0xff]  }
 0x3f2   :  { %7110 = vmatpush1.bf16.msra.mxu0 %v11293_v38  ;;  %7685 = vmatprep.subr.bf16.mxu1 %v11304_v41  ;;  %v11380_v38 = vld [vmem:[#allocation3 + $0x1bc8] ss:$16 sps:$4 sm:$0xff]   ;;  %v11383_v41 = vld [vmem:[#allocation3 + $0x1fe0] ss:$16 sps:$4 sm:$0xff]  }
 0x3f3   :  { %7111 = vmatprep.subr.bf16.mxu0 %v11301_v39  ;;  %7141 = vmatprep.mubr.bf16.mxu0 %v12134_v6  ;;  %v11388_v39 = vld [vmem:[#allocation3 + $0x1bec] ss:$16 sps:$4 sm:$0xff]  }
 0x3f4   :  { %7715 = vmatprep.mubr.bf16.mxu1 %v12104_v45  ;;  %v11320_v45 = vld [vmem:[#allocation3 + $0x1a88] ss:$16 sps:$4 sm:$0xff]  }
 0x3f5   :  { %7686 = vmatpush1.bf16.msra.mxu1 %v11302_v11  ;;  %v11391_v11 = vld [vmem:[#allocation3 + $0x1c0c] ss:$16 sps:$4 sm:$0xff]  }
 0x3f6   :  { %7112 = vmatpush1.bf16.msra.mxu0 %v11299_v49  ;;  %7687 = vmatprep.subr.bf16.mxu1 %v11310_v44  ;;  %v11386_v49 = vld [vmem:[#allocation3 + $0x1be8] ss:$16 sps:$4 sm:$0xff]  }
 0x3f7   :  { %7113 = vmatprep.subr.bf16.mxu0 %v11307_v0  ;;  %v12142_v0 = vcombine.high %v12130_v61, %v12130_v61  ;;  %v11389_v44 = vld [vmem:[#allocation3 + $0x1c08] ss:$16 sps:$4 sm:$0xff]  }
 0x3f9   :  { %7688 = vmatpush1.bf16.msra.mxu1 %v11308_v46  ;;  %v11392_v46 = vld [vmem:[#allocation3 + $0x1c28] ss:$16 sps:$4 sm:$0xff]  }
 0x3fa   :  { %7114 = vmatpush1.bf16.msra.mxu0 %v11305_v3  ;;  %7689 = vmatprep.subr.bf16.mxu1 %v11316_v14  ;;  %v11394_v3 = vld [vmem:[#allocation3 + $0x1c2c] ss:$16 sps:$4 sm:$0xff]   ;;  %v11395_v14 = vld [vmem:[#allocation3 + $0x1c48] ss:$16 sps:$4 sm:$0xff]  }
 0x3fb   :  { %7115 = vmatprep.subr.bf16.mxu0 %v11313_v47  ;;  %v11397_v47 = vld [vmem:[#allocation3 + $0x1c4c] ss:$16 sps:$4 sm:$0xff]  }
 0x3fd   :  { %7690 = vmatpush1.bf16.msra.mxu1 %v11314_v48  ;;  %v11398_v48 = vld [vmem:[#allocation3 + $0x1c68] ss:$16 sps:$4 sm:$0xff]  }
 0x3fe   :  { %7116 = vmatpush1.bf16.msra.mxu0 %v11311_v18  ;;  %7691 = vmatprep.subr.bf16.mxu1 %v11322_v51  ;;  %v11400_v18 = vld [vmem:[#allocation3 + $0x1c6c] ss:$16 sps:$4 sm:$0xff]   ;;  %v11401_v51 = vld [vmem:[#allocation3 + $0x1c88] ss:$16 sps:$4 sm:$0xff]  }
 0x3ff   :  { %7117 = vmatprep.subr.bf16.mxu0 %v11319_v30  ;;  %v11403_v30 = vld [vmem:[#allocation3 + $0x1c8c] ss:$16 sps:$4 sm:$0xff]  }
 0x401   :  { %7692 = vmatpush1.bf16.msra.mxu1 %v11320_v45  ;;  %v11409_v45 = vld [vmem:[#allocation3 + $0x1ccc] ss:$16 sps:$4 sm:$0xff]  }
 0x402   :  { %7118 = vmatpush1.bf16.msra.mxu0 %v11317_v52  ;;  %7693 = vmatprep.subr.bf16.mxu1 %v11328_v55  ;;  %v11406_v52 = vld [vmem:[#allocation3 + $0x1cac] ss:$16 sps:$4 sm:$0xff]   ;;  %v11410_v55 = vld [vmem:[#allocation3 + $0x1ce8] ss:$16 sps:$4 sm:$0xff]  }
 0x403   :  { %7119 = vmatprep.subr.bf16.mxu0 %v11325_v17  ;;  %v11412_v17 = vld [vmem:[#allocation3 + $0x1cec] ss:$16 sps:$4 sm:$0xff]  }
 0x405   :  { %7694 = vmatpush1.bf16.msra.mxu1 %v11326_v12  ;;  %v11413_v12 = vld [vmem:[#allocation3 + $0x1d08] ss:$16 sps:$4 sm:$0xff]  }
 0x406   :  { %7120 = vmatpush1.bf16.msra.mxu0 %v11323_v27  ;;  %7695 = vmatprep.subr.bf16.mxu1 %v11334_v23  ;;  %v11415_v27 = vld [vmem:[#allocation3 + $0x1d0c] ss:$16 sps:$4 sm:$0xff]   ;;  %v11416_v23 = vld [vmem:[#allocation3 + $0x1d28] ss:$16 sps:$4 sm:$0xff]  }
 0x407   :  { %7121 = vmatprep.subr.bf16.mxu0 %v11331_v58  ;;  %v11418_v58 = vld [vmem:[#allocation3 + $0x1d2c] ss:$16 sps:$4 sm:$0xff]  }
 0x409   :  { %7696 = vmatpush1.bf16.msra.mxu1 %v11332_v60  ;;  %v11419_v60 = vld [vmem:[#allocation3 + $0x1d48] ss:$16 sps:$4 sm:$0xff]  }
 0x40a   :  { %7122 = vmatpush1.bf16.msra.mxu0 %v11329_v59  ;;  %7697 = vmatprep.subr.bf16.mxu1 %v11340_v62  ;;  %v11421_v59 = vld [vmem:[#allocation3 + $0x1d4c] ss:$16 sps:$4 sm:$0xff]   ;;  %v11422_v62 = vld [vmem:[#allocation3 + $0x1d68] ss:$16 sps:$4 sm:$0xff]  }
 0x40b   :  { %7123 = vmatprep.subr.bf16.mxu0 %v11337_v31  ;;  %v11424_v31 = vld [vmem:[#allocation3 + $0x1d6c] ss:$16 sps:$4 sm:$0xff]  }
 0x40d   :  { %7698 = vmatpush1.bf16.msra.mxu1 %v11338_v1  ;;  %v11425_v1 = vld [vmem:[#allocation3 + $0x1d88] ss:$16 sps:$4 sm:$0xff]  }
 0x40e   :  { %7124 = vmatpush1.bf16.msra.mxu0 %v11335_v63  ;;  %7699 = vmatprep.subr.bf16.mxu1 %v11346_v35  ;;  %v11427_v63 = vld [vmem:[#allocation3 + $0x1d8c] ss:$16 sps:$4 sm:$0xff]   ;;  %v11428_v35 = vld [vmem:[#allocation3 + $0x1da8] ss:$16 sps:$4 sm:$0xff]  }
 0x40f   :  { %7125 = vmatprep.subr.bf16.mxu0 %v11343_v2  ;;  %v11430_v2 = vld [vmem:[#allocation3 + $0x1dac] ss:$16 sps:$4 sm:$0xff]  }
 0x411   :  { %7700 = vmatpush1.bf16.msra.mxu1 %v11344_v8  ;;  %v11431_v8 = vld [vmem:[#allocation3 + $0x1dc8] ss:$16 sps:$4 sm:$0xff]  }
 0x412   :  { %7126 = vmatpush1.bf16.msra.mxu0 %v11341_v36  ;;  %7701 = vmatprep.subr.bf16.mxu1 %v11352_v22  ;;  %v11433_v36 = vld [vmem:[#allocation3 + $0x1dcc] ss:$16 sps:$4 sm:$0xff]   ;;  %v11434_v22 = vld [vmem:[#allocation3 + $0x1de8] ss:$16 sps:$4 sm:$0xff]  }
 0x413   :  { %7127 = vmatprep.subr.bf16.mxu0 %v11349_v9  ;;  %v11436_v9 = vld [vmem:[#allocation3 + $0x1dec] ss:$16 sps:$4 sm:$0xff]  }
 0x415   :  { %7702 = vmatpush1.bf16.msra.mxu1 %v11350_v42  ;;  %v11437_v42 = vld [vmem:[#allocation3 + $0x1e08] ss:$16 sps:$4 sm:$0xff]  }
 0x416   :  { %7128 = vmatpush1.bf16.msra.mxu0 %v11347_v13  ;;  %7703 = vmatprep.subr.bf16.mxu1 %v11358_v15  ;;  %v11439_v13 = vld [vmem:[#allocation3 + $0x1e0c] ss:$16 sps:$4 sm:$0xff]   ;;  %v11440_v15 = vld [vmem:[#allocation3 + $0x1e28] ss:$16 sps:$4 sm:$0xff]  }
 0x417   :  { %7129 = vmatprep.subr.bf16.mxu0 %v11355_v40  ;;  %v11442_v40 = vld [vmem:[#allocation3 + $0x1e2c] ss:$16 sps:$4 sm:$0xff]  }
 0x419   :  { %7704 = vmatpush1.bf16.msra.mxu1 %v11356_v24  ;;  %v11443_v24 = vld [vmem:[#allocation3 + $0x1e48] ss:$16 sps:$4 sm:$0xff]  }
 0x41a   :  { %7130 = vmatpush1.bf16.msra.mxu0 %v11353_v16  ;;  %7705 = vmatprep.subr.bf16.mxu1 %v11364_v20  ;;  %v11445_v16 = vld [vmem:[#allocation3 + $0x1e4c] ss:$16 sps:$4 sm:$0xff]   ;;  %v11446_v20 = vld [vmem:[#allocation3 + $0x1e68] ss:$16 sps:$4 sm:$0xff]  }
 0x41b   :  { %7131 = vmatprep.subr.bf16.mxu0 %v11361_v19  ;;  %v11448_v19 = vld [vmem:[#allocation3 + $0x1e6c] ss:$16 sps:$4 sm:$0xff]  }
 0x41d   :  { %7706 = vmatpush1.bf16.msra.mxu1 %v11362_v25  ;;  %v11449_v25 = vld [vmem:[#allocation3 + $0x1e88] ss:$16 sps:$4 sm:$0xff]  }
 0x41e   :  { %7132 = vmatpush1.bf16.msra.mxu0 %v11359_v21  ;;  %7707 = vmatprep.subr.bf16.mxu1 %v11370_v54  ;;  %v11451_v21 = vld [vmem:[#allocation3 + $0x1e8c] ss:$16 sps:$4 sm:$0xff]  }
 0x41f   :  { %7133 = vmatprep.subr.bf16.mxu0 %v11367_v50  ;;  %v11454_v50 = vld [vmem:[#allocation3 + $0x1eac] ss:$16 sps:$4 sm:$0xff]  }
 0x420   :  { %v11457_v54 = vld [vmem:[#allocation3 + $0x1ecc] ss:$16 sps:$4 sm:$0xff]  }
 0x421   :  { %7708 = vmatpush1.bf16.msra.mxu1 %v11368_v28  ;;  %v11458_v28 = vld [vmem:[#allocation3 + $0x1ee8] ss:$16 sps:$4 sm:$0xff]  }
 0x422   :  { %7134 = vmatpush1.bf16.msra.mxu0 %v11365_v26  ;;  %7709 = vmatprep.subr.bf16.mxu1 %v11376_v10  ;;  %v11460_v26 = vld [vmem:[#allocation3 + $0x1eec] ss:$16 sps:$4 sm:$0xff]   ;;  %v11487_v10 = vld [vmem:[#allocation8 + $0x4] ss:$8 sps:$4 sm:$0xff]  }
 0x423   :  { %7135 = vmatprep.subr.bf16.mxu0 %v11373_v29  ;;  %v11485_v29 = vld [vmem:[#allocation8] ss:$8 sps:$4 sm:$0xff]  }
 0x425   :  { %7710 = vmatpush1.bf16.msra.mxu1 %v11374_v33  ;;  %v11490_v33 = vld [vmem:[#allocation8 + $0x14] ss:$8 sps:$4 sm:$0xff]  }
 0x426   :  { %7136 = vmatpush1.bf16.msra.mxu0 %v11371_v56  ;;  %7711 = vmatprep.subr.bf16.mxu1 %v11382_v7  ;;  %v11463_v56 = vld [vmem:[#allocation3 + $0x1f0c] ss:$16 sps:$4 sm:$0xff]   ;;  %v11461_v7 = vld [vmem:[#allocation3 + $0x1f08] ss:$16 sps:$4 sm:$0xff]  }
 0x427   :  { %7137 = vmatprep.subr.bf16.mxu0 %v11379_v34  ;;  %v11488_v34 = vld [vmem:[#allocation8 + $0x10] ss:$8 sps:$4 sm:$0xff]  }
 0x429   :  { %7712 = vmatpush1.bf16.msra.mxu1 %v11380_v38  ;;  %v11466_v38 = vld [vmem:[#allocation3 + $0x1f2c] ss:$16 sps:$4 sm:$0xff]  }
 0x42a   :  { %7138 = vmatpush1.bf16.msra.mxu0 %v11377_v37  ;;  %7713 = vmatprep.subr.bf16.mxu1 %v11388_v39  ;;  %v11493_v37 = vld [vmem:[#allocation8 + $0x24] ss:$8 sps:$4 sm:$0xff]  }
 0x42b   :  { %7139 = vmatprep.subr.bf16.mxu0 %v11385_v32  ;;  %v11491_v32 = vld [vmem:[#allocation8 + $0x20] ss:$8 sps:$4 sm:$0xff]   ;;  %v11464_v39 = vld [vmem:[#allocation3 + $0x1f28] ss:$16 sps:$4 sm:$0xff]  }
 0x42d   :  { %7714 = vmatpush1.bf16.msra.mxu1 %v11386_v49  ;;  %v11469_v49 = vld [vmem:[#allocation3 + $0x1f4c] ss:$16 sps:$4 sm:$0xff]  }
 0x42e   :  { %7140 = vmatpush1.bf16.msra.mxu0 %v11383_v41  ;;  %7724 = vmatprep.subr.bf16.mxu1 %v11391_v11  ;;  %v11496_v41 = vld [vmem:[#allocation8 + $0x34] ss:$8 sps:$4 sm:$0xff]   ;;  %v11494_v11 = vld [vmem:[#allocation8 + $0x30] ss:$8 sps:$4 sm:$0xff]  }
 0x42f   :  { %8293 = vmatprep.subr.bf16.mxu0 %v11487_v10 }
 0x430   :  { %7716 = vmatmul.mubr.bf16.vlgmr.msra.gmra.mrb[4].mxu1 %v12119_v53  ;;  %v11404_v53 = vld [vmem:[#allocation3 + $0x1ca8] ss:$16 sps:$4 sm:$0xff]  }
 0x431   :  { %7142 = vmatmul.mubr.bf16.vlgmr.msra.gmra.mrb[0].mxu0 %v12142_v0  ;;  %7725 = vmatpush1.bf16.msra.mxu1 %v11389_v44  ;;  %v11467_v44 = vld [vmem:[#allocation3 + $0x1f48] ss:$16 sps:$4 sm:$0xff]  }
 0x432   :  { %7756 = vmatprep.mubr.bf16.mxu1 %v12122_v57  ;;  %7726 = vmatprep.subr.bf16.mxu1 %v11394_v3  ;;  %v11407_v57 = vld [vmem:[#allocation3 + $0x1cc8] ss:$16 sps:$4 sm:$0xff]  }
 0x433   :  { %8294 = vmatpush1.bf16.msra.mxu0 %v11485_v29  ;;  %v11499_v3 = vld [vmem:[#allocation8 + $0x44] ss:$8 sps:$4 sm:$0xff]  }
 0x434   :  { %8295 = vmatprep.subr.bf16.mxu0 %v11490_v33 }
 0x435   :  { %7727 = vmatpush1.bf16.msra.mxu1 %v11392_v46  ;;  %v11472_v46 = vld [vmem:[#allocation3 + $0x1f6c] ss:$16 sps:$4 sm:$0xff]  }
 0x436   :  { %7728 = vmatprep.subr.bf16.mxu1 %v11397_v47  ;;  %v11497_v47 = vld [vmem:[#allocation8 + $0x40] ss:$8 sps:$4 sm:$0xff]  }
 0x437   :  { %8296 = vmatpush1.bf16.msra.mxu0 %v11488_v34 }
 0x438   :  { %8297 = vmatprep.subr.bf16.mxu0 %v11493_v37 }
 0x439   :  { %7729 = vmatpush1.bf16.msra.mxu1 %v11395_v14  ;;  %v11470_v14 = vld [vmem:[#allocation3 + $0x1f68] ss:$16 sps:$4 sm:$0xff]  }
 0x43a   :  { %7730 = vmatprep.subr.bf16.mxu1 %v11400_v18  ;;  %v11502_v18 = vld [vmem:[#allocation8 + $0x54] ss:$8 sps:$4 sm:$0xff]  }
 0x43b   :  { %8298 = vmatpush1.bf16.msra.mxu0 %v11491_v32 }
 0x43c   :  { %8299 = vmatprep.subr.bf16.mxu0 %v11496_v41 }
 0x43d   :  { %7731 = vmatpush1.bf16.msra.mxu1 %v11398_v48  ;;  %v11475_v48 = vld [vmem:[#allocation3 + $0x1f8c] ss:$16 sps:$4 sm:$0xff]  }
 0x43e   :  { %7732 = vmatprep.subr.bf16.mxu1 %v11403_v30  ;;  %v11500_v30 = vld [vmem:[#allocation8 + $0x50] ss:$8 sps:$4 sm:$0xff]  }
 0x43f   :  { %8300 = vmatpush1.bf16.msra.mxu0 %v11494_v11 }
 0x440   :  { %8301 = vmatprep.subr.bf16.mxu0 %v11499_v3 }
 0x441   :  { %7733 = vmatpush1.bf16.msra.mxu1 %v11401_v51  ;;  %v11473_v51 = vld [vmem:[#allocation3 + $0x1f88] ss:$16 sps:$4 sm:$0xff]  }
 0x442   :  { %7734 = vmatprep.subr.bf16.mxu1 %v11406_v52  ;;  %v11505_v52 = vld [vmem:[#allocation8 + $0x64] ss:$8 sps:$4 sm:$0xff]  }
 0x443   :  { %8302 = vmatpush1.bf16.msra.mxu0 %v11497_v47 }
 0x444   :  { %8303 = vmatprep.subr.bf16.mxu0 %v11502_v18 }
 0x445   :  { %7735 = vmatpush1.bf16.msra.mxu1 %v11404_v53  ;;  %v11478_v53 = vld [vmem:[#allocation3 + $0x1fac] ss:$16 sps:$4 sm:$0xff]  }
 0x446   :  { %7736 = vmatprep.subr.bf16.mxu1 %v11409_v45  ;;  %v11503_v45 = vld [vmem:[#allocation8 + $0x60] ss:$8 sps:$4 sm:$0xff]  }
 0x447   :  { %8304 = vmatpush1.bf16.msra.mxu0 %v11500_v30 }
 0x448   :  { %8305 = vmatprep.subr.bf16.mxu0 %v11505_v52 }
 0x449   :  { %7737 = vmatpush1.bf16.msra.mxu1 %v11407_v57  ;;  %v11476_v57 = vld [vmem:[#allocation3 + $0x1fa8] ss:$16 sps:$4 sm:$0xff]  }
 0x44a   :  { %7738 = vmatprep.subr.bf16.mxu1 %v11412_v17  ;;  %v11508_v17 = vld [vmem:[#allocation8 + $0x74] ss:$8 sps:$4 sm:$0xff]  }
 0x44b   :  { %8306 = vmatpush1.bf16.msra.mxu0 %v11503_v45 }
 0x44c   :  { %8307 = vmatprep.subr.bf16.mxu0 %v11508_v17 }
 0x44d   :  { %7739 = vmatpush1.bf16.msra.mxu1 %v11410_v55  ;;  %v11481_v55 = vld [vmem:[#allocation3 + $0x1fcc] ss:$16 sps:$4 sm:$0xff]  }
 0x44e   :  { %7740 = vmatprep.subr.bf16.mxu1 %v11415_v27  ;;  %v11506_v27 = vld [vmem:[#allocation8 + $0x70] ss:$8 sps:$4 sm:$0xff]  }
 0x44f   :  { %8308 = vmatpush1.bf16.msra.mxu0 %v11506_v27  ;;  %v11538_v27 = vld [vmem:[#allocation8 + $0x114] ss:$8 sps:$4 sm:$0xff]  }
 0x451   :  { %7741 = vmatpush1.bf16.msra.mxu1 %v11413_v12  ;;  %v11479_v12 = vld [vmem:[#allocation3 + $0x1fc8] ss:$16 sps:$4 sm:$0xff]  }
 0x452   :  { %7742 = vmatprep.subr.bf16.mxu1 %v11418_v58  ;;  %v11511_v58 = vld [vmem:[#allocation8 + $0x84] ss:$8 sps:$4 sm:$0xff]  }
 0x453   :  { %8309 = vmatprep.subr.bf16.mxu0 %v11511_v58  ;;  %v11536_v58 = vld [vmem:[#allocation8 + $0x110] ss:$8 sps:$4 sm:$0xff]  }
 0x455   :  { %7743 = vmatpush1.bf16.msra.mxu1 %v11416_v23  ;;  %v11484_v23 = vld [vmem:[#allocation3 + $0x1fec] ss:$16 sps:$4 sm:$0xff]  }
 0x456   :  { %7744 = vmatprep.subr.bf16.mxu1 %v11421_v59  ;;  %v11509_v59 = vld [vmem:[#allocation8 + $0x80] ss:$8 sps:$4 sm:$0xff]  }
 0x457   :  { %8310 = vmatpush1.bf16.msra.mxu0 %v11509_v59  ;;  %v11539_v59 = vld [vmem:[#allocation8 + $0x120] ss:$8 sps:$4 sm:$0xff]  }
 0x459   :  { %7745 = vmatpush1.bf16.msra.mxu1 %v11419_v60  ;;  %v11482_v60 = vld [vmem:[#allocation3 + $0x1fe8] ss:$16 sps:$4 sm:$0xff]  }
 0x45a   :  { %7746 = vmatprep.subr.bf16.mxu1 %v11424_v31  ;;  %v11514_v31 = vld [vmem:[#allocation8 + $0x94] ss:$8 sps:$4 sm:$0xff]  }
 0x45b   :  { %8311 = vmatprep.subr.bf16.mxu0 %v11514_v31  ;;  %v11542_v31 = vld [vmem:[#allocation8 + $0x130] ss:$8 sps:$4 sm:$0xff]  }
 0x45d   :  { %7747 = vmatpush1.bf16.msra.mxu1 %v11422_v62  ;;  %v11512_v62 = vld [vmem:[#allocation8 + $0x90] ss:$8 sps:$4 sm:$0xff]  }
 0x45e   :  { %7748 = vmatprep.subr.bf16.mxu1 %v11427_v63  ;;  %v11517_v63 = vld [vmem:[#allocation8 + $0xa4] ss:$8 sps:$4 sm:$0xff]   ;;  %8312 = vmatpush1.bf16.msra.mxu0 %v11512_v62 }
 0x45f   :  { %8313 = vmatprep.subr.bf16.mxu0 %v11517_v63  ;;  %v11547_v62 = vld [vmem:[#allocation8 + $0x144] ss:$8 sps:$4 sm:$0xff]   ;;  %v11545_v63 = vld [vmem:[#allocation8 + $0x140] ss:$8 sps:$4 sm:$0xff]  }
 0x461   :  { %7749 = vmatpush1.bf16.msra.mxu1 %v11425_v1  ;;  %v11515_v1 = vld [vmem:[#allocation8 + $0xa0] ss:$8 sps:$4 sm:$0xff]  }
 0x462   :  { %7750 = vmatprep.subr.bf16.mxu1 %v11430_v2  ;;  %v11520_v2 = vld [vmem:[#allocation8 + $0xb4] ss:$8 sps:$4 sm:$0xff]   ;;  %8314 = vmatpush1.bf16.msra.mxu0 %v11515_v1 }
 0x463   :  { %8315 = vmatprep.subr.bf16.mxu0 %v11520_v2  ;;  %v11550_v1 = vld [vmem:[#allocation8 + $0x154] ss:$8 sps:$4 sm:$0xff]   ;;  %v11548_v2 = vld [vmem:[#allocation8 + $0x150] ss:$8 sps:$4 sm:$0xff]  }
 0x465   :  { %7751 = vmatpush1.bf16.msra.mxu1 %v11428_v35  ;;  %v11518_v35 = vld [vmem:[#allocation8 + $0xb0] ss:$8 sps:$4 sm:$0xff]  }
 0x466   :  { %7752 = vmatprep.subr.bf16.mxu1 %v11433_v36  ;;  %8316 = vmatpush1.bf16.msra.mxu0 %v11518_v35  ;;  %v11523_v36 = vld [vmem:[#allocation8 + $0xc4] ss:$8 sps:$4 sm:$0xff]  }
 0x467   :  { %8317 = vmatprep.subr.bf16.mxu0 %v11523_v36  ;;  %v11553_v35 = vld [vmem:[#allocation8 + $0x164] ss:$8 sps:$4 sm:$0xff]   ;;  %v11551_v36 = vld [vmem:[#allocation8 + $0x160] ss:$8 sps:$4 sm:$0xff]  }
 0x469   :  { %7753 = vmatpush1.bf16.msra.mxu1 %v11431_v8  ;;  %v11521_v8 = vld [vmem:[#allocation8 + $0xc0] ss:$8 sps:$4 sm:$0xff]  }
 0x46a   :  { %7754 = vmatprep.subr.bf16.mxu1 %v11436_v9  ;;  %8318 = vmatpush1.bf16.msra.mxu0 %v11521_v8  ;;  %v11556_v8 = vld [vmem:[#allocation8 + $0x174] ss:$8 sps:$4 sm:$0xff]  }
 0x46d   :  { %7755 = vmatpush1.bf16.msra.mxu1 %v11434_v22 }
 0x46e   :  { %7765 = vmatprep.subr.bf16.mxu1 %v11439_v13 }
 0x470   :  { %7757 = vmatmul.mubr.bf16.vlgmr.msra.gmra.mrb[4].mxu1 %v12130_v61  ;;  %v11452_v61 = vld [vmem:[#allocation3 + $0x1ea8] ss:$16 sps:$4 sm:$0xff]  }
 0x471   :  { %7766 = vmatpush1.bf16.msra.mxu1 %v11437_v42  ;;  %7797 = vmatprep.mubr.bf16.mxu1 %v12134_v6  ;;  %v11455_v6 = vld [vmem:[#allocation3 + $0x1ec8] ss:$16 sps:$4 sm:$0xff]  }
 0x472   :  { %7767 = vmatprep.subr.bf16.mxu1 %v11442_v40 }
 0x475   :  { %7768 = vmatpush1.bf16.msra.mxu1 %v11440_v15 }
 0x476   :  { %7769 = vmatprep.subr.bf16.mxu1 %v11445_v16  ;;  %v11524_v16 = vld [vmem:[#allocation8 + $0xd0] ss:$8 sps:$4 sm:$0xff]  }
 0x479   :  { %7770 = vmatpush1.bf16.msra.mxu1 %v11443_v24 }
 0x47a   :  { %7771 = vmatprep.subr.bf16.mxu1 %v11448_v19  ;;  %v11529_v19 = vld [vmem:[#allocation8 + $0xe4] ss:$8 sps:$4 sm:$0xff]  }
 0x47d   :  { %7772 = vmatpush1.bf16.msra.mxu1 %v11446_v20  ;;  %v11527_v20 = vld [vmem:[#allocation8 + $0xe0] ss:$8 sps:$4 sm:$0xff]  }
 0x47e   :  { %7773 = vmatprep.subr.bf16.mxu1 %v11451_v21  ;;  %v11532_v21 = vld [vmem:[#allocation8 + $0xf4] ss:$8 sps:$4 sm:$0xff]  }
 0x481   :  { %7774 = vmatpush1.bf16.msra.mxu1 %v11449_v25  ;;  %v11530_v25 = vld [vmem:[#allocation8 + $0xf0] ss:$8 sps:$4 sm:$0xff]  }
 0x482   :  { %7775 = vmatprep.subr.bf16.mxu1 %v11454_v50  ;;  %v7838_v50 = vsub.s32 0, %v11904_v43 }
 0x485   :  { %7776 = vmatpush1.bf16.msra.mxu1 %v11452_v61  ;;  %v7846_v61 = vsub.s32 2, %v11904_v43 }
 0x486   :  { %7777 = vmatprep.subr.bf16.mxu1 %v11457_v54  ;;  %v7850_v54 = vsub.s32 3, %v11904_v43 }
 0x489   :  { %7778 = vmatpush1.bf16.msra.mxu1 %v11455_v6  ;;  %v7834_v6 = vld [vmem:[#allocation6] sm:$0xf] }
 0x48a   :  { %7779 = vmatprep.subr.bf16.mxu1 %v11460_v26  ;;  %v11778_v26 = vmov 1983009808   ;;  %v7839_v29 = vrot.slane %v7834_v6, %v7838_v50  ;;  %v7851_v33 = vrot.slane %v7834_v6, %v7850_v54  ;;  %v11580_v54 = vld [vmem:[#allocation8 + $0x1f4] ss:$8 sps:$4 sm:$0xff]  }
 0x48d   :  { %7780 = vmatpush1.bf16.msra.mxu1 %v11458_v28  ;;  %v7813_v28 = vunpack.c.l.s4 %v11778_v26  ;;  %v11581_v26 = vld [vmem:[%s12248_s5 + $0x40] sm:$0xff]  }
 0x48e   :  { %7781 = vmatprep.subr.bf16.mxu1 %v11463_v56  ;;  %v7847_v56 = vrot.slane %v7834_v6, %v7846_v61  ;;  %v11575_v61 = vld [vmem:[#allocation8 + $0x1e0] ss:$8 sps:$4 sm:$0xff]  }
 0x48f   :  { %v7814_v34 = vunpack.c.0.s8 %v7813_v28  ;;  %v11582_v28 = vld [vmem:[%s12248_s5] sm:$0xff]  }
 0x490   :  { %v7853_v37 = vcombine.low %v7847_v56, %v7851_v33  ;;  %v11584_v56 = vld [vmem:[%s12248_s5 + $0x8] sm:$0xff]   ;;  %v11585_v33 = vld [vmem:[%s12248_s5 + $0x50] sm:$0xff]  }
 0x491   :  { %7782 = vmatpush1.bf16.msra.mxu1 %v11461_v7 }
 0x492   :  { %7783 = vmatprep.subr.bf16.mxu1 %v11466_v38  ;;  %v7817_v38 = vsub.s32 %v7814_v34, %v11904_v43  ;;  %v11586_v34 = vld [vmem:[%s12248_s5 + $0x10] sm:$0xff]  }
 0x494   :  { %v7867_v41 = vrot.slane %v7853_v37, %v7817_v38  ;;  %v11588_v37 = vld [vmem:[%s12248_s5 + $0x18] sm:$0xff]  }
 0x495   :  { %7784 = vmatpush1.bf16.msra.mxu1 %v11464_v39 }
 0x496   :  { %7785 = vmatprep.subr.bf16.mxu1 %v11469_v49 }
 0x499   :  { %7786 = vmatpush1.bf16.msra.mxu1 %v11467_v44 }
 0x49a   :  { %7787 = vmatprep.subr.bf16.mxu1 %v11472_v46 }
 0x49d   :  { %7788 = vmatpush1.bf16.msra.mxu1 %v11470_v14 }
 0x49e   :  { %7789 = vmatprep.subr.bf16.mxu1 %v11475_v48 }
 0x4a1   :  { %7790 = vmatpush1.bf16.msra.mxu1 %v11473_v51 }
 0x4a2   :  { %7791 = vmatprep.subr.bf16.mxu1 %v11478_v53 }
 0x4a5   :  { %7792 = vmatpush1.bf16.msra.mxu1 %v11476_v57  ;;  %v11533_v57 = vld [vmem:[#allocation8 + $0x100] ss:$8 sps:$4 sm:$0xff]  }
 0x4a6   :  { %7793 = vmatprep.subr.bf16.mxu1 %v11481_v55 }
 0x4a9   :  { %7794 = vmatpush1.bf16.msra.mxu1 %v11479_v12 }
 0x4aa   :  { %7795 = vmatprep.subr.bf16.mxu1 %v11484_v23  ;;  %v11541_v23 = vld [vmem:[#allocation8 + $0x124] ss:$8 sps:$4 sm:$0xff]  }
 0x4ad   :  { %7796 = vmatpush1.bf16.msra.mxu1 %v11482_v60  ;;  %v11544_v60 = vld [vmem:[#allocation8 + $0x134] ss:$8 sps:$4 sm:$0xff]  }
 0x4b0   :  { %7798 = vmatmul.mubr.bf16.vlgmr.msra.gmra.mrb[4].mxu1 %v12142_v0  ;;  %v11526_v0 = vld [vmem:[#allocation8 + $0xd4] ss:$8 sps:$4 sm:$0xff]  }
 0x4b1   :  { %8319 = vmatprep.subr.bf16.mxu0 %v11526_v0  ;;  %v11565_v0 = vld [vmem:[#allocation8 + $0x1a4] ss:$8 sps:$4 sm:$0xff]  }
 0x4b2   :  { %8320 = vmatpush1.bf16.msra.mxu0 %v11524_v16  ;;  %v11568_v16 = vld [vmem:[#allocation8 + $0x1b4] ss:$8 sps:$4 sm:$0xff]  }
 0x4b3   :  { %8321 = vmatprep.subr.bf16.mxu0 %v11529_v19  ;;  %v11571_v19 = vld [vmem:[#allocation8 + $0x1c4] ss:$8 sps:$4 sm:$0xff]  }
 0x4b6   :  { %8322 = vmatpush1.bf16.msra.mxu0 %v11527_v20  ;;  %v11569_v20 = vld [vmem:[#allocation8 + $0x1c0] ss:$8 sps:$4 sm:$0xff]  }
 0x4b7   :  { %8323 = vmatprep.subr.bf16.mxu0 %v11532_v21  ;;  %v11574_v21 = vld [vmem:[#allocation8 + $0x1d4] ss:$8 sps:$4 sm:$0xff]  }
 0x4ba   :  { %8324 = vmatpush1.bf16.msra.mxu0 %v11530_v25  ;;  %v11572_v25 = vld [vmem:[#allocation8 + $0x1d0] ss:$8 sps:$4 sm:$0xff]  }
 0x504   :  { %v7143_v9 = vpop.f32.mrb[0].mxu0 }
 0x505   :  { %v9806_v22 = vadd.f32 %v7143_v9, %v11981_v4  ;;  %v7145_v13 = vpop.f32.mrb[1].mxu0  ;;  %v11535_v4 = vld [vmem:[#allocation8 + $0x104] ss:$8 sps:$4 sm:$0xff]   ;;  %v11554_v9 = vld [vmem:[#allocation8 + $0x170] ss:$8 sps:$4 sm:$0xff]  }
 0x506   :  { %v9807_v42 = vadd.f32 %v7145_v13, %v11983_v5  ;;  %v7147_v40 = vpop.f32.mrb[2].mxu0  ;;  %8334 = vmatprep.subr.bf16.mxu0 %v11535_v4  ;;  %v7842_v5 = vsub.s32 1, %v11904_v43  ;;  %v11557_v13 = vld [vmem:[#allocation8 + $0x180] ss:$8 sps:$4 sm:$0xff]   ;;  %v11577_v4 = vld [vmem:[#allocation8 + $0x1e4] ss:$8 sps:$4 sm:$0xff]  }
 0x507   :  { %v7148_v15 = vpop.f32.mrb[3].mxu0  ;;  %v11560_v40 = vld [vmem:[#allocation8 + $0x190] ss:$8 sps:$4 sm:$0xff]  }
 0x508   :  { %v7810_v24 = vcombine.low %v9806_v22, %v9807_v42  ;;  %v7843_v10 = vrot.slane %v7834_v6, %v7842_v5  ;;  %v11559_v22 = vld [vmem:[#allocation8 + $0x184] ss:$8 sps:$4 sm:$0xff]   ;;  %v11562_v42 = vld [vmem:[#allocation8 + $0x194] ss:$8 sps:$4 sm:$0xff]   ;;  %v11563_v15 = vld [vmem:[#allocation8 + $0x1a0] ss:$8 sps:$4 sm:$0xff]  }
 0x509   :  { %v11578_v6 = vld [vmem:[#allocation8 + $0x1f0] ss:$8 sps:$4 sm:$0xff]  }
 0x50a   :  { %v7852_v7 = vcombine.low %v7839_v29, %v7843_v10  ;;  %v7818_v46 = vrot.slane %v7810_v24, %v7817_v38  ;;  %v11566_v24 = vld [vmem:[#allocation8 + $0x1b0] ss:$8 sps:$4 sm:$0xff]   ;;  %v11583_v10 = vld [vmem:[%s12248_s5 + $0x48] sm:$0xff]  }
 0x50b   :  { %v11600_v43 = vld [vmem:[%s12250_s7 + $0x18] sm:$0xff]  }
 0x50c   :  { %v7860_v39 = vrot.slane %v7852_v7, %v7817_v38  ;;  %v11587_v7 = vld [vmem:[%s12248_s5 + $0x58] sm:$0xff]  }
 0x50e   :  { %v7868_v14 = vcombine.low %v7860_v39, %v7867_v41  ;;  %v11591_v39 = vld [vmem:[%s12248_s5 + $0x68] sm:$0xff]  }
 0x50f   :  { %v11592_v41 = vld [vmem:[%s12248_s5 + $0x28] sm:$0xff]  }
 0x583   :  { %v7799_v32 = vpop.f32.mrb[4].mxu1 }
 0x584   :  { %v7801_v49 = vpop.f32.mrb[5].mxu1 }
 0x585   :  { %v7811_v11 = vcombine.low %v7799_v32, %v7801_v49  ;;  %v7803_v44 = vpop.f32.mrb[6].mxu1  ;;  %v11590_v32 = vld [vmem:[%s12248_s5 + $0x20] sm:$0xff]   ;;  %v11593_v49 = vld [vmem:[%s12248_s5 + $0x70] sm:$0xff]  }
 0x586   :  { %v7804_v3 = vpop.f32.mrb[7].mxu1  ;;  %v11595_v44 = vld [vmem:[%s12248_s5 + $0x78] sm:$0xff]  }
 0x587   :  { %v7825_v47 = vrot.slane %v7811_v11, %v7817_v38  ;;  %v11594_v11 = vld [vmem:[%s12248_s5 + $0x30] sm:$0xff]   ;;  %v11596_v3 = vld [vmem:[%s12248_s5 + $0x38] sm:$0xff]  }
 0x589   :  { %v7826_v18 = vcombine.low %v7818_v46, %v7825_v47  ;;  %v11597_v46 = vld [vmem:[%s12250_s7] sm:$0xff]   ;;  %v11779_v47 = vmov 0.0  }
 0x58a   :  { %9794 = vmatprep.subr.bf16.mxu1 %v11779_v47  ;;  %9802 = vmatprep.mubr.msk.bf16.mxu1 %vm11780_vm0, %v11779_v47 }
 0x58b   :  { %v7870_v48 = vadd.f32 %v7868_v14, %v7826_v18  ;;  %9795 = vmatpush3.bf16.msra.mxu1 %v11597_v46  ;;  %v11598_v14 = vld [vmem:[%s12250_s7 + $0x8] sm:$0xff]   ;;  %v7961_v18 = vld [vmem:[#allocation9] sm:$0x3] }
 0x58c   :  { %9796 = vmatprep.subr.bf16.mxu1 %v11779_v47 }
 0x58d   :  { %v7879_v30 = vrot.slane %v7870_v48, %v7817_v38  ;;  %v7872_v51 = vcombine.high %v7870_v48, %v7870_v48  ;;  %v7966_v48 = vrot.slane %v7961_v18, %v7838_v50 }
 0x58f   :  { %v7887_v52 = vcombine.high %v7879_v30, %v7879_v30  ;;  %v12161_v53 = vrot.slane %v7872_v51, %v7817_v38  ;;  %v7893_v55 = vpack.c.bf16 %v7879_v30, %v7879_v30  ;;  %v11589_v38 = vld [vmem:[%s12248_s5 + $0x60] sm:$0xff]   ;;  %9797 = vmatpush3.bf16.msra.mxu1 %v11598_v14  ;;  %v7970_v30 = vrot.slane %v7961_v18, %v7842_v5 }
 0x590   :  { %9798 = vmatprep.subr.bf16.mxu1 %v11779_v47  ;;  %v9744_v5 = vld [vmem:[#allocation11] ss:$0 sm:$0xff] }
 0x591   :  { %v7894_v45 = vpack.c.bf16 %v7887_v52, %v7887_v52  ;;  %v7888_v17 = vcombine.high %v12161_v53, %v12161_v53  ;;  %v7895_v29 = vpack.c.bf16 %v12161_v53, %v12161_v53 }
 0x593   :  { %8325 = vmatprep.mubr.bf16.mxu0 %v7894_v45  ;;  %v7896_v12 = vpack.c.bf16 %v7888_v17, %v7888_v17 }
 0x594   :  { %8326 = vmatmul.mubr.bf16.vlgmr.msra.gmra.mrb[4].mxu0 %v7893_v55 }
 0x595   :  { %8335 = vmatpush1.bf16.msra.mxu0 %v11533_v57  ;;  %8366 = vmatprep.mubr.bf16.mxu0 %v7896_v12  ;;  %v11599_v12 = vld [vmem:[%s12250_s7 + $0x10] sm:$0xff]   ;;  %s11735_s7 = scalar_lea.vmem %s8645_s11, 32 }
 0x596   :  { %8336 = vmatprep.subr.bf16.mxu0 %v11538_v27  ;;  %9799 = vmatpush3.bf16.msra.mxu1 %v11599_v12  ;;  %p11736_p6 = scmp.ne.s32.totalorder %s8645_s11, %s11735_s7  ;;  %p11741_p8 = scmp.lt.s32.totalorder %s11735_s7, %s11735_s7 }
 0x597   :  { %9800 = vmatprep.subr.bf16.mxu1 %v11779_v47 }
 0x598   :  { %p11742_p9 = por %p11741_p8, %p11740_p7 }
 0x599   :  { %8337 = vmatpush1.bf16.msra.mxu0 %v11536_v58 }
 0x59a   :  { %8338 = vmatprep.subr.bf16.mxu0 %v11541_v23  ;;  %9801 = vmatpush3.bf16.msra.mxu1 %v11600_v43  ;;  %p11743_p10 = pnand %p11742_p9, %p11736_p6 }
 0x59d   :  { %8339 = vmatpush1.bf16.msra.mxu0 %v11539_v59 }
 0x59e   :  { %8340 = vmatprep.subr.bf16.mxu0 %v11544_v60 }
 0x5a1   :  { %8341 = vmatpush1.bf16.msra.mxu0 %v11542_v31 }
 0x5a2   :  { %8342 = vmatprep.subr.bf16.mxu0 %v11547_v62 }
 0x5a5   :  { %8343 = vmatpush1.bf16.msra.mxu0 %v11545_v63  ;;  %v9761_v63 = vld [vmem:[#allocation12] ss:$0 sm:$0xff] }
 0x5a6   :  { %8344 = vmatprep.subr.bf16.mxu0 %v11550_v1 }
 0x5a9   :  { %8345 = vmatpush1.bf16.msra.mxu0 %v11548_v2 }
 0x5aa   :  { %8346 = vmatprep.subr.bf16.mxu0 %v11553_v35 }
 0x5ad   :  { %8347 = vmatpush1.bf16.msra.mxu0 %v11551_v36 }
 0x5ae   :  { %8348 = vmatprep.subr.bf16.mxu0 %v11556_v8 }
 0x5b1   :  { %8349 = vmatpush1.bf16.msra.mxu0 %v11554_v9 }
 0x5b2   :  { %8350 = vmatprep.subr.bf16.mxu0 %v11559_v22 }
 0x5b5   :  { %8351 = vmatpush1.bf16.msra.mxu0 %v11557_v13 }
 0x5b6   :  { %8352 = vmatprep.subr.bf16.mxu0 %v11562_v42 }
 0x5b9   :  { %8353 = vmatpush1.bf16.msra.mxu0 %v11560_v40 }
 0x5ba   :  { %8354 = vmatprep.subr.bf16.mxu0 %v11565_v0 }
 0x5bd   :  { %8355 = vmatpush1.bf16.msra.mxu0 %v11563_v15 }
 0x5be   :  { %8356 = vmatprep.subr.bf16.mxu0 %v11568_v16 }
 0x5c1   :  { %8357 = vmatpush1.bf16.msra.mxu0 %v11566_v24 }
 0x5c2   :  { %8358 = vmatprep.subr.bf16.mxu0 %v11571_v19 }
 0x5c5   :  { %8359 = vmatpush1.bf16.msra.mxu0 %v11569_v20 }
 0x5c6   :  { %8360 = vmatprep.subr.bf16.mxu0 %v11574_v21 }
 0x5c9   :  { %8361 = vmatpush1.bf16.msra.mxu0 %v11572_v25 }
 0x5ca   :  { %8362 = vmatprep.subr.bf16.mxu0 %v11577_v4 }
 0x5cd   :  { %8363 = vmatpush1.bf16.msra.mxu0 %v11575_v61 }
 0x5ce   :  { %8364 = vmatprep.subr.bf16.mxu0 %v11580_v54 }
 0x5d1   :  { %8365 = vmatpush1.bf16.msra.mxu0 %v11578_v6 }
 0x5d2   :  { %9767 = vmatprep.subr.bf16.mxu0 %v11581_v26 }
 0x5d4   :  { %8367 = vmatmul.mubr.bf16.vlgmr.msra.gmra.mrb[4].mxu0 %v7895_v29 }
 0x5d5   :  { %9768 = vmatpush3.bf16.msra.mxu0 %v11582_v28 }
 0x5d6   :  { %9769 = vmatprep.subr.bf16.mxu0 %v11583_v10 }
 0x5d9   :  { %9770 = vmatpush3.bf16.msra.mxu0 %v11584_v56 }
 0x5da   :  { %9771 = vmatprep.subr.bf16.mxu0 %v11585_v33 }
 0x5dd   :  { %9772 = vmatpush3.bf16.msra.mxu0 %v11586_v34 }
 0x5de   :  { %9773 = vmatprep.subr.bf16.mxu0 %v11587_v7 }
 0x5e1   :  { %9774 = vmatpush3.bf16.msra.mxu0 %v11588_v37 }
 0x5e2   :  { %9775 = vmatprep.subr.bf16.mxu0 %v11589_v38 }
 0x5e5   :  { %9776 = vmatpush3.bf16.msra.mxu0 %v11590_v32 }
 0x5e6   :  { %9777 = vmatprep.subr.bf16.mxu0 %v11591_v39 }
 0x5e9   :  { %9778 = vmatpush3.bf16.msra.mxu0 %v11592_v41 }
 0x5ea   :  { %9779 = vmatprep.subr.bf16.mxu0 %v11593_v49 }
 0x5ed   :  { %9780 = vmatpush3.bf16.msra.mxu0 %v11594_v11 }
 0x5ee   :  { %9781 = vmatprep.subr.bf16.mxu0 %v11595_v44 }
 0x5f1   :  { %9782 = vmatpush3.bf16.msra.mxu0 %v11596_v3 }
 0x6a7   :  { %v8368_v51 = vpop.f32.mrb[4].mxu0 }
 0x6a8   :  { %v9808_v52 = vadd.f32 %v8368_v51, %v7966_v48  ;;  %v8370_v53 = vpop.f32.mrb[5].mxu0 }
 0x6a9   :  { %v9809_v45 = vadd.f32 %v8370_v53, %v7970_v30  ;;  %v8372_v57 = vpop.f32.mrb[6].mxu0 }
 0x6aa   :  { %v8373_v17 = vpop.f32.mrb[7].mxu0  ;;  %v8375_v27 = vpack.c.bf16 %v9808_v52, %v9808_v52 }
 0x6ab   :  { %v8376_v55 = vpack.c.bf16 %v9809_v45, %v9809_v45 }
 0x6ad   :  { %8544 = vmatprep.mubr.bf16.mxu0 %v8376_v55 }
 0x6ae   :  { %8545 = vmatmul.mubr.bf16.vlgmr.msra.gmra.mrb[8].mxu0 %v8375_v27 }
 0x781   :  { %v9783_v50 = vpop.f32.mrb[8].mxu0 }
 0x782   :  { %v9784_v58 = vpop.f32.mrb[9].mxu0 }
 0x783   :  { %v9785_v23 = vadd.f32 %v9784_v58, %v9783_v50  ;;  %v9786_v59 = vpop.f32.mrb[10].mxu0 }
 0x784   :  { %v9787_v60 = vpop.f32.mrb[11].mxu0 }
 0x785   :  { %v8547_v31 = vadd.f32 %v9785_v23, %v9744_v5 }
 0x787   :  { %v8552_v62 = vpack.c.bf16 %v8547_v31, %v8547_v31 }
 0x789   :  { %9803 = vmatmul.mubr.msk.bf16.vlgmr.msra.gmra.mrb[8].mxu1 %vm8592_vm1, %v8552_v62 }
 0x85c   :  { %v8630_v1 = vpop.f32.mrb[8].mxu1 }
 0x85d   :  { %v8631_v2 = vadd.f32 %v9761_v63, %v8630_v1  ;;  %v9804_v35 = vpop.f32.mrb[9].mxu1 }
 0x85e   :  { %v8633_v36 = vpop.f32.mrb[10].mxu1 }
 0x85f   :  { %v9805_v8 = vpop.f32.mrb[11].mxu1  ;;  %8637 = vst.msk [vmem:[#allocation14] sm:$0x3] %vm8636_vm2, %v8631_v2 }
 0x860   :  { %11746 = shalt.err (!%p11743_p10)
}
 0x861   :  { %s11747_s14 = scalar_lea.hbm %s12252_s9, 32 }
 0x862   :  { %p11748_p11 = scmp.ne.s32.totalorder %s12252_s9, %s11747_s14  ;;  %p11751_p12 = scmp.lt.u32.totalorder %s11747_s14, %s12252_s9 }
 0x864   :  { %p11753_p13 = pnand %p11751_p12, %p11748_p11 }
 0x866   :  { %11756 = shalt.err (!%p11753_p13)
}
 0x867   :  { %8647 = dma.vmem_to_hbm [thread:$0]  %s8645_s11, 32, %s12252_s9, [#allocation5]  }
 0x868   :  { %11765 = dma.done.wait [#allocation5], 32  }
 0x869   :  { %11766 = vsyncadd [#allocation5], 4294967264 }
 0x86a   :  { %8651 = vsyncpa [#allocation4], 1 }
 0x86b   :  { %8652 = vsyncpa [#allocation7], 1 }
 0x86c   :  { %8653 = vsyncpa [#allocation10], 1 }
 0x86d   :  { %8654 = vsyncpa [#allocation13], 1 }
 0x86e   :  { %8655 = vsyncpa [#allocation5], 1 }

</bundles_post_ra>
